<compile_context>
chip_gen: v5e
topology: v5e:2x2
jax: 0.10.0
libtpu: 0.0.40
codegen_flags: <defaults>
</compile_context>

<pallas_src>
import functools

import jax
import jax.numpy as jnp
from jax import lax
from jax.experimental import pallas as pl
from jax.experimental.pallas import tpu as pltpu


_VMEM_LIMIT = 48 * 1024 * 1024
_EPS = 1e-5
_SLOPE = 0.2


def _pick_tile(dim, candidates):
    """Largest candidate that divides `dim`; fall back to the full dim."""
    for c in candidates:
        if c <= dim and dim % c == 0:
            return c
    return dim


def _round_up(n, m):
    return ((n + m - 1) // m) * m


# ----------------------------------------------------------------------------
# Kernel 1: conv1 as matmul + bias + LeakyReLU (M-tiled, parallel)
# ----------------------------------------------------------------------------
def _matmul_bias_lrelu_kernel(a_ref, w_ref, b_ref, o_ref, *, slope):
    acc = jnp.dot(a_ref[...], w_ref[...], preferred_element_type=jnp.float32)
    acc = acc + b_ref[...]
    o_ref[...] = jnp.where(acc >= 0.0, acc, slope * acc).astype(o_ref.dtype)


def conv1_matmul(a, w, b, *, slope=_SLOPE):
    M, K = a.shape
    _, N = w.shape
    tm = _pick_tile(M, [512, 256, 128, 64, 32, 16, 8])
    kernel = functools.partial(_matmul_bias_lrelu_kernel, slope=slope)
    return pl.pallas_call(
        kernel,
        out_shape=jax.ShapeDtypeStruct((M, N), jnp.bfloat16),
        grid=(M // tm,),
        in_specs=[
            pl.BlockSpec((tm, K), lambda i: (i, 0)),
            pl.BlockSpec((K, N), lambda i: (0, 0)),
            pl.BlockSpec((1, N), lambda i: (0, 0)),
        ],
        out_specs=pl.BlockSpec((tm, N), lambda i: (i, 0)),
        compiler_params=pltpu.CompilerParams(
            dimension_semantics=("parallel",),
            vmem_limit_bytes=_VMEM_LIMIT),
    )(a, w, b)


# ----------------------------------------------------------------------------
# Kernel 2: conv2 matmul (K-tiled, f32 accumulator) + bias + BN2d + LeakyReLU
# ----------------------------------------------------------------------------
def _matmul_bn_lrelu_kernel(a_ref, w_ref, b_ref, g_ref, bt_ref, o_ref, acc_ref,
                            *, eps, slope):
    k = pl.program_id(0)

    @pl.when(k == 0)
    def _():
        acc_ref[...] = jnp.zeros_like(acc_ref)

    acc_ref[...] += jnp.dot(a_ref[...], w_ref[...],
                            preferred_element_type=jnp.float32)

    @pl.when(k == pl.num_programs(0) - 1)
    def _():
        z = acc_ref[...] + b_ref[...]
        mean = jnp.mean(z, axis=0, keepdims=True)
        diff = z - mean
        var = jnp.mean(diff * diff, axis=0, keepdims=True)   # biased (training)
        y = diff * lax.rsqrt(var + eps) * g_ref[...] + bt_ref[...]
        y = jnp.where(y >= 0.0, y, slope * y)
        o_ref[...] = y.astype(o_ref.dtype)


def conv2_matmul_bn_lrelu(a, w, b, gamma, beta, *, eps=_EPS, slope=_SLOPE):
    M, K = a.shape
    _, N = w.shape
    tk = _pick_tile(K, [512, 256, 128])
    kernel = functools.partial(_matmul_bn_lrelu_kernel, eps=eps, slope=slope)
    return pl.pallas_call(
        kernel,
        out_shape=jax.ShapeDtypeStruct((M, N), jnp.bfloat16),
        grid=(K // tk,),
        in_specs=[
            pl.BlockSpec((M, tk), lambda k: (0, k)),
            pl.BlockSpec((tk, N), lambda k: (k, 0)),
            pl.BlockSpec((1, N), lambda k: (0, 0)),
            pl.BlockSpec((1, N), lambda k: (0, 0)),
            pl.BlockSpec((1, N), lambda k: (0, 0)),
        ],
        out_specs=pl.BlockSpec((M, N), lambda k: (0, 0)),
        scratch_shapes=[pltpu.VMEM((M, N), jnp.float32)],
        compiler_params=pltpu.CompilerParams(
            dimension_semantics=("arbitrary",),
            vmem_limit_bytes=_VMEM_LIMIT),
    )(a, w, b, gamma, beta)


# ----------------------------------------------------------------------------
# Kernel 3: fc1 (K-tiled) + bias + BN1d + LeakyReLU + fc2 + Sigmoid, fully fused
# ----------------------------------------------------------------------------
def _fc_fused_kernel(x_ref, w1_ref, b1_ref, g_ref, bt_ref, w2_ref, b2_ref,
                     o_ref, acc_ref, *, eps, slope):
    k = pl.program_id(0)

    @pl.when(k == 0)
    def _():
        acc_ref[...] = jnp.zeros_like(acc_ref)

    acc_ref[...] += jnp.dot(x_ref[...], w1_ref[...],
                            preferred_element_type=jnp.float32)

    @pl.when(k == pl.num_programs(0) - 1)
    def _():
        z = acc_ref[...] + b1_ref[...]
        mean = jnp.mean(z, axis=0, keepdims=True)
        diff = z - mean
        var = jnp.mean(diff * diff, axis=0, keepdims=True)
        z = diff * lax.rsqrt(var + eps) * g_ref[...] + bt_ref[...]
        z = jnp.where(z >= 0.0, z, slope * z)
        logits = jnp.dot(z.astype(w2_ref.dtype), w2_ref[...],
                         preferred_element_type=jnp.float32) + b2_ref[...]
        o_ref[...] = 1.0 / (1.0 + jnp.exp(-logits))   # f32 sigmoid epilogue


def fc_fused(feat, w1, b1, gamma, beta, w2, b2, *, eps=_EPS, slope=_SLOPE):
    M, K = feat.shape
    _, H = w1.shape          # 1024
    _, P = w2.shape          # padded output lanes (multiple of 128)
    tk = _pick_tile(K, [1024, 512, 256, 128])
    kernel = functools.partial(_fc_fused_kernel, eps=eps, slope=slope)
    cost = pl.CostEstimate(
        flops=2 * M * K * H + 2 * M * H * P,
        transcendentals=M * P + M * H,
        bytes_accessed=(feat.size * feat.dtype.itemsize
                        + w1.size * w1.dtype.itemsize
                        + w2.size * w2.dtype.itemsize
                        + M * P * 4))
    return pl.pallas_call(
        kernel,
        out_shape=jax.ShapeDtypeStruct((M, P), jnp.float32),
        grid=(K // tk,),
        in_specs=[
            pl.BlockSpec((M, tk), lambda k: (0, k)),
            pl.BlockSpec((tk, H), lambda k: (k, 0)),
            pl.BlockSpec((1, H), lambda k: (0, 0)),
            pl.BlockSpec((1, H), lambda k: (0, 0)),
            pl.BlockSpec((1, H), lambda k: (0, 0)),
            pl.BlockSpec((H, P), lambda k: (0, 0)),
            pl.BlockSpec((1, P), lambda k: (0, 0)),
        ],
        out_specs=pl.BlockSpec((M, P), lambda k: (0, 0)),
        scratch_shapes=[pltpu.VMEM((M, H), jnp.float32)],
        compiler_params=pltpu.CompilerParams(
            dimension_semantics=("arbitrary",),
            vmem_limit_bytes=_VMEM_LIMIT),
        cost_estimate=cost,
    )(feat, w1, b1, gamma, beta, w2, b2)


# ----------------------------------------------------------------------------
# Glue: im2col patch extraction (plain JAX, bf16; matmuls run in Pallas)
# ----------------------------------------------------------------------------
def im2col(x_nhwc, kh, kw, stride, pad):
    N, H, W, C = x_nhwc.shape
    Ho = (H + 2 * pad - kh) // stride + 1
    Wo = (W + 2 * pad - kw) // stride + 1
    xp = jnp.pad(x_nhwc, ((0, 0), (pad, pad), (pad, pad), (0, 0)))
    patches = []
    for i in range(kh):
        for j in range(kw):
            patches.append(
                xp[:, i:i + stride * Ho:stride, j:j + stride * Wo:stride, :])
    # (N, Ho, Wo, C, kh*kw); K ordered as (C, kh, kw) to match PyTorch
    # weight.reshape(Cout, Cin*kh*kw) flattening.
    p = jnp.stack(patches, axis=-1)
    return p.reshape(N * Ho * Wo, C * kh * kw), Ho, Wo


# ----------------------------------------------------------------------------
# One-time eager weight prep: no per-call transposes, bf16 matmul operands
# ----------------------------------------------------------------------------
def prepare_params(params, input_size, output_dim):
    h2 = w2 = input_size // 4
    p = {}
    # conv1: (64, Cin, 4, 4) -> (Cin*16, 64)
    p["conv1_w"] = params["conv1_w"].reshape(64, -1).T.astype(jnp.bfloat16)
    p["conv1_b"] = params["conv1_b"].reshape(1, -1).astype(jnp.float32)
    # conv2: (128, 64, 4, 4) -> (64*16, 128)
    p["conv2_w"] = params["conv2_w"].reshape(128, -1).T.astype(jnp.bfloat16)
    p["conv2_b"] = params["conv2_b"].reshape(1, -1).astype(jnp.float32)
    p["bn2_gamma"] = params["bn2_gamma"].reshape(1, -1).astype(jnp.float32)
    p["bn2_beta"] = params["bn2_beta"].reshape(1, -1).astype(jnp.float32)
    # fc1: (1024, 128*h*w) with column order (c,h,w) -> rows in NHWC (h,w,c)
    # order so that `feat = y2_nhwc.reshape(N, -1)` needs no activation permute.
    f1 = params["fc1_w"].reshape(1024, 128, h2, w2)
    p["fc1_w"] = (f1.transpose(2, 3, 1, 0)
                    .reshape(h2 * w2 * 128, 1024).astype(jnp.bfloat16))
    p["fc1_b"] = params["fc1_b"].reshape(1, -1).astype(jnp.float32)
    p["bnfc_gamma"] = params["bnfc_gamma"].reshape(1, -1).astype(jnp.float32)
    p["bnfc_beta"] = params["bnfc_beta"].reshape(1, -1).astype(jnp.float32)
    # fc2: (out, 1024) -> (1024, out_pad) with zero-padded lanes (lane-dense)
    out_pad = _round_up(max(output_dim, 1), 128)
    f2 = params["fc2_w"].T
    p["fc2_w"] = jnp.pad(f2, ((0, 0), (0, out_pad - output_dim))).astype(jnp.bfloat16)
    p["fc2_b"] = (jnp.pad(params["fc2_b"], (0, out_pad - output_dim))
                    .reshape(1, -1).astype(jnp.float32))
    return p


# ----------------------------------------------------------------------------
# Full forward pass
# ----------------------------------------------------------------------------
def discriminator_forward(x_nchw, params, *, input_size, output_dim):
    N = x_nchw.shape[0]
    x = jnp.transpose(x_nchw, (0, 2, 3, 1)).astype(jnp.bfloat16)   # NHWC bf16

    # conv1 + LeakyReLU (Pallas matmul)
    a1, h1, w1o = im2col(x, 4, 4, 2, 1)
    y1 = conv1_matmul(a1, params["conv1_w"], params["conv1_b"])    # (N*h1*w1,64)
    y1 = y1.reshape(N, h1, w1o, 64)

    # conv2 + BatchNorm2d + LeakyReLU (single fused Pallas kernel)
    a2, h2, w2o = im2col(y1, 4, 4, 2, 1)
    y2 = conv2_matmul_bn_lrelu(a2, params["conv2_w"], params["conv2_b"],
                               params["bn2_gamma"], params["bn2_beta"])
    # flatten: fc1_w rows are pre-permuted to NHWC feature order -> plain reshape
    feat = y2.reshape(N, h2 * w2o * 128)

    # fc1 + BatchNorm1d + LeakyReLU + fc2 + Sigmoid (single fused Pallas kernel)
    out = fc_fused(feat, params["fc1_w"], params["fc1_b"],
                   params["bnfc_gamma"], params["bnfc_beta"],
                   params["fc2_w"], params["fc2_b"])
    return out[:, :output_dim]


# ----------------------------------------------------------------------------
# Deterministic parameter init (mimics utils.initialize_weights: normal(0,.02)
# weights, zero biases, BN gamma ~ N(1,.02), BN beta = 0)
# ----------------------------------------------------------------------------
def init_params(key, input_dim, output_dim, input_size):
    ks = jax.random.split(key, 8)
    feat_dim = 128 * (input_size // 4) * (input_size // 4)
    return {
        "conv1_w": 0.02 * jax.random.normal(ks[0], (64, input_dim, 4, 4), jnp.float32),
        "conv1_b": jnp.zeros((64,), jnp.float32),
        "conv2_w": 0.02 * jax.random.normal(ks[1], (128, 64, 4, 4), jnp.float32),
        "conv2_b": jnp.zeros((128,), jnp.float32),
        "bn2_gamma": 1.0 + 0.02 * jax.random.normal(ks[2], (128,), jnp.float32),
        "bn2_beta": jnp.zeros((128,), jnp.float32),
        "fc1_w": 0.02 * jax.random.normal(ks[3], (1024, feat_dim), jnp.float32),
        "fc1_b": jnp.zeros((1024,), jnp.float32),
        "bnfc_gamma": 1.0 + 0.02 * jax.random.normal(ks[4], (1024,), jnp.float32),
        "bnfc_beta": jnp.zeros((1024,), jnp.float32),
        "fc2_w": 0.02 * jax.random.normal(ks[5], (output_dim, 1024), jnp.float32),
        "fc2_b": jnp.zeros((output_dim,), jnp.float32),
    }


if __name__ == "__main__":
    batch, input_dim, output_dim, input_size = 4, 1, 1, 16

    key = jax.random.PRNGKey(0)
    k_x, k_p = jax.random.split(key)
    x = jax.random.normal(k_x, (batch, input_dim, input_size, input_size),
                          jnp.float32)                       # NCHW, like PyTorch
    raw_params = init_params(k_p, input_dim, output_dim, input_size)
    params = prepare_params(raw_params, input_size, output_dim)  # one-time prep

    fwd = jax.jit(functools.partial(discriminator_forward,
                                    input_size=input_size,
                                    output_dim=output_dim))
    out = jax.block_until_ready(fwd(x, params))

    assert out.shape == (batch, output_dim)
    assert bool(jnp.all((out > 0.0) & (out < 1.0)))
    print("KERNEL_OK")
</pallas_src>

<mosaic_0001>
module attributes {stable_mosaic.version = 11 : i64} {
  func.func @_matmul_bias_lrelu_kernel(%arg0: i32, %arg1: memref<256x16xbf16, #tpu.memory_space<vmem>>, %arg2: memref<16x64xbf16, #tpu.memory_space<vmem>>, %arg3: memref<1x64xf32, #tpu.memory_space<vmem>>, %arg4: memref<256x64xbf16, #tpu.memory_space<vmem>>) attributes {dimension_semantics = [#tpu.dimension_semantics<parallel>], iteration_bounds = array<i64: 1>, scalar_prefetch = 0 : i64, scratch_operands = 0 : i64, tpu.core_type = #tpu.core_type<tc>, window_params = [{transform_indices = @transform_0, window_bounds = array<i64: 256, 16>}, {pipeline_mode = #tpu.pipeline_mode<synchronous>, transform_indices = @transform_1, window_bounds = array<i64: 16, 64>}, {pipeline_mode = #tpu.pipeline_mode<synchronous>, transform_indices = @transform_2, window_bounds = array<i64: 1, 64>}, {transform_indices = @transform_3, window_bounds = array<i64: 256, 64>}]} {
    %c0 = arith.constant 0 : index
    %c0_0 = arith.constant 0 : index
    %0 = vector.load %arg1[%c0, %c0_0] : memref<256x16xbf16, #tpu.memory_space<vmem>>, vector<256x16xbf16>
    %c0_1 = arith.constant 0 : index
    %c0_2 = arith.constant 0 : index
    %1 = vector.load %arg2[%c0_1, %c0_2] : memref<16x64xbf16, #tpu.memory_space<vmem>>, vector<16x64xbf16>
    %cst = arith.constant dense<0.000000e+00> : vector<256x64xf32>
    %2 = tpu.matmul %0, %1, %cst {dimension_numbers = #tpu.dot_dimension_numbers<[1], [0], [0], [1], [0, 0, 1, 1], [], []>} : vector<256x16xbf16>, vector<16x64xbf16>, vector<256x64xf32> -> vector<256x64xf32>
    %c0_3 = arith.constant 0 : index
    %c0_4 = arith.constant 0 : index
    %3 = vector.load %arg3[%c0_3, %c0_4] : memref<1x64xf32, #tpu.memory_space<vmem>>, vector<1x64xf32>
    %4 = vector.broadcast %3 : vector<1x64xf32> to vector<256x64xf32>
    %5 = arith.addf %2, %4 : vector<256x64xf32>
    %cst_5 = arith.constant 0.000000e+00 : f32
    %6 = vector.broadcast %cst_5 : f32 to vector<256x64xf32>
    %7 = arith.cmpf oge, %5, %6 : vector<256x64xf32>
    %cst_6 = arith.constant 2.000000e-01 : f32
    %8 = vector.broadcast %cst_6 : f32 to vector<256x64xf32>
    %9 = arith.mulf %8, %5 : vector<256x64xf32>
    %10 = arith.select %7, %5, %9 : vector<256x64xi1>, vector<256x64xf32>
    %11 = arith.truncf %10 : vector<256x64xf32> to vector<256x64xbf16>
    %c0_7 = arith.constant 0 : index
    %c0_8 = arith.constant 0 : index
    %12 = vector.load %arg4[%c0_7, %c0_8] : memref<256x64xbf16, #tpu.memory_space<vmem>>, vector<256x64xbf16>
    tpu.vector_store %arg4[%c0_7, %c0_8], %11 {strides = array<i32>} : memref<256x64xbf16, #tpu.memory_space<vmem>>, vector<256x64xbf16>,
    return
  }
  func.func @transform_0(%arg0: i32) -> (i32, i32) {
    %c0_i32 = arith.constant 0 : i32
    %c0_i32_0 = arith.constant 0 : i32
    return %arg0, %c0_i32 : i32, i32
  }
  func.func @transform_1(%arg0: i32) -> (i32, i32) {
    %c0_i32 = arith.constant 0 : i32
    %c0_i32_0 = arith.constant 0 : i32
    %c0_i32_1 = arith.constant 0 : i32
    return %c0_i32, %c0_i32_0 : i32, i32
  }
  func.func @transform_2(%arg0: i32) -> (i32, i32) {
    %c0_i32 = arith.constant 0 : i32
    %c0_i32_0 = arith.constant 0 : i32
    %c0_i32_1 = arith.constant 0 : i32
    return %c0_i32, %c0_i32_0 : i32, i32
  }
  func.func @transform_3(%arg0: i32) -> (i32, i32) {
    %c0_i32 = arith.constant 0 : i32
    %c0_i32_0 = arith.constant 0 : i32
    return %arg0, %c0_i32 : i32, i32
  }
}

module attributes {stable_mosaic.version = 11 : i64} {
  func.func @_matmul_bn_lrelu_kernel(%arg0: i32, %arg1: memref<64x512xbf16, #tpu.memory_space<vmem>>, %arg2: memref<512x128xbf16, #tpu.memory_space<vmem>>, %arg3: memref<1x128xf32, #tpu.memory_space<vmem>>, %arg4: memref<1x128xf32, #tpu.memory_space<vmem>>, %arg5: memref<1x128xf32, #tpu.memory_space<vmem>>, %arg6: memref<64x128xbf16, #tpu.memory_space<vmem>>, %arg7: memref<64x128xf32, #tpu.memory_space<vmem>>) attributes {dimension_semantics = [#tpu.dimension_semantics<arbitrary>], iteration_bounds = array<i64: 2>, scalar_prefetch = 0 : i64, scratch_operands = 1 : i64, tpu.core_type = #tpu.core_type<tc>, window_params = [{transform_indices = @transform_0, window_bounds = array<i64: 64, 512>}, {transform_indices = @transform_1, window_bounds = array<i64: 512, 128>}, {pipeline_mode = #tpu.pipeline_mode<synchronous>, transform_indices = @transform_2, window_bounds = array<i64: 1, 128>}, {pipeline_mode = #tpu.pipeline_mode<synchronous>, transform_indices = @transform_3, window_bounds = array<i64: 1, 128>}, {pipeline_mode = #tpu.pipeline_mode<synchronous>, transform_indices = @transform_4, window_bounds = array<i64: 1, 128>}, {pipeline_mode = #tpu.pipeline_mode<synchronous>, transform_indices = @transform_5, window_bounds = array<i64: 64, 128>}]} {
    %c0_i32 = arith.constant 0 : i32
    %0 = arith.cmpi eq, %arg0, %c0_i32 : i32
    %1 = arith.extui %0 : i1 to i32
    %c0_i32_0 = arith.constant 0 : i32
    %2 = arith.cmpi ne, %1, %c0_i32_0 : i32
    scf.if %2 {
      %cst_9 = arith.constant 0.000000e+00 : f32
      %12 = vector.broadcast %cst_9 : f32 to vector<64x128xf32>
      %c0_10 = arith.constant 0 : index
      %c0_11 = arith.constant 0 : index
      %13 = vector.load %arg7[%c0_10, %c0_11] : memref<64x128xf32, #tpu.memory_space<vmem>>, vector<64x128xf32>
      tpu.vector_store %arg7[%c0_10, %c0_11], %12 {strides = array<i32>} : memref<64x128xf32, #tpu.memory_space<vmem>>, vector<64x128xf32>,
    } else {
    }
    %c0 = arith.constant 0 : index
    %c0_1 = arith.constant 0 : index
    %3 = vector.load %arg7[%c0, %c0_1] : memref<64x128xf32, #tpu.memory_space<vmem>>, vector<64x128xf32>
    %c0_2 = arith.constant 0 : index
    %c0_3 = arith.constant 0 : index
    %4 = vector.load %arg1[%c0_2, %c0_3] : memref<64x512xbf16, #tpu.memory_space<vmem>>, vector<64x512xbf16>
    %c0_4 = arith.constant 0 : index
    %c0_5 = arith.constant 0 : index
    %5 = vector.load %arg2[%c0_4, %c0_5] : memref<512x128xbf16, #tpu.memory_space<vmem>>, vector<512x128xbf16>
    %cst = arith.constant dense<0.000000e+00> : vector<64x128xf32>
    %6 = tpu.matmul %4, %5, %cst {dimension_numbers = #tpu.dot_dimension_numbers<[1], [0], [0], [1], [0, 0, 1, 1], [], []>} : vector<64x512xbf16>, vector<512x128xbf16>, vector<64x128xf32> -> vector<64x128xf32>
    %7 = arith.addf %3, %6 : vector<64x128xf32>
    %c0_6 = arith.constant 0 : index
    %c0_7 = arith.constant 0 : index
    %8 = vector.load %arg7[%c0_6, %c0_7] : memref<64x128xf32, #tpu.memory_space<vmem>>, vector<64x128xf32>
    tpu.vector_store %arg7[%c0_6, %c0_7], %7 {strides = array<i32>} : memref<64x128xf32, #tpu.memory_space<vmem>>, vector<64x128xf32>,
    %c1_i32 = arith.constant 1 : i32
    %9 = arith.cmpi eq, %arg0, %c1_i32 : i32
    %10 = arith.extui %9 : i1 to i32
    %c0_i32_8 = arith.constant 0 : i32
    %11 = arith.cmpi ne, %10, %c0_i32_8 : i32
    scf.if %11 {
      %c0_9 = arith.constant 0 : index
      %c0_10 = arith.constant 0 : index
      %12 = vector.load %arg7[%c0_9, %c0_10] : memref<64x128xf32, #tpu.memory_space<vmem>>, vector<64x128xf32>
      %c0_11 = arith.constant 0 : index
      %c0_12 = arith.constant 0 : index
      %13 = vector.load %arg3[%c0_11, %c0_12] : memref<1x128xf32, #tpu.memory_space<vmem>>, vector<1x128xf32>
      %14 = vector.broadcast %13 : vector<1x128xf32> to vector<64x128xf32>
      %15 = arith.addf %12, %14 : vector<64x128xf32>
      %cst_13 = arith.constant dense<0.000000e+00> : vector<128xf32>
      %16 = vector.multi_reduction <add>, %15, %cst_13 [0] : vector<64x128xf32> to vector<128xf32>
      %17 = vector.shape_cast %16 : vector<128xf32> to vector<1x128xf32>
      %cst_14 = arith.constant 6.400000e+01 : f32
      %18 = vector.broadcast %cst_14 : f32 to vector<1x128xf32>
      %19 = arith.divf %17, %18 : vector<1x128xf32>
      %20 = vector.broadcast %19 : vector<1x128xf32> to vector<64x128xf32>
      %21 = arith.subf %15, %20 : vector<64x128xf32>
      %22 = arith.mulf %21, %21 : vector<64x128xf32>
      %cst_15 = arith.constant dense<0.000000e+00> : vector<128xf32>
      %23 = vector.multi_reduction <add>, %22, %cst_15 [0] : vector<64x128xf32> to vector<128xf32>
      %24 = vector.shape_cast %23 : vector<128xf32> to vector<1x128xf32>
      %cst_16 = arith.constant 6.400000e+01 : f32
      %25 = vector.broadcast %cst_16 : f32 to vector<1x128xf32>
      %26 = arith.divf %24, %25 : vector<1x128xf32>
      %cst_17 = arith.constant 9.99999974E-6 : f32
      %27 = vector.broadcast %cst_17 : f32 to vector<1x128xf32>
      %28 = arith.addf %26, %27 : vector<1x128xf32>
      %29 = math.rsqrt %28 : vector<1x128xf32>
      %30 = vector.broadcast %29 : vector<1x128xf32> to vector<64x128xf32>
      %31 = arith.mulf %21, %30 : vector<64x128xf32>
      %c0_18 = arith.constant 0 : index
      %c0_19 = arith.constant 0 : index
      %32 = vector.load %arg4[%c0_18, %c0_19] : memref<1x128xf32, #tpu.memory_space<vmem>>, vector<1x128xf32>
      %33 = vector.broadcast %32 : vector<1x128xf32> to vector<64x128xf32>
      %34 = arith.mulf %31, %33 : vector<64x128xf32>
      %c0_20 = arith.constant 0 : index
      %c0_21 = arith.constant 0 : index
      %35 = vector.load %arg5[%c0_20, %c0_21] : memref<1x128xf32, #tpu.memory_space<vmem>>, vector<1x128xf32>
      %36 = vector.broadcast %35 : vector<1x128xf32> to vector<64x128xf32>
      %37 = arith.addf %34, %36 : vector<64x128xf32>
      %cst_22 = arith.constant 0.000000e+00 : f32
      %38 = vector.broadcast %cst_22 : f32 to vector<64x128xf32>
      %39 = arith.cmpf oge, %37, %38 : vector<64x128xf32>
      %cst_23 = arith.constant 2.000000e-01 : f32
      %40 = vector.broadcast %cst_23 : f32 to vector<64x128xf32>
      %41 = arith.mulf %40, %37 : vector<64x128xf32>
      %42 = arith.select %39, %37, %41 : vector<64x128xi1>, vector<64x128xf32>
      %43 = arith.truncf %42 : vector<64x128xf32> to vector<64x128xbf16>
      %c0_24 = arith.constant 0 : index
      %c0_25 = arith.constant 0 : index
      %44 = vector.load %arg6[%c0_24, %c0_25] : memref<64x128xbf16, #tpu.memory_space<vmem>>, vector<64x128xbf16>
      tpu.vector_store %arg6[%c0_24, %c0_25], %43 {strides = array<i32>} : memref<64x128xbf16, #tpu.memory_space<vmem>>, vector<64x128xbf16>,
    } else {
    }
    return
  }
  func.func @transform_0(%arg0: i32) -> (i32, i32) {
    %c0_i32 = arith.constant 0 : i32
    %c0_i32_0 = arith.constant 0 : i32
    return %c0_i32, %arg0 : i32, i32
  }
  func.func @transform_1(%arg0: i32) -> (i32, i32) {
    %c0_i32 = arith.constant 0 : i32
    %c0_i32_0 = arith.constant 0 : i32
    return %arg0, %c0_i32 : i32, i32
  }
  func.func @transform_2(%arg0: i32) -> (i32, i32) {
    %c0_i32 = arith.constant 0 : i32
    %c0_i32_0 = arith.constant 0 : i32
    %c0_i32_1 = arith.constant 0 : i32
    return %c0_i32, %c0_i32_0 : i32, i32
  }
  func.func @transform_3(%arg0: i32) -> (i32, i32) {
    %c0_i32 = arith.constant 0 : i32
    %c0_i32_0 = arith.constant 0 : i32
    %c0_i32_1 = arith.constant 0 : i32
    return %c0_i32, %c0_i32_0 : i32, i32
  }
  func.func @transform_4(%arg0: i32) -> (i32, i32) {
    %c0_i32 = arith.constant 0 : i32
    %c0_i32_0 = arith.constant 0 : i32
    %c0_i32_1 = arith.constant 0 : i32
    return %c0_i32, %c0_i32_0 : i32, i32
  }
  func.func @transform_5(%arg0: i32) -> (i32, i32) {
    %c0_i32 = arith.constant 0 : i32
    %c0_i32_0 = arith.constant 0 : i32
    %c0_i32_1 = arith.constant 0 : i32
    return %c0_i32, %c0_i32_0 : i32, i32
  }
}

module attributes {stable_mosaic.version = 11 : i64} {
  func.func @_fc_fused_kernel(%arg0: i32, %arg1: memref<4x1024xbf16, #tpu.memory_space<vmem>>, %arg2: memref<1024x1024xbf16, #tpu.memory_space<vmem>>, %arg3: memref<1x1024xf32, #tpu.memory_space<vmem>>, %arg4: memref<1x1024xf32, #tpu.memory_space<vmem>>, %arg5: memref<1x1024xf32, #tpu.memory_space<vmem>>, %arg6: memref<1024x128xbf16, #tpu.memory_space<vmem>>, %arg7: memref<1x128xf32, #tpu.memory_space<vmem>>, %arg8: memref<4x128xf32, #tpu.memory_space<vmem>>, %arg9: memref<4x1024xf32, #tpu.memory_space<vmem>>) attributes {dimension_semantics = [#tpu.dimension_semantics<arbitrary>], iteration_bounds = array<i64: 2>, scalar_prefetch = 0 : i64, scratch_operands = 1 : i64, tpu.core_type = #tpu.core_type<tc>, window_params = [{transform_indices = @transform_0, window_bounds = array<i64: 4, 1024>}, {transform_indices = @transform_1, window_bounds = array<i64: 1024, 1024>}, {pipeline_mode = #tpu.pipeline_mode<synchronous>, transform_indices = @transform_2, window_bounds = array<i64: 1, 1024>}, {pipeline_mode = #tpu.pipeline_mode<synchronous>, transform_indices = @transform_3, window_bounds = array<i64: 1, 1024>}, {pipeline_mode = #tpu.pipeline_mode<synchronous>, transform_indices = @transform_4, window_bounds = array<i64: 1, 1024>}, {pipeline_mode = #tpu.pipeline_mode<synchronous>, transform_indices = @transform_5, window_bounds = array<i64: 1024, 128>}, {pipeline_mode = #tpu.pipeline_mode<synchronous>, transform_indices = @transform_6, window_bounds = array<i64: 1, 128>}, {pipeline_mode = #tpu.pipeline_mode<synchronous>, transform_indices = @transform_7, window_bounds = array<i64: 4, 128>}]} {
    %c0_i32 = arith.constant 0 : i32
    %0 = arith.cmpi eq, %arg0, %c0_i32 : i32
    %1 = arith.extui %0 : i1 to i32
    %c0_i32_0 = arith.constant 0 : i32
    %2 = arith.cmpi ne, %1, %c0_i32_0 : i32
    scf.if %2 {
      %cst_9 = arith.constant 0.000000e+00 : f32
      %12 = vector.broadcast %cst_9 : f32 to vector<4x1024xf32>
      %c0_10 = arith.constant 0 : index
      %c0_11 = arith.constant 0 : index
      %13 = vector.load %arg9[%c0_10, %c0_11] : memref<4x1024xf32, #tpu.memory_space<vmem>>, vector<4x1024xf32>
      tpu.vector_store %arg9[%c0_10, %c0_11], %12 {strides = array<i32>} : memref<4x1024xf32, #tpu.memory_space<vmem>>, vector<4x1024xf32>,
    } else {
    }
    %c0 = arith.constant 0 : index
    %c0_1 = arith.constant 0 : index
    %3 = vector.load %arg9[%c0, %c0_1] : memref<4x1024xf32, #tpu.memory_space<vmem>>, vector<4x1024xf32>
    %c0_2 = arith.constant 0 : index
    %c0_3 = arith.constant 0 : index
    %4 = vector.load %arg1[%c0_2, %c0_3] : memref<4x1024xbf16, #tpu.memory_space<vmem>>, vector<4x1024xbf16>
    %c0_4 = arith.constant 0 : index
    %c0_5 = arith.constant 0 : index
    %5 = vector.load %arg2[%c0_4, %c0_5] : memref<1024x1024xbf16, #tpu.memory_space<vmem>>, vector<1024x1024xbf16>
    %cst = arith.constant dense<0.000000e+00> : vector<4x1024xf32>
    %6 = tpu.matmul %4, %5, %cst {dimension_numbers = #tpu.dot_dimension_numbers<[1], [0], [0], [1], [0, 0, 1, 1], [], []>} : vector<4x1024xbf16>, vector<1024x1024xbf16>, vector<4x1024xf32> -> vector<4x1024xf32>
    %7 = arith.addf %3, %6 : vector<4x1024xf32>
    %c0_6 = arith.constant 0 : index
    %c0_7 = arith.constant 0 : index
    %8 = vector.load %arg9[%c0_6, %c0_7] : memref<4x1024xf32, #tpu.memory_space<vmem>>, vector<4x1024xf32>
    tpu.vector_store %arg9[%c0_6, %c0_7], %7 {strides = array<i32>} : memref<4x1024xf32, #tpu.memory_space<vmem>>, vector<4x1024xf32>,
    %c1_i32 = arith.constant 1 : i32
    %9 = arith.cmpi eq, %arg0, %c1_i32 : i32
    %10 = arith.extui %9 : i1 to i32
    %c0_i32_8 = arith.constant 0 : i32
    %11 = arith.cmpi ne, %10, %c0_i32_8 : i32
    scf.if %11 {
      %c0_9 = arith.constant 0 : index
      %c0_10 = arith.constant 0 : index
      %12 = vector.load %arg9[%c0_9, %c0_10] : memref<4x1024xf32, #tpu.memory_space<vmem>>, vector<4x1024xf32>
      %c0_11 = arith.constant 0 : index
      %c0_12 = arith.constant 0 : index
      %13 = vector.load %arg3[%c0_11, %c0_12] : memref<1x1024xf32, #tpu.memory_space<vmem>>, vector<1x1024xf32>
      %14 = vector.broadcast %13 : vector<1x1024xf32> to vector<4x1024xf32>
      %15 = arith.addf %12, %14 : vector<4x1024xf32>
      %cst_13 = arith.constant dense<0.000000e+00> : vector<1024xf32>
      %16 = vector.multi_reduction <add>, %15, %cst_13 [0] : vector<4x1024xf32> to vector<1024xf32>
      %17 = vector.shape_cast %16 : vector<1024xf32> to vector<1x1024xf32>
      %cst_14 = arith.constant 4.000000e+00 : f32
      %18 = vector.broadcast %cst_14 : f32 to vector<1x1024xf32>
      %19 = arith.divf %17, %18 : vector<1x1024xf32>
      %20 = vector.broadcast %19 : vector<1x1024xf32> to vector<4x1024xf32>
      %21 = arith.subf %15, %20 : vector<4x1024xf32>
      %22 = arith.mulf %21, %21 : vector<4x1024xf32>
      %cst_15 = arith.constant dense<0.000000e+00> : vector<1024xf32>
      %23 = vector.multi_reduction <add>, %22, %cst_15 [0] : vector<4x1024xf32> to vector<1024xf32>
      %24 = vector.shape_cast %23 : vector<1024xf32> to vector<1x1024xf32>
      %cst_16 = arith.constant 4.000000e+00 : f32
      %25 = vector.broadcast %cst_16 : f32 to vector<1x1024xf32>
      %26 = arith.divf %24, %25 : vector<1x1024xf32>
      %cst_17 = arith.constant 9.99999974E-6 : f32
      %27 = vector.broadcast %cst_17 : f32 to vector<1x1024xf32>
      %28 = arith.addf %26, %27 : vector<1x1024xf32>
      %29 = math.rsqrt %28 : vector<1x1024xf32>
      %30 = vector.broadcast %29 : vector<1x1024xf32> to vector<4x1024xf32>
      %31 = arith.mulf %21, %30 : vector<4x1024xf32>
      %c0_18 = arith.constant 0 : index
      %c0_19 = arith.constant 0 : index
      %32 = vector.load %arg4[%c0_18, %c0_19] : memref<1x1024xf32, #tpu.memory_space<vmem>>, vector<1x1024xf32>
      %33 = vector.broadcast %32 : vector<1x1024xf32> to vector<4x1024xf32>
      %34 = arith.mulf %31, %33 : vector<4x1024xf32>
      %c0_20 = arith.constant 0 : index
      %c0_21 = arith.constant 0 : index
      %35 = vector.load %arg5[%c0_20, %c0_21] : memref<1x1024xf32, #tpu.memory_space<vmem>>, vector<1x1024xf32>
      %36 = vector.broadcast %35 : vector<1x1024xf32> to vector<4x1024xf32>
      %37 = arith.addf %34, %36 : vector<4x1024xf32>
      %cst_22 = arith.constant 0.000000e+00 : f32
      %38 = vector.broadcast %cst_22 : f32 to vector<4x1024xf32>
      %39 = arith.cmpf oge, %37, %38 : vector<4x1024xf32>
      %cst_23 = arith.constant 2.000000e-01 : f32
      %40 = vector.broadcast %cst_23 : f32 to vector<4x1024xf32>
      %41 = arith.mulf %40, %37 : vector<4x1024xf32>
      %42 = arith.select %39, %37, %41 : vector<4x1024xi1>, vector<4x1024xf32>
      %43 = arith.truncf %42 : vector<4x1024xf32> to vector<4x1024xbf16>
      %c0_24 = arith.constant 0 : index
      %c0_25 = arith.constant 0 : index
      %44 = vector.load %arg6[%c0_24, %c0_25] : memref<1024x128xbf16, #tpu.memory_space<vmem>>, vector<1024x128xbf16>
      %cst_26 = arith.constant dense<0.000000e+00> : vector<4x128xf32>
      %45 = tpu.matmul %43, %44, %cst_26 {dimension_numbers = #tpu.dot_dimension_numbers<[1], [0], [0], [1], [0, 0, 1, 1], [], []>} : vector<4x1024xbf16>, vector<1024x128xbf16>, vector<4x128xf32> -> vector<4x128xf32>
      %c0_27 = arith.constant 0 : index
      %c0_28 = arith.constant 0 : index
      %46 = vector.load %arg7[%c0_27, %c0_28] : memref<1x128xf32, #tpu.memory_space<vmem>>, vector<1x128xf32>
      %47 = vector.broadcast %46 : vector<1x128xf32> to vector<4x128xf32>
      %48 = arith.addf %45, %47 : vector<4x128xf32>
      %cst_29 = arith.constant 0.000000e+00 : f32
      %49 = vector.broadcast %cst_29 : f32 to vector<4x128xf32>
      %50 = arith.subf %49, %48 : vector<4x128xf32>
      %51 = math.exp %50 : vector<4x128xf32>
      %cst_30 = arith.constant 1.000000e+00 : f32
      %52 = vector.broadcast %cst_30 : f32 to vector<4x128xf32>
      %53 = arith.addf %52, %51 : vector<4x128xf32>
      %cst_31 = arith.constant 1.000000e+00 : f32
      %54 = vector.broadcast %cst_31 : f32 to vector<4x128xf32>
      %55 = arith.divf %54, %53 : vector<4x128xf32>
      %c0_32 = arith.constant 0 : index
      %c0_33 = arith.constant 0 : index
      %56 = vector.load %arg8[%c0_32, %c0_33] : memref<4x128xf32, #tpu.memory_space<vmem>>, vector<4x128xf32>
      tpu.vector_store %arg8[%c0_32, %c0_33], %55 {strides = array<i32>} : memref<4x128xf32, #tpu.memory_space<vmem>>, vector<4x128xf32>,
    } else {
    }
    return
  }
  func.func @transform_0(%arg0: i32) -> (i32, i32) {
    %c0_i32 = arith.constant 0 : i32
    %c0_i32_0 = arith.constant 0 : i32
    return %c0_i32, %arg0 : i32, i32
  }
  func.func @transform_1(%arg0: i32) -> (i32, i32) {
    %c0_i32 = arith.constant 0 : i32
    %c0_i32_0 = arith.constant 0 : i32
    return %arg0, %c0_i32 : i32, i32
  }
  func.func @transform_2(%arg0: i32) -> (i32, i32) {
    %c0_i32 = arith.constant 0 : i32
    %c0_i32_0 = arith.constant 0 : i32
    %c0_i32_1 = arith.constant 0 : i32
    return %c0_i32, %c0_i32_0 : i32, i32
  }
  func.func @transform_3(%arg0: i32) -> (i32, i32) {
    %c0_i32 = arith.constant 0 : i32
    %c0_i32_0 = arith.constant 0 : i32
    %c0_i32_1 = arith.constant 0 : i32
    return %c0_i32, %c0_i32_0 : i32, i32
  }
  func.func @transform_4(%arg0: i32) -> (i32, i32) {
    %c0_i32 = arith.constant 0 : i32
    %c0_i32_0 = arith.constant 0 : i32
    %c0_i32_1 = arith.constant 0 : i32
    return %c0_i32, %c0_i32_0 : i32, i32
  }
  func.func @transform_5(%arg0: i32) -> (i32, i32) {
    %c0_i32 = arith.constant 0 : i32
    %c0_i32_0 = arith.constant 0 : i32
    %c0_i32_1 = arith.constant 0 : i32
    return %c0_i32, %c0_i32_0 : i32, i32
  }
  func.func @transform_6(%arg0: i32) -> (i32, i32) {
    %c0_i32 = arith.constant 0 : i32
    %c0_i32_0 = arith.constant 0 : i32
    %c0_i32_1 = arith.constant 0 : i32
    return %c0_i32, %c0_i32_0 : i32, i32
  }
  func.func @transform_7(%arg0: i32) -> (i32, i32) {
    %c0_i32 = arith.constant 0 : i32
    %c0_i32_0 = arith.constant 0 : i32
    %c0_i32_1 = arith.constant 0 : i32
    return %c0_i32, %c0_i32_0 : i32, i32
  }
}

</mosaic_0001>

<bundles_post_ra>
// kernel: discriminator_forward.3
= control target key start
LH: loop header
LB: loop body
LE: loop exit
PB: predicated region body
PF: predicated region fallthrough
CT: control target
= control target key end

     0   :  { %8 = vsyncpa [#allocation3], 0  ;;  %s891_s0 = inlined_call_operand.vmem [shape: bf16[256,16], index: 0, kind: input, shape index: {}]   ;;  %s892_s1 = inlined_call_operand.hbm [shape: bf16[16,64], index: 1, kind: input, shape index: {}]   ;;  %s893_s2 = inlined_call_operand.hbm [shape: f32[1,64], index: 2, kind: input, shape index: {}]   ;;  %s894_s3 = inlined_call_operand.vmem [shape: bf16[256,64], index: 3, kind: output, shape index: {}]  }
   0x1   :  { %s16_s14 = sshll.u32 %s892_s1, 4  ;;  %s17_s14 = int_to_ptr.hbm [resolvable:$true] %s16_s14 }
   0x2   :  { %9 = vsyncpa [#allocation5], 0  ;;  %s635_s15 = smov [#allocation2]   ;;  %s30_s19 = sshll.u32 %s893_s2, 4  ;;  %s31_s19 = int_to_ptr.hbm [resolvable:$true] %s30_s19 }
   0x3   :  { %s18_s16 = sshll.u32 %s635_s15, 4  ;;  %s636_s20 = smov 64   ;;  %s19_s16 = int_to_ptr.vmem [resolvable:$true] %s18_s16 }
   0x4   :  { %s637_s21 = smov 4   ;;  %s638_s22 = smov [#allocation4]  }
   0x5   :  { %24 = dma.hbm_to_vmem [thread:$0]  %s17_s14, 128, %s19_s16, [#allocation3], %s636_s20, %s636_s20, %s637_s21  }
   0x6   :  { %s32_s23 = sshll.u32 %s638_s22, 4  ;;  %s33_s23 = int_to_ptr.vmem [resolvable:$true] %s32_s23 }
   0x7   :  { %35 = dma.hbm_to_vmem [thread:$0]  %s31_s19, 16, %s33_s23, [#allocation5]  }
   0x8   :  { %631 = dma.done.wait [#allocation3], 128  }
   0x9   :  { %632 = vsyncadd [#allocation3], 4294967168 }
   0xa   :  { %633 = dma.done.wait [#allocation5], 16  }
   0xb   :  { %634 = vsyncadd [#allocation5], 4294967280  ;;  %v574_v0 = vld [vmem:[#allocation2] sm:$0xff]  ;;  %vm169_vm0 = vcmask 130048   ;;  %v559_v5 = vld [vmem:[%s891_s0 + $0x8] sm:$0xff]  ;;  %vm435_vm3 = vcmask 519168  }
   0xc   :  { %v558_v1 = vld [vmem:[%s891_s0] sm:$0xff]  ;;  %225 = vmatpush.bf16.msra.mxu0 %v574_v0  ;;  %575 = vmatpush.bf16.msra.mxu1 %v574_v0  ;;  %v563_v6 = vld [vmem:[%s891_s0 + $0x28] sm:$0xff]  ;;  %v560_v9 = vld [vmem:[%s891_s0 + $0x10] sm:$0xff] }
   0xd   :  { %v562_v2 = vld [vmem:[%s891_s0 + $0x20] sm:$0xff]  ;;  %576 = vmatpush.bf16.msra.mxu2 %v574_v0  ;;  %577 = vmatpush.bf16.msra.mxu3 %v574_v0  ;;  %v567_v7 = vld [vmem:[%s891_s0 + $0x48] sm:$0xff]  ;;  %v564_v10 = vld [vmem:[%s891_s0 + $0x30] sm:$0xff] }
   0xe   :  { %v566_v3 = vld [vmem:[%s891_s0 + $0x40] sm:$0xff]  ;;  %v571_v8 = vld [vmem:[%s891_s0 + $0x68] sm:$0xff]  ;;  %v568_v11 = vld [vmem:[%s891_s0 + $0x50] sm:$0xff] }
   0xf   :  { %v570_v4 = vld [vmem:[%s891_s0 + $0x60] sm:$0xff]  ;;  %542 = vmatmul.msk.bf16.vlgmr.msra.gmra.mxu0 %vm169_vm0, %v558_v1  ;;  %546 = vmatmul.msk.bf16.vlgmr.msra.gmra.mxu1 %vm169_vm0, %v562_v2  ;;  %v572_v12 = vld [vmem:[%s891_s0 + $0x70] sm:$0xff]  ;;  %v561_v13 = vld [vmem:[%s891_s0 + $0x18] sm:$0xff] }
  0x10   :  { %550 = vmatmul.msk.bf16.vlgmr.msra.gmra.mxu2 %vm169_vm0, %v566_v3  ;;  %554 = vmatmul.msk.bf16.vlgmr.msra.gmra.mxu3 %vm169_vm0, %v570_v4  ;;  %v565_v14 = vld [vmem:[%s891_s0 + $0x38] sm:$0xff]  ;;  %v729_v17 = vld [vmem:[#allocation4] ss:$0 sm:$0xff] }
  0x11   :  { %v569_v15 = vld [vmem:[%s891_s0 + $0x58] sm:$0xff] }
  0x12   :  { %v573_v16 = vld [vmem:[%s891_s0 + $0x78] sm:$0xff] }
  0x1f   :  { %543 = vmatmul.msk.bf16.gmra.mxu0 %vm169_vm0, %v559_v5  ;;  %547 = vmatmul.msk.bf16.gmra.mxu1 %vm169_vm0, %v563_v6 }
  0x20   :  { %551 = vmatmul.msk.bf16.gmra.mxu2 %vm169_vm0, %v567_v7  ;;  %555 = vmatmul.msk.bf16.gmra.mxu3 %vm169_vm0, %v571_v8 }
  0x2f   :  { %544 = vmatmul.msk.bf16.gmra.mxu0 %vm169_vm0, %v560_v9  ;;  %548 = vmatmul.msk.bf16.gmra.mxu1 %vm169_vm0, %v564_v10 }
  0x30   :  { %552 = vmatmul.msk.bf16.gmra.mxu2 %vm169_vm0, %v568_v11  ;;  %556 = vmatmul.msk.bf16.gmra.mxu3 %vm169_vm0, %v572_v12 }
  0x3f   :  { %545 = vmatmul.msk.bf16.gmra.mxu0 %vm169_vm0, %v561_v13  ;;  %549 = vmatmul.msk.bf16.gmra.mxu1 %vm169_vm0, %v565_v14 }
  0x40   :  { %553 = vmatmul.msk.bf16.gmra.mxu2 %vm169_vm0, %v569_v15  ;;  %557 = vmatmul.msk.bf16.gmra.mxu3 %vm169_vm0, %v573_v16 }
  0x8c   :  { %v227_v18 = vpop.f32.mrf.mxu0  ;;  %v247_v19 = vpop.f32.mrf.mxu1 }
  0x8d   :  { %v228_v20 = vadd.f32 %v729_v17, %v227_v18  ;;  %v248_v21 = vadd.f32 %v729_v17, %v247_v19 }
  0x8f   :  { %vm307_vm1 = vcmp.ge.f32.partialorder %v228_v20, 0.0  ;;  %v339_v22 = vmul.f32 0.2, %v228_v20  ;;  %vm315_vm2 = vcmp.ge.f32.partialorder %v248_v21, 0.0  ;;  %v347_v23 = vmul.f32 0.2, %v248_v21 }
  0x91   :  { %v371_v24 = vsel %vm307_vm1, %v228_v20, %v339_v22  ;;  %v379_v25 = vsel %vm315_vm2, %v248_v21, %v347_v23 }
  0x92   :  { %v403_v26 = vpack.c.bf16 %v371_v24, %v371_v24  ;;  %v411_v27 = vpack.c.bf16 %v379_v25, %v379_v25 }
  0x93   :  { %v267_v28 = vpop.f32.mrf.mxu2  ;;  %v287_v29 = vpop.f32.mrf.mxu3 }
  0x94   :  { %436 = vst.msk [vmem:[%s894_s3] sm:$0xf] %vm435_vm3, %v403_v26  ;;  %v268_v30 = vadd.f32 %v729_v17, %v267_v28  ;;  %v288_v31 = vadd.f32 %v729_v17, %v287_v29  ;;  %v229_v32 = vpop.f32.mrf.mxu0  ;;  %v249_v33 = vpop.f32.mrf.mxu1 }
  0x95   :  { %444 = vst.msk [vmem:[%s894_s3 + $0x20] sm:$0xf] %vm435_vm3, %v411_v27  ;;  %v230_v34 = vadd.f32 %v729_v17, %v229_v32  ;;  %v250_v35 = vadd.f32 %v729_v17, %v249_v33 }
  0x96   :  { %vm323_vm4 = vcmp.ge.f32.partialorder %v268_v30, 0.0  ;;  %v355_v36 = vmul.f32 0.2, %v268_v30  ;;  %vm331_vm5 = vcmp.ge.f32.partialorder %v288_v31, 0.0  ;;  %v363_v37 = vmul.f32 0.2, %v288_v31 }
  0x97   :  { %vm308_vm6 = vcmp.ge.f32.partialorder %v230_v34, 0.0  ;;  %v340_v38 = vmul.f32 0.2, %v230_v34  ;;  %vm316_vm7 = vcmp.ge.f32.partialorder %v250_v35, 0.0  ;;  %v348_v39 = vmul.f32 0.2, %v250_v35 }
  0x98   :  { %v387_v40 = vsel %vm323_vm4, %v268_v30, %v355_v36  ;;  %v395_v41 = vsel %vm331_vm5, %v288_v31, %v363_v37 }
  0x99   :  { %v419_v42 = vpack.c.bf16 %v387_v40, %v387_v40  ;;  %v427_v43 = vpack.c.bf16 %v395_v41, %v395_v41  ;;  %v372_v44 = vsel %vm308_vm6, %v230_v34, %v340_v38  ;;  %v380_v45 = vsel %vm316_vm7, %v250_v35, %v348_v39 }
  0x9a   :  { %v404_v46 = vpack.c.bf16 %v372_v44, %v372_v44  ;;  %v412_v47 = vpack.c.bf16 %v380_v45, %v380_v45 }
  0x9b   :  { %452 = vst.msk [vmem:[%s894_s3 + $0x40] sm:$0xf] %vm435_vm3, %v419_v42  ;;  %v269_v48 = vpop.f32.mrf.mxu2  ;;  %v289_v49 = vpop.f32.mrf.mxu3 }
  0x9c   :  { %460 = vst.msk [vmem:[%s894_s3 + $0x60] sm:$0xf] %vm435_vm3, %v427_v43  ;;  %v270_v50 = vadd.f32 %v729_v17, %v269_v48  ;;  %v290_v51 = vadd.f32 %v729_v17, %v289_v49  ;;  %v232_v52 = vpop.f32.mrf.mxu0  ;;  %v252_v53 = vpop.f32.mrf.mxu1 }
  0x9d   :  { %437 = vst.msk [vmem:[%s894_s3 + $0x4] sm:$0xf] %vm435_vm3, %v404_v46  ;;  %v233_v54 = vadd.f32 %v729_v17, %v232_v52  ;;  %v253_v55 = vadd.f32 %v729_v17, %v252_v53 }
  0x9e   :  { %445 = vst.msk [vmem:[%s894_s3 + $0x24] sm:$0xf] %vm435_vm3, %v412_v47  ;;  %vm324_vm8 = vcmp.ge.f32.partialorder %v270_v50, 0.0  ;;  %v356_v56 = vmul.f32 0.2, %v270_v50  ;;  %vm332_vm9 = vcmp.ge.f32.partialorder %v290_v51, 0.0 }
  0x9f   :  { %v364_v57 = vmul.f32 0.2, %v290_v51  ;;  %vm309_vm10 = vcmp.ge.f32.partialorder %v233_v54, 0.0  ;;  %v341_v58 = vmul.f32 0.2, %v233_v54  ;;  %vm317_vm11 = vcmp.ge.f32.partialorder %v253_v55, 0.0 }
  0xa0   :  { %v388_v59 = vsel %vm324_vm8, %v270_v50, %v356_v56  ;;  %v349_v60 = vmul.f32 0.2, %v253_v55 }
  0xa1   :  { %v420_v61 = vpack.c.bf16 %v388_v59, %v388_v59  ;;  %v396_v62 = vsel %vm332_vm9, %v290_v51, %v364_v57  ;;  %v373_v63 = vsel %vm309_vm10, %v233_v54, %v341_v58 }
  0xa2   :  { %v428_v0 = vpack.c.bf16 %v396_v62, %v396_v62  ;;  %v405_v1 = vpack.c.bf16 %v373_v63, %v373_v63  ;;  %v381_v2 = vsel %vm317_vm11, %v253_v55, %v349_v60 }
  0xa3   :  { %453 = vst.msk [vmem:[%s894_s3 + $0x44] sm:$0xf] %vm435_vm3, %v420_v61  ;;  %v413_v3 = vpack.c.bf16 %v381_v2, %v381_v2  ;;  %v272_v4 = vpop.f32.mrf.mxu2  ;;  %v292_v5 = vpop.f32.mrf.mxu3 }
  0xa4   :  { %461 = vst.msk [vmem:[%s894_s3 + $0x64] sm:$0xf] %vm435_vm3, %v428_v0  ;;  %v273_v6 = vadd.f32 %v729_v17, %v272_v4  ;;  %v293_v7 = vadd.f32 %v729_v17, %v292_v5  ;;  %v234_v8 = vpop.f32.mrf.mxu0  ;;  %v254_v9 = vpop.f32.mrf.mxu1 }
  0xa5   :  { %438 = vst.msk [vmem:[%s894_s3 + $0x8] sm:$0xf] %vm435_vm3, %v405_v1  ;;  %v235_v10 = vadd.f32 %v729_v17, %v234_v8  ;;  %v255_v11 = vadd.f32 %v729_v17, %v254_v9 }
  0xa6   :  { %446 = vst.msk [vmem:[%s894_s3 + $0x28] sm:$0xf] %vm435_vm3, %v413_v3  ;;  %vm325_vm12 = vcmp.ge.f32.partialorder %v273_v6, 0.0  ;;  %v357_v12 = vmul.f32 0.2, %v273_v6  ;;  %vm333_vm13 = vcmp.ge.f32.partialorder %v293_v7, 0.0 }
  0xa7   :  { %v365_v13 = vmul.f32 0.2, %v293_v7  ;;  %vm310_vm14 = vcmp.ge.f32.partialorder %v235_v10, 0.0  ;;  %v342_v14 = vmul.f32 0.2, %v235_v10  ;;  %vm318_vm15 = vcmp.ge.f32.partialorder %v255_v11, 0.0 }
  0xa8   :  { %v389_v15 = vsel %vm325_vm12, %v273_v6, %v357_v12  ;;  %v350_v16 = vmul.f32 0.2, %v255_v11 }
  0xa9   :  { %v421_v18 = vpack.c.bf16 %v389_v15, %v389_v15  ;;  %v397_v19 = vsel %vm333_vm13, %v293_v7, %v365_v13  ;;  %v374_v20 = vsel %vm310_vm14, %v235_v10, %v342_v14 }
  0xaa   :  { %v429_v21 = vpack.c.bf16 %v397_v19, %v397_v19  ;;  %v406_v22 = vpack.c.bf16 %v374_v20, %v374_v20  ;;  %v382_v23 = vsel %vm318_vm15, %v255_v11, %v350_v16 }
  0xab   :  { %454 = vst.msk [vmem:[%s894_s3 + $0x48] sm:$0xf] %vm435_vm3, %v421_v18  ;;  %v414_v24 = vpack.c.bf16 %v382_v23, %v382_v23  ;;  %v274_v25 = vpop.f32.mrf.mxu2  ;;  %v294_v26 = vpop.f32.mrf.mxu3 }
  0xac   :  { %462 = vst.msk [vmem:[%s894_s3 + $0x68] sm:$0xf] %vm435_vm3, %v429_v21  ;;  %v275_v27 = vadd.f32 %v729_v17, %v274_v25  ;;  %v295_v28 = vadd.f32 %v729_v17, %v294_v26  ;;  %v237_v29 = vpop.f32.mrf.mxu0  ;;  %v257_v30 = vpop.f32.mrf.mxu1 }
  0xad   :  { %439 = vst.msk [vmem:[%s894_s3 + $0xc] sm:$0xf] %vm435_vm3, %v406_v22  ;;  %v238_v31 = vadd.f32 %v729_v17, %v237_v29  ;;  %v258_v32 = vadd.f32 %v729_v17, %v257_v30 }
  0xae   :  { %447 = vst.msk [vmem:[%s894_s3 + $0x2c] sm:$0xf] %vm435_vm3, %v414_v24  ;;  %vm326_vm0 = vcmp.ge.f32.partialorder %v275_v27, 0.0  ;;  %v358_v33 = vmul.f32 0.2, %v275_v27  ;;  %vm334_vm1 = vcmp.ge.f32.partialorder %v295_v28, 0.0 }
  0xaf   :  { %v366_v34 = vmul.f32 0.2, %v295_v28  ;;  %vm311_vm2 = vcmp.ge.f32.partialorder %v238_v31, 0.0  ;;  %v343_v35 = vmul.f32 0.2, %v238_v31  ;;  %vm319_vm4 = vcmp.ge.f32.partialorder %v258_v32, 0.0 }
  0xb0   :  { %v390_v36 = vsel %vm326_vm0, %v275_v27, %v358_v33  ;;  %v351_v37 = vmul.f32 0.2, %v258_v32 }
  0xb1   :  { %v422_v38 = vpack.c.bf16 %v390_v36, %v390_v36  ;;  %v398_v39 = vsel %vm334_vm1, %v295_v28, %v366_v34  ;;  %v375_v40 = vsel %vm311_vm2, %v238_v31, %v343_v35 }
  0xb2   :  { %v430_v41 = vpack.c.bf16 %v398_v39, %v398_v39  ;;  %v407_v42 = vpack.c.bf16 %v375_v40, %v375_v40  ;;  %v383_v43 = vsel %vm319_vm4, %v258_v32, %v351_v37 }
  0xb3   :  { %455 = vst.msk [vmem:[%s894_s3 + $0x4c] sm:$0xf] %vm435_vm3, %v422_v38  ;;  %v415_v44 = vpack.c.bf16 %v383_v43, %v383_v43  ;;  %v277_v45 = vpop.f32.mrf.mxu2  ;;  %v297_v46 = vpop.f32.mrf.mxu3 }
  0xb4   :  { %463 = vst.msk [vmem:[%s894_s3 + $0x6c] sm:$0xf] %vm435_vm3, %v430_v41  ;;  %v278_v47 = vadd.f32 %v729_v17, %v277_v45  ;;  %v298_v48 = vadd.f32 %v729_v17, %v297_v46  ;;  %v239_v49 = vpop.f32.mrf.mxu0  ;;  %v259_v50 = vpop.f32.mrf.mxu1 }
  0xb5   :  { %440 = vst.msk [vmem:[%s894_s3 + $0x10] sm:$0xf] %vm435_vm3, %v407_v42  ;;  %v240_v51 = vadd.f32 %v729_v17, %v239_v49  ;;  %v260_v52 = vadd.f32 %v729_v17, %v259_v50 }
  0xb6   :  { %448 = vst.msk [vmem:[%s894_s3 + $0x30] sm:$0xf] %vm435_vm3, %v415_v44  ;;  %vm327_vm5 = vcmp.ge.f32.partialorder %v278_v47, 0.0  ;;  %v359_v53 = vmul.f32 0.2, %v278_v47  ;;  %vm335_vm6 = vcmp.ge.f32.partialorder %v298_v48, 0.0 }
  0xb7   :  { %v367_v54 = vmul.f32 0.2, %v298_v48  ;;  %vm312_vm7 = vcmp.ge.f32.partialorder %v240_v51, 0.0  ;;  %v344_v55 = vmul.f32 0.2, %v240_v51  ;;  %vm320_vm8 = vcmp.ge.f32.partialorder %v260_v52, 0.0 }
  0xb8   :  { %v391_v56 = vsel %vm327_vm5, %v278_v47, %v359_v53  ;;  %v352_v57 = vmul.f32 0.2, %v260_v52 }
  0xb9   :  { %v423_v58 = vpack.c.bf16 %v391_v56, %v391_v56  ;;  %v399_v59 = vsel %vm335_vm6, %v298_v48, %v367_v54  ;;  %v376_v60 = vsel %vm312_vm7, %v240_v51, %v344_v55 }
  0xba   :  { %v431_v61 = vpack.c.bf16 %v399_v59, %v399_v59  ;;  %v408_v62 = vpack.c.bf16 %v376_v60, %v376_v60  ;;  %v384_v63 = vsel %vm320_vm8, %v260_v52, %v352_v57 }
  0xbb   :  { %456 = vst.msk [vmem:[%s894_s3 + $0x50] sm:$0xf] %vm435_vm3, %v423_v58  ;;  %v416_v0 = vpack.c.bf16 %v384_v63, %v384_v63  ;;  %v279_v1 = vpop.f32.mrf.mxu2  ;;  %v299_v2 = vpop.f32.mrf.mxu3 }
  0xbc   :  { %464 = vst.msk [vmem:[%s894_s3 + $0x70] sm:$0xf] %vm435_vm3, %v431_v61  ;;  %v280_v3 = vadd.f32 %v729_v17, %v279_v1  ;;  %v300_v4 = vadd.f32 %v729_v17, %v299_v2  ;;  %v242_v5 = vpop.f32.mrf.mxu0  ;;  %v262_v6 = vpop.f32.mrf.mxu1 }
  0xbd   :  { %441 = vst.msk [vmem:[%s894_s3 + $0x14] sm:$0xf] %vm435_vm3, %v408_v62  ;;  %v243_v7 = vadd.f32 %v729_v17, %v242_v5  ;;  %v263_v8 = vadd.f32 %v729_v17, %v262_v6 }
  0xbe   :  { %449 = vst.msk [vmem:[%s894_s3 + $0x34] sm:$0xf] %vm435_vm3, %v416_v0  ;;  %vm328_vm9 = vcmp.ge.f32.partialorder %v280_v3, 0.0  ;;  %v360_v9 = vmul.f32 0.2, %v280_v3  ;;  %vm336_vm10 = vcmp.ge.f32.partialorder %v300_v4, 0.0 }
  0xbf   :  { %v368_v10 = vmul.f32 0.2, %v300_v4  ;;  %vm313_vm11 = vcmp.ge.f32.partialorder %v243_v7, 0.0  ;;  %v345_v11 = vmul.f32 0.2, %v243_v7  ;;  %vm321_vm12 = vcmp.ge.f32.partialorder %v263_v8, 0.0 }
  0xc0   :  { %v392_v12 = vsel %vm328_vm9, %v280_v3, %v360_v9  ;;  %v353_v13 = vmul.f32 0.2, %v263_v8 }
  0xc1   :  { %v424_v14 = vpack.c.bf16 %v392_v12, %v392_v12  ;;  %v400_v15 = vsel %vm336_vm10, %v300_v4, %v368_v10  ;;  %v377_v16 = vsel %vm313_vm11, %v243_v7, %v345_v11 }
  0xc2   :  { %v432_v18 = vpack.c.bf16 %v400_v15, %v400_v15  ;;  %v409_v19 = vpack.c.bf16 %v377_v16, %v377_v16  ;;  %v385_v20 = vsel %vm321_vm12, %v263_v8, %v353_v13 }
  0xc3   :  { %457 = vst.msk [vmem:[%s894_s3 + $0x54] sm:$0xf] %vm435_vm3, %v424_v14  ;;  %v417_v21 = vpack.c.bf16 %v385_v20, %v385_v20  ;;  %v282_v22 = vpop.f32.mrf.mxu2  ;;  %v302_v23 = vpop.f32.mrf.mxu3 }
  0xc4   :  { %465 = vst.msk [vmem:[%s894_s3 + $0x74] sm:$0xf] %vm435_vm3, %v432_v18  ;;  %v283_v24 = vadd.f32 %v729_v17, %v282_v22  ;;  %v303_v25 = vadd.f32 %v729_v17, %v302_v23  ;;  %v244_v26 = vpop.f32.mrf.mxu0  ;;  %v264_v27 = vpop.f32.mrf.mxu1 }
  0xc5   :  { %442 = vst.msk [vmem:[%s894_s3 + $0x18] sm:$0xf] %vm435_vm3, %v409_v19  ;;  %v245_v28 = vadd.f32 %v729_v17, %v244_v26  ;;  %v265_v29 = vadd.f32 %v729_v17, %v264_v27 }
  0xc6   :  { %450 = vst.msk [vmem:[%s894_s3 + $0x38] sm:$0xf] %vm435_vm3, %v417_v21  ;;  %vm329_vm13 = vcmp.ge.f32.partialorder %v283_v24, 0.0  ;;  %v361_v30 = vmul.f32 0.2, %v283_v24  ;;  %vm337_vm14 = vcmp.ge.f32.partialorder %v303_v25, 0.0 }
  0xc7   :  { %v369_v31 = vmul.f32 0.2, %v303_v25  ;;  %vm314_vm15 = vcmp.ge.f32.partialorder %v245_v28, 0.0  ;;  %v346_v32 = vmul.f32 0.2, %v245_v28  ;;  %vm322_vm0 = vcmp.ge.f32.partialorder %v265_v29, 0.0 }
  0xc8   :  { %v393_v33 = vsel %vm329_vm13, %v283_v24, %v361_v30  ;;  %v354_v34 = vmul.f32 0.2, %v265_v29 }
  0xc9   :  { %v425_v35 = vpack.c.bf16 %v393_v33, %v393_v33  ;;  %v401_v36 = vsel %vm337_vm14, %v303_v25, %v369_v31  ;;  %v378_v37 = vsel %vm314_vm15, %v245_v28, %v346_v32 }
  0xca   :  { %v433_v38 = vpack.c.bf16 %v401_v36, %v401_v36  ;;  %v410_v39 = vpack.c.bf16 %v378_v37, %v378_v37  ;;  %v386_v40 = vsel %vm322_vm0, %v265_v29, %v354_v34 }
  0xcb   :  { %458 = vst.msk [vmem:[%s894_s3 + $0x58] sm:$0xf] %vm435_vm3, %v425_v35  ;;  %v418_v41 = vpack.c.bf16 %v386_v40, %v386_v40  ;;  %v284_v42 = vpop.f32.mrf.mxu2  ;;  %v304_v43 = vpop.f32.mrf.mxu3 }
  0xcc   :  { %466 = vst.msk [vmem:[%s894_s3 + $0x78] sm:$0xf] %vm435_vm3, %v433_v38  ;;  %v285_v44 = vadd.f32 %v729_v17, %v284_v42  ;;  %v305_v45 = vadd.f32 %v729_v17, %v304_v43 }
  0xcd   :  { %443 = vst.msk [vmem:[%s894_s3 + $0x1c] sm:$0xf] %vm435_vm3, %v410_v39 }
  0xce   :  { %451 = vst.msk [vmem:[%s894_s3 + $0x3c] sm:$0xf] %vm435_vm3, %v418_v41  ;;  %vm330_vm1 = vcmp.ge.f32.partialorder %v285_v44, 0.0  ;;  %v362_v46 = vmul.f32 0.2, %v285_v44  ;;  %vm338_vm2 = vcmp.ge.f32.partialorder %v305_v45, 0.0 }
  0xcf   :  { %v370_v47 = vmul.f32 0.2, %v305_v45 }
  0xd0   :  { %v394_v48 = vsel %vm330_vm1, %v285_v44, %v362_v46 }
  0xd1   :  { %v426_v49 = vpack.c.bf16 %v394_v48, %v394_v48  ;;  %v402_v50 = vsel %vm338_vm2, %v305_v45, %v370_v47 }
  0xd2   :  { %v434_v51 = vpack.c.bf16 %v402_v50, %v402_v50 }
  0xd3   :  { %459 = vst.msk [vmem:[%s894_s3 + $0x5c] sm:$0xf] %vm435_vm3, %v426_v49 }
  0xd4   :  { %467 = vst.msk [vmem:[%s894_s3 + $0x7c] sm:$0xf] %vm435_vm3, %v434_v51 }
  0xd5   :  { %472 = vsyncpa [#allocation3], 1 }
  0xd6   :  { %473 = vsyncpa [#allocation5], 1 }

// kernel: discriminator_forward.4
= control target key start
LH: loop header
LB: loop body
LE: loop exit
PB: predicated region body
PF: predicated region fallthrough
CT: control target
= control target key end

     0   :  { %10 = vsyncpa [#allocation5], 0  ;;  %s1642_s0 = inlined_call_operand.vmem [shape: bf16[64,1024], index: 0, kind: input, shape index: {}]   ;;  %s1643_s1 = inlined_call_operand.hbm [shape: bf16[1024,128], index: 1, kind: input, shape index: {}]   ;;  %s1644_s2 = inlined_call_operand.vmem [shape: f32[1,128], index: 2, kind: input, shape index: {}]   ;;  %s1645_s3 = inlined_call_operand.vmem [shape: f32[1,128], index: 3, kind: input, shape index: {}]   ;;  %s1646_s4 = inlined_call_operand.vmem [shape: f32[1,128], index: 4, kind: input, shape index: {}]   ;;  %s1647_s5 = inlined_call_operand.vmem [shape: bf16[64,128], index: 5, kind: output, shape index: {}]  }
   0x1   :  { %12 = vsyncpa [#allocation5 + $0x1], 0  ;;  %s1447_s18 = smov 0   ;;  %s1449_s19 = smov 0  }
   0x2   :  { %s1451_s20 = smov 0   ;;  %s1453_s21 = smov 0  }
   0x3 LB: > { %s1466_s22 = sadd.s32 4294967295, %s1411_s21   ;;  %s1469_s23 = sadd.s32 1, %s1411_s21   ;;  %s1411_s21 = sphi %s1453_s21, %s1653_s21   ;;  %s1407_s20 = sphi %s1451_s20, %s1652_s20   ;;  %s1403_s19 = sphi %s1449_s19, %s1651_s19   ;;  %s1399_s18 = sphi %s1447_s18, %s1650_s18  }
   0x4   : > { %s22_s24 = ssub.s32 %s1411_s21, %s1469_s23  ;;  %s25_s25 = sadd.s32 1, %s1407_s20 }
   0x5   : > { %p23_p0 = scmp.eq.s32.totalorder %s22_s24, 0  ;;  %p32_p1 = scmp.ne.s32.totalorder %s1407_s20, %s1403_s19 }
   0x6   : > { %p33_p2 = scmp.eq.s32.totalorder %s1411_s21, 0  ;;  %p64_p3 = scmp.ne.s32.totalorder %s1403_s19, %s1399_s18 }
   0x7   : > { %s1479_s26 = scalar_select %p23_p0, %s1407_s20, %s25_s25  }
   0x8   : > { %p1481_p4 = por %p33_p2, %p32_p1  ;;  %p65_p5 = scmp.eq.s32.totalorder %s1466_s22, 0 }
   0x9   : > { %p1025_p7 = scmp.ge.s32.totalorder %s1411_s21, 2 }
   0xa   : > { %p1486_p6 = por %p65_p5, %p64_p3 }
   0xb   : > { %177 = sbr.rel (%p1025_p7) target bundleno = 53 (0x35), region = 28 }
  0x10   : > { %180 = sbr.rel (!%p1481_p4) target bundleno = 36 (0x24), region = 32  ;;  %s182_s29 = sand.u32 (%p1481_p4), 1, %s1407_s20  }
  0x11   : > { %s1231_s30 = sshll.u32 (%p1481_p4), %s1411_s21, 4  ;;  %s1026_s6 = sshll.u32 (%p1481_p4), %s182_s29, 7 }
  0x12   : > { %s1498_s9 = scalar_lea.vmem (%p1481_p4), %s1642_s0, %s1231_s30  ;;  %s184_s10 = scalar_lea.vmem (%p1481_p4), [#allocation3], %s1026_s6 }
  0x13   : > { %v200_v0 = vld [vmem:[%s1498_s9] sm:$0xff] (%p1481_p4)  ;;  %v202_v1 = vld [vmem:[%s1498_s9 + $0x8] sm:$0xff] (%p1481_p4) }
  0x14   : > { %v204_v2 = vld [vmem:[%s1498_s9 + $0x20] sm:$0xff] (%p1481_p4)  ;;  %201 = vst [vmem:[%s184_s10] sm:$0xff] (%p1481_p4), %v200_v0  ;;  %v206_v3 = vld [vmem:[%s1498_s9 + $0x28] sm:$0xff] (%p1481_p4) }
  0x15   : > { %203 = vst [vmem:[%s184_s10 + $0x8] sm:$0xff] %v202_v1  ;;  %v208_v4 = vld [vmem:[%s1498_s9 + $0x40] sm:$0xff]  ;;  %v210_v5 = vld [vmem:[%s1498_s9 + $0x48] sm:$0xff] }
  0x16   : > { %205 = vst [vmem:[%s184_s10 + $0x10] sm:$0xff] %v204_v2  ;;  %v212_v6 = vld [vmem:[%s1498_s9 + $0x60] sm:$0xff]  ;;  %v214_v7 = vld [vmem:[%s1498_s9 + $0x68] sm:$0xff] }
  0x17   : > { %207 = vst [vmem:[%s184_s10 + $0x18] sm:$0xff] %v206_v3  ;;  %v216_v8 = vld [vmem:[%s1498_s9 + $0x80] sm:$0xff]  ;;  %v218_v9 = vld [vmem:[%s1498_s9 + $0x88] sm:$0xff] }
  0x18   : > { %209 = vst [vmem:[%s184_s10 + $0x20] sm:$0xff] %v208_v4  ;;  %v220_v10 = vld [vmem:[%s1498_s9 + $0xa0] sm:$0xff]  ;;  %v222_v11 = vld [vmem:[%s1498_s9 + $0xa8] sm:$0xff] }
  0x19   : > { %211 = vst [vmem:[%s184_s10 + $0x28] sm:$0xff] %v210_v5  ;;  %v224_v12 = vld [vmem:[%s1498_s9 + $0xc0] sm:$0xff]  ;;  %v226_v13 = vld [vmem:[%s1498_s9 + $0xc8] sm:$0xff] }
  0x1a   : > { %213 = vst [vmem:[%s184_s10 + $0x30] sm:$0xff] %v212_v6  ;;  %v228_v14 = vld [vmem:[%s1498_s9 + $0xe0] sm:$0xff]  ;;  %v230_v15 = vld [vmem:[%s1498_s9 + $0xe8] sm:$0xff] }
  0x1b   : > { %215 = vst [vmem:[%s184_s10 + $0x38] sm:$0xff] %v214_v7 }
  0x1c   : > { %217 = vst [vmem:[%s184_s10 + $0x40] sm:$0xff] %v216_v8 }
  0x1d   : > { %219 = vst [vmem:[%s184_s10 + $0x48] sm:$0xff] %v218_v9 }
  0x1e   : > { %221 = vst [vmem:[%s184_s10 + $0x50] sm:$0xff] %v220_v10 }
  0x1f   : > { %223 = vst [vmem:[%s184_s10 + $0x58] sm:$0xff] %v222_v11 }
  0x20   : > { %225 = vst [vmem:[%s184_s10 + $0x60] sm:$0xff] %v224_v12 }
  0x21   : > { %227 = vst [vmem:[%s184_s10 + $0x68] sm:$0xff] %v226_v13 }
  0x22   : > { %229 = vst [vmem:[%s184_s10 + $0x70] sm:$0xff] %v228_v14 }
  0x23   : > { %231 = vst [vmem:[%s184_s10 + $0x78] sm:$0xff] %v230_v15 }
  0x24 PF: > { %s238_s11 = sand.u32 1, %s1407_s20   ;;  %s1232_s12 = sshll.u32 %s1411_s21, 8 }
  0x25   : > { %s1029_s13 = sshll.u32 %s238_s11, 8  ;;  %s247_s16 = scalar_lea.hbm %s1643_s1, %s1232_s12 }
  0x26   : > { %s248_s17 = sshll.u32 %s247_s16, 4  ;;  %s242_s18 = scalar_lea.vmem [#allocation4], %s1029_s13  ;;  %s249_s17 = int_to_ptr.hbm [resolvable:$true] %s248_s17 }
  0x27   : > { %s250_s24 = sshll.u32 %s242_s18, 4  ;;  %s239_s25 = scalar_lea.sflag [#allocation5], %s238_s11  ;;  %s251_s24 = int_to_ptr.vmem [resolvable:$true] %s250_s24 }
  0x28   : > { %s1349_s29 = sshra.s32 %s249_s17, 4  ;;  %s1355_s8 = scalar_lea.hbm %s1643_s1, 512  ;;  %s1350_s29 = int_to_ptr.hbm [resolvable:$true] %s1349_s29 }
  0x29   : > { %s1351_s30 = scalar_lea.hbm %s1350_s29, 256  ;;  %p1356_p11 = scmp.lt.s32.totalorder %s1350_s29, %s1643_s1 }
  0x2a   : > { %p1352_p8 = scmp.ne.s32.totalorder %s1350_s29, %s1351_s30  ;;  %p1357_p12 = scmp.lt.s32.totalorder %s1355_s8, %s1351_s30 }
  0x2c   : > { %p1353_p9 = pnand %p1352_p8, %p1481_p4  ;;  %p1358_p13 = por %p1357_p12, %p1356_p11 }
  0x2e   : > { %p1354_p10 = pneg %p1353_p9 }
  0x30   : > { %p1359_p0 = pnand %p1358_p13, %p1354_p10 }
  0x32   : > { %1362 = shalt.err (!%p1359_p0)
}
  0x33   : > { %s1413_s11 = smov 64   ;;  %s1414_s12 = smov 4  }
  0x34   : > { %1304 = dma.hbm_to_vmem [thread:$0]  (%p1481_p4), %s249_s17, 4096, %s251_s24, %s239_s25, %s1413_s11, %s1413_s11, %s1414_s12  }
  0x35 PF: > { %p1032_p1 = scmp.ge.s32.totalorder %s1411_s21, 1  ;;  %p258_p2 = scmp.lt.s32.totalorder %s1411_s21, 3 }
  0x37   : > { %p259_p3 = pnand %p1032_p1, %p258_p2 }
  0x38   : > { %s265_s13 = sand.u32 (!%p259_p3), 1, %s1403_s19  }
  0x39   : > { %262 = sbr.rel (%p259_p3) target bundleno = 409 (0x199), region = 59  ;;  %s1033_s14 = sshll.u32 (!%p259_p3), %s265_s13, 7 }
  0x3a   : > { %s1034_s15 = sshll.u32 (!%p259_p3), %s265_s13, 8  ;;  %s1534_s16 = scalar_lea.vmem (!%p259_p3), [#allocation3], %s1033_s14 }
  0x3b   : > { %s272_s18 = scalar_lea.sflag (!%p259_p3), [#allocation5], %s265_s13  ;;  %s1536_s29 = scalar_lea.vmem (!%p259_p3), [#allocation4], %s1034_s15 }
  0x3e   : > { %1394 = dma.done.wait (%p1486_p6), %s272_s18, 4096  }
  0x3f   : > { %1396 = vsyncadd (%p1486_p6), %s272_s18, 4294963200  ;;  %p1035_p4 = scmp.ne.s32.totalorder %s1466_s22, 0 }
  0x41   : > { %307 = sbr.rel (%p1035_p4) target bundleno = 79 (0x4f), region = 71 }
  0x46   : > { %v1415_v16 = vmov 0.0  }
  0x47   : > { %308 = vst [vmem:[#allocation2 + $0x30] sm:$0xff] %v1415_v16 }
  0x48   : > { %309 = vst [vmem:[#allocation2] sm:$0xff] %v1415_v16 }
  0x49   : > { %310 = vst [vmem:[#allocation2 + $0x18] sm:$0xff] %v1415_v16 }
  0x4a   : > { %311 = vst [vmem:[#allocation2 + $0x10] sm:$0xff] %v1415_v16 }
  0x4b   : > { %312 = vst [vmem:[#allocation2 + $0x8] sm:$0xff] %v1415_v16 }
  0x4c   : > { %313 = vst [vmem:[#allocation2 + $0x20] sm:$0xff] %v1415_v16 }
  0x4d   : > { %314 = vst [vmem:[#allocation2 + $0x28] sm:$0xff] %v1415_v16 }
  0x4e   : > { %315 = vst [vmem:[#allocation2 + $0x38] sm:$0xff] %v1415_v16 }
  0x4f PF: > { %v1256_v17 = vld [vmem:[%s1536_s29 + $0x38] sm:$0xff]  ;;  %v1255_v21 = vld [vmem:[%s1536_s29 + $0x30] sm:$0xff]  ;;  %v1254_v25 = vld [vmem:[%s1536_s29 + $0x28] sm:$0xff]  ;;  %p1228_p5 = scmp.ne.s32.totalorder %s1466_s22, 1 }
  0x50   : > { %v1264_v18 = vld [vmem:[%s1536_s29 + $0x78] sm:$0xff]  ;;  %676 = vmatpush.bf16.msra.mxu0 %v1256_v17  ;;  %v1263_v22 = vld [vmem:[%s1536_s29 + $0x70] sm:$0xff]  ;;  %v1262_v26 = vld [vmem:[%s1536_s29 + $0x68] sm:$0xff] }
  0x51   : > { %v1272_v19 = vld [vmem:[%s1536_s29 + $0xb8] sm:$0xff]  ;;  %705 = vmatpush.bf16.msra.mxu1 %v1264_v18  ;;  %v1271_v23 = vld [vmem:[%s1536_s29 + $0xb0] sm:$0xff]  ;;  %v1270_v27 = vld [vmem:[%s1536_s29 + $0xa8] sm:$0xff] }
  0x52   : > { %v1280_v20 = vld [vmem:[%s1536_s29 + $0xf8] sm:$0xff]  ;;  %734 = vmatpush.bf16.msra.mxu2 %v1272_v19  ;;  %v1279_v24 = vld [vmem:[%s1536_s29 + $0xf0] sm:$0xff]  ;;  %v1278_v28 = vld [vmem:[%s1536_s29 + $0xe8] sm:$0xff] }
  0x53   : > { %763 = vmatpush.bf16.msra.mxu3 %v1280_v20  ;;  %v1253_v29 = vld [vmem:[%s1536_s29 + $0x20] sm:$0xff]  ;;  %v1252_v33 = vld [vmem:[%s1536_s29 + $0x18] sm:$0xff]  ;;  %v1251_v37 = vld [vmem:[%s1536_s29 + $0x10] sm:$0xff] }
  0x54   : > { %677 = vmatpush.bf16.msra.mxu0 %v1255_v21  ;;  %v1261_v30 = vld [vmem:[%s1536_s29 + $0x60] sm:$0xff]  ;;  %v1260_v34 = vld [vmem:[%s1536_s29 + $0x58] sm:$0xff]  ;;  %v1259_v38 = vld [vmem:[%s1536_s29 + $0x50] sm:$0xff] }
  0x55   : > { %706 = vmatpush.bf16.msra.mxu1 %v1263_v22  ;;  %v1269_v31 = vld [vmem:[%s1536_s29 + $0xa0] sm:$0xff]  ;;  %v1268_v35 = vld [vmem:[%s1536_s29 + $0x98] sm:$0xff]  ;;  %v1267_v39 = vld [vmem:[%s1536_s29 + $0x90] sm:$0xff] }
  0x56   : > { %735 = vmatpush.bf16.msra.mxu2 %v1271_v23  ;;  %v1277_v32 = vld [vmem:[%s1536_s29 + $0xe0] sm:$0xff]  ;;  %v1276_v36 = vld [vmem:[%s1536_s29 + $0xd8] sm:$0xff]  ;;  %v1275_v40 = vld [vmem:[%s1536_s29 + $0xd0] sm:$0xff] }
  0x57   : > { %764 = vmatpush.bf16.msra.mxu3 %v1279_v24  ;;  %v1250_v41 = vld [vmem:[%s1536_s29 + $0x8] sm:$0xff]  ;;  %v1249_v45 = vld [vmem:[%s1536_s29] sm:$0xff]  ;;  %v1235_v50 = vld [vmem:[%s1534_s16 + $0xc] sm:$0xf0] }
  0x58   : > { %678 = vmatpush.bf16.msra.mxu0 %v1254_v25  ;;  %v1258_v42 = vld [vmem:[%s1536_s29 + $0x48] sm:$0xff]  ;;  %v1257_v46 = vld [vmem:[%s1536_s29 + $0x40] sm:$0xff]  ;;  %v1040_v52 = vld [vmem:[%s1534_s16 + $0x10] sm:$0xf0] }
  0x59   : > { %707 = vmatpush.bf16.msra.mxu1 %v1262_v26  ;;  %v1266_v43 = vld [vmem:[%s1536_s29 + $0x88] sm:$0xff]  ;;  %v1265_v47 = vld [vmem:[%s1536_s29 + $0x80] sm:$0xff]  ;;  %v1236_v54 = vld [vmem:[%s1534_s16 + $0x14] sm:$0xf0] }
  0x5a   : > { %736 = vmatpush.bf16.msra.mxu2 %v1270_v27  ;;  %v1274_v44 = vld [vmem:[%s1536_s29 + $0xc8] sm:$0xff]  ;;  %v1273_v48 = vld [vmem:[%s1536_s29 + $0xc0] sm:$0xff]  ;;  %v1048_v56 = vld [vmem:[%s1534_s16 + $0x18] sm:$0xf0] }
  0x5b   : > { %765 = vmatpush.bf16.msra.mxu3 %v1278_v28  ;;  %v1038_v49 = vld [vmem:[%s1534_s16] sm:$0xf]  ;;  %v1233_v51 = vld [vmem:[%s1534_s16 + $0x4] sm:$0xf]  ;;  %v1046_v53 = vld [vmem:[%s1534_s16 + $0x8] sm:$0xf] }
  0x5c   : > { %679 = vmatpush.bf16.msra.mxu0 %v1253_v29  ;;  %v1234_v55 = vld [vmem:[%s1534_s16 + $0xc] sm:$0xf]  ;;  %v1039_v57 = vor.u32 %v1235_v50, %v1038_v49  ;;  %v1043_v58 = vor.u32 %v1233_v51, %v1040_v52  ;;  %v1047_v59 = vor.u32 %v1236_v54, %v1046_v53  ;;  %v1054_v61 = vld [vmem:[%s1534_s16 + $0x20] sm:$0xf]  ;;  %v1239_v62 = vld [vmem:[%s1534_s16 + $0x2c] sm:$0xf0] }
  0x5d   : > { %708 = vmatpush.bf16.msra.mxu1 %v1261_v30  ;;  %v1051_v60 = vor.u32 %v1234_v55, %v1048_v56  ;;  %v1237_v63 = vld [vmem:[%s1534_s16 + $0x24] sm:$0xf]  ;;  %v1056_v0 = vld [vmem:[%s1534_s16 + $0x30] sm:$0xf0]  ;;  %v1062_v1 = vld [vmem:[%s1534_s16 + $0x28] sm:$0xf]  ;;  %v1055_v5 = vor.u32 %v1239_v62, %v1054_v61 }
  0x5e   : > { %737 = vmatpush.bf16.msra.mxu2 %v1269_v31  ;;  %v1240_v2 = vld [vmem:[%s1534_s16 + $0x34] sm:$0xf0]  ;;  %v1238_v3 = vld [vmem:[%s1534_s16 + $0x2c] sm:$0xf]  ;;  %v1064_v4 = vld [vmem:[%s1534_s16 + $0x38] sm:$0xf0]  ;;  %v1059_v6 = vor.u32 %v1237_v63, %v1056_v0 }
  0x5f   : > { %766 = vmatpush.bf16.msra.mxu3 %v1277_v32  ;;  %v1063_v7 = vor.u32 %v1240_v2, %v1062_v1  ;;  %v1067_v8 = vor.u32 %v1238_v3, %v1064_v4  ;;  %v1070_v9 = vld [vmem:[%s1534_s16 + $0x40] sm:$0xf]  ;;  %v1243_v10 = vld [vmem:[%s1534_s16 + $0x4c] sm:$0xf0]  ;;  %v1241_v11 = vld [vmem:[%s1534_s16 + $0x44] sm:$0xf] }
  0x60   : > { %680 = vmatpush.bf16.msra.mxu0 %v1252_v33  ;;  %v1072_v12 = vld [vmem:[%s1534_s16 + $0x50] sm:$0xf0]  ;;  %v1078_v13 = vld [vmem:[%s1534_s16 + $0x48] sm:$0xf]  ;;  %v1244_v14 = vld [vmem:[%s1534_s16 + $0x54] sm:$0xf0]  ;;  %v1071_v17 = vor.u32 %v1243_v10, %v1070_v9 }
  0x61   : > { %709 = vmatpush.bf16.msra.mxu1 %v1260_v34  ;;  %v1242_v15 = vld [vmem:[%s1534_s16 + $0x4c] sm:$0xf]  ;;  %v1080_v16 = vld [vmem:[%s1534_s16 + $0x58] sm:$0xf0]  ;;  %v1075_v18 = vor.u32 %v1241_v11, %v1072_v12  ;;  %v1079_v19 = vor.u32 %v1244_v14, %v1078_v13  ;;  %v1086_v21 = vld [vmem:[%s1534_s16 + $0x60] sm:$0xf] }
  0x62   : > { %738 = vmatpush.bf16.msra.mxu2 %v1268_v35  ;;  %v1083_v20 = vor.u32 %v1242_v15, %v1080_v16  ;;  %v1247_v22 = vld [vmem:[%s1534_s16 + $0x6c] sm:$0xf0]  ;;  %v1245_v23 = vld [vmem:[%s1534_s16 + $0x64] sm:$0xf]  ;;  %v1088_v24 = vld [vmem:[%s1534_s16 + $0x70] sm:$0xf0] }
  0x63   : > { %767 = vmatpush.bf16.msra.mxu3 %v1276_v36  ;;  %v1094_v25 = vld [vmem:[%s1534_s16 + $0x68] sm:$0xf]  ;;  %v1248_v26 = vld [vmem:[%s1534_s16 + $0x74] sm:$0xf0]  ;;  %v1246_v27 = vld [vmem:[%s1534_s16 + $0x6c] sm:$0xf]  ;;  %v1087_v29 = vor.u32 %v1247_v22, %v1086_v21  ;;  %v1091_v30 = vor.u32 %v1245_v23, %v1088_v24 }
  0x64   : > { %681 = vmatpush.bf16.msra.mxu0 %v1251_v37  ;;  %v1096_v28 = vld [vmem:[%s1534_s16 + $0x78] sm:$0xf0]  ;;  %v1095_v31 = vor.u32 %v1248_v26, %v1094_v25  ;;  %v317_v50 = vld [vmem:[#allocation2] sm:$0xff]  ;;  %v319_v4 = vld [vmem:[#allocation2 + $0x10] sm:$0xff] }
  0x65   : > { %710 = vmatpush.bf16.msra.mxu1 %v1259_v38  ;;  %v1099_v32 = vor.u32 %v1246_v27, %v1096_v28  ;;  %v320_v13 = vld [vmem:[#allocation2 + $0x8] sm:$0xff] }
  0x66   : > { %739 = vmatpush.bf16.msra.mxu2 %v1267_v39 }
  0x67   : > { %768 = vmatpush.bf16.msra.mxu3 %v1275_v40 }
  0x68   : > { %682 = vmatpush.bf16.msra.mxu0 %v1250_v41  ;;  %v316_v41 = vld [vmem:[#allocation2 + $0x30] sm:$0xff] }
  0x69   : > { %711 = vmatpush.bf16.msra.mxu1 %v1258_v42 }
  0x6a   : > { %740 = vmatpush.bf16.msra.mxu2 %v1266_v43 }
  0x6b   : > { %769 = vmatpush.bf16.msra.mxu3 %v1274_v44 }
  0x6c   : > { %683 = vmatpush.bf16.msra.mxu0 %v1249_v45 }
  0x6d   : > { %712 = vmatpush.bf16.msra.mxu1 %v1257_v46 }
  0x6e   : > { %741 = vmatpush.bf16.msra.mxu2 %v1265_v47 }
  0x6f   : > { %770 = vmatpush.bf16.msra.mxu3 %v1273_v48  ;;  %684 = vmatmul.bf16.vlgmr.msra.gmra.mxu0 %v1039_v57 }
  0x70   : > { %713 = vmatmul.bf16.vlgmr.msra.gmra.mxu1 %v1043_v58 }
  0x71   : > { %742 = vmatmul.bf16.vlgmr.msra.gmra.mxu2 %v1047_v59  ;;  %v318_v59 = vld [vmem:[#allocation2 + $0x18] sm:$0xff] }
  0x72   : > { %771 = vmatmul.bf16.vlgmr.msra.gmra.mxu3 %v1051_v60 }
  0x7f   : > { %689 = vmatmul.bf16.gmra.mxu0 %v1055_v5 }
  0x80   : > { %718 = vmatmul.bf16.gmra.mxu1 %v1059_v6 }
  0x81   : > { %747 = vmatmul.bf16.gmra.mxu2 %v1063_v7 }
  0x82   : > { %776 = vmatmul.bf16.gmra.mxu3 %v1067_v8 }
  0x8f   : > { %694 = vmatmul.bf16.gmra.mxu0 %v1071_v17 }
  0x90   : > { %723 = vmatmul.bf16.gmra.mxu1 %v1075_v18 }
  0x91   : > { %752 = vmatmul.bf16.gmra.mxu2 %v1079_v19 }
  0x92   : > { %781 = vmatmul.bf16.gmra.mxu3 %v1083_v20  ;;  %v321_v20 = vld [vmem:[#allocation2 + $0x20] sm:$0xff] }
  0x9f   : > { %699 = vmatmul.bf16.gmra.mxu0 %v1087_v29  ;;  %v322_v29 = vld [vmem:[#allocation2 + $0x28] sm:$0xff] }
  0xa0   : > { %728 = vmatmul.bf16.gmra.mxu1 %v1091_v30 }
  0xa1   : > { %757 = vmatmul.bf16.gmra.mxu2 %v1095_v31 }
  0xa2   : > { %786 = vmatmul.bf16.gmra.mxu3 %v1099_v32 }
  0xec   : > { %v685_v33 = vpop.f32.mrf.mxu0 }
  0xed   : > { %v714_v34 = vpop.f32.mrf.mxu1 }
  0xee   : > { %v715_v35 = vadd.f32 %v714_v34, %v685_v33 }
  0xf4   : > { %v743_v36 = vpop.f32.mrf.mxu2  ;;  %v687_v39 = vpop.f32.mrf.mxu0 }
  0xf5   : > { %v772_v37 = vpop.f32.mrf.mxu3  ;;  %v744_v38 = vadd.f32 %v743_v36, %v715_v35  ;;  %v716_v40 = vpop.f32.mrf.mxu1 }
  0xf6   : > { %v717_v44 = vadd.f32 %v716_v40, %v687_v39 }
  0xf7   : > { %v773_v42 = vadd.f32 %v772_v37, %v744_v38  ;;  %v323_v37 = vld [vmem:[#allocation2 + $0x38] sm:$0xff] }
  0xf9   : > { %v792_v43 = vadd.f32 %v773_v42, %v316_v41 }
  0xfb   : > { %800 = vst [vmem:[#allocation2 + $0x30] sm:$0xff] %v792_v43 }
  0xfc   : > { %v745_v45 = vpop.f32.mrf.mxu2  ;;  %v690_v48 = vpop.f32.mrf.mxu0 }
  0xfd   : > { %v774_v46 = vpop.f32.mrf.mxu3  ;;  %v746_v47 = vadd.f32 %v745_v45, %v717_v44  ;;  %v719_v49 = vpop.f32.mrf.mxu1 }
  0xfe   : > { %v720_v53 = vadd.f32 %v719_v49, %v690_v48 }
  0xff   : > { %v775_v51 = vadd.f32 %v774_v46, %v746_v47 }
 0x101   : > { %v793_v52 = vadd.f32 %v775_v51, %v317_v50 }
 0x103   : > { %801 = vst [vmem:[#allocation2] sm:$0xff] %v793_v52 }
 0x104   : > { %v748_v54 = vpop.f32.mrf.mxu2  ;;  %v692_v57 = vpop.f32.mrf.mxu0 }
 0x105   : > { %v777_v55 = vpop.f32.mrf.mxu3  ;;  %v749_v56 = vadd.f32 %v748_v54, %v720_v53  ;;  %v721_v58 = vpop.f32.mrf.mxu1 }
 0x106   : > { %v722_v62 = vadd.f32 %v721_v58, %v692_v57 }
 0x107   : > { %v778_v60 = vadd.f32 %v777_v55, %v749_v56 }
 0x109   : > { %v794_v61 = vadd.f32 %v778_v60, %v318_v59 }
 0x10b   : > { %802 = vst [vmem:[#allocation2 + $0x18] sm:$0xff] %v794_v61 }
 0x10c   : > { %v750_v63 = vpop.f32.mrf.mxu2  ;;  %v695_v2 = vpop.f32.mrf.mxu0 }
 0x10d   : > { %v779_v0 = vpop.f32.mrf.mxu3  ;;  %v751_v1 = vadd.f32 %v750_v63, %v722_v62  ;;  %v724_v3 = vpop.f32.mrf.mxu1 }
 0x10e   : > { %v725_v7 = vadd.f32 %v724_v3, %v695_v2 }
 0x10f   : > { %v780_v5 = vadd.f32 %v779_v0, %v751_v1 }
 0x111   : > { %v795_v6 = vadd.f32 %v780_v5, %v319_v4 }
 0x113   : > { %803 = vst [vmem:[#allocation2 + $0x10] sm:$0xff] %v795_v6 }
 0x114   : > { %v753_v8 = vpop.f32.mrf.mxu2  ;;  %v697_v11 = vpop.f32.mrf.mxu0 }
 0x115   : > { %v782_v9 = vpop.f32.mrf.mxu3  ;;  %v754_v10 = vadd.f32 %v753_v8, %v725_v7  ;;  %v726_v12 = vpop.f32.mrf.mxu1 }
 0x116   : > { %v727_v16 = vadd.f32 %v726_v12, %v697_v11 }
 0x117   : > { %v783_v14 = vadd.f32 %v782_v9, %v754_v10 }
 0x119   : > { %v796_v15 = vadd.f32 %v783_v14, %v320_v13 }
 0x11b   : > { %804 = vst [vmem:[#allocation2 + $0x8] sm:$0xff] %v796_v15 }
 0x11c   : > { %v755_v17 = vpop.f32.mrf.mxu2  ;;  %v700_v21 = vpop.f32.mrf.mxu0 }
 0x11d   : > { %v784_v18 = vpop.f32.mrf.mxu3  ;;  %v756_v19 = vadd.f32 %v755_v17, %v727_v16  ;;  %v729_v22 = vpop.f32.mrf.mxu1 }
 0x11e   : > { %v730_v25 = vadd.f32 %v729_v22, %v700_v21 }
 0x11f   : > { %v785_v23 = vadd.f32 %v784_v18, %v756_v19 }
 0x121   : > { %v797_v24 = vadd.f32 %v785_v23, %v321_v20 }
 0x123   : > { %805 = vst [vmem:[#allocation2 + $0x20] sm:$0xff] %v797_v24 }
 0x124   : > { %v758_v26 = vpop.f32.mrf.mxu2  ;;  %v702_v31 = vpop.f32.mrf.mxu0 }
 0x125   : > { %v787_v27 = vpop.f32.mrf.mxu3  ;;  %v759_v28 = vadd.f32 %v758_v26, %v730_v25  ;;  %v731_v32 = vpop.f32.mrf.mxu1 }
 0x126   : > { %v732_v34 = vadd.f32 %v731_v32, %v702_v31 }
 0x127   : > { %v788_v30 = vadd.f32 %v787_v27, %v759_v28 }
 0x129   : > { %v798_v33 = vadd.f32 %v788_v30, %v322_v29 }
 0x12b   : > { %806 = vst [vmem:[#allocation2 + $0x28] sm:$0xff] %v798_v33 }
 0x12c   : > { %v760_v35 = vpop.f32.mrf.mxu2 }
 0x12d   : > { %v761_v36 = vadd.f32 %v760_v35, %v732_v34  ;;  %v789_v38 = vpop.f32.mrf.mxu3 }
 0x12f   : > { %v790_v39 = vadd.f32 %v789_v38, %v761_v36  ;;  %811 = sbr.rel (%p1228_p5) target bundleno = 409 (0x199), region = 75 }
 0x131   : > { %v799_v40 = vadd.f32 %v790_v39, %v323_v37 }
 0x133   : > { %807 = vst [vmem:[#allocation2 + $0x38] sm:$0xff] %v799_v40 }
 0x134   : > { %v812_v41 = vld [vmem:[#allocation2 + $0x30] sm:$0xff]  ;;  %v813_v42 = vld [vmem:[#allocation2] sm:$0xff]  ;;  %v814_v43 = vld [vmem:[#allocation2 + $0x18] sm:$0xff]  ;;  %v1416_v49 = vmov 64.0  }
 0x135   : > { %v1342_v44 = vld [vmem:[%s1644_s2] ss:$0 sm:$0xff]  ;;  %v815_v45 = vld [vmem:[#allocation2 + $0x10] sm:$0xff]  ;;  %1345 = vrcp.f32 %v1416_v49  ;;  %v816_v50 = vld [vmem:[#allocation2 + $0x8] sm:$0xff] }
 0x136   : > { %v824_v46 = vadd.f32 %v1342_v44, %v812_v41  ;;  %v825_v47 = vadd.f32 %v1342_v44, %v813_v42  ;;  %v826_v48 = vadd.f32 %v1342_v44, %v814_v43  ;;  %v827_v51 = vadd.f32 %v1342_v44, %v815_v45  ;;  %v817_v53 = vld [vmem:[#allocation2 + $0x20] sm:$0xff]  ;;  %v818_v56 = vld [vmem:[#allocation2 + $0x28] sm:$0xff] }
 0x137   : > { %v828_v54 = vadd.f32 %v1342_v44, %v816_v50  ;;  %v829_v58 = vadd.f32 %v1342_v44, %v817_v53  ;;  %v830_v61 = vadd.f32 %v1342_v44, %v818_v56  ;;  %v1344_v56 = vld [vmem:[%s1646_s4] ss:$0 sm:$0xff] }
 0x138   : > { %v832_v52 = vadd.f32 %v825_v47, %v824_v46 }
 0x13a   : > { %v833_v55 = vadd.f32 %v832_v52, %v826_v48  ;;  %v819_v60 = vld [vmem:[#allocation2 + $0x38] sm:$0xff]  ;;  %v1343_v52 = vld [vmem:[%s1645_s3] ss:$0 sm:$0xff] }
 0x13b   : > { %v1346_v57 = vpop.eup %1345  ;;  %v831_v0 = vadd.f32 %v1342_v44, %v819_v60 }
 0x13c   : > { %v834_v59 = vadd.f32 %v833_v55, %v827_v51  ;;  %v846_v63 = vmul.f32 64.0, %v1346_v57  ;;  %vm850_vm0 = vweird.f32 %v1346_v57 }
 0x13e   : > { %v835_v62 = vadd.f32 %v834_v59, %v828_v54  ;;  %v847_v3 = vsub.f32 1.0, %v846_v63 }
 0x140   : > { %v836_v1 = vadd.f32 %v835_v62, %v829_v58  ;;  %v848_v6 = vmul.f32 %v1346_v57, %v847_v3 }
 0x142   : > { %v837_v2 = vadd.f32 %v836_v1, %v830_v61  ;;  %v849_v9 = vadd.f32 %v1346_v57, %v848_v6 }
 0x144   : > { %v838_v4 = vadd.f32 %v837_v2, %v831_v0  ;;  %v851_v12 = vsel %vm850_vm0, %v1346_v57, %v849_v9 }
 0x146   : > { %v839_v5 = vrot.slane %v838_v4, 4 }
 0x148   : > { %v840_v7 = vadd.f32 %v839_v5, %v838_v4 }
 0x14a   : > { %v841_v8 = vrot.slane %v840_v7, 2 }
 0x14c   : > { %v842_v10 = vadd.f32 %v841_v8, %v840_v7 }
 0x14e   : > { %v843_v11 = vrot.slane %v842_v10, 1 }
 0x150   : > { %v844_v13 = vadd.f32 %v843_v11, %v842_v10 }
 0x152   : > { %v852_v14 = vmul.f32 %v851_v12, %v844_v13 }
 0x154   : > { %v853_v15 = vsub.f32 %v824_v46, %v852_v14  ;;  %v854_v16 = vsub.f32 %v825_v47, %v852_v14  ;;  %v855_v17 = vsub.f32 %v826_v48, %v852_v14  ;;  %v856_v18 = vsub.f32 %v827_v51, %v852_v14 }
 0x155   : > { %v857_v19 = vsub.f32 %v828_v54, %v852_v14  ;;  %v858_v23 = vsub.f32 %v829_v58, %v852_v14  ;;  %v859_v26 = vsub.f32 %v830_v61, %v852_v14  ;;  %v860_v29 = vsub.f32 %v831_v0, %v852_v14 }
 0x156   : > { %v861_v20 = vmul.f32 %v853_v15, %v853_v15  ;;  %v862_v21 = vmul.f32 %v854_v16, %v854_v16  ;;  %v863_v22 = vmul.f32 %v855_v17, %v855_v17  ;;  %v864_v24 = vmul.f32 %v856_v18, %v856_v18 }
 0x157   : > { %v865_v27 = vmul.f32 %v857_v19, %v857_v19  ;;  %v866_v30 = vmul.f32 %v858_v23, %v858_v23  ;;  %v867_v32 = vmul.f32 %v859_v26, %v859_v26  ;;  %v868_v34 = vmul.f32 %v860_v29, %v860_v29 }
 0x158   : > { %v869_v25 = vadd.f32 %v862_v21, %v861_v20 }
 0x15a   : > { %v870_v28 = vadd.f32 %v869_v25, %v863_v22 }
 0x15c   : > { %v871_v31 = vadd.f32 %v870_v28, %v864_v24 }
 0x15e   : > { %v872_v33 = vadd.f32 %v871_v31, %v865_v27 }
 0x160   : > { %v873_v35 = vadd.f32 %v872_v33, %v866_v30 }
 0x162   : > { %v874_v36 = vadd.f32 %v873_v35, %v867_v32 }
 0x164   : > { %v875_v37 = vadd.f32 %v874_v36, %v868_v34 }
 0x166   : > { %v876_v38 = vrot.slane %v875_v37, 4 }
 0x168   : > { %v877_v39 = vadd.f32 %v876_v38, %v875_v37 }
 0x16a   : > { %v878_v40 = vrot.slane %v877_v39, 2 }
 0x16c   : > { %v879_v41 = vadd.f32 %v878_v40, %v877_v39 }
 0x16e   : > { %v880_v42 = vrot.slane %v879_v41, 1 }
 0x170   : > { %v881_v43 = vadd.f32 %v880_v42, %v879_v41 }
 0x172   : > { %v882_v44 = vmul.f32 %v881_v43, %v851_v12 }
 0x174   : > { %v883_v45 = vadd.f32 1e-05, %v882_v44 }
 0x176   : > { %1347 = vrsqrt.f32 %v883_v45  ;;  %vm890_vm1 = vweird.f32 %v883_v45 }
 0x17c   : > { %v1348_v46 = vpop.eup %1347 }
 0x17d   : > { %v885_v47 = vmul.f32 %v1348_v46, %v883_v45  ;;  %vm891_vm2 = vweird.f32 %v1348_v46 }
 0x17e   : > { %vm892_vm3 = vmor %vm890_vm1, %vm891_vm2 }
 0x17f   : > { %v886_v48 = vmul.f32 %v1348_v46, %v885_v47 }
 0x181   : > { %v887_v49 = vmul.f32 0.5, %v886_v48 }
 0x183   : > { %v888_v50 = vsub.f32 1.5, %v887_v49 }
 0x185   : > { %v889_v51 = vmul.f32 %v1348_v46, %v888_v50 }
 0x187   : > { %v893_v53 = vsel %vm892_vm3, %v1348_v46, %v889_v51 }
 0x188   : > { %v894_v54 = vmul.f32 %v893_v53, %v853_v15  ;;  %v895_v55 = vmul.f32 %v893_v53, %v854_v16  ;;  %v896_v57 = vmul.f32 %v893_v53, %v855_v17  ;;  %v897_v58 = vmul.f32 %v893_v53, %v856_v18 }
 0x189   : > { %v898_v59 = vmul.f32 %v893_v53, %v857_v19  ;;  %v899_v60 = vmul.f32 %v893_v53, %v858_v23  ;;  %v900_v61 = vmul.f32 %v893_v53, %v859_v26  ;;  %v901_v62 = vmul.f32 %v893_v53, %v860_v29 }
 0x18a   : > { %v906_v63 = vmul.f32 %v1343_v52, %v894_v54  ;;  %v907_v0 = vmul.f32 %v1343_v52, %v895_v55  ;;  %v908_v1 = vmul.f32 %v1343_v52, %v896_v57  ;;  %v909_v2 = vmul.f32 %v1343_v52, %v897_v58 }
 0x18b   : > { %v910_v3 = vmul.f32 %v1343_v52, %v898_v59  ;;  %v911_v4 = vmul.f32 %v1343_v52, %v899_v60  ;;  %v912_v5 = vmul.f32 %v1343_v52, %v900_v61  ;;  %v913_v6 = vmul.f32 %v1343_v52, %v901_v62 }
 0x18c   : > { %v918_v7 = vadd.f32 %v1344_v56, %v906_v63  ;;  %v919_v8 = vadd.f32 %v1344_v56, %v907_v0  ;;  %v920_v9 = vadd.f32 %v1344_v56, %v908_v1  ;;  %v921_v10 = vadd.f32 %v1344_v56, %v909_v2 }
 0x18d   : > { %v922_v11 = vadd.f32 %v1344_v56, %v910_v3  ;;  %v923_v12 = vadd.f32 %v1344_v56, %v911_v4  ;;  %v924_v13 = vadd.f32 %v1344_v56, %v912_v5  ;;  %v925_v14 = vadd.f32 %v1344_v56, %v913_v6 }
 0x18e   : > { %vm926_vm4 = vcmp.ge.f32.partialorder %v918_v7, 0.0  ;;  %vm927_vm5 = vcmp.ge.f32.partialorder %v919_v8, 0.0  ;;  %v934_v15 = vmul.f32 0.2, %v918_v7  ;;  %v935_v16 = vmul.f32 0.2, %v919_v8 }
 0x18f   : > { %vm928_vm6 = vcmp.ge.f32.partialorder %v920_v9, 0.0  ;;  %vm929_vm7 = vcmp.ge.f32.partialorder %v921_v10, 0.0  ;;  %v936_v17 = vmul.f32 0.2, %v920_v9  ;;  %v937_v18 = vmul.f32 0.2, %v921_v10 }
 0x190   : > { %v942_v19 = vsel %vm926_vm4, %v918_v7, %v934_v15  ;;  %v943_v20 = vsel %vm927_vm5, %v919_v8, %v935_v16  ;;  %vm930_vm8 = vcmp.ge.f32.partialorder %v922_v11, 0.0  ;;  %vm931_vm9 = vcmp.ge.f32.partialorder %v923_v12, 0.0 }
 0x191   : > { %v1284_v21 = vpack.c.bf16 %v943_v20, %v942_v19  ;;  %v944_v22 = vsel %vm928_vm6, %v920_v9, %v936_v17  ;;  %v945_v23 = vsel %vm929_vm7, %v921_v10, %v937_v18  ;;  %v938_v24 = vmul.f32 0.2, %v922_v11 }
 0x192   : > { %v1289_v25 = vpack.c.bf16 %v945_v23, %v944_v22  ;;  %v939_v26 = vmul.f32 0.2, %v923_v12  ;;  %vm932_vm10 = vcmp.ge.f32.partialorder %v924_v13, 0.0  ;;  %vm933_vm11 = vcmp.ge.f32.partialorder %v925_v14, 0.0 }
 0x193   : > { %1285 = vst [vmem:[%s1647_s5] sm:$0xff] %v1284_v21   ;;  %v946_v27 = vsel %vm930_vm8, %v922_v11, %v938_v24  ;;  %v940_v28 = vmul.f32 0.2, %v924_v13  ;;  %v941_v29 = vmul.f32 0.2, %v925_v14 }
 0x194   : > { %1301 = vst [vmem:[%s1647_s5 + $0x8] sm:$0xff] %v1289_v25   ;;  %v947_v30 = vsel %vm931_vm9, %v923_v12, %v939_v26 }
 0x195   : > { %v1294_v31 = vpack.c.bf16 %v947_v30, %v946_v27  ;;  %v948_v32 = vsel %vm932_vm10, %v924_v13, %v940_v28  ;;  %v949_v33 = vsel %vm933_vm11, %v925_v14, %v941_v29 }
 0x196   : > { %v1299_v34 = vpack.c.bf16 %v949_v33, %v948_v32 }
 0x197   : > { %1302 = vst [vmem:[%s1647_s5 + $0x10] sm:$0xff] %v1294_v31  }
 0x198   : > { %1303 = vst [vmem:[%s1647_s5 + $0x18] sm:$0xff] %v1299_v34  }
 0x199 PF: > { %p15_p6 = scmp.ge.s32.totalorder %s1469_s23, 4   ;;  %s1650_s18 = smov %s1403_s19 }
 0x19a   : > { %s1651_s19 = smov %s1407_s20  ;;  %s1652_s20 = smov %s1479_s26 }
 0x19b   : > { %s1653_s21 = smov %s1469_s23  ;;  %17 = sbr.rel (!%p15_p6) target bundleno = 3 (0x3), region = 115 }
 0x1a0   :  { %977 = vsyncpa [#allocation5], 1 }
 0x1a1   :  { %979 = vsyncpa [#allocation5 + $0x1], 1 }

// kernel: discriminator_forward.5
= control target key start
LH: loop header
LB: loop body
LE: loop exit
PB: predicated region body
PF: predicated region fallthrough
CT: control target
= control target key end

     0   :  { %12 = vsyncpa [#allocation4], 0  ;;  %s8483_s24 = smov 0   ;;  %s10008_s0 = inlined_call_operand.vmem [shape: bf16[4,2048], index: 0, kind: input, shape index: {}]   ;;  %s10009_s1 = inlined_call_operand.vmem [shape: bf16[2048,1024], index: 1, kind: input, shape index: {}]   ;;  %s10010_s2 = inlined_call_operand.vmem [shape: f32[1,1024], index: 2, kind: input, shape index: {}]   ;;  %s10011_s3 = inlined_call_operand.vmem [shape: f32[1,1024], index: 3, kind: input, shape index: {}]   ;;  %s10012_s4 = inlined_call_operand.vmem [shape: f32[1,1024], index: 4, kind: input, shape index: {}]   ;;  %s10013_s5 = inlined_call_operand.hbm [shape: bf16[1024,128], index: 5, kind: input, shape index: {}]   ;;  %s10014_s6 = inlined_call_operand.vmem [shape: f32[1,128], index: 6, kind: input, shape index: {}]   ;;  %s10015_s7 = inlined_call_operand.vmem [shape: f32[4,128], index: 7, kind: output, shape index: {}]  }
   0x1 LB: > { %s221_s27 = sshll.u32 %s10013_s5, 4  ;;  %s8492_s28 = sadd.s32 4294967295, %s8436_s24   ;;  %s8436_s24 = sphi %s8483_s24, %s18_s24   ;;  %s222_s27 = int_to_ptr.hbm [resolvable:$true] %s221_s27 }
   0x2   : > { %p5431_p0 = scmp.ge.s32.totalorder %s8436_s24, 1  ;;  %p201_p1 = scmp.lt.s32.totalorder %s8436_s24, 3 }
   0x3   : > { %p5432_p2 = scmp.ne.s32.totalorder %s8492_s28, 0  ;;  %p8334_p3 = scmp.eq.s32.totalorder %s8492_s28, 0 }
   0x4   : > { %p202_p4 = pnand %p5431_p0, %p201_p1  ;;  %s8438_s29 = smov [#allocation3]  }
   0x5   : > { %s223_s30 = sshll.u32 %s8438_s29, 4  ;;  %s8439_s8 = smov 64   ;;  %s224_s30 = int_to_ptr.vmem [resolvable:$true] %s223_s30 }
   0x6   : > { %p8330_p5 = pneg %p202_p4  ;;  %s8440_s9 = smov 4  }
   0x7   : > { %261 = sbr.rel (%p202_p4) target bundleno = 1260 (0x4ec), region = 48 }
   0x8   : > { %p8331_p6 = pnand %p8334_p3, %p8330_p5 }
   0xa   : > { %8333 = dma.hbm_to_vmem [thread:$0]  (!%p8331_p6), %s222_s27, 8192, %s224_s30, [#allocation4], %s8439_s8, %s8439_s8, %s8440_s9  }
   0xc   : > { %8431 = dma.done.wait (%p8334_p3), [#allocation4], 8192  }
   0xd   : > { %8433 = vsyncadd (%p8334_p3), [#allocation4], 4294959104  ;;  %s5436_s10 = sshll.u32 %s8492_s28, 3  ;;  %s5438_s11 = sshll.u32 %s8492_s28, 7 }
   0xe   : > { %p296_p7 = scmp.lt.s32.totalorder %s5436_s10, 15  ;;  %p302_p8 = scmp.lt.s32.totalorder %s5438_s11, 255 }
   0xf   : > { %311 = sbr.rel (%p5432_p2) target bundleno = 25 (0x19), region = 56 }
  0x10   : > { %s10029_s10 = smov (!%p296_p7, %s5436_s10), 15  ;;  %s10031_s11 = smov (!%p302_p8, %s5438_s11), 255 }
  0x11   : > { %s5437_s12 = sshll.u32 %s10029_s10, 1  ;;  %s7749_s16 = sshll.u32 %s10031_s11, 5 }
  0x12   : > { %s8503_s15 = scalar_lea.vmem %s10008_s0, %s5437_s12  ;;  %s8508_s19 = scalar_lea.vmem %s10009_s1, %s7749_s16 }
  0x14   : > { %v8441_v0 = vmov 0.0  }
  0x15   : > { %312 = vst [vmem:[#allocation2 + $0x10] sm:$0xff] %v8441_v0 }
  0x16   : > { %313 = vst [vmem:[#allocation2] sm:$0xff] %v8441_v0 }
  0x17   : > { %314 = vst [vmem:[#allocation2 + $0x18] sm:$0xff] %v8441_v0 }
  0x18   : > { %315 = vst [vmem:[#allocation2 + $0x8] sm:$0xff] %v8441_v0 }
  0x19 PF: > { %v5668_v1 = vld [vmem:[%s8508_s19 + $0x1c0] sm:$0xf]  ;;  %vm4259_vm0 = vcmask 1043456   ;;  %p7490_p9 = scmp.ne.s32.totalorder %s8492_s28, 1 }
  0x1a   : > { %v7810_v2 = vld [vmem:[%s8508_s19 + $0x1dc] sm:$0xf0] }
  0x1b   : > { %v5924_v3 = vld [vmem:[%s8508_s19 + $0x3c0] sm:$0xf]  ;;  %v5669_v4 = vor.u32 %v7810_v2, %v5668_v1 }
  0x1c   : > { %v7874_v5 = vld [vmem:[%s8508_s19 + $0x3dc] sm:$0xf0] }
  0x1d   : > { %v6180_v6 = vld [vmem:[%s8508_s19 + $0x5c0] sm:$0xf]  ;;  %v5925_v8 = vor.u32 %v7874_v5, %v5924_v3  ;;  %3415 = vmatpush.bf16.msra.mxu0 %v5669_v4 }
  0x1e   : > { %v7938_v7 = vld [vmem:[%s8508_s19 + $0x5dc] sm:$0xf0] }
  0x1f   : > { %v6181_v9 = vor.u32 %v7938_v7, %v6180_v6  ;;  %v6436_v10 = vld [vmem:[%s8508_s19 + $0x7c0] sm:$0xf]  ;;  %3428 = vmatpush.bf16.msra.mxu1 %v5925_v8 }
  0x20   : > { %v8002_v11 = vld [vmem:[%s8508_s19 + $0x7dc] sm:$0xf0] }
  0x21   : > { %v5636_v12 = vld [vmem:[%s8508_s19 + $0x180] sm:$0xf]  ;;  %v6437_v13 = vor.u32 %v8002_v11, %v6436_v10  ;;  %3441 = vmatpush.bf16.msra.mxu2 %v6181_v9 }
  0x22   : > { %v7802_v14 = vld [vmem:[%s8508_s19 + $0x19c] sm:$0xf0] }
  0x23   : > { %v5892_v15 = vld [vmem:[%s8508_s19 + $0x380] sm:$0xf]  ;;  %v5637_v17 = vor.u32 %v7802_v14, %v5636_v12  ;;  %3454 = vmatpush.bf16.msra.mxu3 %v6437_v13 }
  0x24   : > { %v7866_v16 = vld [vmem:[%s8508_s19 + $0x39c] sm:$0xf0] }
  0x25   : > { %v5893_v18 = vor.u32 %v7866_v16, %v5892_v15  ;;  %v6148_v19 = vld [vmem:[%s8508_s19 + $0x580] sm:$0xf]  ;;  %3416 = vmatpush.bf16.msra.mxu0 %v5637_v17 }
  0x26   : > { %v7930_v20 = vld [vmem:[%s8508_s19 + $0x59c] sm:$0xf0] }
  0x27   : > { %v6404_v21 = vld [vmem:[%s8508_s19 + $0x780] sm:$0xf]  ;;  %v6149_v22 = vor.u32 %v7930_v20, %v6148_v19  ;;  %3429 = vmatpush.bf16.msra.mxu1 %v5893_v18 }
  0x28   : > { %v7994_v23 = vld [vmem:[%s8508_s19 + $0x79c] sm:$0xf0] }
  0x29   : > { %v5604_v24 = vld [vmem:[%s8508_s19 + $0x140] sm:$0xf]  ;;  %v6405_v26 = vor.u32 %v7994_v23, %v6404_v21  ;;  %3442 = vmatpush.bf16.msra.mxu2 %v6149_v22 }
  0x2a   : > { %v7794_v25 = vld [vmem:[%s8508_s19 + $0x15c] sm:$0xf0] }
  0x2b   : > { %v5860_v27 = vld [vmem:[%s8508_s19 + $0x340] sm:$0xf]  ;;  %v5605_v30 = vor.u32 %v7794_v25, %v5604_v24  ;;  %3455 = vmatpush.bf16.msra.mxu3 %v6405_v26 }
  0x2c   : > { %v7858_v28 = vld [vmem:[%s8508_s19 + $0x35c] sm:$0xf0] }
  0x2d   : > { %v6116_v29 = vld [vmem:[%s8508_s19 + $0x540] sm:$0xf]  ;;  %v5861_v34 = vor.u32 %v7858_v28, %v5860_v27  ;;  %3417 = vmatpush.bf16.msra.mxu0 %v5605_v30 }
  0x2e   : > { %v7922_v31 = vld [vmem:[%s8508_s19 + $0x55c] sm:$0xf0] }
  0x2f   : > { %v6372_v32 = vld [vmem:[%s8508_s19 + $0x740] sm:$0xf]  ;;  %v6117_v35 = vor.u32 %v7922_v31, %v6116_v29  ;;  %3430 = vmatpush.bf16.msra.mxu1 %v5861_v34 }
  0x30   : > { %v7986_v33 = vld [vmem:[%s8508_s19 + $0x75c] sm:$0xf0] }
  0x31   : > { %v5572_v36 = vld [vmem:[%s8508_s19 + $0x100] sm:$0xf]  ;;  %v6373_v39 = vor.u32 %v7986_v33, %v6372_v32  ;;  %3443 = vmatpush.bf16.msra.mxu2 %v6117_v35 }
  0x32   : > { %v7786_v37 = vld [vmem:[%s8508_s19 + $0x11c] sm:$0xf0] }
  0x33   : > { %v5828_v38 = vld [vmem:[%s8508_s19 + $0x300] sm:$0xf]  ;;  %v5573_v45 = vor.u32 %v7786_v37, %v5572_v36  ;;  %3456 = vmatpush.bf16.msra.mxu3 %v6373_v39 }
  0x34   : > { %v7850_v40 = vld [vmem:[%s8508_s19 + $0x31c] sm:$0xf0] }
  0x35   : > { %v6084_v41 = vld [vmem:[%s8508_s19 + $0x500] sm:$0xf]  ;;  %v5829_v46 = vor.u32 %v7850_v40, %v5828_v38  ;;  %3418 = vmatpush.bf16.msra.mxu0 %v5573_v45 }
  0x36   : > { %v7914_v42 = vld [vmem:[%s8508_s19 + $0x51c] sm:$0xf0] }
  0x37   : > { %v6340_v43 = vld [vmem:[%s8508_s19 + $0x700] sm:$0xf]  ;;  %v6085_v47 = vor.u32 %v7914_v42, %v6084_v41  ;;  %3431 = vmatpush.bf16.msra.mxu1 %v5829_v46 }
  0x38   : > { %v7978_v44 = vld [vmem:[%s8508_s19 + $0x71c] sm:$0xf0] }
  0x39   : > { %v5540_v48 = vld [vmem:[%s8508_s19 + $0xc0] sm:$0xf]  ;;  %v6341_v51 = vor.u32 %v7978_v44, %v6340_v43  ;;  %3444 = vmatpush.bf16.msra.mxu2 %v6085_v47 }
  0x3a   : > { %v7778_v49 = vld [vmem:[%s8508_s19 + $0xdc] sm:$0xf0] }
  0x3b   : > { %v5796_v50 = vld [vmem:[%s8508_s19 + $0x2c0] sm:$0xf]  ;;  %v5541_v57 = vor.u32 %v7778_v49, %v5540_v48  ;;  %3457 = vmatpush.bf16.msra.mxu3 %v6341_v51 }
  0x3c   : > { %v7842_v52 = vld [vmem:[%s8508_s19 + $0x2dc] sm:$0xf0] }
  0x3d   : > { %v6052_v53 = vld [vmem:[%s8508_s19 + $0x4c0] sm:$0xf]  ;;  %v5797_v58 = vor.u32 %v7842_v52, %v5796_v50  ;;  %3419 = vmatpush.bf16.msra.mxu0 %v5541_v57 }
  0x3e   : > { %v7906_v54 = vld [vmem:[%s8508_s19 + $0x4dc] sm:$0xf0] }
  0x3f   : > { %v6308_v55 = vld [vmem:[%s8508_s19 + $0x6c0] sm:$0xf]  ;;  %v6053_v59 = vor.u32 %v7906_v54, %v6052_v53  ;;  %3432 = vmatpush.bf16.msra.mxu1 %v5797_v58 }
  0x40   : > { %v7970_v56 = vld [vmem:[%s8508_s19 + $0x6dc] sm:$0xf0] }
  0x41   : > { %v5508_v60 = vld [vmem:[%s8508_s19 + $0x80] sm:$0xf]  ;;  %v6309_v63 = vor.u32 %v7970_v56, %v6308_v55  ;;  %3445 = vmatpush.bf16.msra.mxu2 %v6053_v59 }
  0x42   : > { %v7770_v61 = vld [vmem:[%s8508_s19 + $0x9c] sm:$0xf0] }
  0x43   : > { %v5764_v62 = vld [vmem:[%s8508_s19 + $0x280] sm:$0xf]  ;;  %v5509_v5 = vor.u32 %v7770_v61, %v5508_v60  ;;  %3458 = vmatpush.bf16.msra.mxu3 %v6309_v63 }
  0x44   : > { %v7834_v0 = vld [vmem:[%s8508_s19 + $0x29c] sm:$0xf0] }
  0x45   : > { %v6020_v1 = vld [vmem:[%s8508_s19 + $0x480] sm:$0xf]  ;;  %v5765_v6 = vor.u32 %v7834_v0, %v5764_v62  ;;  %3420 = vmatpush.bf16.msra.mxu0 %v5509_v5 }
  0x46   : > { %v7898_v2 = vld [vmem:[%s8508_s19 + $0x49c] sm:$0xf0] }
  0x47   : > { %v6276_v3 = vld [vmem:[%s8508_s19 + $0x680] sm:$0xf]  ;;  %v6021_v7 = vor.u32 %v7898_v2, %v6020_v1  ;;  %3433 = vmatpush.bf16.msra.mxu1 %v5765_v6 }
  0x48   : > { %v7962_v4 = vld [vmem:[%s8508_s19 + $0x69c] sm:$0xf0] }
  0x49   : > { %v5476_v8 = vld [vmem:[%s8508_s19 + $0x40] sm:$0xf]  ;;  %v6277_v11 = vor.u32 %v7962_v4, %v6276_v3  ;;  %3446 = vmatpush.bf16.msra.mxu2 %v6021_v7 }
  0x4a   : > { %v7762_v9 = vld [vmem:[%s8508_s19 + $0x5c] sm:$0xf0] }
  0x4b   : > { %v5732_v10 = vld [vmem:[%s8508_s19 + $0x240] sm:$0xf]  ;;  %v5477_v17 = vor.u32 %v7762_v9, %v5476_v8  ;;  %3459 = vmatpush.bf16.msra.mxu3 %v6277_v11 }
  0x4c   : > { %v7826_v12 = vld [vmem:[%s8508_s19 + $0x25c] sm:$0xf0] }
  0x4d   : > { %v5988_v13 = vld [vmem:[%s8508_s19 + $0x440] sm:$0xf]  ;;  %v5733_v20 = vor.u32 %v7826_v12, %v5732_v10  ;;  %3421 = vmatpush.bf16.msra.mxu0 %v5477_v17 }
  0x4e   : > { %v7890_v14 = vld [vmem:[%s8508_s19 + $0x45c] sm:$0xf0] }
  0x4f   : > { %v6244_v15 = vld [vmem:[%s8508_s19 + $0x640] sm:$0xf]  ;;  %v5989_v21 = vor.u32 %v7890_v14, %v5988_v13  ;;  %3434 = vmatpush.bf16.msra.mxu1 %v5733_v20 }
  0x50   : > { %v7954_v16 = vld [vmem:[%s8508_s19 + $0x65c] sm:$0xf0] }
  0x51   : > { %v5444_v18 = vld [vmem:[%s8508_s19] sm:$0xf]  ;;  %v6245_v25 = vor.u32 %v7954_v16, %v6244_v15  ;;  %3447 = vmatpush.bf16.msra.mxu2 %v5989_v21 }
  0x52   : > { %v7754_v19 = vld [vmem:[%s8508_s19 + $0x1c] sm:$0xf0] }
  0x53   : > { %v5700_v22 = vld [vmem:[%s8508_s19 + $0x200] sm:$0xf]  ;;  %v5445_v32 = vor.u32 %v7754_v19, %v5444_v18  ;;  %3460 = vmatpush.bf16.msra.mxu3 %v6245_v25 }
  0x54   : > { %v7818_v23 = vld [vmem:[%s8508_s19 + $0x21c] sm:$0xf0] }
  0x55   : > { %v5956_v24 = vld [vmem:[%s8508_s19 + $0x400] sm:$0xf]  ;;  %v5701_v36 = vor.u32 %v7818_v23, %v5700_v22  ;;  %3422 = vmatpush.bf16.msra.mxu0 %v5445_v32 }
  0x56   : > { %v7882_v26 = vld [vmem:[%s8508_s19 + $0x41c] sm:$0xf0] }
  0x57   : > { %v6212_v27 = vld [vmem:[%s8508_s19 + $0x600] sm:$0xf]  ;;  %v5957_v37 = vor.u32 %v7882_v26, %v5956_v24  ;;  %3435 = vmatpush.bf16.msra.mxu1 %v5701_v36 }
  0x58   : > { %v7946_v28 = vld [vmem:[%s8508_s19 + $0x61c] sm:$0xf0] }
  0x59   : > { %v6692_v29 = vld [vmem:[%s8508_s19 + $0x9c0] sm:$0xf]  ;;  %v6213_v40 = vor.u32 %v7946_v28, %v6212_v27  ;;  %3448 = vmatpush.bf16.msra.mxu2 %v5957_v37 }
  0x5a   : > { %v8066_v30 = vld [vmem:[%s8508_s19 + $0x9dc] sm:$0xf0] }
  0x5b   : > { %v6948_v31 = vld [vmem:[%s8508_s19 + $0xbc0] sm:$0xf]  ;;  %v6693_v41 = vor.u32 %v8066_v30, %v6692_v29  ;;  %3461 = vmatpush.bf16.msra.mxu3 %v6213_v40 }
  0x5c   : > { %v8130_v33 = vld [vmem:[%s8508_s19 + $0xbdc] sm:$0xf0] }
  0x5d   : > { %v7204_v34 = vld [vmem:[%s8508_s19 + $0xdc0] sm:$0xf]  ;;  %v6949_v42 = vor.u32 %v8130_v33, %v6948_v31  ;;  %3467 = vmatpush.bf16.msrb.mxu0 %v6693_v41 }
  0x5e   : > { %v8194_v35 = vld [vmem:[%s8508_s19 + $0xddc] sm:$0xf0] }
  0x5f   : > { %v7460_v38 = vld [vmem:[%s8508_s19 + $0xfc0] sm:$0xf]  ;;  %v7205_v43 = vor.u32 %v8194_v35, %v7204_v34  ;;  %3480 = vmatpush.bf16.msrb.mxu1 %v6949_v42 }
  0x60   : > { %v8258_v39 = vld [vmem:[%s8508_s19 + $0xfdc] sm:$0xf0] }
  0x61   : > { %v6660_v44 = vld [vmem:[%s8508_s19 + $0x980] sm:$0xf]  ;;  %v7461_v47 = vor.u32 %v8258_v39, %v7460_v38  ;;  %3493 = vmatpush.bf16.msrb.mxu2 %v7205_v43 }
  0x62   : > { %v8058_v45 = vld [vmem:[%s8508_s19 + $0x99c] sm:$0xf0] }
  0x63   : > { %v6916_v46 = vld [vmem:[%s8508_s19 + $0xb80] sm:$0xf]  ;;  %v6661_v53 = vor.u32 %v8058_v45, %v6660_v44  ;;  %3506 = vmatpush.bf16.msrb.mxu3 %v7461_v47 }
  0x64   : > { %v8122_v48 = vld [vmem:[%s8508_s19 + $0xb9c] sm:$0xf0] }
  0x65   : > { %v7172_v49 = vld [vmem:[%s8508_s19 + $0xd80] sm:$0xf]  ;;  %v6917_v56 = vor.u32 %v8122_v48, %v6916_v46  ;;  %3468 = vmatpush.bf16.msrb.mxu0 %v6661_v53 }
  0x66   : > { %v8186_v50 = vld [vmem:[%s8508_s19 + $0xd9c] sm:$0xf0] }
  0x67   : > { %v7428_v51 = vld [vmem:[%s8508_s19 + $0xf80] sm:$0xf]  ;;  %v7173_v57 = vor.u32 %v8186_v50, %v7172_v49  ;;  %3481 = vmatpush.bf16.msrb.mxu1 %v6917_v56  ;;  %v321_v49 = vld [vmem:[%s8503_s15 + $0x8] sm:$0xff] }
  0x68   : > { %v8250_v52 = vld [vmem:[%s8508_s19 + $0xf9c] sm:$0xf0]  ;;  %838 = vst [vmem:[#allocation1 + $0x20] ss:$4 sm:$0xff] %v321_v49 }
  0x69   : > { %v6628_v54 = vld [vmem:[%s8508_s19 + $0x940] sm:$0xf]  ;;  %v7429_v61 = vor.u32 %v8250_v52, %v7428_v51  ;;  %3494 = vmatpush.bf16.msrb.mxu2 %v7173_v57 }
  0x6a   : > { %v8050_v55 = vld [vmem:[%s8508_s19 + $0x95c] sm:$0xf0] }
  0x6b   : > { %v6884_v58 = vld [vmem:[%s8508_s19 + $0xb40] sm:$0xf]  ;;  %v6629_v2 = vor.u32 %v8050_v55, %v6628_v54  ;;  %3507 = vmatpush.bf16.msrb.mxu3 %v7429_v61 }
  0x6c   : > { %v8114_v59 = vld [vmem:[%s8508_s19 + $0xb5c] sm:$0xf0] }
  0x6d   : > { %v320_v60 = vld [vmem:[%s8503_s15] sm:$0xff]  ;;  %v6885_v4 = vor.u32 %v8114_v59, %v6884_v58  ;;  %3469 = vmatpush.bf16.msrb.mxu0 %v6629_v2 }
  0x6e   : > { %v7140_v62 = vld [vmem:[%s8508_s19 + $0xd40] sm:$0xf]  ;;  %835 = vst [vmem:[#allocation1] ss:$4 sm:$0xff] %v320_v60 }
  0x6f   : > { %v8178_v63 = vld [vmem:[%s8508_s19 + $0xd5c] sm:$0xf0]  ;;  %3482 = vmatpush.bf16.msrb.mxu1 %v6885_v4  ;;  %v5670_v4 = vld [vmem:[%s8508_s19 + $0x1e0] sm:$0xf0] }
  0x70   : > { %v7396_v0 = vld [vmem:[%s8508_s19 + $0xf40] sm:$0xf]  ;;  %v7141_v5 = vor.u32 %v8178_v63, %v7140_v62 }
  0x71   : > { %v8242_v1 = vld [vmem:[%s8508_s19 + $0xf5c] sm:$0xf0] }
  0x72   : > { %v6596_v3 = vld [vmem:[%s8508_s19 + $0x900] sm:$0xf]  ;;  %v7397_v9 = vor.u32 %v8242_v1, %v7396_v0  ;;  %3495 = vmatpush.bf16.msrb.mxu2 %v7141_v5  ;;  %v7870_v5 = vld [vmem:[%s8508_s19 + $0x3c4] sm:$0xf] }
  0x73   : > { %v8042_v6 = vld [vmem:[%s8508_s19 + $0x91c] sm:$0xf0] }
  0x74   : > { %v6852_v7 = vld [vmem:[%s8508_s19 + $0xb00] sm:$0xf]  ;;  %v6597_v16 = vor.u32 %v8042_v6, %v6596_v3  ;;  %3508 = vmatpush.bf16.msrb.mxu3 %v7397_v9  ;;  %v7806_v3 = vld [vmem:[%s8508_s19 + $0x1c4] sm:$0xf] }
  0x75   : > { %v8106_v8 = vld [vmem:[%s8508_s19 + $0xb1c] sm:$0xf0]  ;;  %v8615_v23 = vld.sshfl [vmem:[#allocation1 + $0x10] sm:$0xff pattern:$0x73625140] }
  0x76   : > { %v7108_v10 = vld [vmem:[%s8508_s19 + $0xd00] sm:$0xf]  ;;  %v6853_v21 = vor.u32 %v8106_v8, %v6852_v7  ;;  %3449 = vmatmul.bf16.vlgmr.msra.gmra.mxu2 %v8615_v23  ;;  %v8620_v26 = vld.sshfl [vmem:[#allocation1 + $0x18] sm:$0xff pattern:$0x73625140]  ;;  %3470 = vmatpush.bf16.msrb.mxu0 %v6597_v16 }
  0x77   : > { %v8170_v11 = vld [vmem:[%s8508_s19 + $0xd1c] sm:$0xf0]  ;;  %v8622_v27 = vld.sshfl [vmem:[#allocation1 + $0x8] sm:$0xff pattern:$0x73625140]  ;;  %3462 = vmatmul.bf16.vlgmr.msra.gmra.mxu3 %v8620_v26 }
  0x78   : > { %v7364_v12 = vld [vmem:[%s8508_s19 + $0xf00] sm:$0xf]  ;;  %v7109_v22 = vor.u32 %v8170_v11, %v7108_v10  ;;  %3436 = vmatmul.bf16.vlgmr.msra.gmra.mxu1 %v8622_v27  ;;  %v5926_v7 = vld [vmem:[%s8508_s19 + $0x3e0] sm:$0xf0] }
  0x79   : > { %v8234_v13 = vld [vmem:[%s8508_s19 + $0xf1c] sm:$0xf0]  ;;  %3483 = vmatpush.bf16.msrb.mxu1 %v6853_v21  ;;  %v7934_v8 = vld [vmem:[%s8508_s19 + $0x5c4] sm:$0xf] }
  0x7a   : > { %v6564_v14 = vld [vmem:[%s8508_s19 + $0x8c0] sm:$0xf]  ;;  %v7365_v25 = vor.u32 %v8234_v13, %v7364_v12  ;;  %3496 = vmatpush.bf16.msrb.mxu2 %v7109_v22  ;;  %v6182_v9 = vld [vmem:[%s8508_s19 + $0x5e0] sm:$0xf0] }
  0x7b   : > { %v8034_v15 = vld [vmem:[%s8508_s19 + $0x8dc] sm:$0xf0]  ;;  %v7998_v12 = vld [vmem:[%s8508_s19 + $0x7c4] sm:$0xf] }
  0x7c   : > { %v6820_v17 = vld [vmem:[%s8508_s19 + $0xac0] sm:$0xf]  ;;  %v6565_v30 = vor.u32 %v8034_v15, %v6564_v14  ;;  %3509 = vmatpush.bf16.msrb.mxu3 %v7365_v25  ;;  %v6438_v13 = vld [vmem:[%s8508_s19 + $0x7e0] sm:$0xf0]  ;;  %v5673_v15 = vor.u32 %v7806_v3, %v5670_v4 }
  0x7d   : > { %v8098_v18 = vld [vmem:[%s8508_s19 + $0xadc] sm:$0xf0]  ;;  %v7798_v16 = vld [vmem:[%s8508_s19 + $0x184] sm:$0xf]  ;;  %v6441_v25 = vor.u32 %v7998_v12, %v6438_v13 }
  0x7e   : > { %v7076_v19 = vld [vmem:[%s8508_s19 + $0xcc0] sm:$0xf]  ;;  %v6821_v31 = vor.u32 %v8098_v18, %v6820_v17  ;;  %3471 = vmatpush.bf16.msrb.mxu0 %v6565_v30  ;;  %v5638_v17 = vld [vmem:[%s8508_s19 + $0x1a0] sm:$0xf0]  ;;  %v5929_v18 = vor.u32 %v7870_v5, %v5926_v7 }
  0x7f   : > { %v8162_v20 = vld [vmem:[%s8508_s19 + $0xcdc] sm:$0xf0]  ;;  %v5894_v21 = vld [vmem:[%s8508_s19 + $0x3a0] sm:$0xf0] }
  0x80   : > { %v8617_v24 = vld.sshfl [vmem:[#allocation1] sm:$0xff pattern:$0x73625140]  ;;  %v7077_v32 = vor.u32 %v8162_v20, %v7076_v19  ;;  %3484 = vmatpush.bf16.msrb.mxu1 %v6821_v31  ;;  %v6185_v19 = vor.u32 %v7934_v8, %v6182_v9  ;;  %v8670_v31 = vld.sshfl [vmem:[#allocation1 + $0x30] sm:$0xff pattern:$0x73625140] }
  0x81   : > { %v7332_v28 = vld [vmem:[%s8508_s19 + $0xec0] sm:$0xf]  ;;  %3423 = vmatmul.bf16.vlgmr.msra.gmra.mxu0 %v8617_v24  ;;  %v7862_v20 = vld [vmem:[%s8508_s19 + $0x384] sm:$0xf] }
  0x82   : > { %v8226_v29 = vld [vmem:[%s8508_s19 + $0xedc] sm:$0xf0]  ;;  %3497 = vmatpush.bf16.msrb.mxu2 %v7077_v32  ;;  %v7926_v22 = vld [vmem:[%s8508_s19 + $0x584] sm:$0xf] }
  0x83   : > { %v6532_v33 = vld [vmem:[%s8508_s19 + $0x880] sm:$0xf]  ;;  %v7333_v36 = vor.u32 %v8226_v29, %v7332_v28  ;;  %v6150_v28 = vld [vmem:[%s8508_s19 + $0x5a0] sm:$0xf0] }
  0x84   : > { %v8026_v34 = vld [vmem:[%s8508_s19 + $0x89c] sm:$0xf0]  ;;  %v7990_v29 = vld [vmem:[%s8508_s19 + $0x784] sm:$0xf] }
  0x85   : > { %v6788_v35 = vld [vmem:[%s8508_s19 + $0xa80] sm:$0xf]  ;;  %v6533_v42 = vor.u32 %v8026_v34, %v6532_v33  ;;  %3510 = vmatpush.bf16.msrb.mxu3 %v7333_v36  ;;  %v6406_v30 = vld [vmem:[%s8508_s19 + $0x7a0] sm:$0xf0]  ;;  %v5641_v34 = vor.u32 %v7798_v16, %v5638_v17 }
  0x86   : > { %v8090_v37 = vld [vmem:[%s8508_s19 + $0xa9c] sm:$0xf0]  ;;  %v7790_v32 = vld [vmem:[%s8508_s19 + $0x144] sm:$0xf] }
  0x87   : > { %v7044_v38 = vld [vmem:[%s8508_s19 + $0xc80] sm:$0xf]  ;;  %v6789_v45 = vor.u32 %v8090_v37, %v6788_v35  ;;  %3472 = vmatpush.bf16.msrb.mxu0 %v6533_v42  ;;  %v5606_v33 = vld [vmem:[%s8508_s19 + $0x160] sm:$0xf0]  ;;  %v5897_v37 = vor.u32 %v7862_v20, %v5894_v21 }
  0x88   : > { %v8154_v39 = vld [vmem:[%s8508_s19 + $0xc9c] sm:$0xf0]  ;;  %v8676_v36 = vld.sshfl [vmem:[#allocation1 + $0x38] sm:$0xff pattern:$0x73625140] }
  0x89   : > { %v7300_v40 = vld [vmem:[%s8508_s19 + $0xe80] sm:$0xf]  ;;  %v7045_v46 = vor.u32 %v8154_v39, %v7044_v38  ;;  %3485 = vmatpush.bf16.msrb.mxu1 %v6789_v45  ;;  %v6153_v38 = vor.u32 %v7926_v22, %v6150_v28  ;;  %v7854_v39 = vld [vmem:[%s8508_s19 + $0x344] sm:$0xf] }
  0x8a   : > { %v8218_v41 = vld [vmem:[%s8508_s19 + $0xe9c] sm:$0xf0]  ;;  %v5862_v42 = vld [vmem:[%s8508_s19 + $0x360] sm:$0xf0] }
  0x8b   : > { %v6500_v43 = vld [vmem:[%s8508_s19 + $0x840] sm:$0xf]  ;;  %v7301_v50 = vor.u32 %v8218_v41, %v7300_v40  ;;  %3498 = vmatpush.bf16.msrb.mxu2 %v7045_v46  ;;  %v8679_v40 = vld.sshfl [vmem:[#allocation1 + $0x28] sm:$0xff pattern:$0x73625140]  ;;  %v6409_v41 = vor.u32 %v7990_v29, %v6406_v30 }
  0x8c   : > { %v8018_v44 = vld [vmem:[%s8508_s19 + $0x85c] sm:$0xf0]  ;;  %v7982_v45 = vld [vmem:[%s8508_s19 + $0x744] sm:$0xf] }
  0x8d   : > { %v6756_v47 = vld [vmem:[%s8508_s19 + $0xa40] sm:$0xf]  ;;  %v6501_v55 = vor.u32 %v8018_v44, %v6500_v43  ;;  %3511 = vmatpush.bf16.msrb.mxu3 %v7301_v50  ;;  %v7918_v43 = vld [vmem:[%s8508_s19 + $0x544] sm:$0xf] }
  0x8e   : > { %v8082_v48 = vld [vmem:[%s8508_s19 + $0xa5c] sm:$0xf0]  ;;  %v6118_v44 = vld [vmem:[%s8508_s19 + $0x560] sm:$0xf0] }
  0x8f   : > { %v7012_v51 = vld [vmem:[%s8508_s19 + $0xc40] sm:$0xf]  ;;  %v6757_v58 = vor.u32 %v8082_v48, %v6756_v47  ;;  %3473 = vmatpush.bf16.msrb.mxu0 %v6501_v55  ;;  %v6374_v46 = vld [vmem:[%s8508_s19 + $0x760] sm:$0xf0]  ;;  %v5609_v47 = vor.u32 %v7790_v32, %v5606_v33  ;;  %v5865_v48 = vor.u32 %v7854_v39, %v5862_v42  ;;  %v6121_v49 = vor.u32 %v7918_v43, %v6118_v44 }
  0x90   : > { %v8146_v52 = vld [vmem:[%s8508_s19 + $0xc5c] sm:$0xf0]  ;;  %v7782_v50 = vld [vmem:[%s8508_s19 + $0x104] sm:$0xf] }
  0x91   : > { %v7268_v53 = vld [vmem:[%s8508_s19 + $0xe40] sm:$0xf]  ;;  %v7013_v59 = vor.u32 %v8146_v52, %v7012_v51  ;;  %3486 = vmatpush.bf16.msrb.mxu1 %v6757_v58  ;;  %v5574_v51 = vld [vmem:[%s8508_s19 + $0x120] sm:$0xf0] }
  0x92   : > { %v8210_v54 = vld [vmem:[%s8508_s19 + $0xe5c] sm:$0xf0]  ;;  %v7846_v52 = vld [vmem:[%s8508_s19 + $0x304] sm:$0xf] }
  0x93   : > { %v6468_v56 = vld [vmem:[%s8508_s19 + $0x800] sm:$0xf]  ;;  %v7269_v63 = vor.u32 %v8210_v54, %v7268_v53  ;;  %3499 = vmatpush.bf16.msrb.mxu2 %v7013_v59  ;;  %v6377_v53 = vor.u32 %v7982_v45, %v6374_v46  ;;  %v5830_v54 = vld [vmem:[%s8508_s19 + $0x320] sm:$0xf0]  ;;  %v5577_v59 = vor.u32 %v7782_v50, %v5574_v51 }
  0x94   : > { %v8010_v57 = vld [vmem:[%s8508_s19 + $0x81c] sm:$0xf0]  ;;  %v7910_v55 = vld [vmem:[%s8508_s19 + $0x504] sm:$0xf] }
  0x95   : > { %v6724_v60 = vld [vmem:[%s8508_s19 + $0xa00] sm:$0xf]  ;;  %v6469_v6 = vor.u32 %v8010_v57, %v6468_v56  ;;  %3512 = vmatpush.bf16.msrb.mxu3 %v7269_v63  ;;  %v6086_v56 = vld [vmem:[%s8508_s19 + $0x520] sm:$0xf0] }
  0x96   : > { %v8074_v61 = vld [vmem:[%s8508_s19 + $0xa1c] sm:$0xf0]  ;;  %v7974_v57 = vld [vmem:[%s8508_s19 + $0x704] sm:$0xf] }
  0x97   : > { %v6980_v62 = vld [vmem:[%s8508_s19 + $0xc00] sm:$0xf]  ;;  %v6725_v10 = vor.u32 %v8074_v61, %v6724_v60  ;;  %3474 = vmatpush.bf16.msrb.mxu0 %v6469_v6  ;;  %v6342_v58 = vld [vmem:[%s8508_s19 + $0x720] sm:$0xf0]  ;;  %v5833_v60 = vor.u32 %v7846_v52, %v5830_v54  ;;  %v6089_v61 = vor.u32 %v7910_v55, %v6086_v56 }
  0x98   : > { %v8138_v0 = vld [vmem:[%s8508_s19 + $0xc1c] sm:$0xf0]  ;;  %v5542_v63 = vld [vmem:[%s8508_s19 + $0xe0] sm:$0xf0] }
  0x99   : > { %v7236_v1 = vld [vmem:[%s8508_s19 + $0xe00] sm:$0xf]  ;;  %v6981_v11 = vor.u32 %v8138_v0, %v6980_v62  ;;  %3487 = vmatpush.bf16.msrb.mxu1 %v6725_v10  ;;  %v7774_v62 = vld [vmem:[%s8508_s19 + $0xc4] sm:$0xf] }
  0x9a   : > { %v8202_v2 = vld [vmem:[%s8508_s19 + $0xe1c] sm:$0xf0]  ;;  %v7838_v0 = vld [vmem:[%s8508_s19 + $0x2c4] sm:$0xf]  ;;  %v5545_v7 = vor.u32 %v7774_v62, %v5542_v63 }
  0x9b   : > { %v7237_v14 = vor.u32 %v8202_v2, %v7236_v1  ;;  %3500 = vmatpush.bf16.msrb.mxu2 %v6981_v11  ;;  %3519 = vmatpush.bf16.msra.mxu0 %v5673_v15  ;;  %v8674_v35 = vld.sshfl [vmem:[#allocation1 + $0x20] sm:$0xff pattern:$0x73625140]  ;;  %v6345_v1 = vor.u32 %v7974_v57, %v6342_v58 }
  0x9c   : > { %3475 = vmatmul.bf16.vlgmr.msrb.gmra.mxu0 %v8674_v35  ;;  %3488 = vmatmul.bf16.vlgmr.msrb.gmra.mxu1 %v8679_v40  ;;  %v5798_v2 = vld [vmem:[%s8508_s19 + $0x2e0] sm:$0xf0] }
  0x9d   : > { %3513 = vmatpush.bf16.msrb.mxu3 %v7237_v14  ;;  %3532 = vmatpush.bf16.msra.mxu1 %v5929_v18  ;;  %v7902_v3 = vld [vmem:[%s8508_s19 + $0x4c4] sm:$0xf]  ;;  %v5801_v8 = vor.u32 %v7838_v0, %v5798_v2 }
  0x9e   : > { %3501 = vmatmul.bf16.vlgmr.msrb.gmra.mxu2 %v8670_v31  ;;  %v6054_v4 = vld [vmem:[%s8508_s19 + $0x4e0] sm:$0xf0] }
  0x9f   : > { %3545 = vmatpush.bf16.msra.mxu2 %v6185_v19  ;;  %3520 = vmatpush.bf16.msra.mxu0 %v5641_v34  ;;  %v7966_v5 = vld [vmem:[%s8508_s19 + $0x6c4] sm:$0xf]  ;;  %v6057_v9 = vor.u32 %v7902_v3, %v6054_v4 }
  0xa0   : > { %3514 = vmatmul.bf16.vlgmr.msrb.gmra.mxu3 %v8676_v36  ;;  %v6310_v6 = vld [vmem:[%s8508_s19 + $0x6e0] sm:$0xf0] }
  0xa1   : > { %3558 = vmatpush.bf16.msra.mxu3 %v6441_v25  ;;  %3533 = vmatpush.bf16.msra.mxu1 %v5897_v37  ;;  %v7766_v10 = vld [vmem:[%s8508_s19 + $0x84] sm:$0xf]  ;;  %v6313_v13 = vor.u32 %v7966_v5, %v6310_v6 }
  0xa2   : > { %v5510_v11 = vld [vmem:[%s8508_s19 + $0xa0] sm:$0xf0] }
  0xa3   : > { %3546 = vmatpush.bf16.msra.mxu2 %v6153_v38  ;;  %3521 = vmatpush.bf16.msra.mxu0 %v5609_v47  ;;  %v7830_v12 = vld [vmem:[%s8508_s19 + $0x284] sm:$0xf]  ;;  %v5513_v19 = vor.u32 %v7766_v10, %v5510_v11 }
  0xa4   : > { %v5766_v14 = vld [vmem:[%s8508_s19 + $0x2a0] sm:$0xf0] }
  0xa5   : > { %3559 = vmatpush.bf16.msra.mxu3 %v6409_v41  ;;  %3534 = vmatpush.bf16.msra.mxu1 %v5865_v48  ;;  %v7894_v15 = vld [vmem:[%s8508_s19 + $0x484] sm:$0xf]  ;;  %v5769_v20 = vor.u32 %v7830_v12, %v5766_v14 }
  0xa6   : > { %v6022_v16 = vld [vmem:[%s8508_s19 + $0x4a0] sm:$0xf0] }
  0xa7   : > { %3547 = vmatpush.bf16.msra.mxu2 %v6121_v49  ;;  %3522 = vmatpush.bf16.msra.mxu0 %v5577_v59  ;;  %v7958_v17 = vld [vmem:[%s8508_s19 + $0x684] sm:$0xf]  ;;  %v6025_v21 = vor.u32 %v7894_v15, %v6022_v16 }
  0xa8   : > { %v6278_v18 = vld [vmem:[%s8508_s19 + $0x6a0] sm:$0xf0] }
  0xa9   : > { %3560 = vmatpush.bf16.msra.mxu3 %v6377_v53  ;;  %3535 = vmatpush.bf16.msra.mxu1 %v5833_v60  ;;  %v7758_v22 = vld [vmem:[%s8508_s19 + $0x44] sm:$0xf]  ;;  %v6281_v29 = vor.u32 %v7958_v17, %v6278_v18 }
  0xaa   : > { %v5478_v25 = vld [vmem:[%s8508_s19 + $0x60] sm:$0xf0] }
  0xab   : > { %3548 = vmatpush.bf16.msra.mxu2 %v6089_v61  ;;  %3523 = vmatpush.bf16.msra.mxu0 %v5545_v7  ;;  %v7822_v28 = vld [vmem:[%s8508_s19 + $0x244] sm:$0xf]  ;;  %v5481_v38 = vor.u32 %v7758_v22, %v5478_v25 }
  0xac   : > { %v5734_v30 = vld [vmem:[%s8508_s19 + $0x260] sm:$0xf0] }
  0xad   : > { %3561 = vmatpush.bf16.msra.mxu3 %v6345_v1  ;;  %3536 = vmatpush.bf16.msra.mxu1 %v5801_v8  ;;  %v7886_v32 = vld [vmem:[%s8508_s19 + $0x444] sm:$0xf]  ;;  %v5737_v42 = vor.u32 %v7822_v28, %v5734_v30 }
  0xae   : > { %v5990_v33 = vld [vmem:[%s8508_s19 + $0x460] sm:$0xf0] }
  0xaf   : > { %3549 = vmatpush.bf16.msra.mxu2 %v6057_v9  ;;  %v7950_v34 = vld [vmem:[%s8508_s19 + $0x644] sm:$0xf]  ;;  %3524 = vmatpush.bf16.msra.mxu0 %v5513_v19  ;;  %v5993_v43 = vor.u32 %v7886_v32, %v5990_v33 }
  0xb0   : > { %v6246_v37 = vld [vmem:[%s8508_s19 + $0x660] sm:$0xf0] }
  0xb1   : > { %3562 = vmatpush.bf16.msra.mxu3 %v6313_v13  ;;  %v7750_v39 = vld [vmem:[%s8508_s19 + $0x4] sm:$0xf]  ;;  %3537 = vmatpush.bf16.msra.mxu1 %v5769_v20  ;;  %v6249_v47 = vor.u32 %v7950_v34, %v6246_v37 }
  0xb2   : > { %v5446_v41 = vld [vmem:[%s8508_s19 + $0x20] sm:$0xf0] }
  0xb3   : > { %3550 = vmatpush.bf16.msra.mxu2 %v6025_v21  ;;  %v7814_v44 = vld [vmem:[%s8508_s19 + $0x204] sm:$0xf]  ;;  %3525 = vmatpush.bf16.msra.mxu0 %v5481_v38  ;;  %v5449_v54 = vor.u32 %v7750_v39, %v5446_v41 }
  0xb4   : > { %v5702_v45 = vld [vmem:[%s8508_s19 + $0x220] sm:$0xf0] }
  0xb5   : > { %v7878_v46 = vld [vmem:[%s8508_s19 + $0x404] sm:$0xf]  ;;  %3563 = vmatpush.bf16.msra.mxu3 %v6281_v29  ;;  %3538 = vmatpush.bf16.msra.mxu1 %v5737_v42  ;;  %v5705_v58 = vor.u32 %v7814_v44, %v5702_v45 }
  0xb6   : > { %v5958_v48 = vld [vmem:[%s8508_s19 + $0x420] sm:$0xf0] }
  0xb7   : > { %v7942_v49 = vld [vmem:[%s8508_s19 + $0x604] sm:$0xf]  ;;  %3551 = vmatpush.bf16.msra.mxu2 %v5993_v43  ;;  %v5961_v59 = vor.u32 %v7878_v46, %v5958_v48  ;;  %3526 = vmatpush.bf16.msra.mxu0 %v5449_v54 }
  0xb8   : > { %v6214_v50 = vld [vmem:[%s8508_s19 + $0x620] sm:$0xf0] }
  0xb9   : > { %v8062_v51 = vld [vmem:[%s8508_s19 + $0x9c4] sm:$0xf]  ;;  %3564 = vmatpush.bf16.msra.mxu3 %v6249_v47  ;;  %v6217_v62 = vor.u32 %v7942_v49, %v6214_v50  ;;  %3539 = vmatpush.bf16.msra.mxu1 %v5705_v58 }
  0xba   : > { %v6694_v52 = vld [vmem:[%s8508_s19 + $0x9e0] sm:$0xf0]  ;;  %3527 = vmatmul.bf16.vlgmr.msra.gmra.mxu0 %v8617_v24 }
  0xbb   : > { %v8126_v53 = vld [vmem:[%s8508_s19 + $0xbc4] sm:$0xf]  ;;  %v6697_v63 = vor.u32 %v8062_v51, %v6694_v52  ;;  %3552 = vmatpush.bf16.msra.mxu2 %v5961_v59 }
  0xbc   : > { %v6950_v55 = vld [vmem:[%s8508_s19 + $0xbe0] sm:$0xf0]  ;;  %3540 = vmatmul.bf16.vlgmr.msra.gmra.mxu1 %v8622_v27 }
  0xbd   : > { %v8190_v56 = vld [vmem:[%s8508_s19 + $0xdc4] sm:$0xf]  ;;  %v6953_v0 = vor.u32 %v8126_v53, %v6950_v55  ;;  %3565 = vmatpush.bf16.msra.mxu3 %v6217_v62  ;;  %3571 = vmatpush.bf16.msrb.mxu0 %v6697_v63 }
  0xbe   : > { %v7206_v57 = vld [vmem:[%s8508_s19 + $0xde0] sm:$0xf0]  ;;  %3553 = vmatmul.bf16.vlgmr.msra.gmra.mxu2 %v8615_v23 }
  0xbf   : > { %v8254_v60 = vld [vmem:[%s8508_s19 + $0xfc4] sm:$0xf]  ;;  %v7209_v1 = vor.u32 %v8190_v56, %v7206_v57  ;;  %3584 = vmatpush.bf16.msrb.mxu1 %v6953_v0 }
  0xc0   : > { %v7462_v61 = vld [vmem:[%s8508_s19 + $0xfe0] sm:$0xf0]  ;;  %3566 = vmatmul.bf16.vlgmr.msra.gmra.mxu3 %v8620_v26 }
  0xc1   : > { %v8054_v2 = vld [vmem:[%s8508_s19 + $0x984] sm:$0xf]  ;;  %v7465_v5 = vor.u32 %v8254_v60, %v7462_v61  ;;  %3597 = vmatpush.bf16.msrb.mxu2 %v7209_v1 }
  0xc2   : > { %v6662_v3 = vld [vmem:[%s8508_s19 + $0x9a0] sm:$0xf0] }
  0xc3   : > { %v8118_v4 = vld [vmem:[%s8508_s19 + $0xb84] sm:$0xf]  ;;  %v6665_v11 = vor.u32 %v8054_v2, %v6662_v3  ;;  %3610 = vmatpush.bf16.msrb.mxu3 %v7465_v5 }
  0xc4   : > { %v6918_v6 = vld [vmem:[%s8508_s19 + $0xba0] sm:$0xf0] }
  0xc5   : > { %v8182_v7 = vld [vmem:[%s8508_s19 + $0xd84] sm:$0xf]  ;;  %v6921_v12 = vor.u32 %v8118_v4, %v6918_v6  ;;  %3572 = vmatpush.bf16.msrb.mxu0 %v6665_v11 }
  0xc6   : > { %v7174_v8 = vld [vmem:[%s8508_s19 + $0xda0] sm:$0xf0] }
  0xc7   : > { %v8246_v9 = vld [vmem:[%s8508_s19 + $0xf84] sm:$0xf]  ;;  %v7177_v13 = vor.u32 %v8182_v7, %v7174_v8  ;;  %3585 = vmatpush.bf16.msrb.mxu1 %v6921_v12 }
  0xc8   : > { %v7430_v10 = vld [vmem:[%s8508_s19 + $0xfa0] sm:$0xf0] }
  0xc9   : > { %v8046_v14 = vld [vmem:[%s8508_s19 + $0x944] sm:$0xf]  ;;  %v7433_v17 = vor.u32 %v8246_v9, %v7430_v10  ;;  %3598 = vmatpush.bf16.msrb.mxu2 %v7177_v13 }
  0xca   : > { %v6630_v15 = vld [vmem:[%s8508_s19 + $0x960] sm:$0xf0] }
  0xcb   : > { %v8110_v16 = vld [vmem:[%s8508_s19 + $0xb44] sm:$0xf]  ;;  %v6633_v25 = vor.u32 %v8046_v14, %v6630_v15  ;;  %3611 = vmatpush.bf16.msrb.mxu3 %v7433_v17 }
  0xcc   : > { %v6886_v18 = vld [vmem:[%s8508_s19 + $0xb60] sm:$0xf0] }
  0xcd   : > { %v8174_v19 = vld [vmem:[%s8508_s19 + $0xd44] sm:$0xf]  ;;  %v6889_v28 = vor.u32 %v8110_v16, %v6886_v18  ;;  %3573 = vmatpush.bf16.msrb.mxu0 %v6633_v25 }
  0xce   : > { %v7142_v20 = vld [vmem:[%s8508_s19 + $0xd60] sm:$0xf0] }
  0xcf   : > { %v8238_v21 = vld [vmem:[%s8508_s19 + $0xf44] sm:$0xf]  ;;  %v7145_v29 = vor.u32 %v8174_v19, %v7142_v20  ;;  %3586 = vmatpush.bf16.msrb.mxu1 %v6889_v28 }
  0xd0   : > { %v7398_v22 = vld [vmem:[%s8508_s19 + $0xf60] sm:$0xf0] }
  0xd1   : > { %v8038_v30 = vld [vmem:[%s8508_s19 + $0x904] sm:$0xf]  ;;  %v7401_v34 = vor.u32 %v8238_v21, %v7398_v22  ;;  %3599 = vmatpush.bf16.msrb.mxu2 %v7145_v29 }
  0xd2   : > { %v6598_v32 = vld [vmem:[%s8508_s19 + $0x920] sm:$0xf0] }
  0xd3   : > { %v8102_v33 = vld [vmem:[%s8508_s19 + $0xb04] sm:$0xf]  ;;  %v6601_v43 = vor.u32 %v8038_v30, %v6598_v32  ;;  %3612 = vmatpush.bf16.msrb.mxu3 %v7401_v34  ;;  %v5676_v32 = vld [vmem:[%s8508_s19 + $0x1c8] sm:$0xf] }
  0xd4   : > { %v6854_v37 = vld [vmem:[%s8508_s19 + $0xb20] sm:$0xf0]  ;;  %v5932_v34 = vld [vmem:[%s8508_s19 + $0x3c8] sm:$0xf] }
  0xd5   : > { %v8166_v38 = vld [vmem:[%s8508_s19 + $0xd04] sm:$0xf]  ;;  %v6857_v44 = vor.u32 %v8102_v33, %v6854_v37  ;;  %3574 = vmatpush.bf16.msrb.mxu0 %v6601_v43  ;;  %v7811_v33 = vld [vmem:[%s8508_s19 + $0x1e4] sm:$0xf0] }
  0xd6   : > { %v7110_v39 = vld [vmem:[%s8508_s19 + $0xd20] sm:$0xf0] }
  0xd7   : > { %v8230_v41 = vld [vmem:[%s8508_s19 + $0xf04] sm:$0xf]  ;;  %v7113_v45 = vor.u32 %v8166_v38, %v7110_v39  ;;  %3587 = vmatpush.bf16.msrb.mxu1 %v6857_v44  ;;  %v7875_v38 = vld [vmem:[%s8508_s19 + $0x3e4] sm:$0xf0] }
  0xd8   : > { %v7366_v42 = vld [vmem:[%s8508_s19 + $0xf20] sm:$0xf0]  ;;  %v6188_v39 = vld [vmem:[%s8508_s19 + $0x5c8] sm:$0xf] }
  0xd9   : > { %v8030_v46 = vld [vmem:[%s8508_s19 + $0x8c4] sm:$0xf]  ;;  %v7369_v49 = vor.u32 %v8230_v41, %v7366_v42  ;;  %3600 = vmatpush.bf16.msrb.mxu2 %v7113_v45  ;;  %v7939_v41 = vld [vmem:[%s8508_s19 + $0x5e4] sm:$0xf0] }
  0xda   : > { %v6566_v47 = vld [vmem:[%s8508_s19 + $0x8e0] sm:$0xf0]  ;;  %v6444_v44 = vld [vmem:[%s8508_s19 + $0x7c8] sm:$0xf] }
  0xdb   : > { %v8094_v48 = vld [vmem:[%s8508_s19 + $0xac4] sm:$0xf]  ;;  %v6569_v55 = vor.u32 %v8030_v46, %v6566_v47  ;;  %3613 = vmatpush.bf16.msrb.mxu3 %v7369_v49  ;;  %v8003_v45 = vld [vmem:[%s8508_s19 + $0x7e4] sm:$0xf0]  ;;  %v5677_v47 = vor.u32 %v7811_v33, %v5676_v32  ;;  %v6189_v49 = vor.u32 %v7939_v41, %v6188_v39 }
  0xdc   : > { %v6822_v50 = vld [vmem:[%s8508_s19 + $0xae0] sm:$0xf0]  ;;  %v5772_v39 = vld [vmem:[%s8508_s19 + $0x288] sm:$0xf] }
  0xdd   : > { %v8158_v51 = vld [vmem:[%s8508_s19 + $0xcc4] sm:$0xf]  ;;  %v6825_v56 = vor.u32 %v8094_v48, %v6822_v50  ;;  %3575 = vmatpush.bf16.msrb.mxu0 %v6569_v55  ;;  %v5933_v48 = vor.u32 %v7875_v38, %v5932_v34  ;;  %v5644_v50 = vld [vmem:[%s8508_s19 + $0x188] sm:$0xf] }
  0xde   : > { %v7078_v52 = vld [vmem:[%s8508_s19 + $0xce0] sm:$0xf0]  ;;  %v6156_v55 = vld [vmem:[%s8508_s19 + $0x588] sm:$0xf] }
  0xdf   : > { %v8222_v53 = vld [vmem:[%s8508_s19 + $0xec4] sm:$0xf]  ;;  %v7081_v57 = vor.u32 %v8158_v51, %v7078_v52  ;;  %3588 = vmatpush.bf16.msrb.mxu1 %v6825_v56  ;;  %v7803_v51 = vld [vmem:[%s8508_s19 + $0x1a4] sm:$0xf0] }
  0xe0   : > { %v7334_v54 = vld [vmem:[%s8508_s19 + $0xee0] sm:$0xf0]  ;;  %v5900_v52 = vld [vmem:[%s8508_s19 + $0x388] sm:$0xf] }
  0xe1   : > { %v8022_v58 = vld [vmem:[%s8508_s19 + $0x884] sm:$0xf]  ;;  %v7337_v61 = vor.u32 %v8222_v53, %v7334_v54  ;;  %3601 = vmatpush.bf16.msrb.mxu2 %v7081_v57  ;;  %v6445_v53 = vor.u32 %v8003_v45, %v6444_v44  ;;  %v7867_v54 = vld [vmem:[%s8508_s19 + $0x3a4] sm:$0xf0] }
  0xe2   : > { %v6534_v59 = vld [vmem:[%s8508_s19 + $0x8a0] sm:$0xf0]  ;;  %v7931_v56 = vld [vmem:[%s8508_s19 + $0x5a4] sm:$0xf0] }
  0xe3   : > { %v8086_v60 = vld [vmem:[%s8508_s19 + $0xa84] sm:$0xf]  ;;  %v6537_v3 = vor.u32 %v8022_v58, %v6534_v59  ;;  %3614 = vmatpush.bf16.msrb.mxu3 %v7337_v61  ;;  %v6412_v57 = vld [vmem:[%s8508_s19 + $0x788] sm:$0xf]  ;;  %v5645_v59 = vor.u32 %v7803_v51, %v5644_v50  ;;  %v6157_v61 = vor.u32 %v7931_v56, %v6156_v55 }
  0xe4   : > { %v6790_v62 = vld [vmem:[%s8508_s19 + $0xaa0] sm:$0xf0]  ;;  %v7995_v58 = vld [vmem:[%s8508_s19 + $0x7a4] sm:$0xf0] }
  0xe5   : > { %v8150_v63 = vld [vmem:[%s8508_s19 + $0xc84] sm:$0xf]  ;;  %v6793_v4 = vor.u32 %v8086_v60, %v6790_v62  ;;  %3576 = vmatpush.bf16.msrb.mxu0 %v6537_v3  ;;  %v5901_v60 = vor.u32 %v7867_v54, %v5900_v52  ;;  %v5612_v62 = vld [vmem:[%s8508_s19 + $0x148] sm:$0xf] }
  0xe6   : > { %v7046_v0 = vld [vmem:[%s8508_s19 + $0xca0] sm:$0xf0]  ;;  %v6124_v3 = vld [vmem:[%s8508_s19 + $0x548] sm:$0xf] }
  0xe7   : > { %v8214_v1 = vld [vmem:[%s8508_s19 + $0xe84] sm:$0xf]  ;;  %v7049_v5 = vor.u32 %v8150_v63, %v7046_v0  ;;  %3589 = vmatpush.bf16.msrb.mxu1 %v6793_v4  ;;  %v7795_v63 = vld [vmem:[%s8508_s19 + $0x164] sm:$0xf0] }
  0xe8   : > { %v7302_v2 = vld [vmem:[%s8508_s19 + $0xea0] sm:$0xf0]  ;;  %v5868_v0 = vld [vmem:[%s8508_s19 + $0x348] sm:$0xf] }
  0xe9   : > { %v8014_v6 = vld [vmem:[%s8508_s19 + $0x844] sm:$0xf]  ;;  %v7305_v9 = vor.u32 %v8214_v1, %v7302_v2  ;;  %3602 = vmatpush.bf16.msrb.mxu2 %v7049_v5  ;;  %v6413_v1 = vor.u32 %v7995_v58, %v6412_v57  ;;  %v7859_v2 = vld [vmem:[%s8508_s19 + $0x364] sm:$0xf0] }
  0xea   : > { %v6502_v7 = vld [vmem:[%s8508_s19 + $0x860] sm:$0xf0]  ;;  %v7923_v4 = vld [vmem:[%s8508_s19 + $0x564] sm:$0xf0] }
  0xeb   : > { %v8078_v8 = vld [vmem:[%s8508_s19 + $0xa44] sm:$0xf]  ;;  %v6505_v15 = vor.u32 %v8014_v6, %v6502_v7  ;;  %3615 = vmatpush.bf16.msrb.mxu3 %v7305_v9  ;;  %v6380_v5 = vld [vmem:[%s8508_s19 + $0x748] sm:$0xf]  ;;  %v5869_v7 = vor.u32 %v7859_v2, %v5868_v0 }
  0xec   : > { %v6758_v10 = vld [vmem:[%s8508_s19 + $0xa60] sm:$0xf0]  ;;  %v7987_v6 = vld [vmem:[%s8508_s19 + $0x764] sm:$0xf0] }
  0xed   : > { %v8142_v11 = vld [vmem:[%s8508_s19 + $0xc44] sm:$0xf]  ;;  %v6761_v18 = vor.u32 %v8078_v8, %v6758_v10  ;;  %3577 = vmatpush.bf16.msrb.mxu0 %v6505_v15  ;;  %v6125_v8 = vor.u32 %v7923_v4, %v6124_v3  ;;  %v5580_v9 = vld [vmem:[%s8508_s19 + $0x108] sm:$0xf] }
  0xee   : > { %v7014_v12 = vld [vmem:[%s8508_s19 + $0xc60] sm:$0xf0]  ;;  %v5836_v10 = vld [vmem:[%s8508_s19 + $0x308] sm:$0xf] }
  0xef   : > { %v8206_v13 = vld [vmem:[%s8508_s19 + $0xe44] sm:$0xf]  ;;  %v7017_v19 = vor.u32 %v8142_v11, %v7014_v12  ;;  %3590 = vmatpush.bf16.msrb.mxu1 %v6761_v18  ;;  %v7851_v11 = vld [vmem:[%s8508_s19 + $0x324] sm:$0xf0] }
  0xf0   : > { %v7270_v14 = vld [vmem:[%s8508_s19 + $0xe60] sm:$0xf0]  ;;  %v6092_v12 = vld [vmem:[%s8508_s19 + $0x508] sm:$0xf] }
  0xf1   : > { %v8006_v16 = vld [vmem:[%s8508_s19 + $0x804] sm:$0xf]  ;;  %v7273_v25 = vor.u32 %v8206_v13, %v7270_v14  ;;  %3603 = vmatpush.bf16.msrb.mxu2 %v7017_v19  ;;  %v7915_v13 = vld [vmem:[%s8508_s19 + $0x524] sm:$0xf0] }
  0xf2   : > { %v6470_v17 = vld [vmem:[%s8508_s19 + $0x820] sm:$0xf0]  ;;  %v7979_v14 = vld [vmem:[%s8508_s19 + $0x724] sm:$0xf0] }
  0xf3   : > { %v8070_v20 = vld [vmem:[%s8508_s19 + $0xa04] sm:$0xf]  ;;  %v6473_v37 = vor.u32 %v8006_v16, %v6470_v17  ;;  %3616 = vmatpush.bf16.msrb.mxu3 %v7273_v25  ;;  %v5837_v16 = vor.u32 %v7851_v11, %v5836_v10  ;;  %v6093_v17 = vor.u32 %v7915_v13, %v6092_v12  ;;  %v5548_v18 = vld [vmem:[%s8508_s19 + $0xc8] sm:$0xf] }
  0xf4   : > { %v6726_v21 = vld [vmem:[%s8508_s19 + $0xa20] sm:$0xf0]  ;;  %v7779_v19 = vld [vmem:[%s8508_s19 + $0xe4] sm:$0xf0] }
  0xf5   : > { %v8134_v22 = vld [vmem:[%s8508_s19 + $0xc04] sm:$0xf]  ;;  %v6729_v42 = vor.u32 %v8070_v20, %v6726_v21  ;;  %3578 = vmatpush.bf16.msrb.mxu0 %v6473_v37  ;;  %v5804_v20 = vld [vmem:[%s8508_s19 + $0x2c8] sm:$0xf]  ;;  %v5549_v32 = vor.u32 %v7779_v19, %v5548_v18 }
  0xf6   : > { %v6982_v28 = vld [vmem:[%s8508_s19 + $0xc20] sm:$0xf0]  ;;  %v6060_v25 = vld [vmem:[%s8508_s19 + $0x4c8] sm:$0xf] }
  0xf7   : > { %v8198_v29 = vld [vmem:[%s8508_s19 + $0xe04] sm:$0xf]  ;;  %v6985_v43 = vor.u32 %v8134_v22, %v6982_v28  ;;  %3591 = vmatpush.bf16.msrb.mxu1 %v6729_v42  ;;  %v7843_v22 = vld [vmem:[%s8508_s19 + $0x2e4] sm:$0xf0] }
  0xf8   : > { %v7238_v30 = vld [vmem:[%s8508_s19 + $0xe20] sm:$0xf0]  ;;  %3579 = vmatmul.bf16.vlgmr.msrb.gmra.mxu0 %v8674_v35  ;;  %v7787_v35 = vld [vmem:[%s8508_s19 + $0x124] sm:$0xf0]  ;;  %v5805_v33 = vor.u32 %v7843_v22, %v5804_v20 }
  0xf9   : > { %v7241_v46 = vor.u32 %v8198_v29, %v7238_v30  ;;  %3604 = vmatpush.bf16.msrb.mxu2 %v6985_v43  ;;  %3623 = vmatpush.bf16.msra.mxu0 %v5677_v47  ;;  %v5581_v15 = vor.u32 %v7787_v35, %v5580_v9  ;;  %v7907_v28 = vld [vmem:[%s8508_s19 + $0x4e4] sm:$0xf0] }
  0xfa   : > { %3592 = vmatmul.bf16.vlgmr.msrb.gmra.mxu1 %v8679_v40  ;;  %v6348_v40 = vld [vmem:[%s8508_s19 + $0x708] sm:$0xf]  ;;  %v6061_v34 = vor.u32 %v7907_v28, %v6060_v25 }
  0xfb   : > { %3617 = vmatpush.bf16.msrb.mxu3 %v7241_v46  ;;  %3636 = vmatpush.bf16.msra.mxu1 %v5933_v48  ;;  %v6349_v21 = vor.u32 %v7979_v14, %v6348_v40  ;;  %v6316_v29 = vld [vmem:[%s8508_s19 + $0x6c8] sm:$0xf] }
  0xfc   : > { %3605 = vmatmul.bf16.vlgmr.msrb.gmra.mxu2 %v8670_v31  ;;  %v5613_v31 = vor.u32 %v7795_v63, %v5612_v62  ;;  %v7971_v30 = vld [vmem:[%s8508_s19 + $0x6e4] sm:$0xf0] }
  0xfd   : > { %3649 = vmatpush.bf16.msra.mxu2 %v6189_v49  ;;  %3624 = vmatpush.bf16.msra.mxu0 %v5645_v59  ;;  %v5516_v37 = vld [vmem:[%s8508_s19 + $0x88] sm:$0xf]  ;;  %v6317_v41 = vor.u32 %v7971_v30, %v6316_v29 }
  0xfe   : > { %3618 = vmatmul.bf16.vlgmr.msrb.gmra.mxu3 %v8676_v36  ;;  %v6381_v36 = vor.u32 %v7987_v6, %v6380_v5  ;;  %v7771_v38 = vld [vmem:[%s8508_s19 + $0xa4] sm:$0xf0] }
  0xff   : > { %3662 = vmatpush.bf16.msra.mxu3 %v6445_v53  ;;  %3637 = vmatpush.bf16.msra.mxu1 %v5901_v60  ;;  %v7835_v42 = vld [vmem:[%s8508_s19 + $0x2a4] sm:$0xf0]  ;;  %v5517_v47 = vor.u32 %v7771_v38, %v5516_v37 }
 0x100   : > { %v6028_v43 = vld [vmem:[%s8508_s19 + $0x488] sm:$0xf]  ;;  %v5773_v48 = vor.u32 %v7835_v42, %v5772_v39 }
 0x101   : > { %3650 = vmatpush.bf16.msra.mxu2 %v6157_v61  ;;  %3625 = vmatpush.bf16.msra.mxu0 %v5613_v31  ;;  %v7899_v44 = vld [vmem:[%s8508_s19 + $0x4a4] sm:$0xf0] }
 0x102   : > { %v6284_v45 = vld [vmem:[%s8508_s19 + $0x688] sm:$0xf]  ;;  %v6029_v49 = vor.u32 %v7899_v44, %v6028_v43 }
 0x103   : > { %3663 = vmatpush.bf16.msra.mxu3 %v6413_v1  ;;  %3638 = vmatpush.bf16.msra.mxu1 %v5869_v7  ;;  %v7963_v46 = vld [vmem:[%s8508_s19 + $0x6a4] sm:$0xf0] }
 0x104   : > { %v5484_v50 = vld [vmem:[%s8508_s19 + $0x48] sm:$0xf]  ;;  %v6285_v53 = vor.u32 %v7963_v46, %v6284_v45 }
 0x105   : > { %3651 = vmatpush.bf16.msra.mxu2 %v6125_v8  ;;  %3626 = vmatpush.bf16.msra.mxu0 %v5581_v15  ;;  %v7763_v51 = vld [vmem:[%s8508_s19 + $0x64] sm:$0xf0] }
 0x106   : > { %v5740_v52 = vld [vmem:[%s8508_s19 + $0x248] sm:$0xf]  ;;  %v5485_v59 = vor.u32 %v7763_v51, %v5484_v50 }
 0x107   : > { %3664 = vmatpush.bf16.msra.mxu3 %v6381_v36  ;;  %3639 = vmatpush.bf16.msra.mxu1 %v5837_v16  ;;  %v7827_v54 = vld [vmem:[%s8508_s19 + $0x264] sm:$0xf0] }
 0x108   : > { %v5996_v55 = vld [vmem:[%s8508_s19 + $0x448] sm:$0xf]  ;;  %v5741_v62 = vor.u32 %v7827_v54, %v5740_v52 }
 0x109   : > { %3652 = vmatpush.bf16.msra.mxu2 %v6093_v17  ;;  %3627 = vmatpush.bf16.msra.mxu0 %v5549_v32  ;;  %v7891_v56 = vld [vmem:[%s8508_s19 + $0x464] sm:$0xf0] }
 0x10a   : > { %v6252_v57 = vld [vmem:[%s8508_s19 + $0x648] sm:$0xf]  ;;  %v5997_v63 = vor.u32 %v7891_v56, %v5996_v55 }
 0x10b   : > { %3665 = vmatpush.bf16.msra.mxu3 %v6349_v21  ;;  %3640 = vmatpush.bf16.msra.mxu1 %v5805_v33  ;;  %v7955_v58 = vld [vmem:[%s8508_s19 + $0x664] sm:$0xf0] }
 0x10c   : > { %v5452_v60 = vld [vmem:[%s8508_s19 + $0x8] sm:$0xf]  ;;  %v6253_v3 = vor.u32 %v7955_v58, %v6252_v57 }
 0x10d   : > { %3653 = vmatpush.bf16.msra.mxu2 %v6061_v34  ;;  %3628 = vmatpush.bf16.msra.mxu0 %v5517_v47  ;;  %v7755_v61 = vld [vmem:[%s8508_s19 + $0x24] sm:$0xf0] }
 0x10e   : > { %v5708_v0 = vld [vmem:[%s8508_s19 + $0x208] sm:$0xf]  ;;  %v5453_v9 = vor.u32 %v7755_v61, %v5452_v60 }
 0x10f   : > { %3666 = vmatpush.bf16.msra.mxu3 %v6317_v41  ;;  %3641 = vmatpush.bf16.msra.mxu1 %v5773_v48  ;;  %v7819_v1 = vld [vmem:[%s8508_s19 + $0x224] sm:$0xf0] }
 0x110   : > { %v5964_v2 = vld [vmem:[%s8508_s19 + $0x408] sm:$0xf]  ;;  %v5709_v11 = vor.u32 %v7819_v1, %v5708_v0 }
 0x111   : > { %3654 = vmatpush.bf16.msra.mxu2 %v6029_v49  ;;  %v7883_v4 = vld [vmem:[%s8508_s19 + $0x424] sm:$0xf0]  ;;  %3629 = vmatpush.bf16.msra.mxu0 %v5485_v59 }
 0x112   : > { %v6220_v5 = vld [vmem:[%s8508_s19 + $0x608] sm:$0xf]  ;;  %v5965_v12 = vor.u32 %v7883_v4, %v5964_v2 }
 0x113   : > { %3667 = vmatpush.bf16.msra.mxu3 %v6285_v53  ;;  %v7947_v6 = vld [vmem:[%s8508_s19 + $0x624] sm:$0xf0]  ;;  %3642 = vmatpush.bf16.msra.mxu1 %v5741_v62 }
 0x114   : > { %v6700_v31 = vld [vmem:[%s8508_s19 + $0x9c8] sm:$0xf]  ;;  %v6221_v14 = vor.u32 %v7947_v6, %v6220_v5 }
 0x115   : > { %v8067_v7 = vld [vmem:[%s8508_s19 + $0x9e4] sm:$0xf0]  ;;  %3655 = vmatpush.bf16.msra.mxu2 %v5997_v63  ;;  %3630 = vmatpush.bf16.msra.mxu0 %v5453_v9 }
 0x116   : > { %v6956_v8 = vld [vmem:[%s8508_s19 + $0xbc8] sm:$0xf]  ;;  %v6701_v15 = vor.u32 %v8067_v7, %v6700_v31 }
 0x117   : > { %v8131_v35 = vld [vmem:[%s8508_s19 + $0xbe4] sm:$0xf0]  ;;  %3668 = vmatpush.bf16.msra.mxu3 %v6253_v3  ;;  %3643 = vmatpush.bf16.msra.mxu1 %v5709_v11 }
 0x118   : > { %v7212_v10 = vld [vmem:[%s8508_s19 + $0xdc8] sm:$0xf]  ;;  %v6957_v16 = vor.u32 %v8131_v35, %v6956_v8  ;;  %3631 = vmatmul.bf16.vlgmr.msra.gmra.mxu0 %v8617_v24 }
 0x119   : > { %v8195_v36 = vld [vmem:[%s8508_s19 + $0xde4] sm:$0xf0]  ;;  %3656 = vmatpush.bf16.msra.mxu2 %v5965_v12  ;;  %3675 = vmatpush.bf16.msrb.mxu0 %v6701_v15 }
 0x11a   : > { %v7468_v13 = vld [vmem:[%s8508_s19 + $0xfc8] sm:$0xf]  ;;  %v7213_v17 = vor.u32 %v8195_v36, %v7212_v10  ;;  %3644 = vmatmul.bf16.vlgmr.msra.gmra.mxu1 %v8622_v27 }
 0x11b   : > { %v8259_v40 = vld [vmem:[%s8508_s19 + $0xfe4] sm:$0xf0]  ;;  %3669 = vmatpush.bf16.msra.mxu3 %v6221_v14  ;;  %3688 = vmatpush.bf16.msrb.mxu1 %v6957_v16 }
 0x11c   : > { %v6668_v18 = vld [vmem:[%s8508_s19 + $0x988] sm:$0xf]  ;;  %v7469_v21 = vor.u32 %v8259_v40, %v7468_v13  ;;  %3657 = vmatmul.bf16.vlgmr.msra.gmra.mxu2 %v8615_v23  ;;  %v3424_v13 = vpop.f32.mrf.mxu0 }
 0x11d   : > { %v8059_v19 = vld [vmem:[%s8508_s19 + $0x9a4] sm:$0xf0]  ;;  %3701 = vmatpush.bf16.msrb.mxu2 %v7213_v17 }
 0x11e   : > { %v6924_v20 = vld [vmem:[%s8508_s19 + $0xb88] sm:$0xf]  ;;  %v6669_v32 = vor.u32 %v8059_v19, %v6668_v18  ;;  %3670 = vmatmul.bf16.vlgmr.msra.gmra.mxu3 %v8620_v26  ;;  %v3437_v18 = vpop.f32.mrf.mxu1 }
 0x11f   : > { %v8123_v22 = vld [vmem:[%s8508_s19 + $0xba4] sm:$0xf0]  ;;  %3714 = vmatpush.bf16.msrb.mxu3 %v7469_v21 }
 0x120   : > { %v7180_v25 = vld [vmem:[%s8508_s19 + $0xd88] sm:$0xf]  ;;  %v6925_v33 = vor.u32 %v8123_v22, %v6924_v20  ;;  %3676 = vmatpush.bf16.msrb.mxu0 %v6669_v32 }
 0x121   : > { %v8187_v28 = vld [vmem:[%s8508_s19 + $0xda4] sm:$0xf0] }
 0x122   : > { %v7436_v29 = vld [vmem:[%s8508_s19 + $0xf88] sm:$0xf]  ;;  %v7181_v34 = vor.u32 %v8187_v28, %v7180_v25  ;;  %3689 = vmatpush.bf16.msrb.mxu1 %v6925_v33  ;;  %v3438_v25 = vadd.f32 %v3437_v18, %v3424_v13  ;;  %v8964_v18 = vld.sshfl [vmem:[#allocation1 + $0x38] sm:$0xff pattern:$0x73625140] }
 0x123   : > { %v8251_v30 = vld [vmem:[%s8508_s19 + $0xfa4] sm:$0xf0] }
 0x124   : > { %v6636_v37 = vld [vmem:[%s8508_s19 + $0x948] sm:$0xf]  ;;  %v7437_v41 = vor.u32 %v8251_v30, %v7436_v29  ;;  %3702 = vmatpush.bf16.msrb.mxu2 %v7181_v34 }
 0x125   : > { %v8051_v38 = vld [vmem:[%s8508_s19 + $0x964] sm:$0xf0] }
 0x126   : > { %v6892_v39 = vld [vmem:[%s8508_s19 + $0xb48] sm:$0xf]  ;;  %v6637_v47 = vor.u32 %v8051_v38, %v6636_v37  ;;  %3715 = vmatpush.bf16.msrb.mxu3 %v7437_v41 }
 0x127   : > { %v8115_v42 = vld [vmem:[%s8508_s19 + $0xb64] sm:$0xf0] }
 0x128   : > { %v7148_v43 = vld [vmem:[%s8508_s19 + $0xd48] sm:$0xf]  ;;  %v6893_v48 = vor.u32 %v8115_v42, %v6892_v39  ;;  %3677 = vmatpush.bf16.msrb.mxu0 %v6637_v47  ;;  %v3450_v42 = vpop.f32.mrf.mxu2 }
 0x129   : > { %v8179_v44 = vld [vmem:[%s8508_s19 + $0xd64] sm:$0xf0]  ;;  %v3451_v47 = vadd.f32 %v3450_v42, %v3438_v25 }
 0x12a   : > { %v7404_v45 = vld [vmem:[%s8508_s19 + $0xf48] sm:$0xf]  ;;  %v7149_v49 = vor.u32 %v8179_v44, %v7148_v43  ;;  %3690 = vmatpush.bf16.msrb.mxu1 %v6893_v48  ;;  %v3463_v48 = vpop.f32.mrf.mxu3 }
 0x12b   : > { %v8243_v46 = vld [vmem:[%s8508_s19 + $0xf64] sm:$0xf0] }
 0x12c   : > { %v6604_v23 = vld [vmem:[%s8508_s19 + $0x908] sm:$0xf]  ;;  %v7405_v24 = vor.u32 %v8243_v46, %v7404_v45  ;;  %3703 = vmatpush.bf16.msrb.mxu2 %v7149_v49  ;;  %v7807_v49 = vld [vmem:[%s8508_s19 + $0x1cc] sm:$0xf] }
 0x12d   : > { %v8043_v50 = vld [vmem:[%s8508_s19 + $0x924] sm:$0xf0] }
 0x12e   : > { %v6860_v51 = vld [vmem:[%s8508_s19 + $0xb08] sm:$0xf]  ;;  %v6605_v55 = vor.u32 %v8043_v50, %v6604_v23  ;;  %3716 = vmatpush.bf16.msrb.mxu3 %v7405_v24  ;;  %v5678_v23 = vld [vmem:[%s8508_s19 + $0x1e8] sm:$0xf0] }
 0x12f   : > { %v8107_v52 = vld [vmem:[%s8508_s19 + $0xb24] sm:$0xf0]  ;;  %v7871_v50 = vld [vmem:[%s8508_s19 + $0x3cc] sm:$0xf] }
 0x130   : > { %v7116_v26 = vld [vmem:[%s8508_s19 + $0xd08] sm:$0xf]  ;;  %v6861_v56 = vor.u32 %v8107_v52, %v6860_v51  ;;  %3678 = vmatpush.bf16.msrb.mxu0 %v6605_v55  ;;  %v5934_v24 = vld [vmem:[%s8508_s19 + $0x3e8] sm:$0xf0] }
 0x131   : > { %v8171_v53 = vld [vmem:[%s8508_s19 + $0xd24] sm:$0xf0]  ;;  %v7935_v52 = vld [vmem:[%s8508_s19 + $0x5cc] sm:$0xf] }
 0x132   : > { %v7372_v54 = vld [vmem:[%s8508_s19 + $0xf08] sm:$0xf]  ;;  %v7117_v57 = vor.u32 %v8171_v53, %v7116_v26  ;;  %3691 = vmatpush.bf16.msrb.mxu1 %v6861_v56  ;;  %v6190_v26 = vld [vmem:[%s8508_s19 + $0x5e8] sm:$0xf0]  ;;  %v8940_v53 = vadd.f32 %v3463_v48, %v3451_v47 }
 0x133   : > { %v8235_v27 = vld [vmem:[%s8508_s19 + $0xf24] sm:$0xf0]  ;;  %v7999_v56 = vld [vmem:[%s8508_s19 + $0x7cc] sm:$0xf] }
 0x134   : > { %v6572_v58 = vld [vmem:[%s8508_s19 + $0x8c8] sm:$0xf]  ;;  %v7373_v61 = vor.u32 %v8235_v27, %v7372_v54  ;;  %3704 = vmatpush.bf16.msrb.mxu2 %v7117_v57  ;;  %v3426_v54 = vpop.f32.mrf.mxu0  ;;  %v6446_v57 = vld [vmem:[%s8508_s19 + $0x7e8] sm:$0xf0] }
 0x135   : > { %v8035_v59 = vld [vmem:[%s8508_s19 + $0x8e4] sm:$0xf0]  ;;  %v5550_v47 = vld [vmem:[%s8508_s19 + $0xe8] sm:$0xf0] }
 0x136   : > { %v6828_v60 = vld [vmem:[%s8508_s19 + $0xac8] sm:$0xf]  ;;  %v6573_v3 = vor.u32 %v8035_v59, %v6572_v58  ;;  %3717 = vmatpush.bf16.msrb.mxu3 %v7373_v61  ;;  %v3439_v58 = vpop.f32.mrf.mxu1  ;;  %v5937_v61 = vor.u32 %v7871_v50, %v5934_v24  ;;  %v7839_v48 = vld [vmem:[%s8508_s19 + $0x2cc] sm:$0xf] }
 0x137   : > { %v8099_v62 = vld [vmem:[%s8508_s19 + $0xae4] sm:$0xf0]  ;;  %v7903_v24 = vld [vmem:[%s8508_s19 + $0x4cc] sm:$0xf] }
 0x138   : > { %v7084_v63 = vld [vmem:[%s8508_s19 + $0xcc8] sm:$0xf]  ;;  %v6829_v4 = vor.u32 %v8099_v62, %v6828_v60  ;;  %3679 = vmatpush.bf16.msrb.mxu0 %v6573_v3  ;;  %v5681_v60 = vor.u32 %v7807_v49, %v5678_v23  ;;  %v6193_v62 = vor.u32 %v7935_v52, %v6190_v26  ;;  %v5902_v3 = vld [vmem:[%s8508_s19 + $0x3a8] sm:$0xf0] }
 0x139   : > { %v8163_v0 = vld [vmem:[%s8508_s19 + $0xce4] sm:$0xf0]  ;;  %v6062_v52 = vld [vmem:[%s8508_s19 + $0x4e8] sm:$0xf0] }
 0x13a   : > { %v7340_v1 = vld [vmem:[%s8508_s19 + $0xec8] sm:$0xf]  ;;  %v7085_v5 = vor.u32 %v8163_v0, %v7084_v63  ;;  %3692 = vmatpush.bf16.msrb.mxu1 %v6829_v4  ;;  %v7799_v63 = vld [vmem:[%s8508_s19 + $0x18c] sm:$0xf] }
 0x13b   : > { %v8227_v2 = vld [vmem:[%s8508_s19 + $0xee4] sm:$0xf0]  ;;  %v5646_v0 = vld [vmem:[%s8508_s19 + $0x1a8] sm:$0xf0] }
 0x13c   : > { %v6540_v6 = vld [vmem:[%s8508_s19 + $0x888] sm:$0xf]  ;;  %v7341_v8 = vor.u32 %v8227_v2, %v7340_v1  ;;  %3705 = vmatpush.bf16.msrb.mxu2 %v7085_v5  ;;  %v7863_v1 = vld [vmem:[%s8508_s19 + $0x38c] sm:$0xf]  ;;  %v6449_v2 = vor.u32 %v7999_v56, %v6446_v57  ;;  %v6065_v56 = vor.u32 %v7903_v24, %v6062_v52 }
 0x13d   : > { %v8027_v31 = vld [vmem:[%s8508_s19 + $0x8a4] sm:$0xf0]  ;;  %v7927_v4 = vld [vmem:[%s8508_s19 + $0x58c] sm:$0xf] }
 0x13e   : > { %v6796_v7 = vld [vmem:[%s8508_s19 + $0xa88] sm:$0xf]  ;;  %v6541_v12 = vor.u32 %v8027_v31, %v6540_v6  ;;  %3718 = vmatpush.bf16.msrb.mxu3 %v7341_v8  ;;  %v6158_v5 = vld [vmem:[%s8508_s19 + $0x5a8] sm:$0xf0]  ;;  %v5649_v8 = vor.u32 %v7799_v63, %v5646_v0  ;;  %v3489_v23 = vpop.f32.mrf.mxu1 }
 0x13f   : > { %v8091_v9 = vld [vmem:[%s8508_s19 + $0xaa4] sm:$0xf0]  ;;  %v7991_v6 = vld [vmem:[%s8508_s19 + $0x78c] sm:$0xf] }
 0x140   : > { %v7052_v35 = vld [vmem:[%s8508_s19 + $0xc88] sm:$0xf]  ;;  %v6797_v40 = vor.u32 %v8091_v9, %v6796_v7  ;;  %3680 = vmatpush.bf16.msrb.mxu0 %v6541_v12  ;;  %v6414_v31 = vld [vmem:[%s8508_s19 + $0x7a8] sm:$0xf0]  ;;  %v3452_v7 = vpop.f32.mrf.mxu2  ;;  %v3465_v9 = vpop.f32.mrf.mxu3 }
 0x141   : > { %v8155_v10 = vld [vmem:[%s8508_s19 + $0xca4] sm:$0xf0]  ;;  %v7855_v12 = vld [vmem:[%s8508_s19 + $0x34c] sm:$0xf]  ;;  %v6417_v13 = vor.u32 %v7991_v6, %v6414_v31 }
 0x142   : > { %v7308_v36 = vld [vmem:[%s8508_s19 + $0xe88] sm:$0xf]  ;;  %v7053_v14 = vor.u32 %v8155_v10, %v7052_v35  ;;  %3693 = vmatpush.bf16.msrb.mxu1 %v6797_v40  ;;  %v5905_v35 = vor.u32 %v7863_v1, %v5902_v3  ;;  %v6161_v10 = vor.u32 %v7927_v4, %v6158_v5  ;;  %v8955_v40 = vld.sshfl [vmem:[#allocation1 + $0x30] sm:$0xff pattern:$0x73625140] }
 0x143   : > { %v8219_v11 = vld [vmem:[%s8508_s19 + $0xea4] sm:$0xf0]  ;;  %v7967_v26 = vld [vmem:[%s8508_s19 + $0x6cc] sm:$0xf] }
 0x144   : > { %v6508_v15 = vld [vmem:[%s8508_s19 + $0x848] sm:$0xf]  ;;  %v7309_v19 = vor.u32 %v8219_v11, %v7308_v36  ;;  %3706 = vmatpush.bf16.msrb.mxu2 %v7053_v14  ;;  %v7791_v36 = vld [vmem:[%s8508_s19 + $0x14c] sm:$0xf] }
 0x145   : > { %v8019_v16 = vld [vmem:[%s8508_s19 + $0x864] sm:$0xf0]  ;;  %v5614_v11 = vld [vmem:[%s8508_s19 + $0x168] sm:$0xf0] }
 0x146   : > { %v6764_v17 = vld [vmem:[%s8508_s19 + $0xa48] sm:$0xf]  ;;  %v6509_v30 = vor.u32 %v8019_v16, %v6508_v15  ;;  %3719 = vmatpush.bf16.msrb.mxu3 %v7309_v19  ;;  %v5870_v14 = vld [vmem:[%s8508_s19 + $0x368] sm:$0xf0] }
 0x147   : > { %v8083_v20 = vld [vmem:[%s8508_s19 + $0xa64] sm:$0xf0]  ;;  %v7919_v15 = vld [vmem:[%s8508_s19 + $0x54c] sm:$0xf]  ;;  %v5873_v25 = vor.u32 %v7855_v12, %v5870_v14 }
 0x148   : > { %v7020_v21 = vld [vmem:[%s8508_s19 + $0xc48] sm:$0xf]  ;;  %v6765_v34 = vor.u32 %v8083_v20, %v6764_v17  ;;  %3681 = vmatpush.bf16.msrb.mxu0 %v6509_v30  ;;  %v6126_v16 = vld [vmem:[%s8508_s19 + $0x568] sm:$0xf0]  ;;  %v8999_v1 = vpop.f32.mrf.mxu3 }
 0x149   : > { %v8147_v22 = vld [vmem:[%s8508_s19 + $0xc64] sm:$0xf0]  ;;  %v8961_v17 = vld.sshfl [vmem:[#allocation1 + $0x20] sm:$0xff pattern:$0x73625140] }
 0x14a   : > { %v7276_v28 = vld [vmem:[%s8508_s19 + $0xe48] sm:$0xf]  ;;  %v7021_v37 = vor.u32 %v8147_v22, %v7020_v21  ;;  %3694 = vmatpush.bf16.msrb.mxu1 %v6765_v34  ;;  %v7983_v19 = vld [vmem:[%s8508_s19 + $0x74c] sm:$0xf]  ;;  %v5617_v21 = vor.u32 %v7791_v36, %v5614_v11 }
 0x14b   : > { %v8211_v29 = vld [vmem:[%s8508_s19 + $0xe64] sm:$0xf0]  ;;  %v6382_v20 = vld [vmem:[%s8508_s19 + $0x768] sm:$0xf0] }
 0x14c   : > { %v6476_v32 = vld [vmem:[%s8508_s19 + $0x808] sm:$0xf]  ;;  %v7277_v43 = vor.u32 %v8211_v29, %v7276_v28  ;;  %3707 = vmatpush.bf16.msrb.mxu2 %v7021_v37  ;;  %v6129_v28 = vor.u32 %v7919_v15, %v6126_v16  ;;  %v7783_v29 = vld [vmem:[%s8508_s19 + $0x10c] sm:$0xf] }
 0x14d   : > { %v8011_v33 = vld [vmem:[%s8508_s19 + $0x824] sm:$0xf0]  ;;  %v5582_v30 = vld [vmem:[%s8508_s19 + $0x128] sm:$0xf0] }
 0x14e   : > { %v6732_v38 = vld [vmem:[%s8508_s19 + $0xa08] sm:$0xf]  ;;  %v6477_v51 = vor.u32 %v8011_v33, %v6476_v32  ;;  %3720 = vmatpush.bf16.msrb.mxu3 %v7277_v43  ;;  %v7847_v32 = vld [vmem:[%s8508_s19 + $0x30c] sm:$0xf]  ;;  %v6385_v33 = vor.u32 %v7983_v19, %v6382_v20  ;;  %v5585_v42 = vor.u32 %v7783_v29, %v5582_v30  ;;  %v3476_v43 = vpop.f32.mrf.mxu0 }
 0x14f   : > { %v8075_v39 = vld [vmem:[%s8508_s19 + $0xa24] sm:$0xf0]  ;;  %v5838_v34 = vld [vmem:[%s8508_s19 + $0x328] sm:$0xf0]  ;;  %v3477_v49 = vadd.f32 %v3476_v43, %v8940_v53 }
 0x150   : > { %v6988_v41 = vld [vmem:[%s8508_s19 + $0xc08] sm:$0xf]  ;;  %v6733_v27 = vor.u32 %v8075_v39, %v6732_v38  ;;  %3682 = vmatpush.bf16.msrb.mxu0 %v6477_v51  ;;  %v7911_v37 = vld [vmem:[%s8508_s19 + $0x50c] sm:$0xf] }
 0x151   : > { %v8139_v44 = vld [vmem:[%s8508_s19 + $0xc24] sm:$0xf0]  ;;  %v6094_v38 = vld [vmem:[%s8508_s19 + $0x528] sm:$0xf0] }
 0x152   : > { %v7244_v45 = vld [vmem:[%s8508_s19 + $0xe08] sm:$0xf]  ;;  %v6989_v55 = vor.u32 %v8139_v44, %v6988_v41  ;;  %3695 = vmatpush.bf16.msrb.mxu1 %v6733_v27  ;;  %v7975_v39 = vld [vmem:[%s8508_s19 + $0x70c] sm:$0xf]  ;;  %v5841_v44 = vor.u32 %v7847_v32, %v5838_v34  ;;  %v8989_v27 = vadd.f32 %v3489_v23, %v3477_v49 }
 0x153   : > { %v8203_v46 = vld [vmem:[%s8508_s19 + $0xe24] sm:$0xf0]  ;;  %3683 = vmatmul.bf16.vlgmr.msrb.gmra.mxu0 %v8961_v17  ;;  %v6350_v41 = vld [vmem:[%s8508_s19 + $0x728] sm:$0xf0] }
 0x154   : > { %v7245_v59 = vor.u32 %v8203_v46, %v7244_v45  ;;  %3708 = vmatpush.bf16.msrb.mxu2 %v6989_v55  ;;  %3727 = vmatpush.bf16.msra.mxu0 %v5681_v60  ;;  %v8969_v22 = vld.sshfl [vmem:[#allocation1 + $0x28] sm:$0xff pattern:$0x73625140]  ;;  %v6097_v45 = vor.u32 %v7911_v37, %v6094_v38  ;;  %v6353_v50 = vor.u32 %v7975_v39, %v6350_v41  ;;  %v8994_v60 = vpop.f32.mrf.mxu2  ;;  %v3517_v38 = vpop.f32.mrf.mxu3 }
 0x155   : > { %3696 = vmatmul.bf16.vlgmr.msrb.gmra.mxu1 %v8969_v22  ;;  %v7775_v46 = vld [vmem:[%s8508_s19 + $0xcc] sm:$0xf] }
 0x156   : > { %3721 = vmatpush.bf16.msrb.mxu3 %v7245_v59  ;;  %3740 = vmatpush.bf16.msra.mxu1 %v5937_v61  ;;  %v5806_v51 = vld [vmem:[%s8508_s19 + $0x2e8] sm:$0xf0]  ;;  %v5553_v55 = vor.u32 %v7775_v46, %v5550_v47  ;;  %v3478_v5 = vpop.f32.mrf.mxu0 }
 0x157   : > { %3709 = vmatmul.bf16.vlgmr.msrb.gmra.mxu2 %v8955_v40  ;;  %v6318_v54 = vld [vmem:[%s8508_s19 + $0x6e8] sm:$0xf0]  ;;  %v5809_v53 = vor.u32 %v7839_v48, %v5806_v51 }
 0x158   : > { %3753 = vmatpush.bf16.msra.mxu2 %v6193_v62  ;;  %3728 = vmatpush.bf16.msra.mxu0 %v5649_v8  ;;  %v7767_v57 = vld [vmem:[%s8508_s19 + $0x8c] sm:$0xf]  ;;  %v6321_v61 = vor.u32 %v7967_v26, %v6318_v54 }
 0x159   : > { %3722 = vmatmul.bf16.vlgmr.msrb.gmra.mxu3 %v8964_v18  ;;  %v5518_v58 = vld [vmem:[%s8508_s19 + $0xa8] sm:$0xf0] }
 0x15a   : > { %3766 = vmatpush.bf16.msra.mxu3 %v6449_v2  ;;  %3741 = vmatpush.bf16.msra.mxu1 %v5905_v35  ;;  %v7831_v59 = vld [vmem:[%s8508_s19 + $0x28c] sm:$0xf]  ;;  %v5521_v4 = vor.u32 %v7767_v57, %v5518_v58  ;;  %v3491_v35 = vpop.f32.mrf.mxu1 }
 0x15b   : > { %v5774_v62 = vld [vmem:[%s8508_s19 + $0x2a8] sm:$0xf0] }
 0x15c   : > { %3754 = vmatpush.bf16.msra.mxu2 %v6161_v10  ;;  %3729 = vmatpush.bf16.msra.mxu0 %v5617_v21  ;;  %v7895_v63 = vld [vmem:[%s8508_s19 + $0x48c] sm:$0xf]  ;;  %v5777_v6 = vor.u32 %v7831_v59, %v5774_v62  ;;  %v3504_v30 = vpop.f32.mrf.mxu2 }
 0x15d   : > { %v6030_v0 = vld [vmem:[%s8508_s19 + $0x4a8] sm:$0xf0] }
 0x15e   : > { %3767 = vmatpush.bf16.msra.mxu3 %v6417_v13  ;;  %3742 = vmatpush.bf16.msra.mxu1 %v5873_v25  ;;  %v7959_v2 = vld [vmem:[%s8508_s19 + $0x68c] sm:$0xf]  ;;  %v6033_v31 = vor.u32 %v7895_v63, %v6030_v0 }
 0x15f   : > { %v6286_v3 = vld [vmem:[%s8508_s19 + $0x6a8] sm:$0xf0] }
 0x160   : > { %3755 = vmatpush.bf16.msra.mxu2 %v6129_v28  ;;  %3730 = vmatpush.bf16.msra.mxu0 %v5585_v42  ;;  %v7759_v7 = vld [vmem:[%s8508_s19 + $0x4c] sm:$0xf]  ;;  %v6289_v10 = vor.u32 %v7959_v2, %v6286_v3 }
 0x161   : > { %v5486_v8 = vld [vmem:[%s8508_s19 + $0x68] sm:$0xf0] }
 0x162   : > { %3768 = vmatpush.bf16.msra.mxu3 %v6385_v33  ;;  %3743 = vmatpush.bf16.msra.mxu1 %v5841_v44  ;;  %v7823_v9 = vld [vmem:[%s8508_s19 + $0x24c] sm:$0xf]  ;;  %v5489_v15 = vor.u32 %v7759_v7, %v5486_v8  ;;  %v9041_v8 = vld.sshfl [vmem:[#allocation1 + $0x10] sm:$0xff pattern:$0x73625140] }
 0x163   : > { %v5742_v36 = vld [vmem:[%s8508_s19 + $0x268] sm:$0xf0] }
 0x164   : > { %3756 = vmatpush.bf16.msra.mxu2 %v6097_v45  ;;  %3731 = vmatpush.bf16.msra.mxu0 %v5553_v55  ;;  %v7887_v11 = vld [vmem:[%s8508_s19 + $0x44c] sm:$0xf]  ;;  %v5745_v20 = vor.u32 %v7823_v9, %v5742_v36  ;;  %v9049_v36 = vld.sshfl [vmem:[#allocation1 + $0x18] sm:$0xff pattern:$0x73625140] }
 0x165   : > { %v5998_v12 = vld [vmem:[%s8508_s19 + $0x468] sm:$0xf0] }
 0x166   : > { %3769 = vmatpush.bf16.msra.mxu3 %v6353_v50  ;;  %3744 = vmatpush.bf16.msra.mxu1 %v5809_v53  ;;  %v7951_v13 = vld [vmem:[%s8508_s19 + $0x64c] sm:$0xf]  ;;  %v6001_v21 = vor.u32 %v7887_v11, %v5998_v12 }
 0x167   : > { %v6254_v14 = vld [vmem:[%s8508_s19 + $0x668] sm:$0xf0] }
 0x168   : > { %3757 = vmatpush.bf16.msra.mxu2 %v6065_v56  ;;  %3732 = vmatpush.bf16.msra.mxu0 %v5521_v4  ;;  %v7751_v16 = vld [vmem:[%s8508_s19 + $0xc] sm:$0xf]  ;;  %v6257_v32 = vor.u32 %v7951_v13, %v6254_v14 }
 0x169   : > { %v5454_v19 = vld [vmem:[%s8508_s19 + $0x28] sm:$0xf0] }
 0x16a   : > { %3770 = vmatpush.bf16.msra.mxu3 %v6321_v61  ;;  %3745 = vmatpush.bf16.msra.mxu1 %v5777_v6  ;;  %v7815_v25 = vld [vmem:[%s8508_s19 + $0x20c] sm:$0xf]  ;;  %v5457_v43 = vor.u32 %v7751_v16, %v5454_v19 }
 0x16b   : > { %v5710_v28 = vld [vmem:[%s8508_s19 + $0x228] sm:$0xf0] }
 0x16c   : > { %3758 = vmatpush.bf16.msra.mxu2 %v6033_v31  ;;  %v7879_v29 = vld [vmem:[%s8508_s19 + $0x40c] sm:$0xf]  ;;  %3733 = vmatpush.bf16.msra.mxu0 %v5489_v15  ;;  %v5713_v47 = vor.u32 %v7815_v25, %v5710_v28 }
 0x16d   : > { %v5966_v33 = vld [vmem:[%s8508_s19 + $0x428] sm:$0xf0] }
 0x16e   : > { %3771 = vmatpush.bf16.msra.mxu3 %v6289_v10  ;;  %v7943_v34 = vld [vmem:[%s8508_s19 + $0x60c] sm:$0xf]  ;;  %3746 = vmatpush.bf16.msra.mxu1 %v5745_v20  ;;  %v5969_v48 = vor.u32 %v7879_v29, %v5966_v33  ;;  %v9046_v10 = vld.sshfl [vmem:[#allocation1] sm:$0xff pattern:$0x73625140]  ;;  %v9063_v33 = vpop.f32.mrf.mxu0 }
 0x16f   : > { %v6222_v37 = vld [vmem:[%s8508_s19 + $0x628] sm:$0xf0] }
 0x170   : > { %v8063_v39 = vld [vmem:[%s8508_s19 + $0x9cc] sm:$0xf]  ;;  %3759 = vmatpush.bf16.msra.mxu2 %v6001_v21  ;;  %v6225_v50 = vor.u32 %v7943_v34, %v6222_v37  ;;  %3734 = vmatpush.bf16.msra.mxu0 %v5457_v43 }
 0x171   : > { %v6702_v41 = vld [vmem:[%s8508_s19 + $0x9e8] sm:$0xf0] }
 0x172   : > { %v8127_v42 = vld [vmem:[%s8508_s19 + $0xbcc] sm:$0xf]  ;;  %3772 = vmatpush.bf16.msra.mxu3 %v6257_v32  ;;  %v6705_v51 = vor.u32 %v8063_v39, %v6702_v41  ;;  %3747 = vmatpush.bf16.msra.mxu1 %v5713_v47 }
 0x173   : > { %v6958_v44 = vld [vmem:[%s8508_s19 + $0xbe8] sm:$0xf0]  ;;  %3735 = vmatmul.bf16.vlgmr.msra.gmra.mxu0 %v9046_v10 }
 0x174   : > { %v8191_v45 = vld [vmem:[%s8508_s19 + $0xdcc] sm:$0xf]  ;;  %v6961_v24 = vor.u32 %v8127_v42, %v6958_v44  ;;  %3760 = vmatpush.bf16.msra.mxu2 %v5969_v48  ;;  %3779 = vmatpush.bf16.msrb.mxu0 %v6705_v51  ;;  %v9068_v42 = vpop.f32.mrf.mxu1 }
 0x175   : > { %v7214_v46 = vld [vmem:[%s8508_s19 + $0xde8] sm:$0xf0] }
 0x176   : > { %v8255_v49 = vld [vmem:[%s8508_s19 + $0xfcc] sm:$0xf]  ;;  %v7217_v52 = vor.u32 %v8191_v45, %v7214_v46  ;;  %3773 = vmatpush.bf16.msra.mxu3 %v6225_v50  ;;  %3792 = vmatpush.bf16.msrb.mxu1 %v6961_v24 }
 0x177   : > { %v7470_v23 = vld [vmem:[%s8508_s19 + $0xfe8] sm:$0xf0]  ;;  %3761 = vmatmul.bf16.vlgmr.msra.gmra.mxu2 %v9041_v8 }
 0x178   : > { %v8055_v26 = vld [vmem:[%s8508_s19 + $0x98c] sm:$0xf]  ;;  %v7473_v53 = vor.u32 %v8255_v49, %v7470_v23  ;;  %3805 = vmatpush.bf16.msrb.mxu2 %v7217_v52 }
 0x179   : > { %v6670_v54 = vld [vmem:[%s8508_s19 + $0x9a8] sm:$0xf0]  ;;  %3774 = vmatmul.bf16.vlgmr.msra.gmra.mxu3 %v9049_v36 }
 0x17a   : > { %v8119_v55 = vld [vmem:[%s8508_s19 + $0xb8c] sm:$0xf]  ;;  %v6673_v62 = vor.u32 %v8055_v26, %v6670_v54  ;;  %3818 = vmatpush.bf16.msrb.mxu3 %v7473_v53  ;;  %v9078_v26 = vpop.f32.mrf.mxu2 }
 0x17b   : > { %v6926_v56 = vld [vmem:[%s8508_s19 + $0xba8] sm:$0xf0] }
 0x17c   : > { %v8183_v57 = vld [vmem:[%s8508_s19 + $0xd8c] sm:$0xf]  ;;  %v6929_v63 = vor.u32 %v8119_v55, %v6926_v56  ;;  %3780 = vmatpush.bf16.msrb.mxu0 %v6673_v62  ;;  %v3530_v62 = vpop.f32.mrf.mxu0 }
 0x17d   : > { %v7182_v58 = vld [vmem:[%s8508_s19 + $0xda8] sm:$0xf0]  ;;  %v7932_v62 = vld [vmem:[%s8508_s19 + $0x5ac] sm:$0xf0] }
 0x17e   : > { %v8247_v59 = vld [vmem:[%s8508_s19 + $0xf8c] sm:$0xf]  ;;  %v7185_v0 = vor.u32 %v8183_v57, %v7182_v58  ;;  %3793 = vmatpush.bf16.msrb.mxu1 %v6929_v63  ;;  %v9083_v57 = vpop.f32.mrf.mxu3 }
 0x17f   : > { %v7438_v61 = vld [vmem:[%s8508_s19 + $0xfa8] sm:$0xf0] }
 0x180   : > { %v8047_v2 = vld [vmem:[%s8508_s19 + $0x94c] sm:$0xf]  ;;  %v7441_v5 = vor.u32 %v8247_v59, %v7438_v61  ;;  %3806 = vmatpush.bf16.msrb.mxu2 %v7185_v0 }
 0x181   : > { %v6638_v3 = vld [vmem:[%s8508_s19 + $0x968] sm:$0xf0] }
 0x182   : > { %v8111_v4 = vld [vmem:[%s8508_s19 + $0xb4c] sm:$0xf]  ;;  %v6641_v11 = vor.u32 %v8047_v2, %v6638_v3  ;;  %3819 = vmatpush.bf16.msrb.mxu3 %v7441_v5  ;;  %v3543_v5 = vpop.f32.mrf.mxu1 }
 0x183   : > { %v6894_v6 = vld [vmem:[%s8508_s19 + $0xb68] sm:$0xf0]  ;;  %v7796_v5 = vld [vmem:[%s8508_s19 + $0x16c] sm:$0xf0] }
 0x184   : > { %v8175_v31 = vld [vmem:[%s8508_s19 + $0xd4c] sm:$0xf]  ;;  %v6897_v13 = vor.u32 %v8111_v4, %v6894_v6  ;;  %3781 = vmatpush.bf16.msrb.mxu0 %v6641_v11 }
 0x185   : > { %v7150_v7 = vld [vmem:[%s8508_s19 + $0xd68] sm:$0xf0] }
 0x186   : > { %v8239_v9 = vld [vmem:[%s8508_s19 + $0xf4c] sm:$0xf]  ;;  %v7153_v14 = vor.u32 %v8175_v31, %v7150_v7  ;;  %3794 = vmatpush.bf16.msrb.mxu1 %v6897_v13 }
 0x187   : > { %v7406_v35 = vld [vmem:[%s8508_s19 + $0xf68] sm:$0xf0] }
 0x188   : > { %v9052_v12 = vld.sshfl [vmem:[#allocation1 + $0x8] sm:$0xff pattern:$0x73625140]  ;;  %v7409_v20 = vor.u32 %v8239_v9, %v7406_v35  ;;  %3807 = vmatpush.bf16.msrb.mxu2 %v7153_v14 }
 0x189   : > { %3748 = vmatmul.bf16.vlgmr.msra.gmra.mxu1 %v9052_v12  ;;  %v8039_v15 = vld [vmem:[%s8508_s19 + $0x90c] sm:$0xf] }
 0x18a   : > { %v6606_v16 = vld [vmem:[%s8508_s19 + $0x928] sm:$0xf0]  ;;  %3820 = vmatpush.bf16.msrb.mxu3 %v7409_v20 }
 0x18b   : > { %v8103_v19 = vld [vmem:[%s8508_s19 + $0xb0c] sm:$0xf]  ;;  %v6609_v32 = vor.u32 %v8039_v15, %v6606_v16 }
 0x18c   : > { %v6862_v21 = vld [vmem:[%s8508_s19 + $0xb28] sm:$0xf0] }
 0x18d   : > { %v8167_v25 = vld [vmem:[%s8508_s19 + $0xd0c] sm:$0xf]  ;;  %v6865_v34 = vor.u32 %v8103_v19, %v6862_v21  ;;  %3782 = vmatpush.bf16.msrb.mxu0 %v6609_v32 }
 0x18e   : > { %v7118_v28 = vld [vmem:[%s8508_s19 + $0xd28] sm:$0xf0] }
 0x18f   : > { %v8231_v29 = vld [vmem:[%s8508_s19 + $0xf0c] sm:$0xf]  ;;  %v7121_v37 = vor.u32 %v8167_v25, %v7118_v28  ;;  %3795 = vmatpush.bf16.msrb.mxu1 %v6865_v34  ;;  %v3556_v28 = vpop.f32.mrf.mxu2 }
 0x190   : > { %v7374_v30 = vld [vmem:[%s8508_s19 + $0xf28] sm:$0xf0]  ;;  %v7980_v28 = vld [vmem:[%s8508_s19 + $0x72c] sm:$0xf0] }
 0x191   : > { %v8031_v38 = vld [vmem:[%s8508_s19 + $0x8cc] sm:$0xf]  ;;  %v7377_v43 = vor.u32 %v8231_v29, %v7374_v30  ;;  %3808 = vmatpush.bf16.msrb.mxu2 %v7121_v37  ;;  %v3569_v37 = vpop.f32.mrf.mxu3 }
 0x192   : > { %v6574_v39 = vld [vmem:[%s8508_s19 + $0x8e8] sm:$0xf0]  ;;  %v3593_v37 = vpop.f32.mrf.mxu1 }
 0x193   : > { %v8095_v41 = vld [vmem:[%s8508_s19 + $0xacc] sm:$0xf]  ;;  %v6577_v49 = vor.u32 %v8031_v38, %v6574_v39  ;;  %3821 = vmatpush.bf16.msrb.mxu3 %v7377_v43  ;;  %v5684_v38 = vld [vmem:[%s8508_s19 + $0x1d0] sm:$0xf] }
 0x194   : > { %v6830_v44 = vld [vmem:[%s8508_s19 + $0xae8] sm:$0xf0]  ;;  %v7812_v39 = vld [vmem:[%s8508_s19 + $0x1ec] sm:$0xf0] }
 0x195   : > { %v8159_v45 = vld [vmem:[%s8508_s19 + $0xccc] sm:$0xf]  ;;  %v6833_v23 = vor.u32 %v8095_v41, %v6830_v44  ;;  %3783 = vmatpush.bf16.msrb.mxu0 %v6577_v49  ;;  %v5940_v41 = vld [vmem:[%s8508_s19 + $0x3d0] sm:$0xf] }
 0x196   : > { %v7086_v46 = vld [vmem:[%s8508_s19 + $0xce8] sm:$0xf0]  ;;  %v7876_v44 = vld [vmem:[%s8508_s19 + $0x3ec] sm:$0xf0] }
 0x197   : > { %v8223_v47 = vld [vmem:[%s8508_s19 + $0xecc] sm:$0xf]  ;;  %v7089_v50 = vor.u32 %v8159_v45, %v7086_v46  ;;  %3796 = vmatpush.bf16.msrb.mxu1 %v6833_v23  ;;  %v6196_v45 = vld [vmem:[%s8508_s19 + $0x5d0] sm:$0xf] }
 0x198   : > { %v7342_v48 = vld [vmem:[%s8508_s19 + $0xee8] sm:$0xf0]  ;;  %v7940_v46 = vld [vmem:[%s8508_s19 + $0x5ec] sm:$0xf0] }
 0x199   : > { %v8023_v51 = vld [vmem:[%s8508_s19 + $0x88c] sm:$0xf]  ;;  %v7345_v54 = vor.u32 %v8223_v47, %v7342_v48  ;;  %3809 = vmatpush.bf16.msrb.mxu2 %v7089_v50  ;;  %v6452_v49 = vld [vmem:[%s8508_s19 + $0x7d0] sm:$0xf] }
 0x19a   : > { %v6542_v24 = vld [vmem:[%s8508_s19 + $0x8a8] sm:$0xf0]  ;;  %v8004_v23 = vld [vmem:[%s8508_s19 + $0x7ec] sm:$0xf0] }
 0x19b   : > { %v8087_v52 = vld [vmem:[%s8508_s19 + $0xa8c] sm:$0xf]  ;;  %v6545_v61 = vor.u32 %v8023_v51, %v6542_v24  ;;  %3822 = vmatpush.bf16.msrb.mxu3 %v7345_v54  ;;  %v5685_v51 = vor.u32 %v7812_v39, %v5684_v38  ;;  %v3542_v24 = vadd.f32 %v9068_v42, %v9063_v33  ;;  %v6197_v54 = vor.u32 %v7940_v46, %v6196_v45  ;;  %v5556_v38 = vld [vmem:[%s8508_s19 + $0xd0] sm:$0xf] }
 0x19c   : > { %v6798_v55 = vld [vmem:[%s8508_s19 + $0xaa8] sm:$0xf0]  ;;  %v7780_v39 = vld [vmem:[%s8508_s19 + $0xec] sm:$0xf0] }
 0x19d   : > { %v8151_v53 = vld [vmem:[%s8508_s19 + $0xc8c] sm:$0xf]  ;;  %v6801_v63 = vor.u32 %v8087_v52, %v6798_v55  ;;  %3784 = vmatpush.bf16.msrb.mxu0 %v6545_v61  ;;  %v5941_v52 = vor.u32 %v7876_v44, %v5940_v41  ;;  %v5652_v55 = vld [vmem:[%s8508_s19 + $0x190] sm:$0xf]  ;;  %v3555_v42 = vadd.f32 %v9078_v26, %v3542_v24  ;;  %v3606_v24 = vpop.f32.mrf.mxu2 }
 0x19e   : > { %v7054_v56 = vld [vmem:[%s8508_s19 + $0xca8] sm:$0xf0]  ;;  %v6164_v61 = vld [vmem:[%s8508_s19 + $0x590] sm:$0xf] }
 0x19f   : > { %v8215_v58 = vld [vmem:[%s8508_s19 + $0xe8c] sm:$0xf]  ;;  %v7057_v0 = vor.u32 %v8151_v53, %v7054_v56  ;;  %3797 = vmatpush.bf16.msrb.mxu1 %v6801_v63  ;;  %v7804_v53 = vld [vmem:[%s8508_s19 + $0x1ac] sm:$0xf0] }
 0x1a0   : > { %v7310_v59 = vld [vmem:[%s8508_s19 + $0xea8] sm:$0xf0]  ;;  %v5908_v56 = vld [vmem:[%s8508_s19 + $0x390] sm:$0xf]  ;;  %v5653_v33 = vor.u32 %v7804_v53, %v5652_v55  ;;  %v3503_v53 = vadd.f32 %v8994_v60, %v8989_v27 }
 0x1a1   : > { %v8015_v2 = vld [vmem:[%s8508_s19 + $0x84c] sm:$0xf]  ;;  %v7313_v6 = vor.u32 %v8215_v58, %v7310_v59  ;;  %3810 = vmatpush.bf16.msrb.mxu2 %v7057_v0  ;;  %v6453_v58 = vor.u32 %v8004_v23, %v6452_v49  ;;  %v7868_v59 = vld [vmem:[%s8508_s19 + $0x3ac] sm:$0xf0]  ;;  %v5557_v23 = vor.u32 %v7780_v39, %v5556_v38 }
 0x1a2   : > { %v6510_v3 = vld [vmem:[%s8508_s19 + $0x868] sm:$0xf0]  ;;  %v6420_v63 = vld [vmem:[%s8508_s19 + $0x790] sm:$0xf] }
 0x1a3   : > { %v8079_v4 = vld [vmem:[%s8508_s19 + $0xa4c] sm:$0xf]  ;;  %v6513_v13 = vor.u32 %v8015_v2, %v6510_v3  ;;  %3823 = vmatpush.bf16.msrb.mxu3 %v7313_v6  ;;  %v7996_v0 = vld [vmem:[%s8508_s19 + $0x7ac] sm:$0xf0]  ;;  %v5909_v2 = vor.u32 %v7868_v59, %v5908_v56  ;;  %v6165_v3 = vor.u32 %v7932_v62, %v6164_v61  ;;  %v3619_v59 = vpop.f32.mrf.mxu3 }
 0x1a4   : > { %v6766_v31 = vld [vmem:[%s8508_s19 + $0xa68] sm:$0xf0]  ;;  %v5876_v6 = vld [vmem:[%s8508_s19 + $0x350] sm:$0xf] }
 0x1a5   : > { %v8143_v7 = vld [vmem:[%s8508_s19 + $0xc4c] sm:$0xf]  ;;  %v6769_v16 = vor.u32 %v8079_v4, %v6766_v31  ;;  %3785 = vmatpush.bf16.msrb.mxu0 %v6513_v13  ;;  %v5620_v4 = vld [vmem:[%s8508_s19 + $0x150] sm:$0xf]  ;;  %v6421_v31 = vor.u32 %v7996_v0, %v6420_v63  ;;  %v3568_v13 = vadd.f32 %v9083_v57, %v3555_v42 }
 0x1a6   : > { %v7022_v9 = vld [vmem:[%s8508_s19 + $0xc68] sm:$0xf0]  ;;  %v6388_v26 = vld [vmem:[%s8508_s19 + $0x750] sm:$0xf] }
 0x1a7   : > { %v8207_v35 = vld [vmem:[%s8508_s19 + $0xe4c] sm:$0xf]  ;;  %v7025_v19 = vor.u32 %v8143_v7, %v7022_v9  ;;  %3798 = vmatpush.bf16.msrb.mxu1 %v6769_v16  ;;  %v7860_v7 = vld [vmem:[%s8508_s19 + $0x36c] sm:$0xf0] }
 0x1a8   : > { %v7278_v11 = vld [vmem:[%s8508_s19 + $0xe68] sm:$0xf0]  ;;  %v6132_v9 = vld [vmem:[%s8508_s19 + $0x550] sm:$0xf] }
 0x1a9   : > { %v8007_v14 = vld [vmem:[%s8508_s19 + $0x80c] sm:$0xf]  ;;  %v7281_v29 = vor.u32 %v8207_v35, %v7278_v11  ;;  %3811 = vmatpush.bf16.msrb.mxu2 %v7025_v19  ;;  %v7924_v35 = vld [vmem:[%s8508_s19 + $0x56c] sm:$0xf0] }
 0x1aa   : > { %v6478_v15 = vld [vmem:[%s8508_s19 + $0x828] sm:$0xf0]  ;;  %v7988_v11 = vld [vmem:[%s8508_s19 + $0x76c] sm:$0xf0] }
 0x1ab   : > { %v8071_v20 = vld [vmem:[%s8508_s19 + $0xa0c] sm:$0xf]  ;;  %v6481_v43 = vor.u32 %v8007_v14, %v6478_v15  ;;  %3824 = vmatpush.bf16.msrb.mxu3 %v7281_v29  ;;  %v5877_v14 = vor.u32 %v7860_v7, %v5876_v6  ;;  %v6133_v15 = vor.u32 %v7924_v35, %v6132_v9  ;;  %v7788_v16 = vld [vmem:[%s8508_s19 + $0x12c] sm:$0xf0]  ;;  %v6389_v19 = vor.u32 %v7988_v11, %v6388_v26  ;;  %v3580_v29 = vpop.f32.mrf.mxu0  ;;  %v3595_v7 = vpop.f32.mrf.mxu1  ;;  %v316_v35 = vld [vmem:[#allocation2 + $0x10] sm:$0xff] }
 0x1ac   : > { %v6734_v21 = vld [vmem:[%s8508_s19 + $0xa28] sm:$0xf0]  ;;  %v5812_v41 = vld [vmem:[%s8508_s19 + $0x2d0] sm:$0xf]  ;;  %v3516_v9 = vadd.f32 %v8999_v1, %v3503_v53  ;;  %v3621_v38 = vpop.f32.mrf.mxu3 }
 0x1ad   : > { %v8135_v25 = vld [vmem:[%s8508_s19 + $0xc0c] sm:$0xf]  ;;  %v6737_v47 = vor.u32 %v8071_v20, %v6734_v21  ;;  %3786 = vmatpush.bf16.msrb.mxu0 %v6481_v43  ;;  %v7852_v20 = vld [vmem:[%s8508_s19 + $0x32c] sm:$0xf0] }
 0x1ae   : > { %v6990_v30 = vld [vmem:[%s8508_s19 + $0xc28] sm:$0xf0]  ;;  %v6100_v21 = vld [vmem:[%s8508_s19 + $0x510] sm:$0xf] }
 0x1af   : > { %v8199_v32 = vld [vmem:[%s8508_s19 + $0xe0c] sm:$0xf]  ;;  %v6993_v48 = vor.u32 %v8135_v25, %v6990_v30  ;;  %3799 = vmatpush.bf16.msrb.mxu1 %v6737_v47  ;;  %v7916_v25 = vld [vmem:[%s8508_s19 + $0x52c] sm:$0xf0] }
 0x1b0   : > { %v7246_v34 = vld [vmem:[%s8508_s19 + $0xe28] sm:$0xf0]  ;;  %3787 = vmatmul.bf16.vlgmr.msrb.gmra.mxu0 %v8961_v17  ;;  %v5588_v17 = vld [vmem:[%s8508_s19 + $0x110] sm:$0xf] }
 0x1b1   : > { %v7249_v50 = vor.u32 %v8199_v32, %v7246_v34  ;;  %3812 = vmatpush.bf16.msrb.mxu2 %v6993_v48  ;;  %3831 = vmatpush.bf16.msra.mxu0 %v5685_v51  ;;  %v5589_v57 = vor.u32 %v7788_v16, %v5588_v17  ;;  %v6101_v32 = vor.u32 %v7916_v25, %v6100_v21  ;;  %v7844_v44 = vld [vmem:[%s8508_s19 + $0x2ec] sm:$0xf0] }
 0x1b2   : > { %3800 = vmatmul.bf16.vlgmr.msrb.gmra.mxu1 %v8969_v22  ;;  %v6356_v22 = vld [vmem:[%s8508_s19 + $0x710] sm:$0xf]  ;;  %v3581_v34 = vadd.f32 %v3580_v29, %v3568_v13  ;;  %v3608_v29 = vpop.f32.mrf.mxu2 }
 0x1b3   : > { %3825 = vmatpush.bf16.msrb.mxu3 %v7249_v50  ;;  %3844 = vmatpush.bf16.msra.mxu1 %v5941_v52  ;;  %v6357_v43 = vor.u32 %v7980_v28, %v6356_v22  ;;  %v6068_v45 = vld [vmem:[%s8508_s19 + $0x4d0] sm:$0xf]  ;;  %v5813_v50 = vor.u32 %v7844_v44, %v5812_v41  ;;  %v3582_v27 = vpop.f32.mrf.mxu0 }
 0x1b4   : > { %3813 = vmatmul.bf16.vlgmr.msrb.gmra.mxu2 %v8955_v40  ;;  %v5621_v40 = vor.u32 %v7796_v5, %v5620_v4  ;;  %v7908_v46 = vld [vmem:[%s8508_s19 + $0x4ec] sm:$0xf0]  ;;  %v3594_v47 = vadd.f32 %v3593_v37, %v3581_v34 }
 0x1b5   : > { %3857 = vmatpush.bf16.msra.mxu2 %v6197_v54  ;;  %3832 = vmatpush.bf16.msra.mxu0 %v5653_v33  ;;  %v6324_v48 = vld [vmem:[%s8508_s19 + $0x6d0] sm:$0xf]  ;;  %v6069_v51 = vor.u32 %v7908_v46, %v6068_v45 }
 0x1b6   : > { %3826 = vmatmul.bf16.vlgmr.msrb.gmra.mxu3 %v8964_v18  ;;  %v5844_v18 = vld [vmem:[%s8508_s19 + $0x310] sm:$0xf] }
 0x1b7   : > { %3870 = vmatpush.bf16.msra.mxu3 %v6453_v58  ;;  %3845 = vmatpush.bf16.msra.mxu1 %v5909_v2  ;;  %v5845_v30 = vor.u32 %v7852_v20, %v5844_v18  ;;  %v7972_v49 = vld [vmem:[%s8508_s19 + $0x6ec] sm:$0xf0]  ;;  %v3607_v58 = vadd.f32 %v3606_v24, %v3594_v47 }
 0x1b8   : > { %v5524_v52 = vld [vmem:[%s8508_s19 + $0x90] sm:$0xf]  ;;  %v6325_v56 = vor.u32 %v7972_v49, %v6324_v48 }
 0x1b9   : > { %3858 = vmatpush.bf16.msra.mxu2 %v6165_v3  ;;  %3833 = vmatpush.bf16.msra.mxu0 %v5621_v40  ;;  %v7772_v54 = vld [vmem:[%s8508_s19 + $0xac] sm:$0xf0]  ;;  %v3620_v42 = vadd.f32 %v3619_v59, %v3607_v58 }
 0x1ba   : > { %v5780_v55 = vld [vmem:[%s8508_s19 + $0x290] sm:$0xf]  ;;  %v5525_v2 = vor.u32 %v7772_v54, %v5524_v52 }
 0x1bb   : > { %3871 = vmatpush.bf16.msra.mxu3 %v6421_v31  ;;  %3846 = vmatpush.bf16.msra.mxu1 %v5877_v14  ;;  %v7836_v61 = vld [vmem:[%s8508_s19 + $0x2ac] sm:$0xf0]  ;;  %v4255_v26 = vrot.slane %v3620_v42, 4 }
 0x1bc   : > { %v6036_v62 = vld [vmem:[%s8508_s19 + $0x490] sm:$0xf]  ;;  %v5781_v60 = vor.u32 %v7836_v61, %v5780_v55 }
 0x1bd   : > { %3859 = vmatpush.bf16.msra.mxu2 %v6133_v15  ;;  %3834 = vmatpush.bf16.msra.mxu0 %v5589_v57  ;;  %v7900_v63 = vld [vmem:[%s8508_s19 + $0x4ac] sm:$0xf0]  ;;  %v4260_v17 = vsel %vm4259_vm0, %v3516_v9, %v4255_v26 }
 0x1be   : > { %v6292_v0 = vld [vmem:[%s8508_s19 + $0x690] sm:$0xf]  ;;  %v6037_v4 = vor.u32 %v7900_v63, %v6036_v62  ;;  %v4268_v20 = vadd.f32 %v4260_v17, %v316_v35 }
 0x1bf   : > { %3872 = vmatpush.bf16.msra.mxu3 %v6389_v19  ;;  %3847 = vmatpush.bf16.msra.mxu1 %v5845_v30  ;;  %v7964_v33 = vld [vmem:[%s8508_s19 + $0x6ac] sm:$0xf0] }
 0x1c0   : > { %v5492_v3 = vld [vmem:[%s8508_s19 + $0x50] sm:$0xf]  ;;  %v6293_v11 = vor.u32 %v7964_v33, %v6292_v0  ;;  %4272 = vst [vmem:[#allocation2 + $0x10] sm:$0xff] %v4268_v20 }
 0x1c1   : > { %3860 = vmatpush.bf16.msra.mxu2 %v6101_v32  ;;  %3835 = vmatpush.bf16.msra.mxu0 %v5557_v23  ;;  %v7764_v5 = vld [vmem:[%s8508_s19 + $0x6c] sm:$0xf0] }
 0x1c2   : > { %v5748_v6 = vld [vmem:[%s8508_s19 + $0x250] sm:$0xf]  ;;  %v5493_v16 = vor.u32 %v7764_v5, %v5492_v3 }
 0x1c3   : > { %3873 = vmatpush.bf16.msra.mxu3 %v6357_v43  ;;  %3848 = vmatpush.bf16.msra.mxu1 %v5813_v50  ;;  %v7828_v31 = vld [vmem:[%s8508_s19 + $0x26c] sm:$0xf0] }
 0x1c4   : > { %v6004_v40 = vld [vmem:[%s8508_s19 + $0x450] sm:$0xf]  ;;  %v5749_v21 = vor.u32 %v7828_v31, %v5748_v6 }
 0x1c5   : > { %3861 = vmatpush.bf16.msra.mxu2 %v6069_v51  ;;  %v7892_v13 = vld [vmem:[%s8508_s19 + $0x46c] sm:$0xf0]  ;;  %3836 = vmatpush.bf16.msra.mxu0 %v5525_v2 }
 0x1c6   : > { %v6260_v14 = vld [vmem:[%s8508_s19 + $0x650] sm:$0xf]  ;;  %v6005_v25 = vor.u32 %v7892_v13, %v6004_v40 }
 0x1c7   : > { %3874 = vmatpush.bf16.msra.mxu3 %v6325_v56  ;;  %v7956_v15 = vld [vmem:[%s8508_s19 + $0x66c] sm:$0xf0]  ;;  %3849 = vmatpush.bf16.msra.mxu1 %v5781_v60 }
 0x1c8   : > { %v5460_v18 = vld [vmem:[%s8508_s19 + $0x10] sm:$0xf]  ;;  %v6261_v30 = vor.u32 %v7956_v15, %v6260_v14 }
 0x1c9   : > { %v7756_v1 = vld [vmem:[%s8508_s19 + $0x2c] sm:$0xf0]  ;;  %3862 = vmatpush.bf16.msra.mxu2 %v6037_v4  ;;  %3837 = vmatpush.bf16.msra.mxu0 %v5493_v16  ;;  %v3632_v16 = vpop.f32.mrf.mxu0 }
 0x1ca   : > { %v5716_v19 = vld [vmem:[%s8508_s19 + $0x210] sm:$0xf]  ;;  %v5461_v43 = vor.u32 %v7756_v1, %v5460_v18 }
 0x1cb   : > { %v7820_v22 = vld [vmem:[%s8508_s19 + $0x22c] sm:$0xf0]  ;;  %3875 = vmatpush.bf16.msra.mxu3 %v6293_v11  ;;  %3850 = vmatpush.bf16.msra.mxu1 %v5749_v21 }
 0x1cc   : > { %v5972_v28 = vld [vmem:[%s8508_s19 + $0x410] sm:$0xf]  ;;  %v5717_v47 = vor.u32 %v7820_v22, %v5716_v19 }
 0x1cd   : > { %v7884_v57 = vld [vmem:[%s8508_s19 + $0x42c] sm:$0xf0]  ;;  %3863 = vmatpush.bf16.msra.mxu2 %v6005_v25  ;;  %3838 = vmatpush.bf16.msra.mxu0 %v5461_v43  ;;  %v3645_v25 = vpop.f32.mrf.mxu1 }
 0x1ce   : > { %v6228_v32 = vld [vmem:[%s8508_s19 + $0x610] sm:$0xf]  ;;  %v5973_v48 = vor.u32 %v7884_v57, %v5972_v28 }
 0x1cf   : > { %v7948_v34 = vld [vmem:[%s8508_s19 + $0x62c] sm:$0xf0]  ;;  %3876 = vmatpush.bf16.msra.mxu3 %v6261_v30  ;;  %3851 = vmatpush.bf16.msra.mxu1 %v5717_v47  ;;  %v3646_v30 = vadd.f32 %v3645_v25, %v3632_v16  ;;  %v6198_v16 = vld [vmem:[%s8508_s19 + $0x5f0] sm:$0xf0] }
 0x1d0   : > { %v6708_v37 = vld [vmem:[%s8508_s19 + $0x9d0] sm:$0xf]  ;;  %v6229_v50 = vor.u32 %v7948_v34, %v6228_v32  ;;  %3839 = vmatmul.bf16.vlgmr.msra.gmra.mxu0 %v9046_v10 }
 0x1d1   : > { %v8068_v39 = vld [vmem:[%s8508_s19 + $0x9ec] sm:$0xf0]  ;;  %3864 = vmatpush.bf16.msra.mxu2 %v5973_v48 }
 0x1d2   : > { %v6964_v41 = vld [vmem:[%s8508_s19 + $0xbd0] sm:$0xf]  ;;  %v6709_v51 = vor.u32 %v8068_v39, %v6708_v37  ;;  %3852 = vmatmul.bf16.vlgmr.msra.gmra.mxu1 %v9052_v12 }
 0x1d3   : > { %v8132_v44 = vld [vmem:[%s8508_s19 + $0xbec] sm:$0xf0]  ;;  %3877 = vmatpush.bf16.msra.mxu3 %v6229_v50  ;;  %v3671_v50 = vpop.f32.mrf.mxu3 }
 0x1d4   : > { %v7220_v45 = vld [vmem:[%s8508_s19 + $0xdd0] sm:$0xf]  ;;  %v6965_v24 = vor.u32 %v8132_v44, %v6964_v41  ;;  %3883 = vmatpush.bf16.msrb.mxu0 %v6709_v51  ;;  %3865 = vmatmul.bf16.vlgmr.msra.gmra.mxu2 %v9041_v8 }
 0x1d5   : > { %v8196_v46 = vld [vmem:[%s8508_s19 + $0xdec] sm:$0xf0] }
 0x1d6   : > { %v7476_v49 = vld [vmem:[%s8508_s19 + $0xfd0] sm:$0xf]  ;;  %v7221_v52 = vor.u32 %v8196_v46, %v7220_v45  ;;  %3896 = vmatpush.bf16.msrb.mxu1 %v6965_v24  ;;  %3878 = vmatmul.bf16.vlgmr.msra.gmra.mxu3 %v9049_v36  ;;  %v3658_v45 = vpop.f32.mrf.mxu2 }
 0x1d7   : > { %v8260_v23 = vld [vmem:[%s8508_s19 + $0xfec] sm:$0xf0] }
 0x1d8   : > { %v6676_v54 = vld [vmem:[%s8508_s19 + $0x990] sm:$0xf]  ;;  %v7477_v56 = vor.u32 %v8260_v23, %v7476_v49  ;;  %3909 = vmatpush.bf16.msrb.mxu2 %v7221_v52  ;;  %v3659_v23 = vadd.f32 %v3658_v45, %v3646_v30  ;;  %v7864_v30 = vld [vmem:[%s8508_s19 + $0x394] sm:$0xf] }
 0x1d9   : > { %v8060_v55 = vld [vmem:[%s8508_s19 + $0x9ac] sm:$0xf0] }
 0x1da   : > { %v6932_v53 = vld [vmem:[%s8508_s19 + $0xb90] sm:$0xf]  ;;  %v6677_v0 = vor.u32 %v8060_v55, %v6676_v54  ;;  %3922 = vmatpush.bf16.msrb.mxu3 %v7477_v56  ;;  %v9231_v54 = vadd.f32 %v3671_v50, %v3659_v23  ;;  %v3634_v55 = vpop.f32.mrf.mxu0  ;;  %v5878_v50 = vld [vmem:[%s8508_s19 + $0x370] sm:$0xf0] }
 0x1db   : > { %v8124_v58 = vld [vmem:[%s8508_s19 + $0xbac] sm:$0xf0]  ;;  %v9277_v55 = vld.sshfl [vmem:[#allocation1 + $0x38] sm:$0xff pattern:$0x73625140] }
 0x1dc   : > { %v7188_v59 = vld [vmem:[%s8508_s19 + $0xd90] sm:$0xf]  ;;  %v6933_v33 = vor.u32 %v8124_v58, %v6932_v53  ;;  %3884 = vmatpush.bf16.msrb.mxu0 %v6677_v0 }
 0x1dd   : > { %v8188_v61 = vld [vmem:[%s8508_s19 + $0xdac] sm:$0xf0] }
 0x1de   : > { %v7444_v62 = vld [vmem:[%s8508_s19 + $0xf90] sm:$0xf]  ;;  %v7189_v42 = vor.u32 %v8188_v61, %v7188_v59  ;;  %3897 = vmatpush.bf16.msrb.mxu1 %v6933_v33 }
 0x1df   : > { %v8252_v63 = vld [vmem:[%s8508_s19 + $0xfac] sm:$0xf0] }
 0x1e0   : > { %v6644_v2 = vld [vmem:[%s8508_s19 + $0x950] sm:$0xf]  ;;  %v7445_v60 = vor.u32 %v8252_v63, %v7444_v62  ;;  %3910 = vmatpush.bf16.msrb.mxu2 %v7189_v42  ;;  %v3647_v62 = vpop.f32.mrf.mxu1 }
 0x1e1   : > { %v8052_v3 = vld [vmem:[%s8508_s19 + $0x96c] sm:$0xf0] }
 0x1e2   : > { %v6900_v27 = vld [vmem:[%s8508_s19 + $0xb50] sm:$0xf]  ;;  %v6645_v9 = vor.u32 %v8052_v3, %v6644_v2  ;;  %3923 = vmatpush.bf16.msrb.mxu3 %v7445_v60 }
 0x1e3   : > { %v8116_v4 = vld [vmem:[%s8508_s19 + $0xb6c] sm:$0xf0] }
 0x1e4   : > { %v7156_v5 = vld [vmem:[%s8508_s19 + $0xd50] sm:$0xf]  ;;  %v6901_v35 = vor.u32 %v8116_v4, %v6900_v27  ;;  %3885 = vmatpush.bf16.msrb.mxu0 %v6645_v9 }
 0x1e5   : > { %v8180_v6 = vld [vmem:[%s8508_s19 + $0xd6c] sm:$0xf0] }
 0x1e6   : > { %v7412_v31 = vld [vmem:[%s8508_s19 + $0xf50] sm:$0xf]  ;;  %v7157_v26 = vor.u32 %v8180_v6, %v7156_v5  ;;  %3898 = vmatpush.bf16.msrb.mxu1 %v6901_v35  ;;  %v3660_v35 = vpop.f32.mrf.mxu2 }
 0x1e7   : > { %v8244_v7 = vld [vmem:[%s8508_s19 + $0xf6c] sm:$0xf0]  ;;  %v5558_v35 = vld [vmem:[%s8508_s19 + $0xf0] sm:$0xf0] }
 0x1e8   : > { %v6612_v8 = vld [vmem:[%s8508_s19 + $0x910] sm:$0xf]  ;;  %v7413_v10 = vor.u32 %v8244_v7, %v7412_v31  ;;  %3911 = vmatpush.bf16.msrb.mxu2 %v7157_v26 }
 0x1e9   : > { %v8044_v11 = vld [vmem:[%s8508_s19 + $0x92c] sm:$0xf0] }
 0x1ea   : > { %v6868_v40 = vld [vmem:[%s8508_s19 + $0xb10] sm:$0xf]  ;;  %v6613_v12 = vor.u32 %v8044_v11, %v6612_v8  ;;  %3924 = vmatpush.bf16.msrb.mxu3 %v7413_v10  ;;  %v3673_v10 = vpop.f32.mrf.mxu3 }
 0x1eb   : > { %v8108_v13 = vld [vmem:[%s8508_s19 + $0xb2c] sm:$0xf0]  ;;  %v5814_v10 = vld [vmem:[%s8508_s19 + $0x2f0] sm:$0xf0] }
 0x1ec   : > { %v7124_v36 = vld [vmem:[%s8508_s19 + $0xd10] sm:$0xf]  ;;  %v6869_v18 = vor.u32 %v8108_v13, %v6868_v40  ;;  %3886 = vmatpush.bf16.msrb.mxu0 %v6613_v12  ;;  %v7808_v13 = vld [vmem:[%s8508_s19 + $0x1d4] sm:$0xf] }
 0x1ed   : > { %v8172_v14 = vld [vmem:[%s8508_s19 + $0xd2c] sm:$0xf0]  ;;  %v7936_v12 = vld [vmem:[%s8508_s19 + $0x5d4] sm:$0xf] }
 0x1ee   : > { %v7380_v15 = vld [vmem:[%s8508_s19 + $0xf10] sm:$0xf]  ;;  %v7125_v1 = vor.u32 %v8172_v14, %v7124_v36  ;;  %3899 = vmatpush.bf16.msrb.mxu1 %v6869_v18  ;;  %v5686_v36 = vld [vmem:[%s8508_s19 + $0x1f0] sm:$0xf0] }
 0x1ef   : > { %v8236_v17 = vld [vmem:[%s8508_s19 + $0xf2c] sm:$0xf0]  ;;  %v7872_v14 = vld [vmem:[%s8508_s19 + $0x3d4] sm:$0xf]  ;;  %v5689_v25 = vor.u32 %v7808_v13, %v5686_v36 }
 0x1f0   : > { %v6580_v19 = vld [vmem:[%s8508_s19 + $0x8d0] sm:$0xf]  ;;  %v7381_v22 = vor.u32 %v8236_v17, %v7380_v15  ;;  %3912 = vmatpush.bf16.msrb.mxu2 %v7125_v1  ;;  %v5942_v17 = vld [vmem:[%s8508_s19 + $0x3f0] sm:$0xf0] }
 0x1f1   : > { %v8036_v20 = vld [vmem:[%s8508_s19 + $0x8ec] sm:$0xf0]  ;;  %v7904_v13 = vld [vmem:[%s8508_s19 + $0x4d4] sm:$0xf] }
 0x1f2   : > { %v6836_v21 = vld [vmem:[%s8508_s19 + $0xad0] sm:$0xf]  ;;  %v6581_v37 = vor.u32 %v8036_v20, %v6580_v19  ;;  %3925 = vmatpush.bf16.msrb.mxu3 %v7381_v22  ;;  %v8000_v19 = vld [vmem:[%s8508_s19 + $0x7d4] sm:$0xf]  ;;  %v5945_v22 = vor.u32 %v7872_v14, %v5942_v17 }
 0x1f3   : > { %v8100_v28 = vld [vmem:[%s8508_s19 + $0xaec] sm:$0xf0]  ;;  %v6454_v20 = vld [vmem:[%s8508_s19 + $0x7f0] sm:$0xf0] }
 0x1f4   : > { %v7092_v57 = vld [vmem:[%s8508_s19 + $0xcd0] sm:$0xf]  ;;  %v6837_v38 = vor.u32 %v8100_v28, %v6836_v21  ;;  %3887 = vmatpush.bf16.msrb.mxu0 %v6581_v37  ;;  %v6201_v28 = vor.u32 %v7936_v12, %v6198_v16  ;;  %v7928_v37 = vld [vmem:[%s8508_s19 + $0x594] sm:$0xf] }
 0x1f5   : > { %v8164_v29 = vld [vmem:[%s8508_s19 + $0xcec] sm:$0xf0]  ;;  %v6070_v36 = vld [vmem:[%s8508_s19 + $0x4f0] sm:$0xf0] }
 0x1f6   : > { %v7348_v32 = vld [vmem:[%s8508_s19 + $0xed0] sm:$0xf]  ;;  %v7093_v39 = vor.u32 %v8164_v29, %v7092_v57  ;;  %3900 = vmatpush.bf16.msrb.mxu1 %v6837_v38  ;;  %v7800_v57 = vld [vmem:[%s8508_s19 + $0x194] sm:$0xf]  ;;  %v6073_v16 = vor.u32 %v7904_v13, %v6070_v36 }
 0x1f7   : > { %v8228_v34 = vld [vmem:[%s8508_s19 + $0xeec] sm:$0xf0]  ;;  %v5654_v29 = vld [vmem:[%s8508_s19 + $0x1b0] sm:$0xf0] }
 0x1f8   : > { %v6548_v41 = vld [vmem:[%s8508_s19 + $0x890] sm:$0xf]  ;;  %v7349_v46 = vor.u32 %v8228_v34, %v7348_v32  ;;  %3913 = vmatpush.bf16.msrb.mxu2 %v7093_v39  ;;  %v6457_v32 = vor.u32 %v8000_v19, %v6454_v20  ;;  %v5910_v34 = vld [vmem:[%s8508_s19 + $0x3b0] sm:$0xf0]  ;;  %v9307_v20 = vpop.f32.mrf.mxu2 }
 0x1f9   : > { %v8028_v43 = vld [vmem:[%s8508_s19 + $0x8ac] sm:$0xf0]  ;;  %v6166_v38 = vld [vmem:[%s8508_s19 + $0x5b0] sm:$0xf0] }
 0x1fa   : > { %v6804_v44 = vld [vmem:[%s8508_s19 + $0xa90] sm:$0xf]  ;;  %v6549_v52 = vor.u32 %v8028_v43, %v6548_v41  ;;  %3926 = vmatpush.bf16.msrb.mxu3 %v7349_v46  ;;  %v7992_v39 = vld [vmem:[%s8508_s19 + $0x794] sm:$0xf]  ;;  %v5657_v43 = vor.u32 %v7800_v57, %v5654_v29  ;;  %v6169_v45 = vor.u32 %v7928_v37, %v6166_v38  ;;  %v9312_v57 = vpop.f32.mrf.mxu3 }
 0x1fb   : > { %v8092_v47 = vld [vmem:[%s8508_s19 + $0xaac] sm:$0xf0]  ;;  %v6422_v41 = vld [vmem:[%s8508_s19 + $0x7b0] sm:$0xf0] }
 0x1fc   : > { %v7060_v48 = vld [vmem:[%s8508_s19 + $0xc90] sm:$0xf]  ;;  %v6805_v53 = vor.u32 %v8092_v47, %v6804_v44  ;;  %3888 = vmatpush.bf16.msrb.mxu0 %v6549_v52  ;;  %v5913_v44 = vor.u32 %v7864_v30, %v5910_v34  ;;  %v7792_v46 = vld [vmem:[%s8508_s19 + $0x154] sm:$0xf] }
 0x1fd   : > { %v8156_v49 = vld [vmem:[%s8508_s19 + $0xcac] sm:$0xf0]  ;;  %v5622_v47 = vld [vmem:[%s8508_s19 + $0x170] sm:$0xf0] }
 0x1fe   : > { %v7316_v51 = vld [vmem:[%s8508_s19 + $0xe90] sm:$0xf]  ;;  %v7061_v56 = vor.u32 %v8156_v49, %v7060_v48  ;;  %3901 = vmatpush.bf16.msrb.mxu1 %v6805_v53  ;;  %v7856_v48 = vld [vmem:[%s8508_s19 + $0x354] sm:$0xf]  ;;  %v6425_v49 = vor.u32 %v7992_v39, %v6422_v41 }
 0x1ff   : > { %v8220_v24 = vld [vmem:[%s8508_s19 + $0xeac] sm:$0xf0]  ;;  %v9274_v52 = vld.sshfl [vmem:[#allocation1 + $0x20] sm:$0xff pattern:$0x73625140] }
 0x200   : > { %v6516_v58 = vld [vmem:[%s8508_s19 + $0x850] sm:$0xf]  ;;  %v7317_v63 = vor.u32 %v8220_v24, %v7316_v51  ;;  %3914 = vmatpush.bf16.msrb.mxu2 %v7061_v56  ;;  %v7920_v51 = vld [vmem:[%s8508_s19 + $0x554] sm:$0xf] }
 0x201   : > { %v8020_v59 = vld [vmem:[%s8508_s19 + $0x86c] sm:$0xf0]  ;;  %v6134_v24 = vld [vmem:[%s8508_s19 + $0x570] sm:$0xf0] }
 0x202   : > { %v6772_v61 = vld [vmem:[%s8508_s19 + $0xa50] sm:$0xf]  ;;  %v6517_v27 = vor.u32 %v8020_v59, %v6516_v58  ;;  %3927 = vmatpush.bf16.msrb.mxu3 %v7317_v63  ;;  %v7984_v53 = vld [vmem:[%s8508_s19 + $0x754] sm:$0xf]  ;;  %v5625_v58 = vor.u32 %v7792_v46, %v5622_v47  ;;  %v6137_v62 = vor.u32 %v7920_v51, %v6134_v24 }
 0x203   : > { %v8084_v0 = vld [vmem:[%s8508_s19 + $0xa6c] sm:$0xf0]  ;;  %v6390_v56 = vld [vmem:[%s8508_s19 + $0x770] sm:$0xf0] }
 0x204   : > { %v7028_v33 = vld [vmem:[%s8508_s19 + $0xc50] sm:$0xf]  ;;  %v6773_v5 = vor.u32 %v8084_v0, %v6772_v61  ;;  %3889 = vmatpush.bf16.msrb.mxu0 %v6517_v27  ;;  %v9282_v59 = vld.sshfl [vmem:[#allocation1 + $0x28] sm:$0xff pattern:$0x73625140]  ;;  %v5881_v61 = vor.u32 %v7856_v48, %v5878_v50 }
 0x205   : > { %v8148_v42 = vld [vmem:[%s8508_s19 + $0xc6c] sm:$0xf0]  ;;  %v7784_v63 = vld [vmem:[%s8508_s19 + $0x114] sm:$0xf] }
 0x206   : > { %v7284_v2 = vld [vmem:[%s8508_s19 + $0xe50] sm:$0xf]  ;;  %v7029_v6 = vor.u32 %v8148_v42, %v7028_v33  ;;  %3902 = vmatpush.bf16.msrb.mxu1 %v6773_v5  ;;  %v5590_v0 = vld [vmem:[%s8508_s19 + $0x130] sm:$0xf0]  ;;  %v6393_v42 = vor.u32 %v7984_v53, %v6390_v56 }
 0x207   : > { %v8212_v3 = vld [vmem:[%s8508_s19 + $0xe6c] sm:$0xf0]  ;;  %v7848_v33 = vld [vmem:[%s8508_s19 + $0x314] sm:$0xf]  ;;  %v5593_v5 = vor.u32 %v7784_v63, %v5590_v0  ;;  %v3712_v0 = vpop.f32.mrf.mxu2 }
 0x208   : > { %v6484_v60 = vld [vmem:[%s8508_s19 + $0x810] sm:$0xf]  ;;  %v7285_v26 = vor.u32 %v8212_v3, %v7284_v2  ;;  %3915 = vmatpush.bf16.msrb.mxu2 %v7029_v6  ;;  %v5846_v2 = vld [vmem:[%s8508_s19 + $0x330] sm:$0xf0]  ;;  %v3684_v6 = vpop.f32.mrf.mxu0 }
 0x209   : > { %v8012_v4 = vld [vmem:[%s8508_s19 + $0x82c] sm:$0xf0]  ;;  %v7912_v3 = vld [vmem:[%s8508_s19 + $0x514] sm:$0xf] }
 0x20a   : > { %v6740_v31 = vld [vmem:[%s8508_s19 + $0xa10] sm:$0xf]  ;;  %v6485_v15 = vor.u32 %v8012_v4, %v6484_v60  ;;  %3928 = vmatpush.bf16.msrb.mxu3 %v7285_v26  ;;  %v6102_v27 = vld [vmem:[%s8508_s19 + $0x530] sm:$0xf0] }
 0x20b   : > { %v8076_v7 = vld [vmem:[%s8508_s19 + $0xa2c] sm:$0xf0]  ;;  %v7976_v60 = vld [vmem:[%s8508_s19 + $0x714] sm:$0xf] }
 0x20c   : > { %v6996_v9 = vld [vmem:[%s8508_s19 + $0xc10] sm:$0xf]  ;;  %v6741_v18 = vor.u32 %v8076_v7, %v6740_v31  ;;  %3890 = vmatpush.bf16.msrb.mxu0 %v6485_v15  ;;  %v6358_v4 = vld [vmem:[%s8508_s19 + $0x730] sm:$0xf0]  ;;  %v5849_v31 = vor.u32 %v7848_v33, %v5846_v2  ;;  %v6105_v7 = vor.u32 %v7912_v3, %v6102_v27  ;;  %v3725_v27 = vpop.f32.mrf.mxu3 }
 0x20d   : > { %v8140_v8 = vld [vmem:[%s8508_s19 + $0xc2c] sm:$0xf0]  ;;  %v7840_v26 = vld [vmem:[%s8508_s19 + $0x2d4] sm:$0xf] }
 0x20e   : > { %v7252_v11 = vld [vmem:[%s8508_s19 + $0xe10] sm:$0xf]  ;;  %v6997_v1 = vor.u32 %v8140_v8, %v6996_v9  ;;  %3903 = vmatpush.bf16.msrb.mxu1 %v6741_v18  ;;  %v7776_v9 = vld [vmem:[%s8508_s19 + $0xd4] sm:$0xf]  ;;  %v3685_v8 = vadd.f32 %v3684_v6, %v9231_v54  ;;  %v5817_v54 = vor.u32 %v7840_v26, %v5814_v10 }
 0x20f   : > { %v8204_v40 = vld [vmem:[%s8508_s19 + $0xe2c] sm:$0xf0]  ;;  %3891 = vmatmul.bf16.vlgmr.msrb.gmra.mxu0 %v9274_v52  ;;  %v7968_v14 = vld [vmem:[%s8508_s19 + $0x6d4] sm:$0xf]  ;;  %v5561_v12 = vor.u32 %v7776_v9, %v5558_v35 }
 0x210   : > { %v7253_v21 = vor.u32 %v8204_v40, %v7252_v11  ;;  %3916 = vmatpush.bf16.msrb.mxu2 %v6997_v1  ;;  %3935 = vmatpush.bf16.msra.mxu0 %v5689_v25  ;;  %v9268_v23 = vld.sshfl [vmem:[#allocation1 + $0x30] sm:$0xff pattern:$0x73625140]  ;;  %v3697_v11 = vpop.f32.mrf.mxu1  ;;  %v6361_v40 = vor.u32 %v7976_v60, %v6358_v4  ;;  %v3686_v34 = vpop.f32.mrf.mxu0 }
 0x211   : > { %3904 = vmatmul.bf16.vlgmr.msrb.gmra.mxu1 %v9282_v59  ;;  %v6326_v15 = vld [vmem:[%s8508_s19 + $0x6f0] sm:$0xf0]  ;;  %v9302_v17 = vadd.f32 %v3697_v11, %v3685_v8 }
 0x212   : > { %3929 = vmatpush.bf16.msrb.mxu3 %v7253_v21  ;;  %3948 = vmatpush.bf16.msra.mxu1 %v5945_v22  ;;  %v7768_v18 = vld [vmem:[%s8508_s19 + $0x94] sm:$0xf]  ;;  %v6329_v21 = vor.u32 %v7968_v14, %v6326_v15 }
 0x213   : > { %3917 = vmatmul.bf16.vlgmr.msrb.gmra.mxu2 %v9268_v23  ;;  %v5526_v1 = vld [vmem:[%s8508_s19 + $0xb0] sm:$0xf0] }
 0x214   : > { %3961 = vmatpush.bf16.msra.mxu2 %v6201_v28  ;;  %3936 = vmatpush.bf16.msra.mxu0 %v5657_v43  ;;  %v7832_v19 = vld [vmem:[%s8508_s19 + $0x294] sm:$0xf] }
 0x215   : > { %3930 = vmatmul.bf16.vlgmr.msrb.gmra.mxu3 %v9277_v55  ;;  %v5782_v25 = vld [vmem:[%s8508_s19 + $0x2b0] sm:$0xf0] }
 0x216   : > { %3974 = vmatpush.bf16.msra.mxu3 %v6457_v32  ;;  %3949 = vmatpush.bf16.msra.mxu1 %v5913_v44  ;;  %v7896_v22 = vld [vmem:[%s8508_s19 + $0x494] sm:$0xf]  ;;  %v5529_v32 = vor.u32 %v7768_v18, %v5526_v1  ;;  %v5785_v37 = vor.u32 %v7832_v19, %v5782_v25 }
 0x217   : > { %v6038_v28 = vld [vmem:[%s8508_s19 + $0x4b0] sm:$0xf0] }
 0x218   : > { %3962 = vmatpush.bf16.msra.mxu2 %v6169_v45  ;;  %3937 = vmatpush.bf16.msra.mxu0 %v5625_v58  ;;  %v7960_v29 = vld [vmem:[%s8508_s19 + $0x694] sm:$0xf]  ;;  %v6041_v38 = vor.u32 %v7896_v22, %v6038_v28  ;;  %v3699_v44 = vpop.f32.mrf.mxu1 }
 0x219   : > { %v6294_v30 = vld [vmem:[%s8508_s19 + $0x6b0] sm:$0xf0] }
 0x21a   : > { %3975 = vmatpush.bf16.msra.mxu3 %v6425_v49  ;;  %3950 = vmatpush.bf16.msra.mxu1 %v5881_v61  ;;  %v7760_v39 = vld [vmem:[%s8508_s19 + $0x54] sm:$0xf]  ;;  %v6297_v45 = vor.u32 %v7960_v29, %v6294_v30 }
 0x21b   : > { %v5494_v41 = vld [vmem:[%s8508_s19 + $0x70] sm:$0xf0] }
 0x21c   : > { %3963 = vmatpush.bf16.msra.mxu2 %v6137_v62  ;;  %3938 = vmatpush.bf16.msra.mxu0 %v5593_v5  ;;  %v7824_v43 = vld [vmem:[%s8508_s19 + $0x254] sm:$0xf]  ;;  %v5497_v51 = vor.u32 %v7760_v39, %v5494_v41 }
 0x21d   : > { %v5750_v46 = vld [vmem:[%s8508_s19 + $0x270] sm:$0xf0] }
 0x21e   : > { %3976 = vmatpush.bf16.msra.mxu3 %v6393_v42  ;;  %3951 = vmatpush.bf16.msra.mxu1 %v5849_v31  ;;  %v7888_v47 = vld [vmem:[%s8508_s19 + $0x454] sm:$0xf]  ;;  %v5753_v56 = vor.u32 %v7824_v43, %v5750_v46  ;;  %v9362_v46 = vld.sshfl [vmem:[#allocation1 + $0x18] sm:$0xff pattern:$0x73625140] }
 0x21f   : > { %v6006_v48 = vld [vmem:[%s8508_s19 + $0x470] sm:$0xf0] }
 0x220   : > { %3964 = vmatpush.bf16.msra.mxu2 %v6105_v7  ;;  %3939 = vmatpush.bf16.msra.mxu0 %v5561_v12  ;;  %v7952_v49 = vld [vmem:[%s8508_s19 + $0x654] sm:$0xf]  ;;  %v6009_v58 = vor.u32 %v7888_v47, %v6006_v48  ;;  %v9365_v48 = vld.sshfl [vmem:[#allocation1 + $0x8] sm:$0xff pattern:$0x73625140] }
 0x221   : > { %v6262_v50 = vld [vmem:[%s8508_s19 + $0x670] sm:$0xf0] }
 0x222   : > { %3977 = vmatpush.bf16.msra.mxu3 %v6361_v40  ;;  %3952 = vmatpush.bf16.msra.mxu1 %v5817_v54  ;;  %v7752_v24 = vld [vmem:[%s8508_s19 + $0x14] sm:$0xf]  ;;  %v6265_v33 = vor.u32 %v7952_v49, %v6262_v50 }
 0x223   : > { %v5462_v53 = vld [vmem:[%s8508_s19 + $0x30] sm:$0xf0] }
 0x224   : > { %3965 = vmatpush.bf16.msra.mxu2 %v6073_v16  ;;  %3940 = vmatpush.bf16.msra.mxu0 %v5529_v32  ;;  %v7816_v61 = vld [vmem:[%s8508_s19 + $0x214] sm:$0xf]  ;;  %v5465_v6 = vor.u32 %v7752_v24, %v5462_v53 }
 0x225   : > { %v5718_v62 = vld [vmem:[%s8508_s19 + $0x230] sm:$0xf0] }
 0x226   : > { %3978 = vmatpush.bf16.msra.mxu3 %v6329_v21  ;;  %3953 = vmatpush.bf16.msra.mxu1 %v5785_v37  ;;  %v7880_v63 = vld [vmem:[%s8508_s19 + $0x414] sm:$0xf]  ;;  %v5721_v35 = vor.u32 %v7816_v61, %v5718_v62 }
 0x227   : > { %v5974_v42 = vld [vmem:[%s8508_s19 + $0x430] sm:$0xf0] }
 0x228   : > { %3966 = vmatpush.bf16.msra.mxu2 %v6041_v38  ;;  %v7944_v2 = vld [vmem:[%s8508_s19 + $0x614] sm:$0xf]  ;;  %3941 = vmatpush.bf16.msra.mxu0 %v5497_v51  ;;  %v5977_v26 = vor.u32 %v7880_v63, %v5974_v42  ;;  %v9376_v42 = vpop.f32.mrf.mxu0 }
 0x229   : > { %v6230_v3 = vld [vmem:[%s8508_s19 + $0x630] sm:$0xf0] }
 0x22a   : > { %3979 = vmatpush.bf16.msra.mxu3 %v6297_v45  ;;  %v8064_v60 = vld [vmem:[%s8508_s19 + $0x9d4] sm:$0xf]  ;;  %3954 = vmatpush.bf16.msra.mxu1 %v5753_v56  ;;  %v6233_v40 = vor.u32 %v7944_v2, %v6230_v3  ;;  %v9359_v45 = vld.sshfl [vmem:[#allocation1] sm:$0xff pattern:$0x73625140] }
 0x22b   : > { %v6710_v4 = vld [vmem:[%s8508_s19 + $0x9f0] sm:$0xf0] }
 0x22c   : > { %v8128_v5 = vld [vmem:[%s8508_s19 + $0xbd4] sm:$0xf]  ;;  %3967 = vmatpush.bf16.msra.mxu2 %v6009_v58  ;;  %v6713_v10 = vor.u32 %v8064_v60, %v6710_v4  ;;  %3942 = vmatpush.bf16.msra.mxu0 %v5465_v6 }
 0x22d   : > { %v6966_v31 = vld [vmem:[%s8508_s19 + $0xbf0] sm:$0xf0] }
 0x22e   : > { %v8192_v7 = vld [vmem:[%s8508_s19 + $0xdd4] sm:$0xf]  ;;  %3980 = vmatpush.bf16.msra.mxu3 %v6265_v33  ;;  %v6969_v13 = vor.u32 %v8128_v5, %v6966_v31  ;;  %3955 = vmatpush.bf16.msra.mxu1 %v5721_v35  ;;  %v9381_v5 = vpop.f32.mrf.mxu1 }
 0x22f   : > { %v7222_v9 = vld [vmem:[%s8508_s19 + $0xdf0] sm:$0xf0]  ;;  %3943 = vmatmul.bf16.vlgmr.msra.gmra.mxu0 %v9359_v45 }
 0x230   : > { %v8256_v8 = vld [vmem:[%s8508_s19 + $0xfd4] sm:$0xf]  ;;  %v7225_v36 = vor.u32 %v8192_v7, %v7222_v9  ;;  %3968 = vmatpush.bf16.msra.mxu2 %v5977_v26  ;;  %3987 = vmatpush.bf16.msrb.mxu0 %v6713_v10 }
 0x231   : > { %v7478_v11 = vld [vmem:[%s8508_s19 + $0xff0] sm:$0xf0]  ;;  %3956 = vmatmul.bf16.vlgmr.msra.gmra.mxu1 %v9365_v48 }
 0x232   : > { %v8056_v14 = vld [vmem:[%s8508_s19 + $0x994] sm:$0xf]  ;;  %v7481_v54 = vor.u32 %v8256_v8, %v7478_v11  ;;  %3981 = vmatpush.bf16.msra.mxu3 %v6233_v40  ;;  %4000 = vmatpush.bf16.msrb.mxu1 %v6969_v13 }
 0x233   : > { %v6678_v15 = vld [vmem:[%s8508_s19 + $0x9b0] sm:$0xf0] }
 0x234   : > { %v8120_v12 = vld [vmem:[%s8508_s19 + $0xb94] sm:$0xf]  ;;  %v6681_v25 = vor.u32 %v8056_v14, %v6678_v15  ;;  %4013 = vmatpush.bf16.msrb.mxu2 %v7225_v36  ;;  %v9391_v14 = vpop.f32.mrf.mxu2 }
 0x235   : > { %v6934_v16 = vld [vmem:[%s8508_s19 + $0xbb0] sm:$0xf0]  ;;  %3982 = vmatmul.bf16.vlgmr.msra.gmra.mxu3 %v9362_v46 }
 0x236   : > { %v8184_v18 = vld [vmem:[%s8508_s19 + $0xd94] sm:$0xf]  ;;  %v6937_v22 = vor.u32 %v8120_v12, %v6934_v16  ;;  %4026 = vmatpush.bf16.msrb.mxu3 %v7481_v54  ;;  %3988 = vmatpush.bf16.msrb.mxu0 %v6681_v25  ;;  %v3738_v25 = vpop.f32.mrf.mxu0 }
 0x237   : > { %v7190_v1 = vld [vmem:[%s8508_s19 + $0xdb0] sm:$0xf0]  ;;  %v7933_v25 = vld [vmem:[%s8508_s19 + $0x5b4] sm:$0xf0] }
 0x238   : > { %v8248_v19 = vld [vmem:[%s8508_s19 + $0xf94] sm:$0xf]  ;;  %v7193_v28 = vor.u32 %v8184_v18, %v7190_v1  ;;  %4001 = vmatpush.bf16.msrb.mxu1 %v6937_v22  ;;  %v9396_v18 = vpop.f32.mrf.mxu3 }
 0x239   : > { %v7446_v21 = vld [vmem:[%s8508_s19 + $0xfb0] sm:$0xf0] }
 0x23a   : > { %v8048_v29 = vld [vmem:[%s8508_s19 + $0x954] sm:$0xf]  ;;  %v7449_v34 = vor.u32 %v8248_v19, %v7446_v21  ;;  %4014 = vmatpush.bf16.msrb.mxu2 %v7193_v28 }
 0x23b   : > { %v6646_v30 = vld [vmem:[%s8508_s19 + $0x970] sm:$0xf0] }
 0x23c   : > { %v8112_v32 = vld [vmem:[%s8508_s19 + $0xb54] sm:$0xf]  ;;  %v6649_v47 = vor.u32 %v8048_v29, %v6646_v30  ;;  %4027 = vmatpush.bf16.msrb.mxu3 %v7449_v34  ;;  %v3751_v34 = vpop.f32.mrf.mxu1 }
 0x23d   : > { %v6902_v37 = vld [vmem:[%s8508_s19 + $0xb70] sm:$0xf0]  ;;  %v7797_v34 = vld [vmem:[%s8508_s19 + $0x174] sm:$0xf0] }
 0x23e   : > { %v8176_v38 = vld [vmem:[%s8508_s19 + $0xd54] sm:$0xf]  ;;  %v6905_v49 = vor.u32 %v8112_v32, %v6902_v37  ;;  %3989 = vmatpush.bf16.msrb.mxu0 %v6649_v47 }
 0x23f   : > { %v7158_v39 = vld [vmem:[%s8508_s19 + $0xd70] sm:$0xf0] }
 0x240   : > { %v9354_v41 = vld.sshfl [vmem:[#allocation1 + $0x10] sm:$0xff pattern:$0x73625140]  ;;  %v7161_v50 = vor.u32 %v8176_v38, %v7158_v39  ;;  %4002 = vmatpush.bf16.msrb.mxu1 %v6905_v49 }
 0x241   : > { %3969 = vmatmul.bf16.vlgmr.msra.gmra.mxu2 %v9354_v41  ;;  %v8240_v43 = vld [vmem:[%s8508_s19 + $0xf54] sm:$0xf] }
 0x242   : > { %v7414_v44 = vld [vmem:[%s8508_s19 + $0xf70] sm:$0xf0]  ;;  %4015 = vmatpush.bf16.msrb.mxu2 %v7161_v50 }
 0x243   : > { %v8040_v51 = vld [vmem:[%s8508_s19 + $0x914] sm:$0xf]  ;;  %v7417_v56 = vor.u32 %v8240_v43, %v7414_v44 }
 0x244   : > { %v6614_v24 = vld [vmem:[%s8508_s19 + $0x930] sm:$0xf0] }
 0x245   : > { %v8104_v53 = vld [vmem:[%s8508_s19 + $0xb14] sm:$0xf]  ;;  %v6617_v33 = vor.u32 %v8040_v51, %v6614_v24  ;;  %4028 = vmatpush.bf16.msrb.mxu3 %v7417_v56 }
 0x246   : > { %v6870_v58 = vld [vmem:[%s8508_s19 + $0xb30] sm:$0xf0] }
 0x247   : > { %v8168_v61 = vld [vmem:[%s8508_s19 + $0xd14] sm:$0xf]  ;;  %v6873_v2 = vor.u32 %v8104_v53, %v6870_v58  ;;  %3990 = vmatpush.bf16.msrb.mxu0 %v6617_v33 }
 0x248   : > { %v7126_v62 = vld [vmem:[%s8508_s19 + $0xd30] sm:$0xf0] }
 0x249   : > { %v8232_v63 = vld [vmem:[%s8508_s19 + $0xf14] sm:$0xf]  ;;  %v7129_v3 = vor.u32 %v8168_v61, %v7126_v62  ;;  %4003 = vmatpush.bf16.msrb.mxu1 %v6873_v2  ;;  %v3764_v62 = vpop.f32.mrf.mxu2 }
 0x24a   : > { %v7382_v0 = vld [vmem:[%s8508_s19 + $0xf30] sm:$0xf0]  ;;  %v7981_v62 = vld [vmem:[%s8508_s19 + $0x734] sm:$0xf0] }
 0x24b   : > { %v8032_v27 = vld [vmem:[%s8508_s19 + $0x8d4] sm:$0xf]  ;;  %v7385_v6 = vor.u32 %v8232_v63, %v7382_v0  ;;  %4016 = vmatpush.bf16.msrb.mxu2 %v7129_v3  ;;  %v3777_v3 = vpop.f32.mrf.mxu3 }
 0x24c   : > { %v6582_v60 = vld [vmem:[%s8508_s19 + $0x8f0] sm:$0xf0]  ;;  %v3801_v3 = vpop.f32.mrf.mxu1 }
 0x24d   : > { %v8096_v4 = vld [vmem:[%s8508_s19 + $0xad4] sm:$0xf]  ;;  %v6585_v8 = vor.u32 %v8032_v27, %v6582_v60  ;;  %4029 = vmatpush.bf16.msrb.mxu3 %v7385_v6  ;;  %v5692_v27 = vld [vmem:[%s8508_s19 + $0x1d8] sm:$0xf] }
 0x24e   : > { %v6838_v31 = vld [vmem:[%s8508_s19 + $0xaf0] sm:$0xf0]  ;;  %v7813_v60 = vld [vmem:[%s8508_s19 + $0x1f4] sm:$0xf0] }
 0x24f   : > { %v8160_v7 = vld [vmem:[%s8508_s19 + $0xcd4] sm:$0xf]  ;;  %v6841_v11 = vor.u32 %v8096_v4, %v6838_v31  ;;  %3991 = vmatpush.bf16.msrb.mxu0 %v6585_v8  ;;  %v5948_v4 = vld [vmem:[%s8508_s19 + $0x3d8] sm:$0xf] }
 0x250   : > { %v7094_v9 = vld [vmem:[%s8508_s19 + $0xcf0] sm:$0xf0]  ;;  %v7877_v31 = vld [vmem:[%s8508_s19 + $0x3f4] sm:$0xf0] }
 0x251   : > { %v8224_v35 = vld [vmem:[%s8508_s19 + $0xed4] sm:$0xf]  ;;  %v7097_v40 = vor.u32 %v8160_v7, %v7094_v9  ;;  %4004 = vmatpush.bf16.msrb.mxu1 %v6841_v11  ;;  %v6204_v7 = vld [vmem:[%s8508_s19 + $0x5d8] sm:$0xf] }
 0x252   : > { %v7350_v26 = vld [vmem:[%s8508_s19 + $0xef0] sm:$0xf0]  ;;  %v7941_v9 = vld [vmem:[%s8508_s19 + $0x5f4] sm:$0xf0] }
 0x253   : > { %v8024_v10 = vld [vmem:[%s8508_s19 + $0x894] sm:$0xf]  ;;  %v7353_v15 = vor.u32 %v8224_v35, %v7350_v26  ;;  %4017 = vmatpush.bf16.msrb.mxu2 %v7097_v40  ;;  %v6460_v8 = vld [vmem:[%s8508_s19 + $0x7d8] sm:$0xf] }
 0x254   : > { %v6550_v13 = vld [vmem:[%s8508_s19 + $0x8b0] sm:$0xf0]  ;;  %v8005_v11 = vld [vmem:[%s8508_s19 + $0x7f4] sm:$0xf0] }
 0x255   : > { %v8088_v36 = vld [vmem:[%s8508_s19 + $0xa94] sm:$0xf]  ;;  %v6553_v21 = vor.u32 %v8024_v10, %v6550_v13  ;;  %4030 = vmatpush.bf16.msrb.mxu3 %v7353_v15  ;;  %v5693_v10 = vor.u32 %v7813_v60, %v5692_v27  ;;  %v3750_v13 = vadd.f32 %v9381_v5, %v9376_v42  ;;  %v6205_v15 = vor.u32 %v7941_v9, %v6204_v7  ;;  %v5564_v27 = vld [vmem:[%s8508_s19 + $0xd8] sm:$0xf] }
 0x256   : > { %v6806_v12 = vld [vmem:[%s8508_s19 + $0xab0] sm:$0xf0]  ;;  %v7781_v60 = vld [vmem:[%s8508_s19 + $0xf4] sm:$0xf0] }
 0x257   : > { %v8152_v54 = vld [vmem:[%s8508_s19 + $0xc94] sm:$0xf]  ;;  %v6809_v22 = vor.u32 %v8088_v36, %v6806_v12  ;;  %3992 = vmatpush.bf16.msrb.mxu0 %v6553_v21  ;;  %v5949_v36 = vor.u32 %v7877_v31, %v5948_v4  ;;  %v5660_v12 = vld [vmem:[%s8508_s19 + $0x198] sm:$0xf]  ;;  %v3763_v5 = vadd.f32 %v9391_v14, %v3750_v13  ;;  %v3814_v13 = vpop.f32.mrf.mxu2 }
 0x258   : > { %v7062_v16 = vld [vmem:[%s8508_s19 + $0xcb0] sm:$0xf0]  ;;  %v6172_v21 = vld [vmem:[%s8508_s19 + $0x598] sm:$0xf] }
 0x259   : > { %v8216_v1 = vld [vmem:[%s8508_s19 + $0xe94] sm:$0xf]  ;;  %v7065_v28 = vor.u32 %v8152_v54, %v7062_v16  ;;  %4005 = vmatpush.bf16.msrb.mxu1 %v6809_v22  ;;  %v7805_v54 = vld [vmem:[%s8508_s19 + $0x1b4] sm:$0xf0] }
 0x25a   : > { %v7318_v19 = vld [vmem:[%s8508_s19 + $0xeb0] sm:$0xf0]  ;;  %v5916_v16 = vld [vmem:[%s8508_s19 + $0x398] sm:$0xf]  ;;  %v5661_v42 = vor.u32 %v7805_v54, %v5660_v12  ;;  %v3711_v54 = vadd.f32 %v9307_v20, %v9302_v17 }
 0x25b   : > { %v8016_v29 = vld [vmem:[%s8508_s19 + $0x854] sm:$0xf]  ;;  %v7321_v37 = vor.u32 %v8216_v1, %v7318_v19  ;;  %4018 = vmatpush.bf16.msrb.mxu2 %v7065_v28  ;;  %v6461_v1 = vor.u32 %v8005_v11, %v6460_v8  ;;  %v7869_v19 = vld [vmem:[%s8508_s19 + $0x3b4] sm:$0xf0]  ;;  %v5565_v11 = vor.u32 %v7781_v60, %v5564_v27 }
 0x25c   : > { %v6518_v30 = vld [vmem:[%s8508_s19 + $0x870] sm:$0xf0]  ;;  %v6428_v22 = vld [vmem:[%s8508_s19 + $0x798] sm:$0xf] }
 0x25d   : > { %v8080_v32 = vld [vmem:[%s8508_s19 + $0xa54] sm:$0xf]  ;;  %v6521_v49 = vor.u32 %v8016_v29, %v6518_v30  ;;  %4031 = vmatpush.bf16.msrb.mxu3 %v7321_v37  ;;  %v7997_v28 = vld [vmem:[%s8508_s19 + $0x7b4] sm:$0xf0]  ;;  %v5917_v29 = vor.u32 %v7869_v19, %v5916_v16  ;;  %v6173_v30 = vor.u32 %v7933_v25, %v6172_v21  ;;  %v3827_v19 = vpop.f32.mrf.mxu3 }
 0x25e   : > { %v6774_v38 = vld [vmem:[%s8508_s19 + $0xa70] sm:$0xf0]  ;;  %v5884_v37 = vld [vmem:[%s8508_s19 + $0x358] sm:$0xf] }
 0x25f   : > { %v8144_v39 = vld [vmem:[%s8508_s19 + $0xc54] sm:$0xf]  ;;  %v6777_v24 = vor.u32 %v8080_v32, %v6774_v38  ;;  %3993 = vmatpush.bf16.msrb.mxu0 %v6521_v49  ;;  %v5628_v32 = vld [vmem:[%s8508_s19 + $0x158] sm:$0xf]  ;;  %v6429_v38 = vor.u32 %v7997_v28, %v6428_v22  ;;  %v3776_v49 = vadd.f32 %v9396_v18, %v3763_v5 }
 0x260   : > { %v7030_v43 = vld [vmem:[%s8508_s19 + $0xc70] sm:$0xf0]  ;;  %v6396_v14 = vld [vmem:[%s8508_s19 + $0x758] sm:$0xf] }
 0x261   : > { %v8208_v44 = vld [vmem:[%s8508_s19 + $0xe54] sm:$0xf]  ;;  %v7033_v53 = vor.u32 %v8144_v39, %v7030_v43  ;;  %4006 = vmatpush.bf16.msrb.mxu1 %v6777_v24  ;;  %v7861_v39 = vld [vmem:[%s8508_s19 + $0x374] sm:$0xf0] }
 0x262   : > { %v7286_v47 = vld [vmem:[%s8508_s19 + $0xe70] sm:$0xf0]  ;;  %v6140_v43 = vld [vmem:[%s8508_s19 + $0x558] sm:$0xf] }
 0x263   : > { %v8008_v50 = vld [vmem:[%s8508_s19 + $0x814] sm:$0xf]  ;;  %v7289_v63 = vor.u32 %v8208_v44, %v7286_v47  ;;  %4019 = vmatpush.bf16.msrb.mxu2 %v7033_v53  ;;  %v7925_v44 = vld [vmem:[%s8508_s19 + $0x574] sm:$0xf0] }
 0x264   : > { %v6486_v51 = vld [vmem:[%s8508_s19 + $0x830] sm:$0xf0]  ;;  %v7989_v47 = vld [vmem:[%s8508_s19 + $0x774] sm:$0xf0] }
 0x265   : > { %v8072_v56 = vld [vmem:[%s8508_s19 + $0xa14] sm:$0xf]  ;;  %v6489_v6 = vor.u32 %v8008_v50, %v6486_v51  ;;  %4032 = vmatpush.bf16.msrb.mxu3 %v7289_v63  ;;  %v5885_v50 = vor.u32 %v7861_v39, %v5884_v37  ;;  %v6141_v51 = vor.u32 %v7925_v44, %v6140_v43  ;;  %v7789_v24 = vld [vmem:[%s8508_s19 + $0x134] sm:$0xf0]  ;;  %v6397_v53 = vor.u32 %v7989_v47, %v6396_v14  ;;  %v3788_v63 = vpop.f32.mrf.mxu0  ;;  %v3803_v39 = vpop.f32.mrf.mxu1  ;;  %v317_v44 = vld [vmem:[#allocation2] sm:$0xff] }
 0x266   : > { %v6742_v58 = vld [vmem:[%s8508_s19 + $0xa30] sm:$0xf0]  ;;  %v5820_v4 = vld [vmem:[%s8508_s19 + $0x2d8] sm:$0xf]  ;;  %v3724_v43 = vadd.f32 %v9312_v57, %v3711_v54  ;;  %v3829_v27 = vpop.f32.mrf.mxu3 }
 0x267   : > { %v8136_v61 = vld [vmem:[%s8508_s19 + $0xc14] sm:$0xf]  ;;  %v6745_v35 = vor.u32 %v8072_v56, %v6742_v58  ;;  %3994 = vmatpush.bf16.msrb.mxu0 %v6489_v6  ;;  %v7853_v56 = vld [vmem:[%s8508_s19 + $0x334] sm:$0xf0] }
 0x268   : > { %v6998_v0 = vld [vmem:[%s8508_s19 + $0xc30] sm:$0xf0]  ;;  %v6108_v58 = vld [vmem:[%s8508_s19 + $0x518] sm:$0xf] }
 0x269   : > { %v8200_v33 = vld [vmem:[%s8508_s19 + $0xe14] sm:$0xf]  ;;  %v7001_v26 = vor.u32 %v8136_v61, %v6998_v0  ;;  %4007 = vmatpush.bf16.msrb.mxu1 %v6745_v35  ;;  %v7917_v61 = vld [vmem:[%s8508_s19 + $0x534] sm:$0xf0] }
 0x26a   : > { %v7254_v2 = vld [vmem:[%s8508_s19 + $0xe30] sm:$0xf0]  ;;  %3995 = vmatmul.bf16.vlgmr.msrb.gmra.mxu0 %v9274_v52  ;;  %v5596_v52 = vld [vmem:[%s8508_s19 + $0x118] sm:$0xf] }
 0x26b   : > { %v7257_v40 = vor.u32 %v8200_v33, %v7254_v2  ;;  %4020 = vmatpush.bf16.msrb.mxu2 %v7001_v26  ;;  %4039 = vmatpush.bf16.msra.mxu0 %v5693_v10  ;;  %v5597_v18 = vor.u32 %v7789_v24, %v5596_v52  ;;  %v6109_v33 = vor.u32 %v7917_v61, %v6108_v58  ;;  %v7845_v31 = vld [vmem:[%s8508_s19 + $0x2f4] sm:$0xf0] }
 0x26c   : > { %4008 = vmatmul.bf16.vlgmr.msrb.gmra.mxu1 %v9282_v59  ;;  %v6364_v59 = vld [vmem:[%s8508_s19 + $0x718] sm:$0xf]  ;;  %v3789_v2 = vadd.f32 %v3788_v63, %v3776_v49  ;;  %v3816_v63 = vpop.f32.mrf.mxu2 }
 0x26d   : > { %4033 = vmatpush.bf16.msrb.mxu3 %v7257_v40  ;;  %4052 = vmatpush.bf16.msra.mxu1 %v5949_v36  ;;  %v6365_v6 = vor.u32 %v7981_v62, %v6364_v59  ;;  %v6076_v7 = vld [vmem:[%s8508_s19 + $0x4d8] sm:$0xf]  ;;  %v5821_v40 = vor.u32 %v7845_v31, %v5820_v4 }
 0x26e   : > { %4021 = vmatmul.bf16.vlgmr.msrb.gmra.mxu2 %v9268_v23  ;;  %v5629_v23 = vor.u32 %v7797_v34, %v5628_v32  ;;  %v7909_v9 = vld [vmem:[%s8508_s19 + $0x4f4] sm:$0xf0]  ;;  %v3802_v35 = vadd.f32 %v3801_v3, %v3789_v2  ;;  %v3790_v32 = vpop.f32.mrf.mxu0 }
 0x26f   : > { %4065 = vmatpush.bf16.msra.mxu2 %v6205_v15  ;;  %4040 = vmatpush.bf16.msra.mxu0 %v5661_v42  ;;  %v6332_v26 = vld [vmem:[%s8508_s19 + $0x6d8] sm:$0xf]  ;;  %v6077_v10 = vor.u32 %v7909_v9, %v6076_v7 }
 0x270   : > { %4034 = vmatmul.bf16.vlgmr.msrb.gmra.mxu3 %v9277_v55  ;;  %v5852_v55 = vld [vmem:[%s8508_s19 + $0x318] sm:$0xf] }
 0x271   : > { %4078 = vmatpush.bf16.msra.mxu3 %v6461_v1  ;;  %4053 = vmatpush.bf16.msra.mxu1 %v5917_v29  ;;  %v5853_v0 = vor.u32 %v7853_v56, %v5852_v55  ;;  %v7973_v8 = vld [vmem:[%s8508_s19 + $0x6f4] sm:$0xf0]  ;;  %v3815_v1 = vadd.f32 %v3814_v13, %v3802_v35 }
 0x272   : > { %v5532_v36 = vld [vmem:[%s8508_s19 + $0x98] sm:$0xf]  ;;  %v6333_v16 = vor.u32 %v7973_v8, %v6332_v26 }
 0x273   : > { %4066 = vmatpush.bf16.msra.mxu2 %v6173_v30  ;;  %4041 = vmatpush.bf16.msra.mxu0 %v5629_v23  ;;  %v7773_v15 = vld [vmem:[%s8508_s19 + $0xb4] sm:$0xf0]  ;;  %v3828_v5 = vadd.f32 %v3827_v19, %v3815_v1 }
 0x274   : > { %v5788_v12 = vld [vmem:[%s8508_s19 + $0x298] sm:$0xf]  ;;  %v5533_v29 = vor.u32 %v7773_v15, %v5532_v36 }
 0x275   : > { %4079 = vmatpush.bf16.msra.mxu3 %v6429_v38  ;;  %4054 = vmatpush.bf16.msra.mxu1 %v5885_v50  ;;  %v7837_v21 = vld [vmem:[%s8508_s19 + $0x2b4] sm:$0xf0]  ;;  %v4256_v14 = vrot.slane %v3828_v5, 4 }
 0x276   : > { %v6044_v25 = vld [vmem:[%s8508_s19 + $0x498] sm:$0xf]  ;;  %v5789_v17 = vor.u32 %v7837_v21, %v5788_v12 }
 0x277   : > { %4067 = vmatpush.bf16.msra.mxu2 %v6141_v51  ;;  %4042 = vmatpush.bf16.msra.mxu0 %v5597_v18  ;;  %v7901_v22 = vld [vmem:[%s8508_s19 + $0x4b4] sm:$0xf0]  ;;  %v4261_v52 = vsel %vm4259_vm0, %v3724_v43, %v4256_v14 }
 0x278   : > { %v6300_v28 = vld [vmem:[%s8508_s19 + $0x698] sm:$0xf]  ;;  %v6045_v20 = vor.u32 %v7901_v22, %v6044_v25  ;;  %v4269_v56 = vadd.f32 %v4261_v52, %v317_v44 }
 0x279   : > { %4080 = vmatpush.bf16.msra.mxu3 %v6397_v53  ;;  %4055 = vmatpush.bf16.msra.mxu1 %v5853_v0  ;;  %v7965_v42 = vld [vmem:[%s8508_s19 + $0x6b4] sm:$0xf0] }
 0x27a   : > { %v5500_v30 = vld [vmem:[%s8508_s19 + $0x58] sm:$0xf]  ;;  %v6301_v47 = vor.u32 %v7965_v42, %v6300_v28  ;;  %4273 = vst [vmem:[#allocation2] sm:$0xff] %v4269_v56 }
 0x27b   : > { %4068 = vmatpush.bf16.msra.mxu2 %v6109_v33  ;;  %4043 = vmatpush.bf16.msra.mxu0 %v5565_v11  ;;  %v7765_v34 = vld [vmem:[%s8508_s19 + $0x74] sm:$0xf0] }
 0x27c   : > { %v5756_v37 = vld [vmem:[%s8508_s19 + $0x258] sm:$0xf]  ;;  %v5501_v24 = vor.u32 %v7765_v34, %v5500_v30 }
 0x27d   : > { %4081 = vmatpush.bf16.msra.mxu3 %v6365_v6  ;;  %4056 = vmatpush.bf16.msra.mxu1 %v5821_v40  ;;  %v7829_v38 = vld [vmem:[%s8508_s19 + $0x274] sm:$0xf0] }
 0x27e   : > { %v6012_v23 = vld [vmem:[%s8508_s19 + $0x458] sm:$0xf]  ;;  %v5757_v58 = vor.u32 %v7829_v38, %v5756_v37 }
 0x27f   : > { %4069 = vmatpush.bf16.msra.mxu2 %v6077_v10  ;;  %v7893_v49 = vld [vmem:[%s8508_s19 + $0x474] sm:$0xf0]  ;;  %4044 = vmatpush.bf16.msra.mxu0 %v5533_v29 }
 0x280   : > { %v6268_v50 = vld [vmem:[%s8508_s19 + $0x658] sm:$0xf]  ;;  %v6013_v61 = vor.u32 %v7893_v49, %v6012_v23 }
 0x281   : > { %4082 = vmatpush.bf16.msra.mxu3 %v6333_v16  ;;  %v7957_v51 = vld [vmem:[%s8508_s19 + $0x674] sm:$0xf0]  ;;  %4057 = vmatpush.bf16.msra.mxu1 %v5789_v17 }
 0x282   : > { %v5468_v55 = vld [vmem:[%s8508_s19 + $0x18] sm:$0xf]  ;;  %v6269_v0 = vor.u32 %v7957_v51, %v6268_v50 }
 0x283   : > { %v7757_v57 = vld [vmem:[%s8508_s19 + $0x34] sm:$0xf0]  ;;  %4070 = vmatpush.bf16.msra.mxu2 %v6045_v20  ;;  %4045 = vmatpush.bf16.msra.mxu0 %v5501_v24  ;;  %v3840_v24 = vpop.f32.mrf.mxu0 }
 0x284   : > { %v5724_v53 = vld [vmem:[%s8508_s19 + $0x218] sm:$0xf]  ;;  %v5469_v6 = vor.u32 %v7757_v57, %v5468_v55 }
 0x285   : > { %v7821_v59 = vld [vmem:[%s8508_s19 + $0x234] sm:$0xf0]  ;;  %4083 = vmatpush.bf16.msra.mxu3 %v6301_v47  ;;  %4058 = vmatpush.bf16.msra.mxu1 %v5757_v58 }
 0x286   : > { %v5980_v62 = vld [vmem:[%s8508_s19 + $0x418] sm:$0xf]  ;;  %v5725_v35 = vor.u32 %v7821_v59, %v5724_v53 }
 0x287   : > { %v7885_v18 = vld [vmem:[%s8508_s19 + $0x434] sm:$0xf0]  ;;  %4071 = vmatpush.bf16.msra.mxu2 %v6013_v61  ;;  %4046 = vmatpush.bf16.msra.mxu0 %v5469_v6  ;;  %v3853_v61 = vpop.f32.mrf.mxu1 }
 0x288   : > { %v6236_v33 = vld [vmem:[%s8508_s19 + $0x618] sm:$0xf]  ;;  %v5981_v26 = vor.u32 %v7885_v18, %v5980_v62 }
 0x289   : > { %v7949_v2 = vld [vmem:[%s8508_s19 + $0x634] sm:$0xf0]  ;;  %4084 = vmatpush.bf16.msra.mxu3 %v6269_v0  ;;  %4059 = vmatpush.bf16.msra.mxu1 %v5725_v35  ;;  %v3854_v0 = vadd.f32 %v3853_v61, %v3840_v24  ;;  %v6206_v24 = vld [vmem:[%s8508_s19 + $0x5f8] sm:$0xf0] }
 0x28a   : > { %v6716_v3 = vld [vmem:[%s8508_s19 + $0x9d8] sm:$0xf]  ;;  %v6237_v40 = vor.u32 %v7949_v2, %v6236_v33  ;;  %4047 = vmatmul.bf16.vlgmr.msra.gmra.mxu0 %v9359_v45 }
 0x28b   : > { %v8069_v60 = vld [vmem:[%s8508_s19 + $0x9f4] sm:$0xf0]  ;;  %4072 = vmatpush.bf16.msra.mxu2 %v5981_v26 }
 0x28c   : > { %v6972_v4 = vld [vmem:[%s8508_s19 + $0xbd8] sm:$0xf]  ;;  %v6717_v10 = vor.u32 %v8069_v60, %v6716_v3  ;;  %4060 = vmatmul.bf16.vlgmr.msra.gmra.mxu1 %v9365_v48 }
 0x28d   : > { %v8133_v31 = vld [vmem:[%s8508_s19 + $0xbf4] sm:$0xf0]  ;;  %4085 = vmatpush.bf16.msra.mxu3 %v6237_v40  ;;  %v3879_v40 = vpop.f32.mrf.mxu3 }
 0x28e   : > { %v7228_v7 = vld [vmem:[%s8508_s19 + $0xdd8] sm:$0xf]  ;;  %v6973_v13 = vor.u32 %v8133_v31, %v6972_v4  ;;  %4091 = vmatpush.bf16.msrb.mxu0 %v6717_v10  ;;  %4073 = vmatmul.bf16.vlgmr.msra.gmra.mxu2 %v9354_v41 }
 0x28f   : > { %v8197_v9 = vld [vmem:[%s8508_s19 + $0xdf4] sm:$0xf0] }
 0x290   : > { %v7484_v8 = vld [vmem:[%s8508_s19 + $0xfd8] sm:$0xf]  ;;  %v7229_v36 = vor.u32 %v8197_v9, %v7228_v7  ;;  %4104 = vmatpush.bf16.msrb.mxu1 %v6973_v13  ;;  %4086 = vmatmul.bf16.vlgmr.msra.gmra.mxu3 %v9362_v46  ;;  %v3866_v7 = vpop.f32.mrf.mxu2 }
 0x291   : > { %v8261_v11 = vld [vmem:[%s8508_s19 + $0xff4] sm:$0xf0] }
 0x292   : > { %v6684_v15 = vld [vmem:[%s8508_s19 + $0x998] sm:$0xf]  ;;  %v7485_v16 = vor.u32 %v8261_v11, %v7484_v8  ;;  %4117 = vmatpush.bf16.msrb.mxu2 %v7229_v36  ;;  %v3867_v11 = vadd.f32 %v3866_v7, %v3854_v0  ;;  %v7865_v0 = vld [vmem:[%s8508_s19 + $0x39c] sm:$0xf] }
 0x293   : > { %v8061_v12 = vld [vmem:[%s8508_s19 + $0x9b4] sm:$0xf0] }
 0x294   : > { %v6940_v54 = vld [vmem:[%s8508_s19 + $0xb98] sm:$0xf]  ;;  %v6685_v28 = vor.u32 %v8061_v12, %v6684_v15  ;;  %4130 = vmatpush.bf16.msrb.mxu3 %v7485_v16  ;;  %v9544_v15 = vadd.f32 %v3879_v40, %v3867_v11  ;;  %v3842_v12 = vpop.f32.mrf.mxu0  ;;  %v9581_v11 = vld.sshfl [vmem:[#allocation1 + $0x30] sm:$0xff pattern:$0x73625140] }
 0x295   : > { %v8125_v1 = vld [vmem:[%s8508_s19 + $0xbb4] sm:$0xf0]  ;;  %v5886_v40 = vld [vmem:[%s8508_s19 + $0x378] sm:$0xf0] }
 0x296   : > { %v7196_v19 = vld [vmem:[%s8508_s19 + $0xd98] sm:$0xf]  ;;  %v6941_v42 = vor.u32 %v8125_v1, %v6940_v54  ;;  %4092 = vmatpush.bf16.msrb.mxu0 %v6685_v28 }
 0x297   : > { %v8189_v21 = vld [vmem:[%s8508_s19 + $0xdb4] sm:$0xf0] }
 0x298   : > { %v7452_v25 = vld [vmem:[%s8508_s19 + $0xf98] sm:$0xf]  ;;  %v7197_v5 = vor.u32 %v8189_v21, %v7196_v19  ;;  %4105 = vmatpush.bf16.msrb.mxu1 %v6941_v42 }
 0x299   : > { %v8253_v22 = vld [vmem:[%s8508_s19 + $0xfb4] sm:$0xf0] }
 0x29a   : > { %v6652_v29 = vld [vmem:[%s8508_s19 + $0x958] sm:$0xf]  ;;  %v7453_v17 = vor.u32 %v8253_v22, %v7452_v25  ;;  %4118 = vmatpush.bf16.msrb.mxu2 %v7197_v5  ;;  %v3855_v25 = vpop.f32.mrf.mxu1 }
 0x29b   : > { %v8053_v30 = vld [vmem:[%s8508_s19 + $0x974] sm:$0xf0] }
 0x29c   : > { %v6908_v32 = vld [vmem:[%s8508_s19 + $0xb58] sm:$0xf]  ;;  %v6653_v43 = vor.u32 %v8053_v30, %v6652_v29  ;;  %4131 = vmatpush.bf16.msrb.mxu3 %v7453_v17 }
 0x29d   : > { %v8117_v20 = vld [vmem:[%s8508_s19 + $0xb74] sm:$0xf0] }
 0x29e   : > { %v7164_v34 = vld [vmem:[%s8508_s19 + $0xd58] sm:$0xf]  ;;  %v6909_v44 = vor.u32 %v8117_v20, %v6908_v32  ;;  %4093 = vmatpush.bf16.msrb.mxu0 %v6653_v43 }
 0x29f   : > { %v8181_v37 = vld [vmem:[%s8508_s19 + $0xd74] sm:$0xf0] }
 0x2a0   : > { %v7420_v38 = vld [vmem:[%s8508_s19 + $0xf58] sm:$0xf]  ;;  %v7165_v14 = vor.u32 %v8181_v37, %v7164_v34  ;;  %4106 = vmatpush.bf16.msrb.mxu1 %v6909_v44  ;;  %v3868_v44 = vpop.f32.mrf.mxu2 }
 0x2a1   : > { %v8245_v39 = vld [vmem:[%s8508_s19 + $0xf74] sm:$0xf0]  ;;  %v5566_v44 = vld [vmem:[%s8508_s19 + $0xf8] sm:$0xf0] }
 0x2a2   : > { %v6620_v41 = vld [vmem:[%s8508_s19 + $0x918] sm:$0xf]  ;;  %v7421_v45 = vor.u32 %v8245_v39, %v7420_v38  ;;  %4119 = vmatpush.bf16.msrb.mxu2 %v7165_v14 }
 0x2a3   : > { %v8045_v47 = vld [vmem:[%s8508_s19 + $0x934] sm:$0xf0] }
 0x2a4   : > { %v6876_v23 = vld [vmem:[%s8508_s19 + $0xb18] sm:$0xf]  ;;  %v6621_v48 = vor.u32 %v8045_v47, %v6620_v41  ;;  %4132 = vmatpush.bf16.msrb.mxu3 %v7421_v45  ;;  %v3881_v45 = vpop.f32.mrf.mxu3 }
 0x2a5   : > { %v8109_v49 = vld [vmem:[%s8508_s19 + $0xb34] sm:$0xf0]  ;;  %v5822_v45 = vld [vmem:[%s8508_s19 + $0x2f8] sm:$0xf0] }
 0x2a6   : > { %v7132_v46 = vld [vmem:[%s8508_s19 + $0xd18] sm:$0xf]  ;;  %v6877_v55 = vor.u32 %v8109_v49, %v6876_v23  ;;  %4094 = vmatpush.bf16.msrb.mxu0 %v6621_v48  ;;  %v7809_v49 = vld [vmem:[%s8508_s19 + $0x1dc] sm:$0xf] }
 0x2a7   : > { %v8173_v50 = vld [vmem:[%s8508_s19 + $0xd34] sm:$0xf0]  ;;  %v7937_v48 = vld [vmem:[%s8508_s19 + $0x5dc] sm:$0xf] }
 0x2a8   : > { %v7388_v51 = vld [vmem:[%s8508_s19 + $0xf18] sm:$0xf]  ;;  %v7133_v57 = vor.u32 %v8173_v50, %v7132_v46  ;;  %4107 = vmatpush.bf16.msrb.mxu1 %v6877_v55  ;;  %v5694_v46 = vld [vmem:[%s8508_s19 + $0x1f8] sm:$0xf0] }
 0x2a9   : > { %v8237_v52 = vld [vmem:[%s8508_s19 + $0xf34] sm:$0xf0]  ;;  %v7873_v50 = vld [vmem:[%s8508_s19 + $0x3dc] sm:$0xf]  ;;  %v5697_v61 = vor.u32 %v7809_v49, %v5694_v46 }
 0x2aa   : > { %v6588_v53 = vld [vmem:[%s8508_s19 + $0x8d8] sm:$0xf]  ;;  %v7389_v59 = vor.u32 %v8237_v52, %v7388_v51  ;;  %4120 = vmatpush.bf16.msrb.mxu2 %v7133_v57  ;;  %v5950_v52 = vld [vmem:[%s8508_s19 + $0x3f8] sm:$0xf0] }
 0x2ab   : > { %v8037_v56 = vld [vmem:[%s8508_s19 + $0x8f4] sm:$0xf0]  ;;  %v7905_v49 = vld [vmem:[%s8508_s19 + $0x4dc] sm:$0xf] }
 0x2ac   : > { %v6844_v58 = vld [vmem:[%s8508_s19 + $0xad8] sm:$0xf]  ;;  %v6589_v3 = vor.u32 %v8037_v56, %v6588_v53  ;;  %4133 = vmatpush.bf16.msrb.mxu3 %v7389_v59  ;;  %v8001_v53 = vld [vmem:[%s8508_s19 + $0x7dc] sm:$0xf]  ;;  %v5953_v59 = vor.u32 %v7873_v50, %v5950_v52 }
 0x2ad   : > { %v8101_v62 = vld [vmem:[%s8508_s19 + $0xaf4] sm:$0xf0]  ;;  %v6462_v56 = vld [vmem:[%s8508_s19 + $0x7f8] sm:$0xf0] }
 0x2ae   : > { %v7100_v18 = vld [vmem:[%s8508_s19 + $0xcd8] sm:$0xf]  ;;  %v6845_v27 = vor.u32 %v8101_v62, %v6844_v58  ;;  %4095 = vmatpush.bf16.msrb.mxu0 %v6589_v3  ;;  %v6209_v62 = vor.u32 %v7937_v48, %v6206_v24  ;;  %v7929_v3 = vld [vmem:[%s8508_s19 + $0x59c] sm:$0xf] }
 0x2af   : > { %v8165_v63 = vld [vmem:[%s8508_s19 + $0xcf4] sm:$0xf0]  ;;  %v6078_v46 = vld [vmem:[%s8508_s19 + $0x4f8] sm:$0xf0] }
 0x2b0   : > { %v7356_v33 = vld [vmem:[%s8508_s19 + $0xed8] sm:$0xf]  ;;  %v7101_v60 = vor.u32 %v8165_v63, %v7100_v18  ;;  %4108 = vmatpush.bf16.msrb.mxu1 %v6845_v27  ;;  %v7801_v18 = vld [vmem:[%s8508_s19 + $0x19c] sm:$0xf]  ;;  %v6081_v24 = vor.u32 %v7905_v49, %v6078_v46 }
 0x2b1   : > { %v8229_v2 = vld [vmem:[%s8508_s19 + $0xef4] sm:$0xf0]  ;;  %v5662_v63 = vld [vmem:[%s8508_s19 + $0x1b8] sm:$0xf0] }
 0x2b2   : > { %v6556_v4 = vld [vmem:[%s8508_s19 + $0x898] sm:$0xf]  ;;  %v7357_v9 = vor.u32 %v8229_v2, %v7356_v33  ;;  %4121 = vmatpush.bf16.msrb.mxu2 %v7101_v60  ;;  %v6465_v33 = vor.u32 %v8001_v53, %v6462_v56  ;;  %v5918_v2 = vld [vmem:[%s8508_s19 + $0x3b8] sm:$0xf0]  ;;  %v9620_v56 = vpop.f32.mrf.mxu2 }
 0x2b3   : > { %v8029_v6 = vld [vmem:[%s8508_s19 + $0x8b4] sm:$0xf0]  ;;  %v6174_v27 = vld [vmem:[%s8508_s19 + $0x5b8] sm:$0xf0] }
 0x2b4   : > { %v6812_v31 = vld [vmem:[%s8508_s19 + $0xa98] sm:$0xf]  ;;  %v6557_v36 = vor.u32 %v8029_v6, %v6556_v4  ;;  %4134 = vmatpush.bf16.msrb.mxu3 %v7357_v9  ;;  %v7993_v60 = vld [vmem:[%s8508_s19 + $0x79c] sm:$0xf]  ;;  %v5665_v6 = vor.u32 %v7801_v18, %v5662_v63  ;;  %v6177_v7 = vor.u32 %v7929_v3, %v6174_v27  ;;  %v9625_v18 = vpop.f32.mrf.mxu3 }
 0x2b5   : > { %v8093_v35 = vld [vmem:[%s8508_s19 + $0xab4] sm:$0xf0]  ;;  %v6430_v4 = vld [vmem:[%s8508_s19 + $0x7b8] sm:$0xf0] }
 0x2b6   : > { %v7068_v26 = vld [vmem:[%s8508_s19 + $0xc98] sm:$0xf]  ;;  %v6813_v54 = vor.u32 %v8093_v35, %v6812_v31  ;;  %4096 = vmatpush.bf16.msrb.mxu0 %v6557_v36  ;;  %v5921_v31 = vor.u32 %v7865_v0, %v5918_v2  ;;  %v7793_v9 = vld [vmem:[%s8508_s19 + $0x15c] sm:$0xf] }
 0x2b7   : > { %v8157_v8 = vld [vmem:[%s8508_s19 + $0xcb4] sm:$0xf0]  ;;  %v5630_v35 = vld [vmem:[%s8508_s19 + $0x178] sm:$0xf0] }
 0x2b8   : > { %v7324_v10 = vld [vmem:[%s8508_s19 + $0xe98] sm:$0xf]  ;;  %v7069_v16 = vor.u32 %v8157_v8, %v7068_v26  ;;  %4109 = vmatpush.bf16.msrb.mxu1 %v6813_v54  ;;  %v7857_v26 = vld [vmem:[%s8508_s19 + $0x35c] sm:$0xf]  ;;  %v6433_v8 = vor.u32 %v7993_v60, %v6430_v4 }
 0x2b9   : > { %v8221_v13 = vld [vmem:[%s8508_s19 + $0xeb4] sm:$0xf0]  ;;  %v9587_v36 = vld.sshfl [vmem:[#allocation1 + $0x20] sm:$0xff pattern:$0x73625140] }
 0x2ba   : > { %v6524_v1 = vld [vmem:[%s8508_s19 + $0x858] sm:$0xf]  ;;  %v7325_v22 = vor.u32 %v8221_v13, %v7324_v10  ;;  %4122 = vmatpush.bf16.msrb.mxu2 %v7069_v16  ;;  %v7921_v10 = vld [vmem:[%s8508_s19 + $0x55c] sm:$0xf] }
 0x2bb   : > { %v8021_v19 = vld [vmem:[%s8508_s19 + $0x874] sm:$0xf0]  ;;  %v6142_v13 = vld [vmem:[%s8508_s19 + $0x578] sm:$0xf0] }
 0x2bc   : > { %v6780_v21 = vld [vmem:[%s8508_s19 + $0xa58] sm:$0xf]  ;;  %v6525_v32 = vor.u32 %v8021_v19, %v6524_v1  ;;  %4135 = vmatpush.bf16.msrb.mxu3 %v7325_v22  ;;  %v7985_v54 = vld [vmem:[%s8508_s19 + $0x75c] sm:$0xf]  ;;  %v5633_v1 = vor.u32 %v7793_v9, %v5630_v35  ;;  %v6145_v25 = vor.u32 %v7921_v10, %v6142_v13 }
 0x2bd   : > { %v8085_v28 = vld [vmem:[%s8508_s19 + $0xa74] sm:$0xf0]  ;;  %v6398_v16 = vld [vmem:[%s8508_s19 + $0x778] sm:$0xf0] }
 0x2be   : > { %v7036_v42 = vld [vmem:[%s8508_s19 + $0xc58] sm:$0xf]  ;;  %v6781_v34 = vor.u32 %v8085_v28, %v6780_v21  ;;  %4097 = vmatpush.bf16.msrb.mxu0 %v6525_v32  ;;  %v9595_v19 = vld.sshfl [vmem:[#allocation1 + $0x28] sm:$0xff pattern:$0x73625140]  ;;  %v5889_v21 = vor.u32 %v7857_v26, %v5886_v40 }
 0x2bf   : > { %v8149_v5 = vld [vmem:[%s8508_s19 + $0xc74] sm:$0xf0]  ;;  %v7785_v22 = vld [vmem:[%s8508_s19 + $0x11c] sm:$0xf] }
 0x2c0   : > { %v7292_v29 = vld [vmem:[%s8508_s19 + $0xe58] sm:$0xf]  ;;  %v7037_v37 = vor.u32 %v8149_v5, %v7036_v42  ;;  %4110 = vmatpush.bf16.msrb.mxu1 %v6781_v34  ;;  %v5598_v28 = vld [vmem:[%s8508_s19 + $0x138] sm:$0xf0]  ;;  %v6401_v5 = vor.u32 %v7985_v54, %v6398_v16 }
 0x2c1   : > { %v8213_v30 = vld [vmem:[%s8508_s19 + $0xe74] sm:$0xf0]  ;;  %v7849_v42 = vld [vmem:[%s8508_s19 + $0x31c] sm:$0xf]  ;;  %v5601_v34 = vor.u32 %v7785_v22, %v5598_v28  ;;  %v3920_v28 = vpop.f32.mrf.mxu2 }
 0x2c2   : > { %v6492_v17 = vld [vmem:[%s8508_s19 + $0x818] sm:$0xf]  ;;  %v7293_v14 = vor.u32 %v8213_v30, %v7292_v29  ;;  %4123 = vmatpush.bf16.msrb.mxu2 %v7037_v37  ;;  %v5854_v29 = vld [vmem:[%s8508_s19 + $0x338] sm:$0xf0]  ;;  %v3892_v37 = vpop.f32.mrf.mxu0 }
 0x2c3   : > { %v8013_v20 = vld [vmem:[%s8508_s19 + $0x834] sm:$0xf0]  ;;  %v7913_v30 = vld [vmem:[%s8508_s19 + $0x51c] sm:$0xf] }
 0x2c4   : > { %v6748_v38 = vld [vmem:[%s8508_s19 + $0xa18] sm:$0xf]  ;;  %v6493_v51 = vor.u32 %v8013_v20, %v6492_v17  ;;  %4136 = vmatpush.bf16.msrb.mxu3 %v7293_v14  ;;  %v6110_v32 = vld [vmem:[%s8508_s19 + $0x538] sm:$0xf0] }
 0x2c5   : > { %v8077_v39 = vld [vmem:[%s8508_s19 + $0xa34] sm:$0xf0]  ;;  %v7977_v17 = vld [vmem:[%s8508_s19 + $0x71c] sm:$0xf] }
 0x2c6   : > { %v7004_v43 = vld [vmem:[%s8508_s19 + $0xc18] sm:$0xf]  ;;  %v6749_v55 = vor.u32 %v8077_v39, %v6748_v38  ;;  %4098 = vmatpush.bf16.msrb.mxu0 %v6493_v51  ;;  %v6366_v20 = vld [vmem:[%s8508_s19 + $0x738] sm:$0xf0]  ;;  %v5857_v38 = vor.u32 %v7849_v42, %v5854_v29  ;;  %v6113_v39 = vor.u32 %v7913_v30, %v6110_v32  ;;  %v3933_v32 = vpop.f32.mrf.mxu3 }
 0x2c7   : > { %v8141_v41 = vld [vmem:[%s8508_s19 + $0xc34] sm:$0xf0]  ;;  %v7841_v14 = vld [vmem:[%s8508_s19 + $0x2dc] sm:$0xf] }
 0x2c8   : > { %v7260_v47 = vld [vmem:[%s8508_s19 + $0xe18] sm:$0xf]  ;;  %v7005_v57 = vor.u32 %v8141_v41, %v7004_v43  ;;  %4111 = vmatpush.bf16.msrb.mxu1 %v6749_v55  ;;  %v7777_v43 = vld [vmem:[%s8508_s19 + $0xdc] sm:$0xf]  ;;  %v3893_v41 = vadd.f32 %v3892_v37, %v9544_v15  ;;  %v5825_v15 = vor.u32 %v7841_v14, %v5822_v45 }
 0x2c9   : > { %v8205_v23 = vld [vmem:[%s8508_s19 + $0xe34] sm:$0xf0]  ;;  %4099 = vmatmul.bf16.vlgmr.msrb.gmra.mxu0 %v9587_v36  ;;  %v7969_v50 = vld [vmem:[%s8508_s19 + $0x6dc] sm:$0xf]  ;;  %v5569_v48 = vor.u32 %v7777_v43, %v5566_v44 }
 0x2ca   : > { %v7261_v58 = vor.u32 %v8205_v23, %v7260_v47  ;;  %4124 = vmatpush.bf16.msrb.mxu2 %v7005_v57  ;;  %4143 = vmatpush.bf16.msra.mxu0 %v5697_v61  ;;  %v9590_v12 = vld.sshfl [vmem:[#allocation1 + $0x38] sm:$0xff pattern:$0x73625140]  ;;  %v3905_v47 = vpop.f32.mrf.mxu1  ;;  %v6369_v23 = vor.u32 %v7977_v17, %v6366_v20  ;;  %v3894_v2 = vpop.f32.mrf.mxu0 }
 0x2cb   : > { %4112 = vmatmul.bf16.vlgmr.msrb.gmra.mxu1 %v9595_v19  ;;  %v6334_v51 = vld [vmem:[%s8508_s19 + $0x6f8] sm:$0xf0]  ;;  %v9615_v52 = vadd.f32 %v3905_v47, %v3893_v41 }
 0x2cc   : > { %4137 = vmatpush.bf16.msrb.mxu3 %v7261_v58  ;;  %4156 = vmatpush.bf16.msra.mxu1 %v5953_v59  ;;  %v7769_v55 = vld [vmem:[%s8508_s19 + $0x9c] sm:$0xf]  ;;  %v6337_v58 = vor.u32 %v7969_v50, %v6334_v51 }
 0x2cd   : > { %4125 = vmatmul.bf16.vlgmr.msrb.gmra.mxu2 %v9581_v11  ;;  %v5534_v57 = vld [vmem:[%s8508_s19 + $0xb8] sm:$0xf0] }
 0x2ce   : > { %4169 = vmatpush.bf16.msra.mxu2 %v6209_v62  ;;  %4144 = vmatpush.bf16.msra.mxu0 %v5665_v6  ;;  %v7833_v53 = vld [vmem:[%s8508_s19 + $0x29c] sm:$0xf] }
 0x2cf   : > { %4138 = vmatmul.bf16.vlgmr.msrb.gmra.mxu3 %v9590_v12  ;;  %v5790_v61 = vld [vmem:[%s8508_s19 + $0x2b8] sm:$0xf0] }
 0x2d0   : > { %4182 = vmatpush.bf16.msra.mxu3 %v6465_v33  ;;  %4157 = vmatpush.bf16.msra.mxu1 %v5921_v31  ;;  %v7897_v59 = vld [vmem:[%s8508_s19 + $0x49c] sm:$0xf]  ;;  %v5537_v33 = vor.u32 %v7769_v55, %v5534_v57  ;;  %v5793_v3 = vor.u32 %v7833_v53, %v5790_v61 }
 0x2d1   : > { %v6046_v62 = vld [vmem:[%s8508_s19 + $0x4b8] sm:$0xf0] }
 0x2d2   : > { %4170 = vmatpush.bf16.msra.mxu2 %v6177_v7  ;;  %4145 = vmatpush.bf16.msra.mxu0 %v5633_v1  ;;  %v7961_v63 = vld [vmem:[%s8508_s19 + $0x69c] sm:$0xf]  ;;  %v6049_v27 = vor.u32 %v7897_v59, %v6046_v62  ;;  %v3907_v31 = vpop.f32.mrf.mxu1 }
 0x2d3   : > { %v6302_v0 = vld [vmem:[%s8508_s19 + $0x6b8] sm:$0xf0] }
 0x2d4   : > { %4183 = vmatpush.bf16.msra.mxu3 %v6433_v8  ;;  %4158 = vmatpush.bf16.msra.mxu1 %v5889_v21  ;;  %v7761_v60 = vld [vmem:[%s8508_s19 + $0x5c] sm:$0xf]  ;;  %v6305_v7 = vor.u32 %v7961_v63, %v6302_v0 }
 0x2d5   : > { %v5502_v4 = vld [vmem:[%s8508_s19 + $0x78] sm:$0xf0] }
 0x2d6   : > { %4171 = vmatpush.bf16.msra.mxu2 %v6145_v25  ;;  %4146 = vmatpush.bf16.msra.mxu0 %v5601_v34  ;;  %v7825_v6 = vld [vmem:[%s8508_s19 + $0x25c] sm:$0xf]  ;;  %v5505_v10 = vor.u32 %v7761_v60, %v5502_v4 }
 0x2d7   : > { %v5758_v9 = vld [vmem:[%s8508_s19 + $0x278] sm:$0xf0] }
 0x2d8   : > { %4184 = vmatpush.bf16.msra.mxu3 %v6401_v5  ;;  %4159 = vmatpush.bf16.msra.mxu1 %v5857_v38  ;;  %v7889_v35 = vld [vmem:[%s8508_s19 + $0x45c] sm:$0xf]  ;;  %v5761_v16 = vor.u32 %v7825_v6, %v5758_v9 }
 0x2d9   : > { %v6014_v26 = vld [vmem:[%s8508_s19 + $0x478] sm:$0xf0] }
 0x2da   : > { %4172 = vmatpush.bf16.msra.mxu2 %v6113_v39  ;;  %4147 = vmatpush.bf16.msra.mxu0 %v5569_v48  ;;  %v7953_v8 = vld [vmem:[%s8508_s19 + $0x65c] sm:$0xf]  ;;  %v6017_v1 = vor.u32 %v7889_v35, %v6014_v26  ;;  %v8372_v26 = vld.sshfl [vmem:[#allocation1 + $0x8] sm:$0xff pattern:$0x73625140] }
 0x2db   : > { %v6270_v40 = vld [vmem:[%s8508_s19 + $0x678] sm:$0xf0] }
 0x2dc   : > { %4185 = vmatpush.bf16.msra.mxu3 %v6369_v23  ;;  %4160 = vmatpush.bf16.msra.mxu1 %v5825_v15  ;;  %v7753_v13 = vld [vmem:[%s8508_s19 + $0x1c] sm:$0xf]  ;;  %v6273_v42 = vor.u32 %v7953_v8, %v6270_v40 }
 0x2dd   : > { %v5470_v54 = vld [vmem:[%s8508_s19 + $0x38] sm:$0xf0] }
 0x2de   : > { %4173 = vmatpush.bf16.msra.mxu2 %v6081_v24  ;;  %4148 = vmatpush.bf16.msra.mxu0 %v5537_v33  ;;  %v7817_v21 = vld [vmem:[%s8508_s19 + $0x21c] sm:$0xf]  ;;  %v5473_v37 = vor.u32 %v7753_v13, %v5470_v54 }
 0x2df   : > { %v5726_v25 = vld [vmem:[%s8508_s19 + $0x238] sm:$0xf0] }
 0x2e0   : > { %4186 = vmatpush.bf16.msra.mxu3 %v6337_v58  ;;  %4161 = vmatpush.bf16.msra.mxu1 %v5793_v3  ;;  %v7881_v22 = vld [vmem:[%s8508_s19 + $0x41c] sm:$0xf]  ;;  %v5729_v44 = vor.u32 %v7817_v21, %v5726_v25  ;;  %v8369_v3 = vld.sshfl [vmem:[#allocation1 + $0x10] sm:$0xff pattern:$0x73625140] }
 0x2e1   : > { %v5982_v5 = vld [vmem:[%s8508_s19 + $0x438] sm:$0xf0] }
 0x2e2   : > { %4174 = vmatpush.bf16.msra.mxu2 %v6049_v27  ;;  %v7945_v29 = vld [vmem:[%s8508_s19 + $0x61c] sm:$0xf]  ;;  %4149 = vmatpush.bf16.msra.mxu0 %v5505_v10  ;;  %v5985_v14 = vor.u32 %v7881_v22, %v5982_v5  ;;  %v9677_v5 = vpop.f32.mrf.mxu0 }
 0x2e3   : > { %v6238_v30 = vld [vmem:[%s8508_s19 + $0x638] sm:$0xf0] }
 0x2e4   : > { %4187 = vmatpush.bf16.msra.mxu3 %v6305_v7  ;;  %v8065_v17 = vld [vmem:[%s8508_s19 + $0x9dc] sm:$0xf]  ;;  %4162 = vmatpush.bf16.msra.mxu1 %v5761_v16  ;;  %v6241_v23 = vor.u32 %v7945_v29, %v6238_v30  ;;  %v8370_v7 = vld.sshfl [vmem:[#allocation1] sm:$0xff pattern:$0x73625140] }
 0x2e5   : > { %v6718_v20 = vld [vmem:[%s8508_s19 + $0x9f8] sm:$0xf0] }
 0x2e6   : > { %v8129_v34 = vld [vmem:[%s8508_s19 + $0xbdc] sm:$0xf]  ;;  %4175 = vmatpush.bf16.msra.mxu2 %v6017_v1  ;;  %v6721_v45 = vor.u32 %v8065_v17, %v6718_v20  ;;  %4150 = vmatpush.bf16.msra.mxu0 %v5473_v37 }
 0x2e7   : > { %v6974_v38 = vld [vmem:[%s8508_s19 + $0xbf8] sm:$0xf0] }
 0x2e8   : > { %v8193_v39 = vld [vmem:[%s8508_s19 + $0xddc] sm:$0xf]  ;;  %4188 = vmatpush.bf16.msra.mxu3 %v6273_v42  ;;  %v6977_v49 = vor.u32 %v8129_v34, %v6974_v38  ;;  %4163 = vmatpush.bf16.msra.mxu1 %v5729_v44  ;;  %v9682_v34 = vpop.f32.mrf.mxu1 }
 0x2e9   : > { %v7230_v43 = vld [vmem:[%s8508_s19 + $0xdf8] sm:$0xf0]  ;;  %4151 = vmatmul.bf16.vlgmr.msra.gmra.mxu0 %v8370_v7 }
 0x2ea   : > { %v8257_v41 = vld [vmem:[%s8508_s19 + $0xfdc] sm:$0xf]  ;;  %v7233_v46 = vor.u32 %v8193_v39, %v7230_v43  ;;  %4176 = vmatpush.bf16.msra.mxu2 %v5985_v14  ;;  %4195 = vmatpush.bf16.msrb.mxu0 %v6721_v45 }
 0x2eb   : > { %v7486_v47 = vld [vmem:[%s8508_s19 + $0xff8] sm:$0xf0]  ;;  %4164 = vmatmul.bf16.vlgmr.msra.gmra.mxu1 %v8372_v26 }
 0x2ec   : > { %v8057_v50 = vld [vmem:[%s8508_s19 + $0x99c] sm:$0xf]  ;;  %v7489_v15 = vor.u32 %v8257_v41, %v7486_v47  ;;  %4189 = vmatpush.bf16.msra.mxu3 %v6241_v23  ;;  %4208 = vmatpush.bf16.msrb.mxu1 %v6977_v49 }
 0x2ed   : > { %v6686_v51 = vld [vmem:[%s8508_s19 + $0x9b8] sm:$0xf0]  ;;  %4177 = vmatmul.bf16.vlgmr.msra.gmra.mxu2 %v8369_v3 }
 0x2ee   : > { %v8121_v48 = vld [vmem:[%s8508_s19 + $0xb9c] sm:$0xf]  ;;  %v6689_v61 = vor.u32 %v8057_v50, %v6686_v51  ;;  %4221 = vmatpush.bf16.msrb.mxu2 %v7233_v46  ;;  %v3970_v50 = vpop.f32.mrf.mxu2 }
 0x2ef   : > { %v6942_v24 = vld [vmem:[%s8508_s19 + $0xbb8] sm:$0xf0] }
 0x2f0   : > { %v8185_v55 = vld [vmem:[%s8508_s19 + $0xd9c] sm:$0xf]  ;;  %v6945_v59 = vor.u32 %v8121_v48, %v6942_v24  ;;  %4234 = vmatpush.bf16.msrb.mxu3 %v7489_v15  ;;  %4196 = vmatpush.bf16.msrb.mxu0 %v6689_v61  ;;  %v3946_v61 = vpop.f32.mrf.mxu0 }
 0x2f1   : > { %v7198_v57 = vld [vmem:[%s8508_s19 + $0xdb8] sm:$0xf0] }
 0x2f2   : > { %v8249_v53 = vld [vmem:[%s8508_s19 + $0xf9c] sm:$0xf]  ;;  %v7201_v62 = vor.u32 %v8185_v55, %v7198_v57  ;;  %4209 = vmatpush.bf16.msrb.mxu1 %v6945_v59  ;;  %v3983_v55 = vpop.f32.mrf.mxu3 }
 0x2f3   : > { %v7454_v58 = vld [vmem:[%s8508_s19 + $0xfb8] sm:$0xf0] }
 0x2f4   : > { %v8049_v63 = vld [vmem:[%s8508_s19 + $0x95c] sm:$0xf]  ;;  %v7457_v2 = vor.u32 %v8249_v53, %v7454_v58  ;;  %4222 = vmatpush.bf16.msrb.mxu2 %v7201_v62 }
 0x2f5   : > { %v6654_v0 = vld [vmem:[%s8508_s19 + $0x978] sm:$0xf0] }
 0x2f6   : > { %v8113_v33 = vld [vmem:[%s8508_s19 + $0xb5c] sm:$0xf]  ;;  %v6657_v35 = vor.u32 %v8049_v63, %v6654_v0  ;;  %4235 = vmatpush.bf16.msrb.mxu3 %v7457_v2  ;;  %v3959_v2 = vpop.f32.mrf.mxu1 }
 0x2f7   : > { %v6910_v27 = vld [vmem:[%s8508_s19 + $0xb78] sm:$0xf0] }
 0x2f8   : > { %v8177_v60 = vld [vmem:[%s8508_s19 + $0xd5c] sm:$0xf]  ;;  %v6913_v8 = vor.u32 %v8113_v33, %v6910_v27  ;;  %4197 = vmatpush.bf16.msrb.mxu0 %v6657_v35 }
 0x2f9   : > { %v7166_v4 = vld [vmem:[%s8508_s19 + $0xd78] sm:$0xf0] }
 0x2fa   : > { %v8241_v6 = vld [vmem:[%s8508_s19 + $0xf5c] sm:$0xf]  ;;  %v7169_v40 = vor.u32 %v8177_v60, %v7166_v4  ;;  %4210 = vmatpush.bf16.msrb.mxu1 %v6913_v8 }
 0x2fb   : > { %v7422_v31 = vld [vmem:[%s8508_s19 + $0xf78] sm:$0xf0] }
 0x2fc   : > { %v8371_v9 = vld.sshfl [vmem:[#allocation1 + $0x18] sm:$0xff pattern:$0x73625140]  ;;  %v7425_v16 = vor.u32 %v8241_v6, %v7422_v31  ;;  %4223 = vmatpush.bf16.msrb.mxu2 %v7169_v40 }
 0x2fd   : > { %4190 = vmatmul.bf16.vlgmr.msra.gmra.mxu3 %v8371_v9  ;;  %v8041_v10 = vld [vmem:[%s8508_s19 + $0x91c] sm:$0xf] }
 0x2fe   : > { %v6622_v13 = vld [vmem:[%s8508_s19 + $0x938] sm:$0xf0]  ;;  %4236 = vmatpush.bf16.msrb.mxu3 %v7425_v16 }
 0x2ff   : > { %v8105_v54 = vld [vmem:[%s8508_s19 + $0xb1c] sm:$0xf]  ;;  %v6625_v42 = vor.u32 %v8041_v10, %v6622_v13  ;;  %v3972_v10 = vpop.f32.mrf.mxu2 }
 0x300   : > { %v6878_v1 = vld [vmem:[%s8508_s19 + $0xb38] sm:$0xf0] }
 0x301   : > { %v8169_v21 = vld [vmem:[%s8508_s19 + $0xd1c] sm:$0xf]  ;;  %v6881_v29 = vor.u32 %v8105_v54, %v6878_v1  ;;  %4198 = vmatpush.bf16.msrb.mxu0 %v6625_v42 }
 0x302   : > { %v7134_v25 = vld [vmem:[%s8508_s19 + $0xd38] sm:$0xf0] }
 0x303   : > { %v8233_v22 = vld [vmem:[%s8508_s19 + $0xf1c] sm:$0xf]  ;;  %v7137_v30 = vor.u32 %v8169_v21, %v7134_v25  ;;  %4211 = vmatpush.bf16.msrb.mxu1 %v6881_v29  ;;  %v3985_v21 = vpop.f32.mrf.mxu3 }
 0x304   : > { %v7390_v28 = vld [vmem:[%s8508_s19 + $0xf38] sm:$0xf0] }
 0x305   : > { %v8033_v32 = vld [vmem:[%s8508_s19 + $0x8dc] sm:$0xf]  ;;  %v7393_v37 = vor.u32 %v8233_v22, %v7390_v28  ;;  %4224 = vmatpush.bf16.msrb.mxu2 %v7137_v30 }
 0x306   : > { %v6590_v17 = vld [vmem:[%s8508_s19 + $0x8f8] sm:$0xf0] }
 0x307   : > { %v8097_v20 = vld [vmem:[%s8508_s19 + $0xadc] sm:$0xf]  ;;  %v6593_v41 = vor.u32 %v8033_v32, %v6590_v17  ;;  %4237 = vmatpush.bf16.msrb.mxu3 %v7393_v37  ;;  %v3958_v32 = vadd.f32 %v9682_v34, %v9677_v5  ;;  %v3996_v37 = vpop.f32.mrf.mxu0  ;;  %v3919_v5 = vadd.f32 %v9620_v56, %v9615_v52 }
 0x308   : > { %v6846_v38 = vld [vmem:[%s8508_s19 + $0xaf8] sm:$0xf0] }
 0x309   : > { %v8161_v39 = vld [vmem:[%s8508_s19 + $0xcdc] sm:$0xf]  ;;  %v6849_v47 = vor.u32 %v8097_v20, %v6846_v38  ;;  %4199 = vmatpush.bf16.msrb.mxu0 %v6593_v41  ;;  %v3971_v17 = vadd.f32 %v3970_v50, %v3958_v32 }
 0x30a   : > { %v7102_v43 = vld [vmem:[%s8508_s19 + $0xcf8] sm:$0xf0] }
 0x30b   : > { %v8225_v44 = vld [vmem:[%s8508_s19 + $0xedc] sm:$0xf]  ;;  %v7105_v23 = vor.u32 %v8161_v39, %v7102_v43  ;;  %4212 = vmatpush.bf16.msrb.mxu1 %v6849_v47  ;;  %v3984_v20 = vadd.f32 %v3983_v55, %v3971_v17  ;;  %v4009_v39 = vpop.f32.mrf.mxu1  ;;  %v319_v17 = vld [vmem:[#allocation2 + $0x8] sm:$0xff] }
 0x30c   : > { %v7358_v14 = vld [vmem:[%s8508_s19 + $0xef8] sm:$0xf0] }
 0x30d   : > { %v8025_v45 = vld [vmem:[%s8508_s19 + $0x89c] sm:$0xf]  ;;  %v7361_v51 = vor.u32 %v8225_v44, %v7358_v14  ;;  %4225 = vmatpush.bf16.msrb.mxu2 %v7105_v23  ;;  %v3997_v38 = vadd.f32 %v3996_v37, %v3984_v20  ;;  %v4022_v44 = vpop.f32.mrf.mxu2  ;;  %v4035_v14 = vpop.f32.mrf.mxu3  ;;  %v318_v23 = vld [vmem:[#allocation2 + $0x18] sm:$0xff] }
 0x30e   : > { %v6558_v49 = vld [vmem:[%s8508_s19 + $0x8b8] sm:$0xf0] }
 0x30f   : > { %v8089_v46 = vld [vmem:[%s8508_s19 + $0xa9c] sm:$0xf]  ;;  %v6561_v58 = vor.u32 %v8025_v45, %v6558_v49  ;;  %4238 = vmatpush.bf16.msrb.mxu3 %v7361_v51  ;;  %v4010_v43 = vadd.f32 %v4009_v39, %v3997_v38  ;;  %v3998_v47 = vpop.f32.mrf.mxu0 }
 0x310   : > { %v6814_v48 = vld [vmem:[%s8508_s19 + $0xab8] sm:$0xf0] }
 0x311   : > { %v8153_v15 = vld [vmem:[%s8508_s19 + $0xc9c] sm:$0xf]  ;;  %v6817_v59 = vor.u32 %v8089_v46, %v6814_v48  ;;  %4200 = vmatpush.bf16.msrb.mxu0 %v6561_v58  ;;  %v4023_v34 = vadd.f32 %v4022_v44, %v4010_v43 }
 0x312   : > { %v7070_v24 = vld [vmem:[%s8508_s19 + $0xcb8] sm:$0xf0] }
 0x313   : > { %v8217_v57 = vld [vmem:[%s8508_s19 + $0xe9c] sm:$0xf]  ;;  %v7073_v62 = vor.u32 %v8153_v15, %v7070_v24  ;;  %4213 = vmatpush.bf16.msrb.mxu1 %v6817_v59  ;;  %v4036_v41 = vadd.f32 %v4035_v14, %v4023_v34 }
 0x314   : > { %v7326_v53 = vld [vmem:[%s8508_s19 + $0xeb8] sm:$0xf0] }
 0x315   : > { %v8017_v63 = vld [vmem:[%s8508_s19 + $0x85c] sm:$0xf]  ;;  %v7329_v3 = vor.u32 %v8217_v57, %v7326_v53  ;;  %4226 = vmatpush.bf16.msrb.mxu2 %v7073_v62  ;;  %v4024_v49 = vpop.f32.mrf.mxu2  ;;  %v4037_v46 = vpop.f32.mrf.mxu3 }
 0x316   : > { %v6526_v0 = vld [vmem:[%s8508_s19 + $0x878] sm:$0xf0] }
 0x317   : > { %v8081_v33 = vld [vmem:[%s8508_s19 + $0xa5c] sm:$0xf]  ;;  %v6529_v7 = vor.u32 %v8017_v63, %v6526_v0  ;;  %4239 = vmatpush.bf16.msrb.mxu3 %v7329_v3  ;;  %v4048_v50 = vpop.f32.mrf.mxu0 }
 0x318   : > { %v6782_v27 = vld [vmem:[%s8508_s19 + $0xa78] sm:$0xf0] }
 0x319   : > { %v8145_v60 = vld [vmem:[%s8508_s19 + $0xc5c] sm:$0xf]  ;;  %v6785_v9 = vor.u32 %v8081_v33, %v6782_v27  ;;  %4201 = vmatpush.bf16.msrb.mxu0 %v6529_v7 }
 0x31a   : > { %v7038_v4 = vld [vmem:[%s8508_s19 + $0xc78] sm:$0xf0] }
 0x31b   : > { %v8209_v6 = vld [vmem:[%s8508_s19 + $0xe5c] sm:$0xf]  ;;  %v7041_v35 = vor.u32 %v8145_v60, %v7038_v4  ;;  %4214 = vmatpush.bf16.msrb.mxu1 %v6785_v9 }
 0x31c   : > { %v7294_v31 = vld [vmem:[%s8508_s19 + $0xe78] sm:$0xf0] }
 0x31d   : > { %v8009_v26 = vld [vmem:[%s8508_s19 + $0x81c] sm:$0xf]  ;;  %v7297_v13 = vor.u32 %v8209_v6, %v7294_v31  ;;  %4227 = vmatpush.bf16.msrb.mxu2 %v7041_v35  ;;  %v4074_v15 = vpop.f32.mrf.mxu2  ;;  %v4087_v56 = vpop.f32.mrf.mxu3 }
 0x31e   : > { %v6494_v8 = vld [vmem:[%s8508_s19 + $0x838] sm:$0xf0] }
 0x31f   : > { %v8073_v40 = vld [vmem:[%s8508_s19 + $0xa1c] sm:$0xf]  ;;  %v6497_v28 = vor.u32 %v8009_v26, %v6494_v8  ;;  %4240 = vmatpush.bf16.msrb.mxu3 %v7297_v13  ;;  %v4050_v55 = vpop.f32.mrf.mxu0 }
 0x320   : > { %v6750_v54 = vld [vmem:[%s8508_s19 + $0xa38] sm:$0xf0] }
 0x321   : > { %v8137_v16 = vld [vmem:[%s8508_s19 + $0xc1c] sm:$0xf]  ;;  %v6753_v42 = vor.u32 %v8073_v40, %v6750_v54  ;;  %4202 = vmatpush.bf16.msrb.mxu0 %v6497_v28 }
 0x322   : > { %v7006_v1 = vld [vmem:[%s8508_s19 + $0xc38] sm:$0xf0] }
 0x323   : > { %v8201_v25 = vld [vmem:[%s8508_s19 + $0xe1c] sm:$0xf]  ;;  %v7009_v29 = vor.u32 %v8137_v16, %v7006_v1  ;;  %4215 = vmatpush.bf16.msrb.mxu1 %v6753_v42 }
 0x324   : > { %v7262_v22 = vld [vmem:[%s8508_s19 + $0xe38] sm:$0xf0]  ;;  %4203 = vmatmul.bf16.vlgmr.msrb.gmra.mxu0 %v9587_v36  ;;  %v4011_v36 = vpop.f32.mrf.mxu1 }
 0x325   : > { %v7265_v30 = vor.u32 %v8201_v25, %v7262_v22  ;;  %4228 = vmatpush.bf16.msrb.mxu2 %v7009_v29  ;;  %v4076_v53 = vpop.f32.mrf.mxu2  ;;  %v4089_v58 = vpop.f32.mrf.mxu3 }
 0x326   : > { %4216 = vmatmul.bf16.vlgmr.msrb.gmra.mxu1 %v9595_v19  ;;  %v3932_v19 = vadd.f32 %v9625_v18, %v3919_v5 }
 0x327   : > { %4241 = vmatpush.bf16.msrb.mxu3 %v7265_v30 }
 0x328   : > { %4229 = vmatmul.bf16.vlgmr.msrb.gmra.mxu2 %v9581_v11  ;;  %v4257_v11 = vrot.slane %v4036_v41, 4 }
 0x32a   : > { %4242 = vmatmul.bf16.vlgmr.msrb.gmra.mxu3 %v9590_v12  ;;  %v4262_v12 = vsel %vm4259_vm0, %v3932_v19, %v4257_v11 }
 0x32b   : > { %v4270_v45 = vadd.f32 %v4262_v12, %v318_v23 }
 0x32c   : > { %v4061_v51 = vpop.f32.mrf.mxu1 }
 0x32d   : > { %4274 = vst [vmem:[#allocation2 + $0x18] sm:$0xff] %v4270_v45  ;;  %v4062_v48 = vadd.f32 %v4061_v51, %v4048_v50 }
 0x32f   : > { %v4075_v52 = vadd.f32 %v4074_v15, %v4062_v48 }
 0x331   : > { %v4088_v24 = vadd.f32 %v4087_v56, %v4075_v52 }
 0x334   : > { %v4063_v57 = vpop.f32.mrf.mxu1 }
 0x346   : > { %v4100_v18 = vpop.f32.mrf.mxu0 }
 0x347   : > { %v4101_v61 = vadd.f32 %v4100_v18, %v4088_v24 }
 0x348   : > { %v4113_v59 = vpop.f32.mrf.mxu1 }
 0x349   : > { %v4114_v62 = vadd.f32 %v4113_v59, %v4101_v61 }
 0x34e   : > { %v4102_v33 = vpop.f32.mrf.mxu0 }
 0x350   : > { %v4126_v63 = vpop.f32.mrf.mxu2  ;;  %v4115_v2 = vpop.f32.mrf.mxu1 }
 0x351   : > { %v4127_v25 = vadd.f32 %v4126_v63, %v4114_v62 }
 0x352   : > { %v4139_v0 = vpop.f32.mrf.mxu3 }
 0x353   : > { %v4140_v32 = vadd.f32 %v4139_v0, %v4127_v25 }
 0x358   : > { %v4128_v3 = vpop.f32.mrf.mxu2 }
 0x35a   : > { %v4141_v27 = vpop.f32.mrf.mxu3 }
 0x366   : > { %v4152_v60 = vpop.f32.mrf.mxu0 }
 0x368   : > { %v4165_v4 = vpop.f32.mrf.mxu1 }
 0x369   : > { %v4166_v8 = vadd.f32 %v4165_v4, %v4152_v60 }
 0x36e   : > { %v4154_v7 = vpop.f32.mrf.mxu0 }
 0x370   : > { %v4178_v6 = vpop.f32.mrf.mxu2  ;;  %v4167_v9 = vpop.f32.mrf.mxu1 }
 0x371   : > { %v4179_v40 = vadd.f32 %v4178_v6, %v4166_v8 }
 0x378   : > { %v4180_v35 = vpop.f32.mrf.mxu2 }
 0x380   : > { %v4191_v31 = vpop.f32.mrf.mxu3 }
 0x381   : > { %v4192_v10 = vadd.f32 %v4191_v31, %v4179_v40 }
 0x388   : > { %v4193_v26 = vpop.f32.mrf.mxu3 }
 0x3a1   : > { %v4204_v13 = vpop.f32.mrf.mxu0 }
 0x3a2   : > { %v4205_v16 = vadd.f32 %v4204_v13, %v4192_v10 }
 0x3a3   : > { %v4217_v54 = vpop.f32.mrf.mxu1 }
 0x3a4   : > { %v4218_v1 = vadd.f32 %v4217_v54, %v4205_v16 }
 0x3a9   : > { %v4206_v42 = vpop.f32.mrf.mxu0 }
 0x3ab   : > { %v4230_v21 = vpop.f32.mrf.mxu2  ;;  %v4219_v29 = vpop.f32.mrf.mxu1 }
 0x3ac   : > { %v4231_v22 = vadd.f32 %v4230_v21, %v4218_v1 }
 0x3ad   : > { %v4243_v28 = vpop.f32.mrf.mxu3 }
 0x3ae   : > { %v4244_v30 = vadd.f32 %v4243_v28, %v4231_v22 }
 0x3b0   : > { %v4258_v20 = vrot.slane %v4244_v30, 4 }
 0x3b1   : > { %4279 = sbr.rel (%p7490_p9) target bundleno = 1260 (0x4ec), region = 60 }
 0x3b2   : > { %v4263_v37 = vsel %vm4259_vm0, %v4140_v32, %v4258_v20 }
 0x3b3   : > { %v4271_v38 = vadd.f32 %v4263_v37, %v319_v17  ;;  %v4232_v39 = vpop.f32.mrf.mxu2 }
 0x3b5   : > { %v4245_v43 = vpop.f32.mrf.mxu3  ;;  %4275 = vst [vmem:[#allocation2 + $0x8] sm:$0xff] %v4271_v38 }
 0x3b6   : > { %v8269_v44 = vld [vmem:[#allocation3 + $0x38] sm:$0xff]  ;;  %v8268_v41 = vld [vmem:[#allocation3 + $0x30] sm:$0xff]  ;;  %v8267_v23 = vld [vmem:[#allocation3 + $0x28] sm:$0xff]  ;;  %v8442_v48 = vmov 4.0  }
 0x3b7   : > { %v8277_v5 = vld [vmem:[#allocation3 + $0x78] sm:$0xff]  ;;  %5254 = vmatpush.bf16.msra.mxu0 %v8269_v44  ;;  %v8276_v47 = vld [vmem:[#allocation3 + $0x70] sm:$0xff]  ;;  %v8275_v11 = vld [vmem:[#allocation3 + $0x68] sm:$0xff]  ;;  %8374 = vrcp.f32 %v8442_v48 }
 0x3b8   : > { %v8285_v34 = vld [vmem:[#allocation3 + $0xb8] sm:$0xff]  ;;  %5267 = vmatpush.bf16.msra.mxu1 %v8277_v5  ;;  %v8284_v36 = vld [vmem:[#allocation3 + $0xb0] sm:$0xff]  ;;  %v8283_v12 = vld [vmem:[#allocation3 + $0xa8] sm:$0xff] }
 0x3b9   : > { %v8293_v14 = vld [vmem:[#allocation3 + $0xf8] sm:$0xff]  ;;  %5280 = vmatpush.bf16.msra.mxu2 %v8285_v34  ;;  %v8292_v19 = vld [vmem:[#allocation3 + $0xf0] sm:$0xff]  ;;  %v8291_v45 = vld [vmem:[#allocation3 + $0xe8] sm:$0xff] }
 0x3ba   : > { %5293 = vmatpush.bf16.msra.mxu3 %v8293_v14  ;;  %v8266_v49 = vld [vmem:[#allocation3 + $0x20] sm:$0xff]  ;;  %v8265_v15 = vld [vmem:[#allocation3 + $0x18] sm:$0xff]  ;;  %v8264_v53 = vld [vmem:[#allocation3 + $0x10] sm:$0xff] }
 0x3bb   : > { %5255 = vmatpush.bf16.msra.mxu0 %v8268_v41  ;;  %v8274_v46 = vld [vmem:[#allocation3 + $0x60] sm:$0xff]  ;;  %v8273_v52 = vld [vmem:[#allocation3 + $0x58] sm:$0xff]  ;;  %v8272_v58 = vld [vmem:[#allocation3 + $0x50] sm:$0xff] }
 0x3bc   : > { %5268 = vmatpush.bf16.msra.mxu1 %v8276_v47  ;;  %v8282_v50 = vld [vmem:[#allocation3 + $0xa0] sm:$0xff]  ;;  %v8281_v56 = vld [vmem:[#allocation3 + $0x98] sm:$0xff]  ;;  %v8280_v63 = vld [vmem:[#allocation3 + $0x90] sm:$0xff] }
 0x3bd   : > { %5281 = vmatpush.bf16.msra.mxu2 %v8284_v36  ;;  %v8290_v51 = vld [vmem:[#allocation3 + $0xe0] sm:$0xff]  ;;  %v8289_v24 = vld [vmem:[#allocation3 + $0xd8] sm:$0xff]  ;;  %v9728_v57 = vpop.eup %8374  ;;  %v8288_v3 = vld [vmem:[#allocation3 + $0xd0] sm:$0xff] }
 0x3be   : > { %5294 = vmatpush.bf16.msra.mxu3 %v8292_v19  ;;  %v4284_v55 = vld [vmem:[%s10010_s2] sm:$0xff]  ;;  %v4280_v27 = vld [vmem:[#allocation2 + $0x10] sm:$0xff]  ;;  %v4281_v4 = vld [vmem:[#allocation2] sm:$0xff]  ;;  %v4394_v7 = vmul.f32 4.0, %v9728_v57  ;;  %vm4398_vm1 = vweird.f32 %v9728_v57 }
 0x3bf   : > { %5256 = vmatpush.bf16.msra.mxu0 %v8267_v23  ;;  %v4286_v18 = vperm.slane %v4284_v55, 0  ;;  %v4287_v61 = vperm.slane %v4284_v55, 1  ;;  %v4288_v59 = vperm.slane %v4284_v55, 2  ;;  %v4289_v62 = vperm.slane %v4284_v55, 3  ;;  %v4282_v9 = vld [vmem:[#allocation2 + $0x18] sm:$0xff]  ;;  %v4283_v10 = vld [vmem:[#allocation2 + $0x8] sm:$0xff] }
 0x3c0   : > { %5269 = vmatpush.bf16.msra.mxu1 %v8275_v11  ;;  %v4290_v0 = vperm.slane %v4284_v55, 4  ;;  %v4291_v33 = vperm.slane %v4284_v55, 5  ;;  %v4293_v2 = vperm.slane %v4284_v55, 7  ;;  %v4292_v31 = vperm.slane %v4284_v55, 6  ;;  %v8263_v13 = vld [vmem:[#allocation3 + $0x8] sm:$0xff]  ;;  %v8262_v32 = vld [vmem:[#allocation3] sm:$0xff] }
 0x3c1   : > { %5282 = vmatpush.bf16.msra.mxu2 %v8283_v12  ;;  %v4294_v60 = vrot.slane %v4287_v61, 4  ;;  %v4295_v6 = vrot.slane %v4289_v62, 4  ;;  %v8271_v54 = vld [vmem:[#allocation3 + $0x48] sm:$0xff]  ;;  %v4395_v29 = vsub.f32 1.0, %v4394_v7  ;;  %v8270_v17 = vld [vmem:[#allocation3 + $0x40] sm:$0xff]  ;;  %v8301_v38 = vld [vmem:[#allocation3 + $0x138] sm:$0xff] }
 0x3c2   : > { %5295 = vmatpush.bf16.msra.mxu3 %v8291_v45  ;;  %v4296_v35 = vrot.slane %v4291_v33, 4  ;;  %v4297_v26 = vrot.slane %v4293_v2, 4  ;;  %v8279_v25 = vld [vmem:[#allocation3 + $0x88] sm:$0xff]  ;;  %v8278_v20 = vld [vmem:[#allocation3 + $0x80] sm:$0xff]  ;;  %v8309_v39 = vld [vmem:[#allocation3 + $0x178] sm:$0xff] }
 0x3c3   : > { %5257 = vmatpush.bf16.msra.mxu0 %v8266_v49  ;;  %v4298_v8 = vsel %vm4259_vm0, %v4286_v18, %v4294_v60  ;;  %v4299_v40 = vsel %vm4259_vm0, %v4288_v59, %v4295_v6  ;;  %v8287_v22 = vld [vmem:[#allocation3 + $0xc8] sm:$0xff]  ;;  %v8286_v37 = vld [vmem:[#allocation3 + $0xc0] sm:$0xff]  ;;  %v4396_v43 = vmul.f32 %v9728_v57, %v4395_v29  ;;  %v8317_v44 = vld [vmem:[#allocation3 + $0x1b8] sm:$0xff] }
 0x3c4   : > { %5270 = vmatpush.bf16.msra.mxu1 %v8274_v46  ;;  %v9733_v16 = vadd.f32 %v4298_v8, %v4280_v27  ;;  %v9735_v1 = vadd.f32 %v4299_v40, %v4281_v4  ;;  %v4300_v21 = vsel %vm4259_vm0, %v4290_v0, %v4296_v35  ;;  %v4301_v42 = vsel %vm4259_vm0, %v4292_v31, %v4297_v26  ;;  %v8325_v5 = vld [vmem:[#allocation3 + $0x1f8] sm:$0xff]  ;;  %v8300_v34 = vld [vmem:[#allocation3 + $0x130] sm:$0xff]  ;;  %v8299_v48 = vld [vmem:[#allocation3 + $0x128] sm:$0xff] }
 0x3c5   : > { %5283 = vmatpush.bf16.msra.mxu2 %v8282_v50  ;;  %v9738_v28 = vadd.f32 %v4300_v21, %v4282_v9  ;;  %v9742_v30 = vadd.f32 %v4301_v42, %v4283_v10  ;;  %v8308_v14 = vld [vmem:[#allocation3 + $0x170] sm:$0xff]  ;;  %v4397_v12 = vadd.f32 %v9728_v57, %v4396_v43  ;;  %v8315_v55 = vld [vmem:[#allocation3 + $0x1a8] sm:$0xff]  ;;  %v8314_v29 = vld [vmem:[#allocation3 + $0x1a0] sm:$0xff] }
 0x3c6   : > { %5296 = vmatpush.bf16.msra.mxu3 %v8290_v51  ;;  %4314 = vst [vmem:[#allocation1] ss:$2 sm:$0xff] %v9733_v16  ;;  %v8316_v41 = vld [vmem:[#allocation3 + $0x1b0] sm:$0xff]  ;;  %v8323_v62 = vld [vmem:[#allocation3 + $0x1e8] sm:$0xff] }
 0x3c7   : > { %5258 = vmatpush.bf16.msra.mxu0 %v8265_v15  ;;  %4316 = vst [vmem:[#allocation1 + $0x10] ss:$2 sm:$0xff] %v9735_v1  ;;  %v8324_v19 = vld [vmem:[#allocation3 + $0x1f0] sm:$0xff]  ;;  %v8307_v15 = vld [vmem:[#allocation3 + $0x168] sm:$0xff] }
 0x3c8   : > { %5271 = vmatpush.bf16.msra.mxu1 %v8273_v52  ;;  %4318 = vst [vmem:[#allocation1 + $0x20] ss:$2 sm:$0xff] %v9738_v28 }
 0x3c9   : > { %5284 = vmatpush.bf16.msra.mxu2 %v8281_v56  ;;  %4320 = vst [vmem:[#allocation1 + $0x30] ss:$2 sm:$0xff] %v9742_v30 }
 0x3ca   : > { %5297 = vmatpush.bf16.msra.mxu3 %v8289_v24 }
 0x3cb   : > { %5259 = vmatpush.bf16.msra.mxu0 %v8264_v53 }
 0x3cc   : > { %5272 = vmatpush.bf16.msra.mxu1 %v8272_v58 }
 0x3cd   : > { %5285 = vmatpush.bf16.msra.mxu2 %v8280_v63  ;;  %v4321_v47 = vld.sshfl [vmem:[#allocation1] sm:$0xff pattern:$0x75316420]  ;;  %v4322_v36 = vld.sshfl [vmem:[#allocation1 + $0x8] sm:$0xff pattern:$0x75316420]  ;;  %v9758_v63 = vsel %vm4398_vm1, %v9728_v57, %v4397_v12 }
 0x3ce   : > { %5298 = vmatpush.bf16.msra.mxu3 %v8288_v3  ;;  %v4337_v23 = vsel %vm4259_vm0, %v4321_v47, 0.0  ;;  %v4344_v11 = vsel %vm4259_vm0, %v4322_v36, 0.0  ;;  %v4323_v45 = vld.sshfl [vmem:[#allocation1 + $0x10] sm:$0xff pattern:$0x75316420] }
 0x3cf   : > { %5260 = vmatpush.bf16.msra.mxu0 %v8263_v13  ;;  %v4338_v49 = vrot.slane %v4337_v23, 4  ;;  %v4345_v46 = vrot.slane %v4344_v11, 4  ;;  %v4324_v50 = vld.sshfl [vmem:[#allocation1 + $0x18] sm:$0xff pattern:$0x75316420]  ;;  %v4351_v51 = vsel %vm4259_vm0, %v4323_v45, 0.0 }
 0x3d0   : > { %5273 = vmatpush.bf16.msra.mxu1 %v8271_v54  ;;  %v4352_v52 = vrot.slane %v4351_v51, 4  ;;  %v4358_v56 = vsel %vm4259_vm0, %v4324_v50, 0.0  ;;  %v4325_v24 = vld.sshfl [vmem:[#allocation1 + $0x20] sm:$0xff pattern:$0x75316420]  ;;  %v8298_v13 = vld [vmem:[#allocation3 + $0x120] sm:$0xff] }
 0x3d1   : > { %5286 = vmatpush.bf16.msra.mxu2 %v8279_v25  ;;  %v4339_v53 = vadd.f32 %v4338_v49, %v4337_v23  ;;  %v4346_v58 = vadd.f32 %v4345_v46, %v4344_v11  ;;  %v4359_v18 = vrot.slane %v4358_v56, 4  ;;  %v4326_v61 = vld.sshfl [vmem:[#allocation1 + $0x28] sm:$0xff pattern:$0x75316420]  ;;  %v4365_v59 = vsel %vm4259_vm0, %v4325_v24, 0.0 }
 0x3d2   : > { %5299 = vmatpush.bf16.msra.mxu3 %v8287_v22  ;;  %v4353_v0 = vadd.f32 %v4352_v52, %v4351_v51  ;;  %v4366_v33 = vrot.slane %v4365_v59, 4  ;;  %v4372_v2 = vsel %vm4259_vm0, %v4326_v61, 0.0  ;;  %v4327_v3 = vld.sshfl [vmem:[#allocation1 + $0x30] sm:$0xff pattern:$0x75316420]  ;;  %v8306_v54 = vld [vmem:[#allocation3 + $0x160] sm:$0xff] }
 0x3d3   : > { %5261 = vmatpush.bf16.msra.mxu0 %v8262_v32  ;;  %v4340_v27 = vrot.slane %v4339_v53, 2  ;;  %v4347_v60 = vrot.slane %v4346_v58, 2  ;;  %v4360_v4 = vadd.f32 %v4359_v18, %v4358_v56  ;;  %v4373_v6 = vrot.slane %v4372_v2, 4  ;;  %v4328_v31 = vld.sshfl [vmem:[#allocation1 + $0x38] sm:$0xff pattern:$0x75316420] }
 0x3d4   : > { %5274 = vmatpush.bf16.msra.mxu1 %v8270_v17  ;;  %v4354_v7 = vrot.slane %v4353_v0, 2  ;;  %v4367_v9 = vadd.f32 %v4366_v33, %v4365_v59  ;;  %v4379_v35 = vsel %vm4259_vm0, %v4327_v3, 0.0  ;;  %v4386_v26 = vsel %vm4259_vm0, %v4328_v31, 0.0  ;;  %v8322_v32 = vld [vmem:[#allocation3 + $0x1e0] sm:$0xff] }
 0x3d5   : > { %5287 = vmatpush.bf16.msra.mxu2 %v8278_v20  ;;  %v4341_v57 = vadd.f32 %v4340_v27, %v4339_v53  ;;  %v4348_v8 = vadd.f32 %v4347_v60, %v4346_v58  ;;  %v4361_v40 = vrot.slane %v4360_v4, 2  ;;  %v4374_v10 = vadd.f32 %v4373_v6, %v4372_v2 }
 0x3d6   : > { %5300 = vmatpush.bf16.msra.mxu3 %v8286_v37  ;;  %v4355_v21 = vadd.f32 %v4354_v7, %v4353_v0  ;;  %v4368_v25 = vrot.slane %v4367_v9, 2  ;;  %v4380_v22 = vrot.slane %v4379_v35, 4  ;;  %v4387_v42 = vrot.slane %v4386_v26, 4 }
 0x3d7   : > { %5306 = vmatpush.bf16.msrb.mxu0 %v8301_v38  ;;  %v4342_v17 = vrot.slane %v4341_v57, 1  ;;  %v4349_v20 = vrot.slane %v4348_v8, 1  ;;  %v4362_v37 = vadd.f32 %v4361_v40, %v4360_v4  ;;  %v4375_v38 = vrot.slane %v4374_v10, 2 }
 0x3d8   : > { %5319 = vmatpush.bf16.msrb.mxu1 %v8309_v39  ;;  %v4356_v39 = vrot.slane %v4355_v21, 1  ;;  %v4369_v43 = vadd.f32 %v4368_v25, %v4367_v9 }
 0x3d9   : > { %5332 = vmatpush.bf16.msrb.mxu2 %v8317_v44  ;;  %v4381_v44 = vadd.f32 %v4380_v22, %v4379_v35  ;;  %v4376_v47 = vadd.f32 %v4375_v38, %v4374_v10 }
 0x3da   : > { %5345 = vmatpush.bf16.msrb.mxu3 %v8325_v5  ;;  %v4388_v5 = vadd.f32 %v4387_v42, %v4386_v26  ;;  %v4357_v36 = vadd.f32 %v4356_v39, %v4355_v21 }
 0x3db   : > { %5307 = vmatpush.bf16.msrb.mxu0 %v8300_v34  ;;  %v4343_v34 = vadd.f32 %v4342_v17, %v4341_v57  ;;  %v4382_v23 = vrot.slane %v4381_v44, 2  ;;  %v4377_v46 = vrot.slane %v4376_v47, 1 }
 0x3dc   : > { %5320 = vmatpush.bf16.msrb.mxu1 %v8308_v14  ;;  %v4350_v14 = vadd.f32 %v4349_v20, %v4348_v8  ;;  %v4389_v11 = vrot.slane %v4388_v5, 2  ;;  %v4402_v52 = vmul.f32 %v9758_v63, %v4357_v36 }
 0x3dd   : > { %5333 = vmatpush.bf16.msrb.mxu2 %v8316_v41  ;;  %v4363_v41 = vrot.slane %v4362_v37, 1  ;;  %v4400_v12 = vmul.f32 %v9758_v63, %v4343_v34  ;;  %v4383_v51 = vadd.f32 %v4382_v23, %v4381_v44  ;;  %v4378_v24 = vadd.f32 %v4377_v46, %v4376_v47  ;;  %v9803_v44 = vld [vmem:[%s10011_s3] sm:$0xff] }
 0x3de   : > { %5346 = vmatpush.bf16.msrb.mxu3 %v8324_v19  ;;  %v4370_v19 = vrot.slane %v4369_v43, 1  ;;  %v4401_v45 = vmul.f32 %v9758_v63, %v4350_v14 }
 0x3df   : > { %5308 = vmatpush.bf16.msrb.mxu0 %v8299_v48  ;;  %v4364_v49 = vadd.f32 %v4363_v41, %v4362_v37  ;;  %v4390_v48 = vadd.f32 %v4389_v11, %v4388_v5  ;;  %v4405_v59 = vmul.f32 %v9758_v63, %v4378_v24  ;;  %v4642_v11 = vperm.slane %v9803_v44, 1 }
 0x3e0   : > { %5321 = vmatpush.bf16.msrb.mxu1 %v8307_v15  ;;  %v4371_v50 = vadd.f32 %v4370_v19, %v4369_v43  ;;  %v4416_v15 = vrot.slane %v4401_v45, 4 }
 0x3e1   : > { %5334 = vmatpush.bf16.msrb.mxu2 %v8315_v55  ;;  %v4403_v56 = vmul.f32 %v9758_v63, %v4364_v49  ;;  %v4384_v55 = vrot.slane %v4383_v51, 1  ;;  %v4391_v53 = vrot.slane %v4390_v48, 1  ;;  %v4418_v3 = vrot.slane %v4405_v59, 4 }
 0x3e2   : > { %5347 = vmatpush.bf16.msrb.mxu3 %v8323_v62  ;;  %v4420_v58 = vsel %vm4259_vm0, %v4400_v12, %v4416_v15  ;;  %v4404_v61 = vmul.f32 %v9758_v63, %v4371_v50  ;;  %v4641_v15 = vperm.slane %v9803_v44, 0 }
 0x3e3   : > { %5309 = vmatpush.bf16.msrb.mxu0 %v8298_v13  ;;  %v4417_v18 = vrot.slane %v4403_v56, 4  ;;  %v9771_v62 = vsub.f32 %v9733_v16, %v4420_v58  ;;  %v4385_v0 = vadd.f32 %v4384_v55, %v4383_v51  ;;  %v4392_v33 = vadd.f32 %v4391_v53, %v4390_v48 }
 0x3e4   : > { %5322 = vmatpush.bf16.msrb.mxu1 %v8306_v54  ;;  %v4422_v31 = vsel %vm4259_vm0, %v4404_v61, %v4418_v3 }
 0x3e5   : > { %5335 = vmatpush.bf16.msrb.mxu2 %v8314_v29  ;;  %v4421_v2 = vsel %vm4259_vm0, %v4402_v52, %v4417_v18  ;;  %v4432_v27 = vmul.f32 %v9771_v62, %v9771_v62  ;;  %v4406_v4 = vmul.f32 %v9758_v63, %v4385_v0  ;;  %v4407_v6 = vmul.f32 %v9758_v63, %v4392_v33  ;;  %v9810_v52 = vld [vmem:[%s10012_s4] sm:$0xff] }
 0x3e6   : > { %5348 = vmatpush.bf16.msrb.mxu3 %v8322_v32  ;;  %v9777_v60 = vsub.f32 %v9735_v1, %v4421_v2  ;;  %v9785_v7 = vsub.f32 %v9738_v28, %v4422_v31  ;;  %v4649_v18 = vrot.slane %v4642_v11, 4 }
 0x3e7   : > { %4440 = vst [vmem:[#allocation1] ss:$2 sm:$0xff] %v4432_v27  ;;  %v4419_v9 = vrot.slane %v4407_v6, 4 }
 0x3e8   : > { %v4433_v16 = vmul.f32 %v9777_v60, %v9777_v60  ;;  %v4434_v35 = vmul.f32 %v9785_v7, %v9785_v7 }
 0x3e9   : > { %v4423_v1 = vsel %vm4259_vm0, %v4406_v4, %v4419_v9  ;;  %v4668_v4 = vperm.slane %v9810_v52, 1 }
 0x3ea   : > { %4442 = vst [vmem:[#allocation1 + $0x10] ss:$2 sm:$0xff] %v4433_v16  ;;  %v9791_v26 = vsub.f32 %v9742_v30, %v4423_v1 }
 0x3eb   : > { %4444 = vst [vmem:[#allocation1 + $0x20] ss:$2 sm:$0xff] %v4434_v35 }
 0x3ec   : > { %v4435_v57 = vmul.f32 %v9791_v26, %v9791_v26 }
 0x3ee   : > { %v4447_v8 = vld.sshfl [vmem:[#allocation1] sm:$0xff pattern:$0x75316420]  ;;  %v4448_v40 = vld.sshfl [vmem:[#allocation1 + $0x8] sm:$0xff pattern:$0x75316420] }
 0x3ef   : > { %v4463_v10 = vsel %vm4259_vm0, %v4447_v8, 0.0  ;;  %v4470_v28 = vsel %vm4259_vm0, %v4448_v40, 0.0  ;;  %4446 = vst [vmem:[#allocation1 + $0x30] ss:$2 sm:$0xff] %v4435_v57  ;;  %v4644_v57 = vperm.slane %v9803_v44, 3 }
 0x3f0   : > { %v4464_v13 = vrot.slane %v4463_v10, 4  ;;  %v4471_v54 = vrot.slane %v4470_v28, 4 }
 0x3f1   : > { %v4449_v21 = vld.sshfl [vmem:[#allocation1 + $0x10] sm:$0xff pattern:$0x75316420]  ;;  %v4450_v25 = vld.sshfl [vmem:[#allocation1 + $0x18] sm:$0xff pattern:$0x75316420] }
 0x3f2   : > { %v4477_v22 = vsel %vm4259_vm0, %v4449_v21, 0.0  ;;  %v4465_v42 = vadd.f32 %v4464_v13, %v4463_v10  ;;  %v4472_v30 = vadd.f32 %v4471_v54, %v4470_v28  ;;  %v4484_v32 = vsel %vm4259_vm0, %v4450_v25, 0.0  ;;  %v4451_v17 = vld.sshfl [vmem:[#allocation1 + $0x20] sm:$0xff pattern:$0x75316420] }
 0x3f3   : > { %v4478_v29 = vrot.slane %v4477_v22, 4  ;;  %v4485_v20 = vrot.slane %v4484_v32, 4  ;;  %v4491_v43 = vsel %vm4259_vm0, %v4451_v17, 0.0  ;;  %v4452_v45 = vld.sshfl [vmem:[#allocation1 + $0x28] sm:$0xff pattern:$0x75316420] }
 0x3f4   : > { %v4466_v37 = vrot.slane %v4465_v42, 2  ;;  %v4473_v38 = vrot.slane %v4472_v30, 2  ;;  %v4492_v36 = vrot.slane %v4491_v43, 4  ;;  %v4498_v55 = vsel %vm4259_vm0, %v4452_v45, 0.0 }
 0x3f5   : > { %v4479_v39 = vadd.f32 %v4478_v29, %v4477_v22  ;;  %v4486_v5 = vadd.f32 %v4485_v20, %v4484_v32  ;;  %v4499_v33 = vrot.slane %v4498_v55, 4  ;;  %v4667_v13 = vperm.slane %v9810_v52, 0 }
 0x3f6   : > { %v4467_v34 = vadd.f32 %v4466_v37, %v4465_v42  ;;  %v4474_v14 = vadd.f32 %v4473_v38, %v4472_v30  ;;  %v4453_v48 = vld.sshfl [vmem:[#allocation1 + $0x30] sm:$0xff pattern:$0x75316420]  ;;  %v4493_v24 = vadd.f32 %v4492_v36, %v4491_v43  ;;  %v4454_v8 = vld.sshfl [vmem:[#allocation1 + $0x38] sm:$0xff pattern:$0x75316420]  ;;  %v9838_v20 = vsel %vm4259_vm0, %v4641_v15, %v4649_v18 }
 0x3f7   : > { %v4480_v41 = vrot.slane %v4479_v39, 2  ;;  %v4487_v47 = vrot.slane %v4486_v5, 2  ;;  %v4505_v2 = vsel %vm4259_vm0, %v4453_v48, 0.0  ;;  %v4500_v9 = vadd.f32 %v4499_v33, %v4498_v55  ;;  %v8305_v48 = vld [vmem:[#allocation3 + $0x158] sm:$0xff] }
 0x3f8   : > { %v4468_v19 = vrot.slane %v4467_v34, 1  ;;  %v4475_v23 = vrot.slane %v4474_v14, 1  ;;  %v4494_v0 = vrot.slane %v4493_v24, 2  ;;  %v4506_v35 = vrot.slane %v4505_v2, 4  ;;  %v8313_v55 = vld [vmem:[#allocation3 + $0x198] sm:$0xff]  ;;  %5323 = vmatpush.bf16.msrb.mxu1 %v8305_v48  ;;  %v8310_v48 = vld [vmem:[#allocation3 + $0x180] sm:$0xff] }
 0x3f9   : > { %v4481_v12 = vadd.f32 %v4480_v41, %v4479_v39  ;;  %v4488_v49 = vadd.f32 %v4487_v47, %v4486_v5  ;;  %v4501_v28 = vrot.slane %v4500_v9, 2  ;;  %v4675_v54 = vrot.slane %v4668_v4, 4  ;;  %5336 = vmatpush.bf16.msrb.mxu2 %v8313_v55  ;;  %v8312_v4 = vld [vmem:[#allocation3 + $0x190] sm:$0xff] }
 0x3fa   : > { %v4469_v46 = vadd.f32 %v4468_v19, %v4467_v34  ;;  %v4476_v50 = vadd.f32 %v4475_v23, %v4474_v14  ;;  %v4495_v16 = vadd.f32 %v4494_v0, %v4493_v24  ;;  %v4507_v21 = vadd.f32 %v4506_v35, %v4505_v2  ;;  %v8304_v0 = vld [vmem:[#allocation3 + $0x150] sm:$0xff] }
 0x3fb   : > { %v4482_v51 = vrot.slane %v4481_v12, 1  ;;  %v4489_v56 = vrot.slane %v4488_v49, 1  ;;  %v4502_v22 = vadd.f32 %v4501_v28, %v4500_v9  ;;  %v4512_v42 = vsel %vm4259_vm0, %v4454_v8, 0.0 }
 0x3fc   : > { %v4519_v53 = vmul.f32 %v4469_v46, %v9758_v63  ;;  %v4520_v58 = vmul.f32 %v4476_v50, %v9758_v63  ;;  %v4496_v10 = vrot.slane %v4495_v16, 1  ;;  %v4508_v32 = vrot.slane %v4507_v21, 2  ;;  %5324 = vmatpush.bf16.msrb.mxu1 %v8304_v0 }
 0x3fd   : > { %v4483_v61 = vadd.f32 %v4482_v51, %v4481_v12  ;;  %v4490_v59 = vadd.f32 %v4489_v56, %v4488_v49  ;;  %v4503_v30 = vrot.slane %v4502_v22, 1  ;;  %v9841_v37 = vsel %vm4259_vm0, %v4667_v13, %v4675_v54  ;;  %v8297_v51 = vld [vmem:[#allocation3 + $0x118] sm:$0xff]  ;;  %5337 = vmatpush.bf16.msrb.mxu2 %v8312_v4 }
 0x3fe   : > { %v9816_v3 = vadd.f32 1e-05, %v4519_v53  ;;  %v9818_v27 = vadd.f32 1e-05, %v4520_v58  ;;  %v4497_v25 = vadd.f32 %v4496_v10, %v4495_v16  ;;  %v4643_v38 = vperm.slane %v9803_v44, 2  ;;  %v8321_v53 = vld [vmem:[#allocation3 + $0x1d8] sm:$0xff]  ;;  %5310 = vmatpush.bf16.msrb.mxu0 %v8297_v51 }
 0x3ff   : > { %v4521_v6 = vmul.f32 %v4483_v61, %v9758_v63  ;;  %v4522_v31 = vmul.f32 %v4490_v59, %v9758_v63  ;;  %v4513_v39 = vrot.slane %v4512_v42, 4  ;;  %v4650_v34 = vrot.slane %v4644_v57, 4  ;;  %v8296_v59 = vld [vmem:[#allocation3 + $0x110] sm:$0xff]  ;;  %5349 = vmatpush.bf16.msrb.mxu3 %v8321_v53 }
 0x400   : > { %8376 = vrsqrt.f32 %v9816_v3  ;;  %v4523_v29 = vmul.f32 %v4497_v25, %v9758_v63  ;;  %v4504_v14 = vadd.f32 %v4503_v30, %v4502_v22  ;;  %vm4541_vm2 = vweird.f32 %v9816_v3  ;;  %v8295_v22 = vld [vmem:[#allocation3 + $0x108] sm:$0xff] }
 0x401   : > { %v9824_v1 = vadd.f32 1e-05, %v4521_v6  ;;  %8378 = vrsqrt.f32 %v9818_v27  ;;  %v9828_v40 = vadd.f32 1e-05, %v4522_v31  ;;  %vm4551_vm3 = vweird.f32 %v9818_v27  ;;  %v8320_v6 = vld [vmem:[#allocation3 + $0x1d0] sm:$0xff] }
 0x402   : > { %v9848_v41 = vadd.f32 1e-05, %v4523_v29  ;;  %v4670_v19 = vperm.slane %v9810_v52, 3  ;;  %v4524_v45 = vmul.f32 %v4504_v14, %v9758_v63  ;;  %v4509_v49 = vadd.f32 %v4508_v32, %v4507_v21  ;;  %5311 = vmatpush.bf16.msrb.mxu0 %v8296_v59  ;;  %v8311_v32 = vld [vmem:[#allocation3 + $0x188] sm:$0xff] }
 0x403   : > { %8380 = vrsqrt.f32 %v9824_v1  ;;  %v4514_v15 = vadd.f32 %v4513_v39, %v4512_v42  ;;  %vm4561_vm6 = vweird.f32 %v9824_v1  ;;  %vm4571_vm9 = vweird.f32 %v9828_v40  ;;  %v8303_v42 = vld [vmem:[#allocation3 + $0x148] sm:$0xff]  ;;  %5350 = vmatpush.bf16.msrb.mxu3 %v8320_v6  ;;  %5338 = vmatpush.bf16.msrb.mxu2 %v8311_v32 }
 0x404   : > { %8382 = vrsqrt.f32 %v9828_v40  ;;  %v9869_v58 = vadd.f32 1e-05, %v4524_v45  ;;  %v4510_v8 = vrot.slane %v4509_v49, 1  ;;  %v4654_v21 = vsel %vm4259_vm0, %v4643_v38, %v4650_v34  ;;  %v8319_v38 = vld [vmem:[#allocation3 + $0x1c8] sm:$0xff]  ;;  %5325 = vmatpush.bf16.msrb.mxu1 %v8303_v42 }
 0x405   : > { %8384 = vrsqrt.f32 %v9848_v41  ;;  %v4515_v10 = vrot.slane %v4514_v15, 2  ;;  %v4669_v25 = vperm.slane %v9810_v52, 2  ;;  %v4676_v29 = vrot.slane %v4670_v19, 4 }
 0x406   : > { %v9835_v17 = vpop.eup %8376  ;;  %8386 = vrsqrt.f32 %v9869_v58  ;;  %vm4581_vm14 = vweird.f32 %v9848_v41  ;;  %v4511_v14 = vadd.f32 %v4510_v8, %v4509_v49  ;;  %5312 = vmatpush.bf16.msrb.mxu0 %v8295_v22  ;;  %vm4591_vm15 = vweird.f32 %v9869_v58 }
 0x407   : > { %v9844_v43 = vpop.eup %8378  ;;  %v4536_v5 = vmul.f32 %v9835_v17, %v9816_v3  ;;  %vm4542_vm4 = vweird.f32 %v9835_v17  ;;  %v4516_v45 = vadd.f32 %v4515_v10, %v4514_v15  ;;  %5351 = vmatpush.bf16.msrb.mxu3 %v8319_v38  ;;  %v8318_v15 = vld [vmem:[#allocation3 + $0x1c0] sm:$0xff]  ;;  %5339 = vmatpush.bf16.msrb.mxu2 %v8310_v48  ;;  %v4646_v6 = vperm.slane %v9803_v44, 5 }
 0x408   : > { %v4546_v36 = vmul.f32 %v9844_v43, %v9818_v27  ;;  %vm4552_vm5 = vweird.f32 %v9844_v43  ;;  %vm9880_vm8 = vmor %vm4541_vm2, %vm4542_vm4  ;;  %v4525_v49 = vmul.f32 %v4511_v14, %v9758_v63  ;;  %v4645_v10 = vperm.slane %v9803_v44, 4 }
 0x409   : > { %v9850_v47 = vpop.eup %8380  ;;  %v4537_v11 = vmul.f32 %v9835_v17, %v4536_v5  ;;  %vm9891_vm11 = vmor %vm4551_vm3, %vm4552_vm5  ;;  %v4671_v22 = vperm.slane %v9810_v52, 4 }
 0x40a   : > { %v9857_v23 = vpop.eup %8382  ;;  %v4556_v12 = vmul.f32 %v9850_v47, %v9824_v1  ;;  %v4547_v46 = vmul.f32 %v9844_v43, %v4546_v36  ;;  %vm4562_vm7 = vweird.f32 %v9850_v47  ;;  %v9940_v53 = vadd.f32 1e-05, %v4525_v49 }
 0x40b   : > { %v4566_v50 = vmul.f32 %v9857_v23, %v9828_v40  ;;  %v4538_v56 = vmul.f32 0.5, %v4537_v11  ;;  %vm4572_vm10 = vweird.f32 %v9857_v23  ;;  %v9895_v28 = vpop.eup %8384  ;;  %vm9902_vm12 = vmor %vm4561_vm6, %vm4562_vm7  ;;  %5352 = vmatpush.bf16.msrb.mxu3 %v8318_v15  ;;  %v4648_v15 = vperm.slane %v9803_v44, 7 }
 0x40c   : > { %v4557_v24 = vmul.f32 %v9850_v47, %v4556_v12  ;;  %v4548_v18 = vmul.f32 0.5, %v4547_v46  ;;  %vm9913_vm13 = vmor %vm4571_vm9, %vm4572_vm10  ;;  %v4576_v39 = vmul.f32 %v9895_v28, %v9848_v41  ;;  %v8387_v36 = vpop.eup %8386  ;;  %v8294_v46 = vld [vmem:[#allocation3 + $0x100] sm:$0xff]  ;;  %vm4582_vm1 = vweird.f32 %v9895_v28 }
 0x40d   : > { %v4567_v61 = vmul.f32 %v9857_v23, %v4566_v50  ;;  %v4539_v33 = vsub.f32 1.5, %v4538_v56  ;;  %v4586_v50 = vmul.f32 %v8387_v36, %v9869_v58  ;;  %vm4592_vm2 = vweird.f32 %v8387_v36  ;;  %5313 = vmatpush.bf16.msrb.mxu0 %v8294_v46  ;;  %vm9955_vm3 = vmor %vm4581_vm14, %vm4582_vm1 }
 0x40e   : > { %v4558_v2 = vmul.f32 0.5, %v4557_v24  ;;  %v4549_v16 = vsub.f32 1.5, %v4548_v18  ;;  %v4577_v12 = vmul.f32 %v9895_v28, %v4576_v39  ;;  %v4517_v24 = vrot.slane %v4516_v45, 1  ;;  %vm9962_vm4 = vmor %vm4591_vm15, %vm4592_vm2 }
 0x40f   : > { %v4568_v9 = vmul.f32 0.5, %v4567_v61  ;;  %v4540_v35 = vmul.f32 %v9835_v17, %v4539_v33  ;;  %v4587_v55 = vmul.f32 %v8387_v36, %v4586_v50  ;;  %8388 = vrsqrt.f32 %v9940_v53 }
 0x410   : > { %v4559_v3 = vsub.f32 1.5, %v4558_v2  ;;  %v4550_v13 = vmul.f32 %v9844_v43, %v4549_v16  ;;  %v4578_v56 = vmul.f32 0.5, %v4577_v12  ;;  %v4518_v59 = vadd.f32 %v4517_v24, %v4516_v45 }
 0x411   : > { %v4569_v27 = vsub.f32 1.5, %v4568_v9  ;;  %v4544_v5 = vsel %vm9880_vm8, %v9835_v17, %v4540_v35  ;;  %v4588_v2 = vmul.f32 0.5, %v4587_v55  ;;  %vm4601_vm7 = vweird.f32 %v9940_v53 }
 0x412   : > { %v4560_v30 = vmul.f32 %v9850_v47, %v4559_v3  ;;  %v4554_v40 = vsel %vm9891_vm11, %v9844_v43, %v4550_v13  ;;  %v8302_v43 = vld [vmem:[#allocation3 + $0x140] sm:$0xff]  ;;  %v4579_v61 = vsub.f32 1.5, %v4578_v56  ;;  %v4526_v31 = vmul.f32 %v4518_v59, %v9758_v63 }
 0x413   : > { %v4570_v34 = vmul.f32 %v9857_v23, %v4569_v27  ;;  %v4623_v19 = vrot.slane %v4554_v40, 4  ;;  %5326 = vmatpush.bf16.msrb.mxu1 %v8302_v43  ;;  %v4589_v9 = vsub.f32 1.5, %v4588_v2  ;;  %v4672_v63 = vperm.slane %v9810_v52, 5 }
 0x414   : > { %v4564_v11 = vsel %vm9902_vm12, %v9850_v47, %v4560_v30  ;;  %v4580_v4 = vmul.f32 %v9895_v28, %v4579_v61  ;;  %v4651_v13 = vrot.slane %v4646_v6, 4  ;;  %v4652_v61 = vrot.slane %v4648_v15, 4 }
 0x415   : > { %v4574_v17 = vsel %vm9913_vm13, %v9857_v23, %v4570_v34  ;;  %v4627_v51 = vsel %vm4259_vm0, %v4544_v5, %v4623_v19  ;;  %v4590_v8 = vmul.f32 %v8387_v36, %v4589_v9  ;;  %v9971_v58 = vpop.eup %8388  ;;  %v4677_v42 = vrot.slane %v4672_v63, 4 }
 0x416   : > { %v4624_v47 = vrot.slane %v4574_v17, 4  ;;  %v4635_v23 = vmul.f32 %v4627_v51, %v9771_v62  ;;  %v4680_v62 = vsel %vm4259_vm0, %v4669_v25, %v4676_v29  ;;  %v4584_v41 = vsel %vm9955_vm3, %v9895_v28, %v4580_v4 }
 0x417   : > { %v4596_v28 = vmul.f32 %v9971_v58, %v9940_v53  ;;  %v4655_v29 = vsel %vm4259_vm0, %v4645_v10, %v4651_v13  ;;  %v4681_v5 = vsel %vm4259_vm0, %v4671_v22, %v4677_v42  ;;  %vm4602_vm8 = vweird.f32 %v9971_v58 }
 0x418   : > { %v4628_v18 = vsel %vm4259_vm0, %v4564_v11, %v4624_v47  ;;  %v4661_v0 = vmul.f32 %v9838_v20, %v4635_v23  ;;  %vm4603_vm12 = vmor %vm4601_vm7, %vm4602_vm8  ;;  %v4674_v23 = vperm.slane %v9810_v52, 7  ;;  %v4673_v2 = vperm.slane %v9810_v52, 6 }
 0x419   : > { %v4636_v33 = vmul.f32 %v4628_v18, %v9777_v60  ;;  %v4597_v32 = vmul.f32 %v9971_v58, %v4596_v28  ;;  %v4647_v18 = vperm.slane %v9803_v44, 6 }
 0x41a   : > { %v4687_v16 = vadd.f32 %v9841_v37, %v4661_v0  ;;  %v4534_v37 = vadd.f32 1e-05, %v4526_v31 }
 0x41b   : > { %v4662_v20 = vmul.f32 %v4654_v21, %v4636_v33  ;;  %v4594_v21 = vsel %vm9962_vm4, %v8387_v36, %v4590_v8  ;;  %v4598_v40 = vmul.f32 0.5, %v4597_v32  ;;  %v4656_v31 = vsel %vm4259_vm0, %v4647_v18, %v4652_v61 }
 0x41c   : > { %vm4691_vm5 = vcmp.ge.f32.partialorder %v4687_v16, 0.0  ;;  %v4695_v57 = vmul.f32 0.2, %v4687_v16  ;;  %8390 = vrsqrt.f32 %v4534_v37  ;;  %v4625_v25 = vrot.slane %v4594_v21, 4 }
 0x41d   : > { %v4688_v3 = vadd.f32 %v4680_v62, %v4662_v20  ;;  %v4599_v46 = vsub.f32 1.5, %v4598_v40  ;;  %vm4611_vm10 = vweird.f32 %v4534_v37  ;;  %v4678_v62 = vrot.slane %v4674_v23, 4 }
 0x41e   : > { %v4699_v54 = vsel %vm4691_vm5, %v4687_v16, %v4695_v57  ;;  %v4629_v1 = vsel %vm4259_vm0, %v4584_v41, %v4625_v25 }
 0x41f   : > { %vm4692_vm6 = vcmp.ge.f32.partialorder %v4688_v3, 0.0  ;;  %v4696_v27 = vmul.f32 0.2, %v4688_v3  ;;  %4707 = vst [vmem:[#allocation1] ss:$2 sm:$0xff] %v4699_v54  ;;  %v4637_v38 = vmul.f32 %v4629_v1, %v9785_v7  ;;  %v4600_v56 = vmul.f32 %v9971_v58, %v4599_v46 }
 0x420   : > { %v4682_v44 = vsel %vm4259_vm0, %v4673_v2, %v4678_v62 }
 0x421   : > { %v4700_v30 = vsel %vm4692_vm6, %v4688_v3, %v4696_v27  ;;  %v4663_v34 = vmul.f32 %v4655_v29, %v4637_v38  ;;  %v4604_v59 = vsel %vm4603_vm12, %v9971_v58, %v4600_v56  ;;  %v8373_v27 = vld [vmem:[%s10014_s6] ss:$0 sm:$0xff] }
 0x422   : > { %4709 = vst [vmem:[#allocation1 + $0x10] ss:$2 sm:$0xff] %v4700_v30  ;;  %v8391_v39 = vpop.eup %8390 }
 0x423   : > { %v4606_v14 = vmul.f32 %v8391_v39, %v4534_v37  ;;  %v4689_v11 = vadd.f32 %v4681_v5, %v4663_v34  ;;  %vm4612_vm11 = vweird.f32 %v8391_v39 }
 0x424   : > { %vm4613_vm13 = vmor %vm4611_vm10, %vm4612_vm11 }
 0x425   : > { %v4607_v12 = vmul.f32 %v8391_v39, %v4606_v14  ;;  %vm4693_vm9 = vcmp.ge.f32.partialorder %v4689_v11, 0.0  ;;  %v4697_v51 = vmul.f32 0.2, %v4689_v11 }
 0x426   : > { %v4714_v36 = vld.sshfl [vmem:[#allocation1] sm:$0xff pattern:$0x75316420]  ;;  %v4715_v19 = vld.sshfl [vmem:[#allocation1 + $0x8] sm:$0xff pattern:$0x75316420] }
 0x427   : > { %v4730_v45 = vpack.c.bf16 %v4714_v36, %v4714_v36  ;;  %v4731_v17 = vpack.c.bf16 %v4715_v19, %v4715_v19  ;;  %v4608_v47 = vmul.f32 0.5, %v4607_v12  ;;  %v4701_v48 = vsel %vm4693_vm9, %v4689_v11, %v4697_v51 }
 0x428   : > { %4711 = vst [vmem:[#allocation1 + $0x20] ss:$2 sm:$0xff] %v4701_v48 }
 0x429   : > { %v4716_v43 = vld.sshfl [vmem:[#allocation1 + $0x10] sm:$0xff pattern:$0x75316420]  ;;  %v4717_v50 = vld.sshfl [vmem:[#allocation1 + $0x18] sm:$0xff pattern:$0x75316420]  ;;  %5262 = vmatmul.bf16.vlgmr.msra.gmra.mxu0 %v4730_v45  ;;  %5275 = vmatmul.bf16.vlgmr.msra.gmra.mxu1 %v4731_v17 }
 0x42a   : > { %v4732_v7 = vpack.c.bf16 %v4716_v43, %v4716_v43  ;;  %v4733_v49 = vpack.c.bf16 %v4717_v50, %v4717_v50  ;;  %v4609_v24 = vsub.f32 1.5, %v4608_v47 }
 0x42c   : > { %5288 = vmatmul.bf16.vlgmr.msra.gmra.mxu2 %v4732_v7  ;;  %5301 = vmatmul.bf16.vlgmr.msra.gmra.mxu3 %v4733_v49  ;;  %v4610_v55 = vmul.f32 %v8391_v39, %v4609_v24 }
 0x42e   : > { %v4614_v0 = vsel %vm4613_vm13, %v8391_v39, %v4610_v55 }
 0x42f   : > { %v4626_v33 = vrot.slane %v4614_v0, 4  ;;  %v4718_v4 = vld.sshfl [vmem:[#allocation1 + $0x20] sm:$0xff pattern:$0x75316420] }
 0x430   : > { %v4719_v6 = vld.sshfl [vmem:[#allocation1 + $0x28] sm:$0xff pattern:$0x75316420]  ;;  %v4734_v20 = vpack.c.bf16 %v4718_v4, %v4718_v4 }
 0x431   : > { %v4630_v53 = vsel %vm4259_vm0, %v4604_v59, %v4626_v33  ;;  %v4735_v60 = vpack.c.bf16 %v4719_v6, %v4719_v6 }
 0x432   : > { %v4638_v16 = vmul.f32 %v4630_v53, %v9791_v26 }
 0x434   : > { %v4664_v9 = vmul.f32 %v4656_v31, %v4638_v16 }
 0x436   : > { %v4690_v35 = vadd.f32 %v4682_v44, %v4664_v9 }
 0x438   : > { %vm4694_vm14 = vcmp.ge.f32.partialorder %v4690_v35, 0.0  ;;  %v4698_v63 = vmul.f32 0.2, %v4690_v35 }
 0x439   : > { %5314 = vmatmul.bf16.vlgmr.msrb.gmra.mxu0 %v4734_v20  ;;  %5327 = vmatmul.bf16.vlgmr.msrb.gmra.mxu1 %v4735_v60 }
 0x43a   : > { %v4702_v52 = vsel %vm4694_vm14, %v4690_v35, %v4698_v63 }
 0x43b   : > { %4713 = vst [vmem:[#allocation1 + $0x30] ss:$2 sm:$0xff] %v4702_v52 }
 0x442   : > { %v4720_v37 = vld.sshfl [vmem:[#allocation1 + $0x30] sm:$0xff pattern:$0x75316420]  ;;  %v4721_v57 = vld.sshfl [vmem:[#allocation1 + $0x38] sm:$0xff pattern:$0x75316420] }
 0x443   : > { %v4736_v3 = vpack.c.bf16 %v4720_v37, %v4720_v37  ;;  %v4737_v8 = vpack.c.bf16 %v4721_v57, %v4721_v57 }
 0x445   : > { %5340 = vmatmul.bf16.vlgmr.msrb.gmra.mxu2 %v4736_v3  ;;  %5353 = vmatmul.bf16.vlgmr.msrb.gmra.mxu3 %v4737_v8 }
 0x4a6   : > { %v5263_v41 = vpop.f32.mrf.mxu0  ;;  %v5276_v26 = vpop.f32.mrf.mxu1 }
 0x4a7   : > { %v5264_v22 = vadd.f32 %v8373_v27, %v5263_v41 }
 0x4a9   : > { %v5277_v30 = vadd.f32 %v5276_v26, %v5264_v22 }
 0x4ae   : > { %v5265_v58 = vpop.f32.mrf.mxu0  ;;  %v5278_v54 = vpop.f32.mrf.mxu1 }
 0x4af   : > { %v5289_v10 = vpop.f32.mrf.mxu2  ;;  %v5302_v13 = vpop.f32.mrf.mxu3 }
 0x4b0   : > { %v5290_v1 = vadd.f32 %v5289_v10, %v5277_v30 }
 0x4b2   : > { %v5303_v38 = vadd.f32 %v5302_v13, %v5290_v1 }
 0x4b6   : > { %v5315_v42 = vpop.f32.mrf.mxu0  ;;  %v5328_v28 = vpop.f32.mrf.mxu1 }
 0x4b7   : > { %v5291_v21 = vpop.f32.mrf.mxu2  ;;  %v5304_v25 = vpop.f32.mrf.mxu3  ;;  %v5316_v39 = vadd.f32 %v5315_v42, %v5303_v38 }
 0x4b9   : > { %v5329_v5 = vadd.f32 %v5328_v28, %v5316_v39 }
 0x4be   : > { %v5317_v29 = vpop.f32.mrf.mxu0  ;;  %v5330_v32 = vpop.f32.mrf.mxu1 }
 0x4c8   : > { %v5341_v40 = vpop.f32.mrf.mxu2  ;;  %v5354_v34 = vpop.f32.mrf.mxu3 }
 0x4c9   : > { %v5342_v14 = vadd.f32 %v5341_v40, %v5329_v5 }
 0x4cb   : > { %v5355_v36 = vadd.f32 %v5354_v34, %v5342_v14 }
 0x4cd   : > { %v5358_v19 = vsub.f32 0.0, %v5355_v36 }
 0x4cf   : > { %v5359_v11 = vmul.f32 1.442695, %v5358_v19 }
 0x4d0   : > { %v5343_v12 = vpop.f32.mrf.mxu2  ;;  %v5356_v45 = vpop.f32.mrf.mxu3 }
 0x4d1   : > { %8392 = vpow2.f32 %v5359_v11 }
 0x4d7   : > { %v8393_v17 = vpop.eup %8392 }
 0x4d8   : > { %v5361_v46 = vadd.f32 1.0, %v8393_v17 }
 0x4da   : > { %8394 = vrcp.f32 %v5361_v46  ;;  %v5373_v49 = vand.u32 2147483648, %v5361_v46  ;;  %v5371_v47 = vand.u32 2147483647, %v5361_v46  ;;  %vm5367_vm15 = vweird.f32 %v5361_v46 }
 0x4dc   : > { %v5374_v15 = vor.u32 1.1754944e-38, %v5373_v49  ;;  %vm5372_vm2 = vcmp.eq.f32.partialorder %v5371_v47, 8.507059e+37 }
 0x4e0   : > { %v8395_v43 = vpop.eup %8394 }
 0x4e1   : > { %v5363_v50 = vmul.f32 %v8395_v43, %v5361_v46  ;;  %vm5368_vm0 = vweird.f32 %v8395_v43 }
 0x4e2   : > { %vm5369_vm1 = vmor %vm5367_vm15, %vm5368_vm0 }
 0x4e3   : > { %v5364_v7 = vsub.f32 1.0, %v5363_v50 }
 0x4e5   : > { %v5365_v51 = vmul.f32 %v8395_v43, %v5364_v7 }
 0x4e7   : > { %v5366_v48 = vadd.f32 %v8395_v43, %v5365_v51 }
 0x4e9   : > { %v5370_v56 = vsel %vm5369_vm1, %v8395_v43, %v5366_v48 }
 0x4ea   : > { %v5375_v24 = vsel %vm5372_vm2, %v5374_v15, %v5370_v56 }
 0x4eb   : > { %5377 = vst [vmem:[%s10015_s7] sm:$0xf] %v5375_v24 }
 0x4ec PF: > { %s18_s24 = sadd.s32 1, %s8436_s24  }
 0x4ed   : > { %p15_p10 = scmp.ge.s32.totalorder %s18_s24, 4  }
 0x4ef   :  { %17 = sbr.rel (!%p15_p10) target bundleno = 1 (0x1), region = 100 }
 0x4f4   :  { %5389 = vsyncpa [#allocation4], 1 }
 0x4f5   :  { %5391 = vsyncpa [#allocation4 + $0x1], 1 }

</bundles_post_ra>
